<compile_context>
chip_gen: v7x
topology: tpu7x:2x2x1
jax: 0.10.0
libtpu: 0.0.40
codegen_flags: <defaults>
</compile_context>

<pallas_src>
import jax
import jax.numpy as jnp
from jax.experimental import pallas as pl
from jax.experimental.pallas import tpu as pltpu

# Total halo the fused network needs around the image:
# conv1 (5x5, pad 2) + conv2 (3x3, pad 1) + conv3 (3x3, pad 1) = 4.
_PAD = 4


def _make_fused_kernel(H, Wc):
    """Fused ESPCN kernel body for one batch element.

    Every activation is a zero-padded canvas (C, Hc, Wc), Hc = H + 2*_PAD,
    Wc = W + 2*_PAD, stored flattened as (C, Hc*Wc).  Each conv output is
    accumulated over the contiguous flat range covering canvas rows
    [_PAD, _PAD + H) (full canvas width); halo columns are zeroed with a
    precomputed column mask before being reused as the next layer's input.
    """
    L = H * Wc            # contiguous flat range of the "interesting" rows
    ROW0 = _PAD * Wc      # flat offset of canvas row _PAD

    def conv_taps(read_slice, w_ref, b_ref, ksize, pad):
        cout = w_ref.shape[1]
        acc = jnp.zeros((cout, L), jnp.float32)
        for kh in range(ksize):
            for kw in range(ksize):
                # Input needed for this tap is the same contiguous flat range,
                # shifted by a constant offset -> plain static lane slice.
                s = (_PAD + kh - pad) * Wc + (kw - pad)
                acc = acc + jnp.dot(
                    w_ref[kh * ksize + kw],          # (Cout, Cin)
                    read_slice(s),                   # (Cin,  L)
                    preferred_element_type=jnp.float32,
                )
        return acc + b_ref[...]                      # bias (Cout, 1) broadcast

    def kernel(x_ref, mask_ref, w1_ref, b1_ref, w2_ref, b2_ref, w3_ref, b3_ref,
               o_ref, a1_ref, a2_ref):
        # Zero the VMEM canvases: the never-written border rows act as the
        # conv zero-padding for the next layer.  (Cheap: a few tens of vregs.)
        a1_ref[...] = jnp.zeros_like(a1_ref)
        a2_ref[...] = jnp.zeros_like(a2_ref)

        mask = mask_ref[...]   # (1, L): 1.0 on image columns, 0.0 on halo cols

        # conv1 5x5 + ReLU  (Cin -> 64); intermediate stays in VMEM.
        y1 = conv_taps(lambda s: x_ref[0, :, s:s + L], w1_ref, b1_ref, 5, 2)
        a1_ref[:, ROW0:ROW0 + L] = jnp.maximum(y1, 0.0) * mask

        # conv2 3x3 + ReLU  (64 -> 32); intermediate stays in VMEM.
        y2 = conv_taps(lambda s: a1_ref[:, s:s + L], w2_ref, b2_ref, 3, 1)
        a2_ref[:, ROW0:ROW0 + L] = jnp.maximum(y2, 0.0) * mask

        # conv3 3x3 + ReLU  (32 -> r*r); store the lane-dense (r*r, H*Wc) slab,
        # halo columns get sliced off cheaply in the wrapper.
        y3 = conv_taps(lambda s: a2_ref[:, s:s + L], w3_ref, b3_ref, 3, 1)
        o_ref[0] = jnp.maximum(y3, 0.0).astype(o_ref.dtype)

    return kernel


def espcn_forward(params, x_nchw, scale):
    """ESPCN forward pass. x_nchw: (N, Cin, H, W) -> (N, 1, H*scale, W*scale)."""
    N, Cin, H, W = x_nchw.shape
    rr = scale * scale
    Hc, Wc = H + 2 * _PAD, W + 2 * _PAD
    F = Hc * Wc
    L = H * Wc

    # Pad input channels up to a multiple of 8 so conv1's contraction dim is
    # sublane-aligned; the padded channels are zero so results are unchanged.
    Cin_p = -(-Cin // 8) * 8

    # Zero-padded flat input canvas.  Only the *small* Cin-channel input pays
    # this extra HBM pass; the 64/32-channel intermediates never leave VMEM.
    x_canvas = jnp.pad(
        x_nchw,
        ((0, 0), (0, Cin_p - Cin), (_PAD, _PAD), (_PAD, _PAD)),
    ).reshape(N, Cin_p, F)

    # Column mask (shared by all layers, same canvas geometry): 1.0 on real
    # image columns, 0.0 on halo columns, laid out per flattened canvas row.
    col = jnp.arange(Wc)
    mask = ((col >= _PAD) & (col < _PAD + W)).astype(jnp.float32)
    mask = jnp.tile(mask, (H,)).reshape(1, L)

    # Per-tap weight layout (KH*KW, Cout, Cin) from PyTorch OIHW weights.
    def taps(w, ci_pad=None):
        co, ci, kh, kw = w.shape
        t = jnp.transpose(w, (2, 3, 0, 1)).reshape(kh * kw, co, ci)
        if ci_pad is not None and ci_pad > ci:
            t = jnp.pad(t, ((0, 0), (0, 0), (0, ci_pad - ci)))
        return t

    w1 = taps(params["w1"], Cin_p)
    w2 = taps(params["w2"])
    w3 = taps(params["w3"])
    b1 = params["b1"].reshape(-1, 1)
    b2 = params["b2"].reshape(-1, 1)
    b3 = params["b3"].reshape(-1, 1)

    flops = 2 * N * H * W * (25 * Cin_p * 64 + 9 * 64 * 32 + 9 * 32 * rr)
    bytes_accessed = 4 * (x_canvas.size + mask.size + w1.size + w2.size
                          + w3.size + b1.size + b2.size + b3.size + N * rr * L)

    out = pl.pallas_call(
        _make_fused_kernel(H, Wc),
        out_shape=jax.ShapeDtypeStruct((N, rr, L), x_nchw.dtype),
        grid=(N,),
        in_specs=[
            pl.BlockSpec((1, Cin_p, F), lambda n: (n, 0, 0)),    # input canvas
            pl.BlockSpec((1, L), lambda n: (0, 0)),              # column mask
            pl.BlockSpec((25, 64, Cin_p), lambda n: (0, 0, 0)),  # conv1 taps
            pl.BlockSpec((64, 1), lambda n: (0, 0)),             # conv1 bias
            pl.BlockSpec((9, 32, 64), lambda n: (0, 0, 0)),      # conv2 taps
            pl.BlockSpec((32, 1), lambda n: (0, 0)),             # conv2 bias
            pl.BlockSpec((9, rr, 32), lambda n: (0, 0, 0)),      # conv3 taps
            pl.BlockSpec((rr, 1), lambda n: (0, 0)),             # conv3 bias
        ],
        out_specs=pl.BlockSpec((1, rr, L), lambda n: (n, 0, 0)),
        scratch_shapes=[
            pltpu.VMEM((64, F), jnp.float32),   # conv1 activation canvas
            pltpu.VMEM((32, F), jnp.float32),   # conv2 activation canvas
        ],
        compiler_params=pltpu.CompilerParams(
            dimension_semantics=("parallel",),
            vmem_limit_bytes=32 * 1024 * 1024,
        ),
        cost_estimate=pl.CostEstimate(
            flops=flops, transcendentals=0, bytes_accessed=bytes_accessed),
    )(x_canvas, mask, w1, b1, w2, b2, w3, b3)

    # Drop the halo columns, then PixelShuffle(scale):
    # (N, r*r, H, W) -> (N, 1, H*r, W*r), channel c = i*r + j -> offset (i, j).
    a3 = out.reshape(N, rr, H, Wc)[:, :, :, _PAD:_PAD + W]
    y = a3.reshape(N, scale, scale, H, W)
    y = jnp.transpose(y, (0, 3, 1, 4, 2))            # (N, H, i, W, j)
    return y.reshape(N, 1, H * scale, W * scale)


def init_espcn_params(key, num_channel, scale, std=0.001):
    """Mirrors ESPCN.weight_init: normal(std=0.001) weights, zero biases.
    Weights kept in PyTorch OIHW layout (Cout, Cin, KH, KW)."""
    k1, k2, k3 = jax.random.split(key, 3)
    return {
        "w1": jax.random.normal(k1, (64, num_channel, 5, 5), jnp.float32) * std,
        "b1": jnp.zeros((64,), jnp.float32),
        "w2": jax.random.normal(k2, (32, 64, 3, 3), jnp.float32) * std,
        "b2": jnp.zeros((32,), jnp.float32),
        "w3": jax.random.normal(k3, (scale * scale, 32, 3, 3), jnp.float32) * std,
        "b3": jnp.zeros((scale * scale,), jnp.float32),
    }


if __name__ == "__main__":
    num_channel = 4
    scale = 2
    N, H, W = 2, 16, 16

    key = jax.random.PRNGKey(0)
    kx, kp = jax.random.split(key)
    x = jax.random.normal(kx, (N, num_channel, H, W), jnp.float32)
    params = init_espcn_params(kp, num_channel, scale)

    fwd = jax.jit(espcn_forward, static_argnames=("scale",))
    out = jax.block_until_ready(fwd(params, x, scale=scale))

    assert out.shape == (N, 1, H * scale, W * scale), out.shape
    assert out.dtype == jnp.float32
    assert bool(jnp.all(jnp.isfinite(out)))
    print("KERNEL_OK")
</pallas_src>

<mosaic_0001>
module attributes {stable_mosaic.version = 11 : i64} {
  func.func @kernel(%arg0: i32, %arg1: memref<1x8x576xf32, #tpu.memory_space<vmem>>, %arg2: memref<1x384xf32, #tpu.memory_space<vmem>>, %arg3: memref<25x64x8xf32, #tpu.memory_space<vmem>>, %arg4: memref<64x1xf32, #tpu.memory_space<vmem>>, %arg5: memref<9x32x64xf32, #tpu.memory_space<vmem>>, %arg6: memref<32x1xf32, #tpu.memory_space<vmem>>, %arg7: memref<9x4x32xf32, #tpu.memory_space<vmem>>, %arg8: memref<4x1xf32, #tpu.memory_space<vmem>>, %arg9: memref<1x4x384xf32, #tpu.memory_space<vmem>>, %arg10: memref<64x576xf32, #tpu.memory_space<vmem>>, %arg11: memref<32x576xf32, #tpu.memory_space<vmem>>) attributes {dimension_semantics = [#tpu.dimension_semantics<parallel>], iteration_bounds = array<i64: 2>, scalar_prefetch = 0 : i64, scratch_operands = 2 : i64, tpu.core_type = #tpu.core_type<tc>, window_params = [{transform_indices = @transform_0, window_bounds = array<i64: 1, 8, 576>}, {pipeline_mode = #tpu.pipeline_mode<synchronous>, transform_indices = @transform_1, window_bounds = array<i64: 1, 384>}, {pipeline_mode = #tpu.pipeline_mode<synchronous>, transform_indices = @transform_2, window_bounds = array<i64: 25, 64, 8>}, {pipeline_mode = #tpu.pipeline_mode<synchronous>, transform_indices = @transform_3, window_bounds = array<i64: 64, 1>}, {pipeline_mode = #tpu.pipeline_mode<synchronous>, transform_indices = @transform_4, window_bounds = array<i64: 9, 32, 64>}, {pipeline_mode = #tpu.pipeline_mode<synchronous>, transform_indices = @transform_5, window_bounds = array<i64: 32, 1>}, {pipeline_mode = #tpu.pipeline_mode<synchronous>, transform_indices = @transform_6, window_bounds = array<i64: 9, 4, 32>}, {pipeline_mode = #tpu.pipeline_mode<synchronous>, transform_indices = @transform_7, window_bounds = array<i64: 4, 1>}, {transform_indices = @transform_8, window_bounds = array<i64: 1, 4, 384>}]} {
    %cst = arith.constant 0.000000e+00 : f32
    %0 = vector.broadcast %cst : f32 to vector<64x576xf32>
    %c0 = arith.constant 0 : index
    %c0_0 = arith.constant 0 : index
    %1 = vector.load %arg10[%c0, %c0_0] : memref<64x576xf32, #tpu.memory_space<vmem>>, vector<64x576xf32>
    tpu.vector_store %arg10[%c0, %c0_0], %0 {strides = array<i32>} : memref<64x576xf32, #tpu.memory_space<vmem>>, vector<64x576xf32>,
    %cst_1 = arith.constant 0.000000e+00 : f32
    %2 = vector.broadcast %cst_1 : f32 to vector<32x576xf32>
    %c0_2 = arith.constant 0 : index
    %c0_3 = arith.constant 0 : index
    %3 = vector.load %arg11[%c0_2, %c0_3] : memref<32x576xf32, #tpu.memory_space<vmem>>, vector<32x576xf32>
    tpu.vector_store %arg11[%c0_2, %c0_3], %2 {strides = array<i32>} : memref<32x576xf32, #tpu.memory_space<vmem>>, vector<32x576xf32>,
    %c0_4 = arith.constant 0 : index
    %c0_5 = arith.constant 0 : index
    %4 = vector.load %arg2[%c0_4, %c0_5] : memref<1x384xf32, #tpu.memory_space<vmem>>, vector<1x384xf32>
    %cst_6 = arith.constant 0.000000e+00 : f32
    %5 = vector.broadcast %cst_6 : f32 to vector<64x384xf32>
    %c0_7 = arith.constant 0 : index
    %c0_8 = arith.constant 0 : index
    %c0_9 = arith.constant 0 : index
    %6 = vector.load %arg3[%c0_7, %c0_8, %c0_9] : memref<25x64x8xf32, #tpu.memory_space<vmem>>, vector<1x64x8xf32>
    %7 = vector.shape_cast %6 : vector<1x64x8xf32> to vector<64x8xf32>
    %c0_10 = arith.constant 0 : index
    %c0_11 = arith.constant 0 : index
    %c46 = arith.constant 46 : index
    %8 = vector.load %arg1[%c0_10, %c0_11, %c46] : memref<1x8x576xf32, #tpu.memory_space<vmem>>, vector<1x8x384xf32>
    %9 = vector.shape_cast %8 : vector<1x8x384xf32> to vector<8x384xf32>
    %cst_12 = arith.constant dense<0.000000e+00> : vector<64x384xf32>
    %10 = tpu.matmul %7, %9, %cst_12 {dimension_numbers = #tpu.dot_dimension_numbers<[1], [0], [0], [1], [0, 0, 1, 1], [], []>} : vector<64x8xf32>, vector<8x384xf32>, vector<64x384xf32> -> vector<64x384xf32>
    %11 = arith.addf %5, %10 : vector<64x384xf32>
    %c1 = arith.constant 1 : index
    %c0_13 = arith.constant 0 : index
    %c0_14 = arith.constant 0 : index
    %12 = vector.load %arg3[%c1, %c0_13, %c0_14] : memref<25x64x8xf32, #tpu.memory_space<vmem>>, vector<1x64x8xf32>
    %13 = vector.shape_cast %12 : vector<1x64x8xf32> to vector<64x8xf32>
    %c0_15 = arith.constant 0 : index
    %c0_16 = arith.constant 0 : index
    %c47 = arith.constant 47 : index
    %14 = vector.load %arg1[%c0_15, %c0_16, %c47] : memref<1x8x576xf32, #tpu.memory_space<vmem>>, vector<1x8x384xf32>
    %15 = vector.shape_cast %14 : vector<1x8x384xf32> to vector<8x384xf32>
    %cst_17 = arith.constant dense<0.000000e+00> : vector<64x384xf32>
    %16 = tpu.matmul %13, %15, %cst_17 {dimension_numbers = #tpu.dot_dimension_numbers<[1], [0], [0], [1], [0, 0, 1, 1], [], []>} : vector<64x8xf32>, vector<8x384xf32>, vector<64x384xf32> -> vector<64x384xf32>
    %17 = arith.addf %11, %16 : vector<64x384xf32>
    %c2 = arith.constant 2 : index
    %c0_18 = arith.constant 0 : index
    %c0_19 = arith.constant 0 : index
    %18 = vector.load %arg3[%c2, %c0_18, %c0_19] : memref<25x64x8xf32, #tpu.memory_space<vmem>>, vector<1x64x8xf32>
    %19 = vector.shape_cast %18 : vector<1x64x8xf32> to vector<64x8xf32>
    %c0_20 = arith.constant 0 : index
    %c0_21 = arith.constant 0 : index
    %c48 = arith.constant 48 : index
    %20 = vector.load %arg1[%c0_20, %c0_21, %c48] : memref<1x8x576xf32, #tpu.memory_space<vmem>>, vector<1x8x384xf32>
    %21 = vector.shape_cast %20 : vector<1x8x384xf32> to vector<8x384xf32>
    %cst_22 = arith.constant dense<0.000000e+00> : vector<64x384xf32>
    %22 = tpu.matmul %19, %21, %cst_22 {dimension_numbers = #tpu.dot_dimension_numbers<[1], [0], [0], [1], [0, 0, 1, 1], [], []>} : vector<64x8xf32>, vector<8x384xf32>, vector<64x384xf32> -> vector<64x384xf32>
    %23 = arith.addf %17, %22 : vector<64x384xf32>
    %c3 = arith.constant 3 : index
    %c0_23 = arith.constant 0 : index
    %c0_24 = arith.constant 0 : index
    %24 = vector.load %arg3[%c3, %c0_23, %c0_24] : memref<25x64x8xf32, #tpu.memory_space<vmem>>, vector<1x64x8xf32>
    %25 = vector.shape_cast %24 : vector<1x64x8xf32> to vector<64x8xf32>
    %c0_25 = arith.constant 0 : index
    %c0_26 = arith.constant 0 : index
    %c49 = arith.constant 49 : index
    %26 = vector.load %arg1[%c0_25, %c0_26, %c49] : memref<1x8x576xf32, #tpu.memory_space<vmem>>, vector<1x8x384xf32>
    %27 = vector.shape_cast %26 : vector<1x8x384xf32> to vector<8x384xf32>
    %cst_27 = arith.constant dense<0.000000e+00> : vector<64x384xf32>
    %28 = tpu.matmul %25, %27, %cst_27 {dimension_numbers = #tpu.dot_dimension_numbers<[1], [0], [0], [1], [0, 0, 1, 1], [], []>} : vector<64x8xf32>, vector<8x384xf32>, vector<64x384xf32> -> vector<64x384xf32>
    %29 = arith.addf %23, %28 : vector<64x384xf32>
    %c4 = arith.constant 4 : index
    %c0_28 = arith.constant 0 : index
    %c0_29 = arith.constant 0 : index
    %30 = vector.load %arg3[%c4, %c0_28, %c0_29] : memref<25x64x8xf32, #tpu.memory_space<vmem>>, vector<1x64x8xf32>
    %31 = vector.shape_cast %30 : vector<1x64x8xf32> to vector<64x8xf32>
    %c0_30 = arith.constant 0 : index
    %c0_31 = arith.constant 0 : index
    %c50 = arith.constant 50 : index
    %32 = vector.load %arg1[%c0_30, %c0_31, %c50] : memref<1x8x576xf32, #tpu.memory_space<vmem>>, vector<1x8x384xf32>
    %33 = vector.shape_cast %32 : vector<1x8x384xf32> to vector<8x384xf32>
    %cst_32 = arith.constant dense<0.000000e+00> : vector<64x384xf32>
    %34 = tpu.matmul %31, %33, %cst_32 {dimension_numbers = #tpu.dot_dimension_numbers<[1], [0], [0], [1], [0, 0, 1, 1], [], []>} : vector<64x8xf32>, vector<8x384xf32>, vector<64x384xf32> -> vector<64x384xf32>
    %35 = arith.addf %29, %34 : vector<64x384xf32>
    %c5 = arith.constant 5 : index
    %c0_33 = arith.constant 0 : index
    %c0_34 = arith.constant 0 : index
    %36 = vector.load %arg3[%c5, %c0_33, %c0_34] : memref<25x64x8xf32, #tpu.memory_space<vmem>>, vector<1x64x8xf32>
    %37 = vector.shape_cast %36 : vector<1x64x8xf32> to vector<64x8xf32>
    %c0_35 = arith.constant 0 : index
    %c0_36 = arith.constant 0 : index
    %c70 = arith.constant 70 : index
    %38 = vector.load %arg1[%c0_35, %c0_36, %c70] : memref<1x8x576xf32, #tpu.memory_space<vmem>>, vector<1x8x384xf32>
    %39 = vector.shape_cast %38 : vector<1x8x384xf32> to vector<8x384xf32>
    %cst_37 = arith.constant dense<0.000000e+00> : vector<64x384xf32>
    %40 = tpu.matmul %37, %39, %cst_37 {dimension_numbers = #tpu.dot_dimension_numbers<[1], [0], [0], [1], [0, 0, 1, 1], [], []>} : vector<64x8xf32>, vector<8x384xf32>, vector<64x384xf32> -> vector<64x384xf32>
    %41 = arith.addf %35, %40 : vector<64x384xf32>
    %c6 = arith.constant 6 : index
    %c0_38 = arith.constant 0 : index
    %c0_39 = arith.constant 0 : index
    %42 = vector.load %arg3[%c6, %c0_38, %c0_39] : memref<25x64x8xf32, #tpu.memory_space<vmem>>, vector<1x64x8xf32>
    %43 = vector.shape_cast %42 : vector<1x64x8xf32> to vector<64x8xf32>
    %c0_40 = arith.constant 0 : index
    %c0_41 = arith.constant 0 : index
    %c71 = arith.constant 71 : index
    %44 = vector.load %arg1[%c0_40, %c0_41, %c71] : memref<1x8x576xf32, #tpu.memory_space<vmem>>, vector<1x8x384xf32>
    %45 = vector.shape_cast %44 : vector<1x8x384xf32> to vector<8x384xf32>
    %cst_42 = arith.constant dense<0.000000e+00> : vector<64x384xf32>
    %46 = tpu.matmul %43, %45, %cst_42 {dimension_numbers = #tpu.dot_dimension_numbers<[1], [0], [0], [1], [0, 0, 1, 1], [], []>} : vector<64x8xf32>, vector<8x384xf32>, vector<64x384xf32> -> vector<64x384xf32>
    %47 = arith.addf %41, %46 : vector<64x384xf32>
    %c7 = arith.constant 7 : index
    %c0_43 = arith.constant 0 : index
    %c0_44 = arith.constant 0 : index
    %48 = vector.load %arg3[%c7, %c0_43, %c0_44] : memref<25x64x8xf32, #tpu.memory_space<vmem>>, vector<1x64x8xf32>
    %49 = vector.shape_cast %48 : vector<1x64x8xf32> to vector<64x8xf32>
    %c0_45 = arith.constant 0 : index
    %c0_46 = arith.constant 0 : index
    %c72 = arith.constant 72 : index
    %50 = vector.load %arg1[%c0_45, %c0_46, %c72] : memref<1x8x576xf32, #tpu.memory_space<vmem>>, vector<1x8x384xf32>
    %51 = vector.shape_cast %50 : vector<1x8x384xf32> to vector<8x384xf32>
    %cst_47 = arith.constant dense<0.000000e+00> : vector<64x384xf32>
    %52 = tpu.matmul %49, %51, %cst_47 {dimension_numbers = #tpu.dot_dimension_numbers<[1], [0], [0], [1], [0, 0, 1, 1], [], []>} : vector<64x8xf32>, vector<8x384xf32>, vector<64x384xf32> -> vector<64x384xf32>
    %53 = arith.addf %47, %52 : vector<64x384xf32>
    %c8 = arith.constant 8 : index
    %c0_48 = arith.constant 0 : index
    %c0_49 = arith.constant 0 : index
    %54 = vector.load %arg3[%c8, %c0_48, %c0_49] : memref<25x64x8xf32, #tpu.memory_space<vmem>>, vector<1x64x8xf32>
    %55 = vector.shape_cast %54 : vector<1x64x8xf32> to vector<64x8xf32>
    %c0_50 = arith.constant 0 : index
    %c0_51 = arith.constant 0 : index
    %c73 = arith.constant 73 : index
    %56 = vector.load %arg1[%c0_50, %c0_51, %c73] : memref<1x8x576xf32, #tpu.memory_space<vmem>>, vector<1x8x384xf32>
    %57 = vector.shape_cast %56 : vector<1x8x384xf32> to vector<8x384xf32>
    %cst_52 = arith.constant dense<0.000000e+00> : vector<64x384xf32>
    %58 = tpu.matmul %55, %57, %cst_52 {dimension_numbers = #tpu.dot_dimension_numbers<[1], [0], [0], [1], [0, 0, 1, 1], [], []>} : vector<64x8xf32>, vector<8x384xf32>, vector<64x384xf32> -> vector<64x384xf32>
    %59 = arith.addf %53, %58 : vector<64x384xf32>
    %c9 = arith.constant 9 : index
    %c0_53 = arith.constant 0 : index
    %c0_54 = arith.constant 0 : index
    %60 = vector.load %arg3[%c9, %c0_53, %c0_54] : memref<25x64x8xf32, #tpu.memory_space<vmem>>, vector<1x64x8xf32>
    %61 = vector.shape_cast %60 : vector<1x64x8xf32> to vector<64x8xf32>
    %c0_55 = arith.constant 0 : index
    %c0_56 = arith.constant 0 : index
    %c74 = arith.constant 74 : index
    %62 = vector.load %arg1[%c0_55, %c0_56, %c74] : memref<1x8x576xf32, #tpu.memory_space<vmem>>, vector<1x8x384xf32>
    %63 = vector.shape_cast %62 : vector<1x8x384xf32> to vector<8x384xf32>
    %cst_57 = arith.constant dense<0.000000e+00> : vector<64x384xf32>
    %64 = tpu.matmul %61, %63, %cst_57 {dimension_numbers = #tpu.dot_dimension_numbers<[1], [0], [0], [1], [0, 0, 1, 1], [], []>} : vector<64x8xf32>, vector<8x384xf32>, vector<64x384xf32> -> vector<64x384xf32>
    %65 = arith.addf %59, %64 : vector<64x384xf32>
    %c10 = arith.constant 10 : index
    %c0_58 = arith.constant 0 : index
    %c0_59 = arith.constant 0 : index
    %66 = vector.load %arg3[%c10, %c0_58, %c0_59] : memref<25x64x8xf32, #tpu.memory_space<vmem>>, vector<1x64x8xf32>
    %67 = vector.shape_cast %66 : vector<1x64x8xf32> to vector<64x8xf32>
    %c0_60 = arith.constant 0 : index
    %c0_61 = arith.constant 0 : index
    %c94 = arith.constant 94 : index
    %68 = vector.load %arg1[%c0_60, %c0_61, %c94] : memref<1x8x576xf32, #tpu.memory_space<vmem>>, vector<1x8x384xf32>
    %69 = vector.shape_cast %68 : vector<1x8x384xf32> to vector<8x384xf32>
    %cst_62 = arith.constant dense<0.000000e+00> : vector<64x384xf32>
    %70 = tpu.matmul %67, %69, %cst_62 {dimension_numbers = #tpu.dot_dimension_numbers<[1], [0], [0], [1], [0, 0, 1, 1], [], []>} : vector<64x8xf32>, vector<8x384xf32>, vector<64x384xf32> -> vector<64x384xf32>
    %71 = arith.addf %65, %70 : vector<64x384xf32>
    %c11 = arith.constant 11 : index
    %c0_63 = arith.constant 0 : index
    %c0_64 = arith.constant 0 : index
    %72 = vector.load %arg3[%c11, %c0_63, %c0_64] : memref<25x64x8xf32, #tpu.memory_space<vmem>>, vector<1x64x8xf32>
    %73 = vector.shape_cast %72 : vector<1x64x8xf32> to vector<64x8xf32>
    %c0_65 = arith.constant 0 : index
    %c0_66 = arith.constant 0 : index
    %c95 = arith.constant 95 : index
    %74 = vector.load %arg1[%c0_65, %c0_66, %c95] : memref<1x8x576xf32, #tpu.memory_space<vmem>>, vector<1x8x384xf32>
    %75 = vector.shape_cast %74 : vector<1x8x384xf32> to vector<8x384xf32>
    %cst_67 = arith.constant dense<0.000000e+00> : vector<64x384xf32>
    %76 = tpu.matmul %73, %75, %cst_67 {dimension_numbers = #tpu.dot_dimension_numbers<[1], [0], [0], [1], [0, 0, 1, 1], [], []>} : vector<64x8xf32>, vector<8x384xf32>, vector<64x384xf32> -> vector<64x384xf32>
    %77 = arith.addf %71, %76 : vector<64x384xf32>
    %c12 = arith.constant 12 : index
    %c0_68 = arith.constant 0 : index
    %c0_69 = arith.constant 0 : index
    %78 = vector.load %arg3[%c12, %c0_68, %c0_69] : memref<25x64x8xf32, #tpu.memory_space<vmem>>, vector<1x64x8xf32>
    %79 = vector.shape_cast %78 : vector<1x64x8xf32> to vector<64x8xf32>
    %c0_70 = arith.constant 0 : index
    %c0_71 = arith.constant 0 : index
    %c96 = arith.constant 96 : index
    %80 = vector.load %arg1[%c0_70, %c0_71, %c96] : memref<1x8x576xf32, #tpu.memory_space<vmem>>, vector<1x8x384xf32>
    %81 = vector.shape_cast %80 : vector<1x8x384xf32> to vector<8x384xf32>
    %cst_72 = arith.constant dense<0.000000e+00> : vector<64x384xf32>
    %82 = tpu.matmul %79, %81, %cst_72 {dimension_numbers = #tpu.dot_dimension_numbers<[1], [0], [0], [1], [0, 0, 1, 1], [], []>} : vector<64x8xf32>, vector<8x384xf32>, vector<64x384xf32> -> vector<64x384xf32>
    %83 = arith.addf %77, %82 : vector<64x384xf32>
    %c13 = arith.constant 13 : index
    %c0_73 = arith.constant 0 : index
    %c0_74 = arith.constant 0 : index
    %84 = vector.load %arg3[%c13, %c0_73, %c0_74] : memref<25x64x8xf32, #tpu.memory_space<vmem>>, vector<1x64x8xf32>
    %85 = vector.shape_cast %84 : vector<1x64x8xf32> to vector<64x8xf32>
    %c0_75 = arith.constant 0 : index
    %c0_76 = arith.constant 0 : index
    %c97 = arith.constant 97 : index
    %86 = vector.load %arg1[%c0_75, %c0_76, %c97] : memref<1x8x576xf32, #tpu.memory_space<vmem>>, vector<1x8x384xf32>
    %87 = vector.shape_cast %86 : vector<1x8x384xf32> to vector<8x384xf32>
    %cst_77 = arith.constant dense<0.000000e+00> : vector<64x384xf32>
    %88 = tpu.matmul %85, %87, %cst_77 {dimension_numbers = #tpu.dot_dimension_numbers<[1], [0], [0], [1], [0, 0, 1, 1], [], []>} : vector<64x8xf32>, vector<8x384xf32>, vector<64x384xf32> -> vector<64x384xf32>
    %89 = arith.addf %83, %88 : vector<64x384xf32>
    %c14 = arith.constant 14 : index
    %c0_78 = arith.constant 0 : index
    %c0_79 = arith.constant 0 : index
    %90 = vector.load %arg3[%c14, %c0_78, %c0_79] : memref<25x64x8xf32, #tpu.memory_space<vmem>>, vector<1x64x8xf32>
    %91 = vector.shape_cast %90 : vector<1x64x8xf32> to vector<64x8xf32>
    %c0_80 = arith.constant 0 : index
    %c0_81 = arith.constant 0 : index
    %c98 = arith.constant 98 : index
    %92 = vector.load %arg1[%c0_80, %c0_81, %c98] : memref<1x8x576xf32, #tpu.memory_space<vmem>>, vector<1x8x384xf32>
    %93 = vector.shape_cast %92 : vector<1x8x384xf32> to vector<8x384xf32>
    %cst_82 = arith.constant dense<0.000000e+00> : vector<64x384xf32>
    %94 = tpu.matmul %91, %93, %cst_82 {dimension_numbers = #tpu.dot_dimension_numbers<[1], [0], [0], [1], [0, 0, 1, 1], [], []>} : vector<64x8xf32>, vector<8x384xf32>, vector<64x384xf32> -> vector<64x384xf32>
    %95 = arith.addf %89, %94 : vector<64x384xf32>
    %c15 = arith.constant 15 : index
    %c0_83 = arith.constant 0 : index
    %c0_84 = arith.constant 0 : index
    %96 = vector.load %arg3[%c15, %c0_83, %c0_84] : memref<25x64x8xf32, #tpu.memory_space<vmem>>, vector<1x64x8xf32>
    %97 = vector.shape_cast %96 : vector<1x64x8xf32> to vector<64x8xf32>
    %c0_85 = arith.constant 0 : index
    %c0_86 = arith.constant 0 : index
    %c118 = arith.constant 118 : index
    %98 = vector.load %arg1[%c0_85, %c0_86, %c118] : memref<1x8x576xf32, #tpu.memory_space<vmem>>, vector<1x8x384xf32>
    %99 = vector.shape_cast %98 : vector<1x8x384xf32> to vector<8x384xf32>
    %cst_87 = arith.constant dense<0.000000e+00> : vector<64x384xf32>
    %100 = tpu.matmul %97, %99, %cst_87 {dimension_numbers = #tpu.dot_dimension_numbers<[1], [0], [0], [1], [0, 0, 1, 1], [], []>} : vector<64x8xf32>, vector<8x384xf32>, vector<64x384xf32> -> vector<64x384xf32>
    %101 = arith.addf %95, %100 : vector<64x384xf32>
    %c16 = arith.constant 16 : index
    %c0_88 = arith.constant 0 : index
    %c0_89 = arith.constant 0 : index
    %102 = vector.load %arg3[%c16, %c0_88, %c0_89] : memref<25x64x8xf32, #tpu.memory_space<vmem>>, vector<1x64x8xf32>
    %103 = vector.shape_cast %102 : vector<1x64x8xf32> to vector<64x8xf32>
    %c0_90 = arith.constant 0 : index
    %c0_91 = arith.constant 0 : index
    %c119 = arith.constant 119 : index
    %104 = vector.load %arg1[%c0_90, %c0_91, %c119] : memref<1x8x576xf32, #tpu.memory_space<vmem>>, vector<1x8x384xf32>
    %105 = vector.shape_cast %104 : vector<1x8x384xf32> to vector<8x384xf32>
    %cst_92 = arith.constant dense<0.000000e+00> : vector<64x384xf32>
    %106 = tpu.matmul %103, %105, %cst_92 {dimension_numbers = #tpu.dot_dimension_numbers<[1], [0], [0], [1], [0, 0, 1, 1], [], []>} : vector<64x8xf32>, vector<8x384xf32>, vector<64x384xf32> -> vector<64x384xf32>
    %107 = arith.addf %101, %106 : vector<64x384xf32>
    %c17 = arith.constant 17 : index
    %c0_93 = arith.constant 0 : index
    %c0_94 = arith.constant 0 : index
    %108 = vector.load %arg3[%c17, %c0_93, %c0_94] : memref<25x64x8xf32, #tpu.memory_space<vmem>>, vector<1x64x8xf32>
    %109 = vector.shape_cast %108 : vector<1x64x8xf32> to vector<64x8xf32>
    %c0_95 = arith.constant 0 : index
    %c0_96 = arith.constant 0 : index
    %c120 = arith.constant 120 : index
    %110 = vector.load %arg1[%c0_95, %c0_96, %c120] : memref<1x8x576xf32, #tpu.memory_space<vmem>>, vector<1x8x384xf32>
    %111 = vector.shape_cast %110 : vector<1x8x384xf32> to vector<8x384xf32>
    %cst_97 = arith.constant dense<0.000000e+00> : vector<64x384xf32>
    %112 = tpu.matmul %109, %111, %cst_97 {dimension_numbers = #tpu.dot_dimension_numbers<[1], [0], [0], [1], [0, 0, 1, 1], [], []>} : vector<64x8xf32>, vector<8x384xf32>, vector<64x384xf32> -> vector<64x384xf32>
    %113 = arith.addf %107, %112 : vector<64x384xf32>
    %c18 = arith.constant 18 : index
    %c0_98 = arith.constant 0 : index
    %c0_99 = arith.constant 0 : index
    %114 = vector.load %arg3[%c18, %c0_98, %c0_99] : memref<25x64x8xf32, #tpu.memory_space<vmem>>, vector<1x64x8xf32>
    %115 = vector.shape_cast %114 : vector<1x64x8xf32> to vector<64x8xf32>
    %c0_100 = arith.constant 0 : index
    %c0_101 = arith.constant 0 : index
    %c121 = arith.constant 121 : index
    %116 = vector.load %arg1[%c0_100, %c0_101, %c121] : memref<1x8x576xf32, #tpu.memory_space<vmem>>, vector<1x8x384xf32>
    %117 = vector.shape_cast %116 : vector<1x8x384xf32> to vector<8x384xf32>
    %cst_102 = arith.constant dense<0.000000e+00> : vector<64x384xf32>
    %118 = tpu.matmul %115, %117, %cst_102 {dimension_numbers = #tpu.dot_dimension_numbers<[1], [0], [0], [1], [0, 0, 1, 1], [], []>} : vector<64x8xf32>, vector<8x384xf32>, vector<64x384xf32> -> vector<64x384xf32>
    %119 = arith.addf %113, %118 : vector<64x384xf32>
    %c19 = arith.constant 19 : index
    %c0_103 = arith.constant 0 : index
    %c0_104 = arith.constant 0 : index
    %120 = vector.load %arg3[%c19, %c0_103, %c0_104] : memref<25x64x8xf32, #tpu.memory_space<vmem>>, vector<1x64x8xf32>
    %121 = vector.shape_cast %120 : vector<1x64x8xf32> to vector<64x8xf32>
    %c0_105 = arith.constant 0 : index
    %c0_106 = arith.constant 0 : index
    %c122 = arith.constant 122 : index
    %122 = vector.load %arg1[%c0_105, %c0_106, %c122] : memref<1x8x576xf32, #tpu.memory_space<vmem>>, vector<1x8x384xf32>
    %123 = vector.shape_cast %122 : vector<1x8x384xf32> to vector<8x384xf32>
    %cst_107 = arith.constant dense<0.000000e+00> : vector<64x384xf32>
    %124 = tpu.matmul %121, %123, %cst_107 {dimension_numbers = #tpu.dot_dimension_numbers<[1], [0], [0], [1], [0, 0, 1, 1], [], []>} : vector<64x8xf32>, vector<8x384xf32>, vector<64x384xf32> -> vector<64x384xf32>
    %125 = arith.addf %119, %124 : vector<64x384xf32>
    %c20 = arith.constant 20 : index
    %c0_108 = arith.constant 0 : index
    %c0_109 = arith.constant 0 : index
    %126 = vector.load %arg3[%c20, %c0_108, %c0_109] : memref<25x64x8xf32, #tpu.memory_space<vmem>>, vector<1x64x8xf32>
    %127 = vector.shape_cast %126 : vector<1x64x8xf32> to vector<64x8xf32>
    %c0_110 = arith.constant 0 : index
    %c0_111 = arith.constant 0 : index
    %c142 = arith.constant 142 : index
    %128 = vector.load %arg1[%c0_110, %c0_111, %c142] : memref<1x8x576xf32, #tpu.memory_space<vmem>>, vector<1x8x384xf32>
    %129 = vector.shape_cast %128 : vector<1x8x384xf32> to vector<8x384xf32>
    %cst_112 = arith.constant dense<0.000000e+00> : vector<64x384xf32>
    %130 = tpu.matmul %127, %129, %cst_112 {dimension_numbers = #tpu.dot_dimension_numbers<[1], [0], [0], [1], [0, 0, 1, 1], [], []>} : vector<64x8xf32>, vector<8x384xf32>, vector<64x384xf32> -> vector<64x384xf32>
    %131 = arith.addf %125, %130 : vector<64x384xf32>
    %c21 = arith.constant 21 : index
    %c0_113 = arith.constant 0 : index
    %c0_114 = arith.constant 0 : index
    %132 = vector.load %arg3[%c21, %c0_113, %c0_114] : memref<25x64x8xf32, #tpu.memory_space<vmem>>, vector<1x64x8xf32>
    %133 = vector.shape_cast %132 : vector<1x64x8xf32> to vector<64x8xf32>
    %c0_115 = arith.constant 0 : index
    %c0_116 = arith.constant 0 : index
    %c143 = arith.constant 143 : index
    %134 = vector.load %arg1[%c0_115, %c0_116, %c143] : memref<1x8x576xf32, #tpu.memory_space<vmem>>, vector<1x8x384xf32>
    %135 = vector.shape_cast %134 : vector<1x8x384xf32> to vector<8x384xf32>
    %cst_117 = arith.constant dense<0.000000e+00> : vector<64x384xf32>
    %136 = tpu.matmul %133, %135, %cst_117 {dimension_numbers = #tpu.dot_dimension_numbers<[1], [0], [0], [1], [0, 0, 1, 1], [], []>} : vector<64x8xf32>, vector<8x384xf32>, vector<64x384xf32> -> vector<64x384xf32>
    %137 = arith.addf %131, %136 : vector<64x384xf32>
    %c22 = arith.constant 22 : index
    %c0_118 = arith.constant 0 : index
    %c0_119 = arith.constant 0 : index
    %138 = vector.load %arg3[%c22, %c0_118, %c0_119] : memref<25x64x8xf32, #tpu.memory_space<vmem>>, vector<1x64x8xf32>
    %139 = vector.shape_cast %138 : vector<1x64x8xf32> to vector<64x8xf32>
    %c0_120 = arith.constant 0 : index
    %c0_121 = arith.constant 0 : index
    %c144 = arith.constant 144 : index
    %140 = vector.load %arg1[%c0_120, %c0_121, %c144] : memref<1x8x576xf32, #tpu.memory_space<vmem>>, vector<1x8x384xf32>
    %141 = vector.shape_cast %140 : vector<1x8x384xf32> to vector<8x384xf32>
    %cst_122 = arith.constant dense<0.000000e+00> : vector<64x384xf32>
    %142 = tpu.matmul %139, %141, %cst_122 {dimension_numbers = #tpu.dot_dimension_numbers<[1], [0], [0], [1], [0, 0, 1, 1], [], []>} : vector<64x8xf32>, vector<8x384xf32>, vector<64x384xf32> -> vector<64x384xf32>
    %143 = arith.addf %137, %142 : vector<64x384xf32>
    %c23 = arith.constant 23 : index
    %c0_123 = arith.constant 0 : index
    %c0_124 = arith.constant 0 : index
    %144 = vector.load %arg3[%c23, %c0_123, %c0_124] : memref<25x64x8xf32, #tpu.memory_space<vmem>>, vector<1x64x8xf32>
    %145 = vector.shape_cast %144 : vector<1x64x8xf32> to vector<64x8xf32>
    %c0_125 = arith.constant 0 : index
    %c0_126 = arith.constant 0 : index
    %c145 = arith.constant 145 : index
    %146 = vector.load %arg1[%c0_125, %c0_126, %c145] : memref<1x8x576xf32, #tpu.memory_space<vmem>>, vector<1x8x384xf32>
    %147 = vector.shape_cast %146 : vector<1x8x384xf32> to vector<8x384xf32>
    %cst_127 = arith.constant dense<0.000000e+00> : vector<64x384xf32>
    %148 = tpu.matmul %145, %147, %cst_127 {dimension_numbers = #tpu.dot_dimension_numbers<[1], [0], [0], [1], [0, 0, 1, 1], [], []>} : vector<64x8xf32>, vector<8x384xf32>, vector<64x384xf32> -> vector<64x384xf32>
    %149 = arith.addf %143, %148 : vector<64x384xf32>
    %c24 = arith.constant 24 : index
    %c0_128 = arith.constant 0 : index
    %c0_129 = arith.constant 0 : index
    %150 = vector.load %arg3[%c24, %c0_128, %c0_129] : memref<25x64x8xf32, #tpu.memory_space<vmem>>, vector<1x64x8xf32>
    %151 = vector.shape_cast %150 : vector<1x64x8xf32> to vector<64x8xf32>
    %c0_130 = arith.constant 0 : index
    %c0_131 = arith.constant 0 : index
    %c146 = arith.constant 146 : index
    %152 = vector.load %arg1[%c0_130, %c0_131, %c146] : memref<1x8x576xf32, #tpu.memory_space<vmem>>, vector<1x8x384xf32>
    %153 = vector.shape_cast %152 : vector<1x8x384xf32> to vector<8x384xf32>
    %cst_132 = arith.constant dense<0.000000e+00> : vector<64x384xf32>
    %154 = tpu.matmul %151, %153, %cst_132 {dimension_numbers = #tpu.dot_dimension_numbers<[1], [0], [0], [1], [0, 0, 1, 1], [], []>} : vector<64x8xf32>, vector<8x384xf32>, vector<64x384xf32> -> vector<64x384xf32>
    %155 = arith.addf %149, %154 : vector<64x384xf32>
    %c0_133 = arith.constant 0 : index
    %c0_134 = arith.constant 0 : index
    %156 = vector.load %arg4[%c0_133, %c0_134] : memref<64x1xf32, #tpu.memory_space<vmem>>, vector<64x1xf32>
    %157 = vector.broadcast %156 : vector<64x1xf32> to vector<64x384xf32>
    %158 = arith.addf %155, %157 : vector<64x384xf32>
    %cst_135 = arith.constant 0.000000e+00 : f32
    %159 = vector.broadcast %cst_135 : f32 to vector<64x384xf32>
    %160 = arith.maximumf %158, %159 : vector<64x384xf32>
    %161 = vector.broadcast %4 : vector<1x384xf32> to vector<64x384xf32>
    %162 = arith.mulf %160, %161 : vector<64x384xf32>
    %c0_136 = arith.constant 0 : index
    %c96_137 = arith.constant 96 : index
    %163 = vector.load %arg10[%c0_136, %c96_137] : memref<64x576xf32, #tpu.memory_space<vmem>>, vector<64x384xf32>
    tpu.vector_store %arg10[%c0_136, %c96_137], %162 {strides = array<i32>} : memref<64x576xf32, #tpu.memory_space<vmem>>, vector<64x384xf32>,
    %cst_138 = arith.constant 0.000000e+00 : f32
    %164 = vector.broadcast %cst_138 : f32 to vector<32x384xf32>
    %c0_139 = arith.constant 0 : index
    %c0_140 = arith.constant 0 : index
    %c0_141 = arith.constant 0 : index
    %165 = vector.load %arg5[%c0_139, %c0_140, %c0_141] : memref<9x32x64xf32, #tpu.memory_space<vmem>>, vector<1x32x64xf32>
    %166 = vector.shape_cast %165 : vector<1x32x64xf32> to vector<32x64xf32>
    %c0_142 = arith.constant 0 : index
    %c71_143 = arith.constant 71 : index
    %167 = vector.load %arg10[%c0_142, %c71_143] : memref<64x576xf32, #tpu.memory_space<vmem>>, vector<64x384xf32>
    %cst_144 = arith.constant dense<0.000000e+00> : vector<32x384xf32>
    %168 = tpu.matmul %166, %167, %cst_144 {dimension_numbers = #tpu.dot_dimension_numbers<[1], [0], [0], [1], [0, 0, 1, 1], [], []>} : vector<32x64xf32>, vector<64x384xf32>, vector<32x384xf32> -> vector<32x384xf32>
    %169 = arith.addf %164, %168 : vector<32x384xf32>
    %c1_145 = arith.constant 1 : index
    %c0_146 = arith.constant 0 : index
    %c0_147 = arith.constant 0 : index
    %170 = vector.load %arg5[%c1_145, %c0_146, %c0_147] : memref<9x32x64xf32, #tpu.memory_space<vmem>>, vector<1x32x64xf32>
    %171 = vector.shape_cast %170 : vector<1x32x64xf32> to vector<32x64xf32>
    %c0_148 = arith.constant 0 : index
    %c72_149 = arith.constant 72 : index
    %172 = vector.load %arg10[%c0_148, %c72_149] : memref<64x576xf32, #tpu.memory_space<vmem>>, vector<64x384xf32>
    %cst_150 = arith.constant dense<0.000000e+00> : vector<32x384xf32>
    %173 = tpu.matmul %171, %172, %cst_150 {dimension_numbers = #tpu.dot_dimension_numbers<[1], [0], [0], [1], [0, 0, 1, 1], [], []>} : vector<32x64xf32>, vector<64x384xf32>, vector<32x384xf32> -> vector<32x384xf32>
    %174 = arith.addf %169, %173 : vector<32x384xf32>
    %c2_151 = arith.constant 2 : index
    %c0_152 = arith.constant 0 : index
    %c0_153 = arith.constant 0 : index
    %175 = vector.load %arg5[%c2_151, %c0_152, %c0_153] : memref<9x32x64xf32, #tpu.memory_space<vmem>>, vector<1x32x64xf32>
    %176 = vector.shape_cast %175 : vector<1x32x64xf32> to vector<32x64xf32>
    %c0_154 = arith.constant 0 : index
    %c73_155 = arith.constant 73 : index
    %177 = vector.load %arg10[%c0_154, %c73_155] : memref<64x576xf32, #tpu.memory_space<vmem>>, vector<64x384xf32>
    %cst_156 = arith.constant dense<0.000000e+00> : vector<32x384xf32>
    %178 = tpu.matmul %176, %177, %cst_156 {dimension_numbers = #tpu.dot_dimension_numbers<[1], [0], [0], [1], [0, 0, 1, 1], [], []>} : vector<32x64xf32>, vector<64x384xf32>, vector<32x384xf32> -> vector<32x384xf32>
    %179 = arith.addf %174, %178 : vector<32x384xf32>
    %c3_157 = arith.constant 3 : index
    %c0_158 = arith.constant 0 : index
    %c0_159 = arith.constant 0 : index
    %180 = vector.load %arg5[%c3_157, %c0_158, %c0_159] : memref<9x32x64xf32, #tpu.memory_space<vmem>>, vector<1x32x64xf32>
    %181 = vector.shape_cast %180 : vector<1x32x64xf32> to vector<32x64xf32>
    %c0_160 = arith.constant 0 : index
    %c95_161 = arith.constant 95 : index
    %182 = vector.load %arg10[%c0_160, %c95_161] : memref<64x576xf32, #tpu.memory_space<vmem>>, vector<64x384xf32>
    %cst_162 = arith.constant dense<0.000000e+00> : vector<32x384xf32>
    %183 = tpu.matmul %181, %182, %cst_162 {dimension_numbers = #tpu.dot_dimension_numbers<[1], [0], [0], [1], [0, 0, 1, 1], [], []>} : vector<32x64xf32>, vector<64x384xf32>, vector<32x384xf32> -> vector<32x384xf32>
    %184 = arith.addf %179, %183 : vector<32x384xf32>
    %c4_163 = arith.constant 4 : index
    %c0_164 = arith.constant 0 : index
    %c0_165 = arith.constant 0 : index
    %185 = vector.load %arg5[%c4_163, %c0_164, %c0_165] : memref<9x32x64xf32, #tpu.memory_space<vmem>>, vector<1x32x64xf32>
    %186 = vector.shape_cast %185 : vector<1x32x64xf32> to vector<32x64xf32>
    %c0_166 = arith.constant 0 : index
    %c96_167 = arith.constant 96 : index
    %187 = vector.load %arg10[%c0_166, %c96_167] : memref<64x576xf32, #tpu.memory_space<vmem>>, vector<64x384xf32>
    %cst_168 = arith.constant dense<0.000000e+00> : vector<32x384xf32>
    %188 = tpu.matmul %186, %187, %cst_168 {dimension_numbers = #tpu.dot_dimension_numbers<[1], [0], [0], [1], [0, 0, 1, 1], [], []>} : vector<32x64xf32>, vector<64x384xf32>, vector<32x384xf32> -> vector<32x384xf32>
    %189 = arith.addf %184, %188 : vector<32x384xf32>
    %c5_169 = arith.constant 5 : index
    %c0_170 = arith.constant 0 : index
    %c0_171 = arith.constant 0 : index
    %190 = vector.load %arg5[%c5_169, %c0_170, %c0_171] : memref<9x32x64xf32, #tpu.memory_space<vmem>>, vector<1x32x64xf32>
    %191 = vector.shape_cast %190 : vector<1x32x64xf32> to vector<32x64xf32>
    %c0_172 = arith.constant 0 : index
    %c97_173 = arith.constant 97 : index
    %192 = vector.load %arg10[%c0_172, %c97_173] : memref<64x576xf32, #tpu.memory_space<vmem>>, vector<64x384xf32>
    %cst_174 = arith.constant dense<0.000000e+00> : vector<32x384xf32>
    %193 = tpu.matmul %191, %192, %cst_174 {dimension_numbers = #tpu.dot_dimension_numbers<[1], [0], [0], [1], [0, 0, 1, 1], [], []>} : vector<32x64xf32>, vector<64x384xf32>, vector<32x384xf32> -> vector<32x384xf32>
    %194 = arith.addf %189, %193 : vector<32x384xf32>
    %c6_175 = arith.constant 6 : index
    %c0_176 = arith.constant 0 : index
    %c0_177 = arith.constant 0 : index
    %195 = vector.load %arg5[%c6_175, %c0_176, %c0_177] : memref<9x32x64xf32, #tpu.memory_space<vmem>>, vector<1x32x64xf32>
    %196 = vector.shape_cast %195 : vector<1x32x64xf32> to vector<32x64xf32>
    %c0_178 = arith.constant 0 : index
    %c119_179 = arith.constant 119 : index
    %197 = vector.load %arg10[%c0_178, %c119_179] : memref<64x576xf32, #tpu.memory_space<vmem>>, vector<64x384xf32>
    %cst_180 = arith.constant dense<0.000000e+00> : vector<32x384xf32>
    %198 = tpu.matmul %196, %197, %cst_180 {dimension_numbers = #tpu.dot_dimension_numbers<[1], [0], [0], [1], [0, 0, 1, 1], [], []>} : vector<32x64xf32>, vector<64x384xf32>, vector<32x384xf32> -> vector<32x384xf32>
    %199 = arith.addf %194, %198 : vector<32x384xf32>
    %c7_181 = arith.constant 7 : index
    %c0_182 = arith.constant 0 : index
    %c0_183 = arith.constant 0 : index
    %200 = vector.load %arg5[%c7_181, %c0_182, %c0_183] : memref<9x32x64xf32, #tpu.memory_space<vmem>>, vector<1x32x64xf32>
    %201 = vector.shape_cast %200 : vector<1x32x64xf32> to vector<32x64xf32>
    %c0_184 = arith.constant 0 : index
    %c120_185 = arith.constant 120 : index
    %202 = vector.load %arg10[%c0_184, %c120_185] : memref<64x576xf32, #tpu.memory_space<vmem>>, vector<64x384xf32>
    %cst_186 = arith.constant dense<0.000000e+00> : vector<32x384xf32>
    %203 = tpu.matmul %201, %202, %cst_186 {dimension_numbers = #tpu.dot_dimension_numbers<[1], [0], [0], [1], [0, 0, 1, 1], [], []>} : vector<32x64xf32>, vector<64x384xf32>, vector<32x384xf32> -> vector<32x384xf32>
    %204 = arith.addf %199, %203 : vector<32x384xf32>
    %c8_187 = arith.constant 8 : index
    %c0_188 = arith.constant 0 : index
    %c0_189 = arith.constant 0 : index
    %205 = vector.load %arg5[%c8_187, %c0_188, %c0_189] : memref<9x32x64xf32, #tpu.memory_space<vmem>>, vector<1x32x64xf32>
    %206 = vector.shape_cast %205 : vector<1x32x64xf32> to vector<32x64xf32>
    %c0_190 = arith.constant 0 : index
    %c121_191 = arith.constant 121 : index
    %207 = vector.load %arg10[%c0_190, %c121_191] : memref<64x576xf32, #tpu.memory_space<vmem>>, vector<64x384xf32>
    %cst_192 = arith.constant dense<0.000000e+00> : vector<32x384xf32>
    %208 = tpu.matmul %206, %207, %cst_192 {dimension_numbers = #tpu.dot_dimension_numbers<[1], [0], [0], [1], [0, 0, 1, 1], [], []>} : vector<32x64xf32>, vector<64x384xf32>, vector<32x384xf32> -> vector<32x384xf32>
    %209 = arith.addf %204, %208 : vector<32x384xf32>
    %c0_193 = arith.constant 0 : index
    %c0_194 = arith.constant 0 : index
    %210 = vector.load %arg6[%c0_193, %c0_194] : memref<32x1xf32, #tpu.memory_space<vmem>>, vector<32x1xf32>
    %211 = vector.broadcast %210 : vector<32x1xf32> to vector<32x384xf32>
    %212 = arith.addf %209, %211 : vector<32x384xf32>
    %cst_195 = arith.constant 0.000000e+00 : f32
    %213 = vector.broadcast %cst_195 : f32 to vector<32x384xf32>
    %214 = arith.maximumf %212, %213 : vector<32x384xf32>
    %215 = vector.broadcast %4 : vector<1x384xf32> to vector<32x384xf32>
    %216 = arith.mulf %214, %215 : vector<32x384xf32>
    %c0_196 = arith.constant 0 : index
    %c96_197 = arith.constant 96 : index
    %217 = vector.load %arg11[%c0_196, %c96_197] : memref<32x576xf32, #tpu.memory_space<vmem>>, vector<32x384xf32>
    tpu.vector_store %arg11[%c0_196, %c96_197], %216 {strides = array<i32>} : memref<32x576xf32, #tpu.memory_space<vmem>>, vector<32x384xf32>,
    %cst_198 = arith.constant 0.000000e+00 : f32
    %218 = vector.broadcast %cst_198 : f32 to vector<4x384xf32>
    %c0_199 = arith.constant 0 : index
    %c0_200 = arith.constant 0 : index
    %c0_201 = arith.constant 0 : index
    %219 = vector.load %arg7[%c0_199, %c0_200, %c0_201] : memref<9x4x32xf32, #tpu.memory_space<vmem>>, vector<1x4x32xf32>
    %220 = vector.shape_cast %219 : vector<1x4x32xf32> to vector<4x32xf32>
    %c0_202 = arith.constant 0 : index
    %c71_203 = arith.constant 71 : index
    %221 = vector.load %arg11[%c0_202, %c71_203] : memref<32x576xf32, #tpu.memory_space<vmem>>, vector<32x384xf32>
    %cst_204 = arith.constant dense<0.000000e+00> : vector<4x384xf32>
    %222 = tpu.matmul %220, %221, %cst_204 {dimension_numbers = #tpu.dot_dimension_numbers<[1], [0], [0], [1], [0, 0, 1, 1], [], []>} : vector<4x32xf32>, vector<32x384xf32>, vector<4x384xf32> -> vector<4x384xf32>
    %223 = arith.addf %218, %222 : vector<4x384xf32>
    %c1_205 = arith.constant 1 : index
    %c0_206 = arith.constant 0 : index
    %c0_207 = arith.constant 0 : index
    %224 = vector.load %arg7[%c1_205, %c0_206, %c0_207] : memref<9x4x32xf32, #tpu.memory_space<vmem>>, vector<1x4x32xf32>
    %225 = vector.shape_cast %224 : vector<1x4x32xf32> to vector<4x32xf32>
    %c0_208 = arith.constant 0 : index
    %c72_209 = arith.constant 72 : index
    %226 = vector.load %arg11[%c0_208, %c72_209] : memref<32x576xf32, #tpu.memory_space<vmem>>, vector<32x384xf32>
    %cst_210 = arith.constant dense<0.000000e+00> : vector<4x384xf32>
    %227 = tpu.matmul %225, %226, %cst_210 {dimension_numbers = #tpu.dot_dimension_numbers<[1], [0], [0], [1], [0, 0, 1, 1], [], []>} : vector<4x32xf32>, vector<32x384xf32>, vector<4x384xf32> -> vector<4x384xf32>
    %228 = arith.addf %223, %227 : vector<4x384xf32>
    %c2_211 = arith.constant 2 : index
    %c0_212 = arith.constant 0 : index
    %c0_213 = arith.constant 0 : index
    %229 = vector.load %arg7[%c2_211, %c0_212, %c0_213] : memref<9x4x32xf32, #tpu.memory_space<vmem>>, vector<1x4x32xf32>
    %230 = vector.shape_cast %229 : vector<1x4x32xf32> to vector<4x32xf32>
    %c0_214 = arith.constant 0 : index
    %c73_215 = arith.constant 73 : index
    %231 = vector.load %arg11[%c0_214, %c73_215] : memref<32x576xf32, #tpu.memory_space<vmem>>, vector<32x384xf32>
    %cst_216 = arith.constant dense<0.000000e+00> : vector<4x384xf32>
    %232 = tpu.matmul %230, %231, %cst_216 {dimension_numbers = #tpu.dot_dimension_numbers<[1], [0], [0], [1], [0, 0, 1, 1], [], []>} : vector<4x32xf32>, vector<32x384xf32>, vector<4x384xf32> -> vector<4x384xf32>
    %233 = arith.addf %228, %232 : vector<4x384xf32>
    %c3_217 = arith.constant 3 : index
    %c0_218 = arith.constant 0 : index
    %c0_219 = arith.constant 0 : index
    %234 = vector.load %arg7[%c3_217, %c0_218, %c0_219] : memref<9x4x32xf32, #tpu.memory_space<vmem>>, vector<1x4x32xf32>
    %235 = vector.shape_cast %234 : vector<1x4x32xf32> to vector<4x32xf32>
    %c0_220 = arith.constant 0 : index
    %c95_221 = arith.constant 95 : index
    %236 = vector.load %arg11[%c0_220, %c95_221] : memref<32x576xf32, #tpu.memory_space<vmem>>, vector<32x384xf32>
    %cst_222 = arith.constant dense<0.000000e+00> : vector<4x384xf32>
    %237 = tpu.matmul %235, %236, %cst_222 {dimension_numbers = #tpu.dot_dimension_numbers<[1], [0], [0], [1], [0, 0, 1, 1], [], []>} : vector<4x32xf32>, vector<32x384xf32>, vector<4x384xf32> -> vector<4x384xf32>
    %238 = arith.addf %233, %237 : vector<4x384xf32>
    %c4_223 = arith.constant 4 : index
    %c0_224 = arith.constant 0 : index
    %c0_225 = arith.constant 0 : index
    %239 = vector.load %arg7[%c4_223, %c0_224, %c0_225] : memref<9x4x32xf32, #tpu.memory_space<vmem>>, vector<1x4x32xf32>
    %240 = vector.shape_cast %239 : vector<1x4x32xf32> to vector<4x32xf32>
    %c0_226 = arith.constant 0 : index
    %c96_227 = arith.constant 96 : index
    %241 = vector.load %arg11[%c0_226, %c96_227] : memref<32x576xf32, #tpu.memory_space<vmem>>, vector<32x384xf32>
    %cst_228 = arith.constant dense<0.000000e+00> : vector<4x384xf32>
    %242 = tpu.matmul %240, %241, %cst_228 {dimension_numbers = #tpu.dot_dimension_numbers<[1], [0], [0], [1], [0, 0, 1, 1], [], []>} : vector<4x32xf32>, vector<32x384xf32>, vector<4x384xf32> -> vector<4x384xf32>
    %243 = arith.addf %238, %242 : vector<4x384xf32>
    %c5_229 = arith.constant 5 : index
    %c0_230 = arith.constant 0 : index
    %c0_231 = arith.constant 0 : index
    %244 = vector.load %arg7[%c5_229, %c0_230, %c0_231] : memref<9x4x32xf32, #tpu.memory_space<vmem>>, vector<1x4x32xf32>
    %245 = vector.shape_cast %244 : vector<1x4x32xf32> to vector<4x32xf32>
    %c0_232 = arith.constant 0 : index
    %c97_233 = arith.constant 97 : index
    %246 = vector.load %arg11[%c0_232, %c97_233] : memref<32x576xf32, #tpu.memory_space<vmem>>, vector<32x384xf32>
    %cst_234 = arith.constant dense<0.000000e+00> : vector<4x384xf32>
    %247 = tpu.matmul %245, %246, %cst_234 {dimension_numbers = #tpu.dot_dimension_numbers<[1], [0], [0], [1], [0, 0, 1, 1], [], []>} : vector<4x32xf32>, vector<32x384xf32>, vector<4x384xf32> -> vector<4x384xf32>
    %248 = arith.addf %243, %247 : vector<4x384xf32>
    %c6_235 = arith.constant 6 : index
    %c0_236 = arith.constant 0 : index
    %c0_237 = arith.constant 0 : index
    %249 = vector.load %arg7[%c6_235, %c0_236, %c0_237] : memref<9x4x32xf32, #tpu.memory_space<vmem>>, vector<1x4x32xf32>
    %250 = vector.shape_cast %249 : vector<1x4x32xf32> to vector<4x32xf32>
    %c0_238 = arith.constant 0 : index
    %c119_239 = arith.constant 119 : index
    %251 = vector.load %arg11[%c0_238, %c119_239] : memref<32x576xf32, #tpu.memory_space<vmem>>, vector<32x384xf32>
    %cst_240 = arith.constant dense<0.000000e+00> : vector<4x384xf32>
    %252 = tpu.matmul %250, %251, %cst_240 {dimension_numbers = #tpu.dot_dimension_numbers<[1], [0], [0], [1], [0, 0, 1, 1], [], []>} : vector<4x32xf32>, vector<32x384xf32>, vector<4x384xf32> -> vector<4x384xf32>
    %253 = arith.addf %248, %252 : vector<4x384xf32>
    %c7_241 = arith.constant 7 : index
    %c0_242 = arith.constant 0 : index
    %c0_243 = arith.constant 0 : index
    %254 = vector.load %arg7[%c7_241, %c0_242, %c0_243] : memref<9x4x32xf32, #tpu.memory_space<vmem>>, vector<1x4x32xf32>
    %255 = vector.shape_cast %254 : vector<1x4x32xf32> to vector<4x32xf32>
    %c0_244 = arith.constant 0 : index
    %c120_245 = arith.constant 120 : index
    %256 = vector.load %arg11[%c0_244, %c120_245] : memref<32x576xf32, #tpu.memory_space<vmem>>, vector<32x384xf32>
    %cst_246 = arith.constant dense<0.000000e+00> : vector<4x384xf32>
    %257 = tpu.matmul %255, %256, %cst_246 {dimension_numbers = #tpu.dot_dimension_numbers<[1], [0], [0], [1], [0, 0, 1, 1], [], []>} : vector<4x32xf32>, vector<32x384xf32>, vector<4x384xf32> -> vector<4x384xf32>
    %258 = arith.addf %253, %257 : vector<4x384xf32>
    %c8_247 = arith.constant 8 : index
    %c0_248 = arith.constant 0 : index
    %c0_249 = arith.constant 0 : index
    %259 = vector.load %arg7[%c8_247, %c0_248, %c0_249] : memref<9x4x32xf32, #tpu.memory_space<vmem>>, vector<1x4x32xf32>
    %260 = vector.shape_cast %259 : vector<1x4x32xf32> to vector<4x32xf32>
    %c0_250 = arith.constant 0 : index
    %c121_251 = arith.constant 121 : index
    %261 = vector.load %arg11[%c0_250, %c121_251] : memref<32x576xf32, #tpu.memory_space<vmem>>, vector<32x384xf32>
    %cst_252 = arith.constant dense<0.000000e+00> : vector<4x384xf32>
    %262 = tpu.matmul %260, %261, %cst_252 {dimension_numbers = #tpu.dot_dimension_numbers<[1], [0], [0], [1], [0, 0, 1, 1], [], []>} : vector<4x32xf32>, vector<32x384xf32>, vector<4x384xf32> -> vector<4x384xf32>
    %263 = arith.addf %258, %262 : vector<4x384xf32>
    %c0_253 = arith.constant 0 : index
    %c0_254 = arith.constant 0 : index
    %264 = vector.load %arg8[%c0_253, %c0_254] : memref<4x1xf32, #tpu.memory_space<vmem>>, vector<4x1xf32>
    %265 = vector.broadcast %264 : vector<4x1xf32> to vector<4x384xf32>
    %266 = arith.addf %263, %265 : vector<4x384xf32>
    %cst_255 = arith.constant 0.000000e+00 : f32
    %267 = vector.broadcast %cst_255 : f32 to vector<4x384xf32>
    %268 = arith.maximumf %266, %267 : vector<4x384xf32>
    %c0_256 = arith.constant 0 : index
    %c0_257 = arith.constant 0 : index
    %c0_258 = arith.constant 0 : index
    %269 = vector.load %arg9[%c0_256, %c0_257, %c0_258] : memref<1x4x384xf32, #tpu.memory_space<vmem>>, vector<1x4x384xf32>
    %270 = vector.shape_cast %269 : vector<1x4x384xf32> to vector<4x384xf32>
    %271 = vector.shape_cast %268 : vector<4x384xf32> to vector<1x4x384xf32>
    tpu.vector_store %arg9[%c0_256, %c0_257, %c0_258], %271 {strides = array<i32>} : memref<1x4x384xf32, #tpu.memory_space<vmem>>, vector<1x4x384xf32>,
    return
  }
  func.func @transform_0(%arg0: i32) -> (i32, i32, i32) {
    %c0_i32 = arith.constant 0 : i32
    %c0_i32_0 = arith.constant 0 : i32
    %c0_i32_1 = arith.constant 0 : i32
    return %arg0, %c0_i32, %c0_i32_0 : i32, i32, i32
  }
  func.func @transform_1(%arg0: i32) -> (i32, i32) {
    %c0_i32 = arith.constant 0 : i32
    %c0_i32_0 = arith.constant 0 : i32
    %c0_i32_1 = arith.constant 0 : i32
    return %c0_i32, %c0_i32_0 : i32, i32
  }
  func.func @transform_2(%arg0: i32) -> (i32, i32, i32) {
    %c0_i32 = arith.constant 0 : i32
    %c0_i32_0 = arith.constant 0 : i32
    %c0_i32_1 = arith.constant 0 : i32
    %c0_i32_2 = arith.constant 0 : i32
    return %c0_i32, %c0_i32_0, %c0_i32_1 : i32, i32, i32
  }
  func.func @transform_3(%arg0: i32) -> (i32, i32) {
    %c0_i32 = arith.constant 0 : i32
    %c0_i32_0 = arith.constant 0 : i32
    %c0_i32_1 = arith.constant 0 : i32
    return %c0_i32, %c0_i32_0 : i32, i32
  }
  func.func @transform_4(%arg0: i32) -> (i32, i32, i32) {
    %c0_i32 = arith.constant 0 : i32
    %c0_i32_0 = arith.constant 0 : i32
    %c0_i32_1 = arith.constant 0 : i32
    %c0_i32_2 = arith.constant 0 : i32
    return %c0_i32, %c0_i32_0, %c0_i32_1 : i32, i32, i32
  }
  func.func @transform_5(%arg0: i32) -> (i32, i32) {
    %c0_i32 = arith.constant 0 : i32
    %c0_i32_0 = arith.constant 0 : i32
    %c0_i32_1 = arith.constant 0 : i32
    return %c0_i32, %c0_i32_0 : i32, i32
  }
  func.func @transform_6(%arg0: i32) -> (i32, i32, i32) {
    %c0_i32 = arith.constant 0 : i32
    %c0_i32_0 = arith.constant 0 : i32
    %c0_i32_1 = arith.constant 0 : i32
    %c0_i32_2 = arith.constant 0 : i32
    return %c0_i32, %c0_i32_0, %c0_i32_1 : i32, i32, i32
  }
  func.func @transform_7(%arg0: i32) -> (i32, i32) {
    %c0_i32 = arith.constant 0 : i32
    %c0_i32_0 = arith.constant 0 : i32
    %c0_i32_1 = arith.constant 0 : i32
    return %c0_i32, %c0_i32_0 : i32, i32
  }
  func.func @transform_8(%arg0: i32) -> (i32, i32, i32) {
    %c0_i32 = arith.constant 0 : i32
    %c0_i32_0 = arith.constant 0 : i32
    %c0_i32_1 = arith.constant 0 : i32
    return %arg0, %c0_i32, %c0_i32_0 : i32, i32, i32
  }
}

</mosaic_0001>

<bundles_post_ra>
// kernel: tile.8
= control target key start
LH: loop header
LB: loop body
LE: loop exit
PB: predicated region body
PF: predicated region fallthrough
CT: control target
= control target key end

     0   :  { %s28_s0 = inlined_call_operand.vmem [shape: f32[24], index: 0, kind: input, shape index: {}]   ;;  %s29_s1 = inlined_call_operand.vmem [shape: f32[16,24], index: 1, kind: output, shape index: {}]  }
   0x1   :  { %v4_v0 = vld [vmem:[%s28_s0] ss:$0 sm:$0xff] }
   0x2   :  { %5 = vst [vmem:[%s29_s1] sm:$0xff] %v4_v0  ;;  %8 = vst [vmem:[%s29_s1 + $0x8] sm:$0xff] %v4_v0 }

// kernel: tile.9
= control target key start
LH: loop header
LB: loop body
LE: loop exit
PB: predicated region body
PF: predicated region fallthrough
CT: control target
= control target key end

     0   :  { %vm9_vm0 = vcmask 64512   ;;  %vm13_vm1 = vcmask 130048   ;;  %s171_s14 = smov 120   ;;  %s172_s15 = smov 104   ;;  %vm3_vm2 = vcmask 195584   ;;  %vm16_vm3 = vcmask 1048512   ;;  %s263_s0 = inlined_call_operand.vmem [shape: f32[16,24], index: 0, kind: input, shape index: {}]   ;;  %s264_s1 = inlined_call_operand.vmem [shape: f32[1,384], index: 1, kind: output, shape index: {}]  }
   0x1   :  { %v137_v0 = vld [vmem:[%s263_s0 + $0x5] sm:$0x1]   ;;  %v141_v3 = vld [vmem:[%s263_s0 + $0xf] sm:$0x1]   ;;  %v139_v4 = vld [vmem:[%s263_s0 + $0xa] sm:$0x1]  }
   0x2   :  { %v138_v1 = vld [vmem:[%s263_s0 + $0x5] sm:$0x1]   ;;  %34 = vrot.lane.b32.xlu1 %v141_v3, %s172_s15  ;;  %v140_v5 = vld [vmem:[%s263_s0 + $0xa] sm:$0x1]   ;;  %v142_v7 = vld [vmem:[%s263_s0 + $0x4] sm:$0x1]  }
   0x3   :  { %v10_v2 = vsel %vm9_vm0, %v138_v1, %v137_v0  ;;  %v23_v6 = vsel %vm13_vm1, %v140_v5, %v139_v4  ;;  %s173_s20 = smov 112   ;;  %s174_s21 = smov 96   ;;  %v143_v8 = vld [vmem:[%s263_s0 + $0x9] sm:$0x1]   ;;  %v144_v9 = vld [vmem:[%s263_s0 + $0xe] sm:$0x1]  }
   0x4   :  { %11 = vrot.lane.b32.xlu0 %v10_v2, %s171_s14  ;;  %v2_v10 = vld [vmem:[%s263_s0] sm:$0x1]   ;;  %s175_s28 = smov 88   ;;  %s176_s29 = smov 80   ;;  %v145_v11 = vld [vmem:[%s263_s0 + $0x3] sm:$0x1]  }
   0x5   :  { %4 = vst.msk [vmem:[#allocation0] sm:$0x1] %vm3_vm2, %v2_v10   ;;  %v146_v12 = vld [vmem:[%s263_s0 + $0x8] sm:$0x1]   ;;  %s177_s5 = smov 72   ;;  %s178_s6 = smov 64  }
   0x6   :  { %41 = vrot.lane.b32.xlu1 %v142_v7, %s174_s21  ;;  %v147_v13 = vld [vmem:[%s263_s0 + $0xd] sm:$0x1]   ;;  %v148_v14 = vld [vmem:[%s263_s0 + $0x2] sm:$0x1]   ;;  %s179_s11 = smov 56   ;;  %s180_s12 = smov 48  }
   0x7   :  { %v149_v15 = vld [vmem:[%s263_s0 + $0x7] sm:$0x1]   ;;  %v150_v16 = vld [vmem:[%s263_s0 + $0xc] sm:$0x1]   ;;  %s181_s17 = smov 40   ;;  %s182_s18 = smov 32  }
   0x8   :  { %24 = vrot.lane.b32.xlu0 %v23_v6, %s173_s20  ;;  %v151_v17 = vld [vmem:[%s263_s0 + $0x1] sm:$0x1]   ;;  %v152_v18 = vld [vmem:[%s263_s0 + $0x6] sm:$0x1]   ;;  %s183_s23 = smov 24   ;;  %s184_s24 = smov 16  }
   0x9   :  { %v153_v19 = vld [vmem:[%s263_s0 + $0xb] sm:$0x1]   ;;  %s185_s0 = smov 8   ;;  %vm29_vm4 = vcmask 1048448   ;;  %vm43_vm5 = vcmask 982784   ;;  %vm36_vm6 = vcmask 1048384  }
   0xa   :  { %54 = vrot.lane.b32.xlu1 %v144_v9, %s176_s29  ;;  %vm49_vm7 = vcmask 917184   ;;  %vm56_vm8 = vcmask 851584   ;;  %vm63_vm9 = vcmask 785984   ;;  %vm69_vm10 = vcmask 720384  }
   0xb   :  { %vm76_vm11 = vcmask 654784   ;;  %vm83_vm12 = vcmask 589184   ;;  %vm89_vm13 = vcmask 523584   ;;  %vm96_vm14 = vcmask 457984  }
   0xc   :  { %47 = vrot.lane.b32.xlu0 %v143_v8, %s175_s28  ;;  %vm103_vm15 = vcmask 392384  }
   0xe   :  { %67 = vrot.lane.b32.xlu1 %v146_v12, %s178_s6 }
  0x10   :  { %61 = vrot.lane.b32.xlu0 %v145_v11, %s177_s5 }
  0x12   :  { %81 = vrot.lane.b32.xlu1 %v148_v14, %s180_s12 }
  0x14   :  { %74 = vrot.lane.b32.xlu0 %v147_v13, %s179_s11 }
  0x16   :  { %94 = vrot.lane.b32.xlu1 %v150_v16, %s182_s18 }
  0x18   :  { %87 = vrot.lane.b32.xlu0 %v149_v15, %s181_s17 }
  0x1a   :  { %107 = vrot.lane.b32.xlu1 %v152_v18, %s184_s24 }
  0x1c   :  { %101 = vrot.lane.b32.xlu0 %v151_v17, %s183_s23 }
  0x20   :  { %114 = vrot.lane.b32.xlu0 %v153_v19, %s185_s0 }
  0x74   :  { %v35_v21 = vpop.permute.xlu1 %34  }
  0x76   :  { %v12_v20 = vpop.permute.xlu0 %11  }
  0x77   :  { %15 = vst.msk [vmem:[#allocation0 + $0x8] sm:$0x1] %vm13_vm1, %v12_v20   ;;  %vm116_vm1 = vcmask 261184  }
  0x78   :  { %17 = vst.msk [vmem:[#allocation0] sm:$0x1] %vm16_vm3, %v12_v20   ;;  %v42_v23 = vpop.permute.xlu1 %41  }
  0x79   :  { %44 = vst.msk [vmem:[#allocation0] sm:$0x1] %vm43_vm5, %v42_v23  }
  0x7a   :  { %v25_v22 = vpop.permute.xlu0 %24  }
  0x7b   :  { %28 = vst.msk [vmem:[#allocation0 + $0x10] sm:$0x1] %vm9_vm0, %v25_v22   ;;  %vm109_vm0 = vcmask 326784  }
  0x7c   :  { %31 = vst.msk [vmem:[#allocation0 + $0x8] sm:$0x1] %vm29_vm4, %v25_v22   ;;  %v55_v25 = vpop.permute.xlu1 %54  }
  0x7d   :  { %38 = vst.msk [vmem:[#allocation0 + $0x10] sm:$0x1] %vm36_vm6, %v35_v21  }
  0x7e   :  { %v48_v24 = vpop.permute.xlu0 %47   ;;  %58 = vst.msk [vmem:[#allocation0 + $0x10] sm:$0x1] %vm56_vm8, %v55_v25  }
  0x7f   :  { %51 = vst.msk [vmem:[#allocation0 + $0x8] sm:$0x1] %vm49_vm7, %v48_v24  }
  0x80   :  { %v68_v27 = vpop.permute.xlu1 %67  }
  0x81   :  { %71 = vst.msk [vmem:[#allocation0 + $0x8] sm:$0x1] %vm69_vm10, %v68_v27  }
  0x82   :  { %v62_v26 = vpop.permute.xlu0 %61  }
  0x83   :  { %64 = vst.msk [vmem:[#allocation0] sm:$0x1] %vm63_vm9, %v62_v26  }
  0x84   :  { %v82_v29 = vpop.permute.xlu1 %81  }
  0x85   :  { %84 = vst.msk [vmem:[#allocation0] sm:$0x1] %vm83_vm12, %v82_v29  }
  0x86   :  { %v75_v28 = vpop.permute.xlu0 %74  }
  0x87   :  { %78 = vst.msk [vmem:[#allocation0 + $0x10] sm:$0x1] %vm76_vm11, %v75_v28  }
  0x88   :  { %v95_v31 = vpop.permute.xlu1 %94  }
  0x89   :  { %98 = vst.msk [vmem:[#allocation0 + $0x10] sm:$0x1] %vm96_vm14, %v95_v31  }
  0x8a   :  { %v88_v30 = vpop.permute.xlu0 %87  }
  0x8b   :  { %91 = vst.msk [vmem:[#allocation0 + $0x8] sm:$0x1] %vm89_vm13, %v88_v30  }
  0x8c   :  { %v108_v33 = vpop.permute.xlu1 %107  }
  0x8d   :  { %111 = vst.msk [vmem:[#allocation0 + $0x8] sm:$0x1] %vm109_vm0, %v108_v33  }
  0x8e   :  { %v102_v32 = vpop.permute.xlu0 %101  }
  0x8f   :  { %104 = vst.msk [vmem:[#allocation0] sm:$0x1] %vm103_vm15, %v102_v32  }
  0x92   :  { %v115_v34 = vpop.permute.xlu0 %114  }
  0x93   :  { %118 = vst.msk [vmem:[#allocation0 + $0x10] sm:$0x1] %vm116_vm1, %v115_v34  }
  0x94   :  { %v126_v36 = vld [vmem:[#allocation0 + $0x8] sm:$0x1] }
  0x95   :  { %154 = vst [vmem:[%s264_s1 + $0x1] sm:$0x1] %v126_v36 }
  0x96   :  { %v122_v35 = vld [vmem:[#allocation0] sm:$0x1] }
  0x97   :  { %124 = vst [vmem:[%s264_s1] sm:$0x1] %v122_v35 }
  0x9a   :  { %v131_v37 = vld [vmem:[#allocation0 + $0x10] sm:$0x1] }
  0x9b   :  { %155 = vst [vmem:[%s264_s1 + $0x2] sm:$0x1] %v131_v37 }

// kernel: espcn_forward.1
= control target key start
LH: loop header
LB: loop body
LE: loop exit
PB: predicated region body
PF: predicated region fallthrough
CT: control target
= control target key end

     0   :  { %s16898_s27 = smov 0   ;;  %s21448_s0 = inlined_call_operand.vmem [shape: f32[2,8,576], index: 0, kind: input, shape index: {}]   ;;  %s21449_s1 = inlined_call_operand.vmem [shape: f32[1,384], index: 1, kind: input, shape index: {}]   ;;  %s21450_s2 = inlined_call_operand.vmem [shape: f32[25,64,8], index: 2, kind: input, shape index: {}]   ;;  %s21451_s3 = inlined_call_operand.vmem [shape: f32[64,1], index: 3, kind: input, shape index: {}]   ;;  %s21452_s4 = inlined_call_operand.vmem [shape: f32[9,32,64], index: 4, kind: input, shape index: {}]   ;;  %s21453_s5 = inlined_call_operand.vmem [shape: f32[32,1], index: 5, kind: input, shape index: {}]   ;;  %s21454_s6 = inlined_call_operand.vmem [shape: f32[9,4,32], index: 6, kind: input, shape index: {}]   ;;  %s21455_s7 = inlined_call_operand.vmem [shape: f32[4,1], index: 7, kind: input, shape index: {}]   ;;  %s21456_s8 = inlined_call_operand.vmem [shape: f32[2,4,384], index: 8, kind: output, shape index: {}]  }
   0x1 LB: > { %s12828_s28 = sadd.s32 4294967295, %s16821_s27   ;;  %p12832_p0 = scmp.ge.s32.totalorder %s16821_s27, 1  ;;  %s16821_s27 = sphi %s16898_s27, %s18_s27  }
   0x2   : > { %p262_p1 = scmp.lt.s32.totalorder %s16821_s27, 3 }
   0x4   : > { %p263_p2 = pnand %p12832_p0, %p262_p1 }
   0x6   : > { %266 = sbr.rel (%p263_p2) target bundleno = 2497 (0x9c1), region = 52 }
   0xd   : > { %p16908_p3 = scmp.lt.s32.totalorder %s12828_s28, 1  ;;  %v16823_v0 = vmov 0.0   ;;  %s16824_s12 = smov 81   ;;  %vm401_vm0 = vcmask 662528   ;;  %v12835_v10 = vld [vmem:[%s21450_s2 + $0x40] sm:$0xff]  ;;  %vm408_vm1 = vcmask 64512  }
   0xe   : > { %497 = vmatprep.mubr.f32.mxu0 %v16823_v0  ;;  %306 = vst [vmem:[#allocation2] sm:$0xff] %v16823_v0  ;;  %309 = vst [vmem:[#allocation2 + $0x18] sm:$0xff] %v16823_v0  ;;  %539 = vmatprep.mubr.f32.mxu1 %v16823_v0  ;;  %s16825_s13 = smov 82   ;;  %s16826_s14 = smov 80   ;;  %v17092_v11 = vld [vmem:[%s21450_s2 + $0x78] sm:$0xff]  ;;  %vm659_vm2 = vcmask 670720  }
   0xf   : > { %312 = vst [vmem:[#allocation2 + $0x28] sm:$0xff] %v16823_v0  ;;  %315 = vst [vmem:[#allocation2 + $0x40] sm:$0xff] %v16823_v0  ;;  %s21619_s28 = smov (!%p16908_p3, %s12828_s28), 1  ;;  %s16827_s15 = smov 79   ;;  %v17105_v16 = vld [vmem:[%s21450_s2 + $0x48] sm:$0xff]  ;;  %vm925_vm3 = vcmask 654336  }
  0x10   : > { %317 = vst [vmem:[#allocation2 + $0x50] sm:$0xff] %v16823_v0  ;;  %320 = vst [vmem:[#allocation2 + $0x68] sm:$0xff] %v16823_v0  ;;  %s15688_s30 = smul.u32 40, %s21619_s28  ;;  %s16828_s16 = smov 78   ;;  %v17122_v20 = vld [vmem:[%s21450_s2 + $0x50] sm:$0xff]  ;;  %v17138_v24 = vld [vmem:[%s21450_s2 + $0x58] sm:$0xff] }
  0x11   : > { %322 = vst [vmem:[#allocation2 + $0x78] sm:$0xff] %v16823_v0  ;;  %325 = vst [vmem:[#allocation2 + $0x90] sm:$0xff] %v16823_v0  ;;  %s16829_s17 = smov 58   ;;  %s16830_s18 = smov 57   ;;  %v17154_v27 = vld [vmem:[%s21450_s2 + $0x60] sm:$0xff]  ;;  %v17170_v30 = vld [vmem:[%s21450_s2 + $0x68] sm:$0xff] }
  0x12   : > { %327 = vst [vmem:[#allocation2 + $0xa0] sm:$0xff] %v16823_v0  ;;  %330 = vst [vmem:[#allocation2 + $0xb8] sm:$0xff] %v16823_v0  ;;  %s16948_s11 = scalar_lea.vmem %s21448_s0, %s15688_s30  ;;  %s16831_s19 = smov 56   ;;  %v17186_v33 = vld [vmem:[%s21450_s2 + $0x70] sm:$0xff]  ;;  %vm1215_vm4 = vcmask 646144   ;;  %v17198_v36 = vld [vmem:[%s21450_s2] sm:$0xff] }
  0x13   : > { %332 = vst [vmem:[#allocation2 + $0xc8] sm:$0xff] %v16823_v0  ;;  %335 = vst [vmem:[#allocation2 + $0xe0] sm:$0xff] %v16823_v0  ;;  %v16951_v1 = vld [vmem:[%s16948_s11 + $0x8] sm:$0xff]  ;;  %v16954_v2 = vld [vmem:[%s16948_s11] sm:$0xff]  ;;  %s16832_s20 = smov 55   ;;  %s16833_s21 = smov 54  }
  0x14   : > { %337 = vst [vmem:[#allocation2 + $0xf0] sm:$0xff] %v16823_v0  ;;  %340 = vst [vmem:[#allocation2 + $0x108] sm:$0xff] %v16823_v0  ;;  %395 = vrot.lane.b32.xlu0 %v16951_v1, %s16824_s12  ;;  %393 = vrot.lane.b32.xlu1 %v16954_v2, %s16824_s12  ;;  %v16961_v3 = vld [vmem:[%s16948_s11 + $0x10] sm:$0xff]  ;;  %s16834_s22 = smov 34   ;;  %s16835_s23 = smov 33   ;;  %v17036_v4 = vld [vmem:[%s16948_s11 + $0x18] sm:$0xff] }
  0x15   : > { %342 = vst [vmem:[#allocation2 + $0x118] sm:$0xff] %v16823_v0  ;;  %345 = vst [vmem:[#allocation2 + $0x130] sm:$0xff] %v16823_v0  ;;  %s16836_s24 = smov 32   ;;  %s16837_s25 = smov 31   ;;  %v17214_v41 = vld [vmem:[%s21450_s2 + $0x8] sm:$0xff]  ;;  %v17230_v44 = vld [vmem:[%s21450_s2 + $0x10] sm:$0xff] }
  0x16   : > { %347 = vst [vmem:[#allocation3] sm:$0xff] %v16823_v0  ;;  %350 = vst [vmem:[#allocation3 + $0x18] sm:$0xff] %v16823_v0  ;;  %s16838_s26 = smov 30   ;;  %s16839_s29 = smov 10   ;;  %v17246_v47 = vld [vmem:[%s21450_s2 + $0x18] sm:$0xff]  ;;  %v17260_v50 = vld [vmem:[%s21450_s2 + $0x20] sm:$0xff] }
  0x17   : > { %352 = vst [vmem:[#allocation3 + $0x28] sm:$0xff] %v16823_v0  ;;  %355 = vst [vmem:[#allocation3 + $0x40] sm:$0xff] %v16823_v0  ;;  %s16840_s30 = smov 9   ;;  %v17272_v53 = vld [vmem:[%s21450_s2 + $0x28] sm:$0xff]  ;;  %v17284_v56 = vld [vmem:[%s21450_s2 + $0x30] sm:$0xff]  ;;  %vm1505_vm5 = vcmask 637952  }
  0x18   : > { %357 = vst [vmem:[#allocation3 + $0x50] sm:$0xff] %v16823_v0  ;;  %360 = vst [vmem:[#allocation3 + $0x68] sm:$0xff] %v16823_v0  ;;  %397 = vrot.lane.b32.xlu0 %v16961_v3, %s16824_s12  ;;  %653 = vrot.lane.b32.xlu1 %v16951_v1, %s16825_s13  ;;  %v17296_v59 = vld [vmem:[%s21450_s2 + $0x38] sm:$0xff]  ;;  %v17308_v62 = vld [vmem:[%s21450_s2 + $0x80] sm:$0xff]  ;;  %vm1795_vm6 = vcmask 474112   ;;  %vm2085_vm7 = vcmask 465920  }
  0x19   : > { %362 = vst [vmem:[#allocation3 + $0x78] sm:$0xff] %v16823_v0  ;;  %365 = vst [vmem:[#allocation3 + $0x90] sm:$0xff] %v16823_v0  ;;  %vm2375_vm8 = vcmask 457728   ;;  %vm2665_vm9 = vcmask 449536   ;;  %vm2955_vm10 = vcmask 441344   ;;  %vm3245_vm11 = vcmask 277504  }
  0x1a   : > { %vm3535_vm12 = vcmask 269312   ;;  %vm3825_vm13 = vcmask 261120   ;;  %vm4115_vm14 = vcmask 252928   ;;  %vm4405_vm15 = vcmask 244736  }
  0x1c   : > { %655 = vrot.lane.b32.xlu0 %v16961_v3, %s16825_s13  ;;  %651 = vrot.lane.b32.xlu1 %v16954_v2, %s16825_s13 }
  0x20   : > { %919 = vrot.lane.b32.xlu0 %v16951_v1, %s16826_s14  ;;  %921 = vrot.lane.b32.xlu1 %v16961_v3, %s16826_s14 }
  0x24   : > { %917 = vrot.lane.b32.xlu0 %v16954_v2, %s16826_s14  ;;  %1209 = vrot.lane.b32.xlu1 %v16951_v1, %s16827_s15 }
  0x28   : > { %1211 = vrot.lane.b32.xlu0 %v16961_v3, %s16827_s15  ;;  %1207 = vrot.lane.b32.xlu1 %v16954_v2, %s16827_s15 }
  0x2c   : > { %1499 = vrot.lane.b32.xlu0 %v16951_v1, %s16828_s16  ;;  %1501 = vrot.lane.b32.xlu1 %v16961_v3, %s16828_s16 }
  0x30   : > { %1497 = vrot.lane.b32.xlu0 %v16954_v2, %s16828_s16  ;;  %1789 = vrot.lane.b32.xlu1 %v16951_v1, %s16829_s17 }
  0x34   : > { %1791 = vrot.lane.b32.xlu0 %v16961_v3, %s16829_s17  ;;  %1787 = vrot.lane.b32.xlu1 %v16954_v2, %s16829_s17 }
  0x38   : > { %2079 = vrot.lane.b32.xlu0 %v16951_v1, %s16830_s18  ;;  %2081 = vrot.lane.b32.xlu1 %v16961_v3, %s16830_s18 }
  0x3c   : > { %2077 = vrot.lane.b32.xlu0 %v16954_v2, %s16830_s18  ;;  %2369 = vrot.lane.b32.xlu1 %v16951_v1, %s16831_s19 }
  0x40   : > { %2371 = vrot.lane.b32.xlu0 %v16961_v3, %s16831_s19  ;;  %2367 = vrot.lane.b32.xlu1 %v16954_v2, %s16831_s19 }
  0x44   : > { %2659 = vrot.lane.b32.xlu0 %v16951_v1, %s16832_s20  ;;  %2661 = vrot.lane.b32.xlu1 %v16961_v3, %s16832_s20 }
  0x48   : > { %2657 = vrot.lane.b32.xlu0 %v16954_v2, %s16832_s20  ;;  %2949 = vrot.lane.b32.xlu1 %v16951_v1, %s16833_s21 }
  0x4c   : > { %2951 = vrot.lane.b32.xlu0 %v16961_v3, %s16833_s21  ;;  %2947 = vrot.lane.b32.xlu1 %v16954_v2, %s16833_s21 }
  0x50   : > { %3239 = vrot.lane.b32.xlu0 %v16951_v1, %s16834_s22  ;;  %3241 = vrot.lane.b32.xlu1 %v16961_v3, %s16834_s22 }
  0x54   : > { %3237 = vrot.lane.b32.xlu0 %v16954_v2, %s16834_s22  ;;  %3529 = vrot.lane.b32.xlu1 %v16951_v1, %s16835_s23 }
  0x58   : > { %3531 = vrot.lane.b32.xlu0 %v16961_v3, %s16835_s23  ;;  %3527 = vrot.lane.b32.xlu1 %v16954_v2, %s16835_s23 }
  0x5c   : > { %3819 = vrot.lane.b32.xlu0 %v16951_v1, %s16836_s24  ;;  %3821 = vrot.lane.b32.xlu1 %v16961_v3, %s16836_s24 }
  0x60   : > { %3817 = vrot.lane.b32.xlu0 %v16954_v2, %s16836_s24  ;;  %399 = vrot.lane.b32.xlu1 %v17036_v4, %s16824_s12  ;;  %s16846_s12 = smov 112  }
  0x64   : > { %4109 = vrot.lane.b32.xlu0 %v16951_v1, %s16837_s25  ;;  %4111 = vrot.lane.b32.xlu1 %v16961_v3, %s16837_s25 }
  0x68   : > { %4107 = vrot.lane.b32.xlu0 %v16954_v2, %s16837_s25  ;;  %657 = vrot.lane.b32.xlu1 %v17036_v4, %s16825_s13  ;;  %s16842_s13 = smov 7  }
  0x6c   : > { %923 = vrot.lane.b32.xlu0 %v17036_v4, %s16826_s14  ;;  %4399 = vrot.lane.b32.xlu1 %v16951_v1, %s16838_s26 }
  0x70   : > { %4401 = vrot.lane.b32.xlu0 %v16961_v3, %s16838_s26  ;;  %4397 = vrot.lane.b32.xlu1 %v16954_v2, %s16838_s26 }
  0x74   : > { %1213 = vrot.lane.b32.xlu0 %v17036_v4, %s16827_s15  ;;  %1503 = vrot.lane.b32.xlu1 %v17036_v4, %s16828_s16  ;;  %s16841_s16 = smov 8   ;;  %s16844_s15 = smov 114  }
  0x78   : > { %4691 = vrot.lane.b32.xlu1 %v16961_v3, %s16839_s29  ;;  %4689 = vrot.lane.b32.xlu0 %v16951_v1, %s16839_s29 }
  0x7c   : > { %1793 = vrot.lane.b32.xlu1 %v17036_v4, %s16829_s17  ;;  %4687 = vrot.lane.b32.xlu0 %v16954_v2, %s16839_s29  ;;  %s16845_s17 = smov 113  }
  0x80   : > { %2083 = vrot.lane.b32.xlu0 %v17036_v4, %s16830_s18  ;;  %4979 = vrot.lane.b32.xlu1 %v16951_v1, %s16840_s30 }
  0x84   : > { %4981 = vrot.lane.b32.xlu0 %v16961_v3, %s16840_s30  ;;  %4977 = vrot.lane.b32.xlu1 %v16954_v2, %s16840_s30 }
  0x86   : > { %v396_v5 = vpop.permute.xlu0 %395  ;;  %v394_v6 = vpop.permute.xlu1 %393 }
  0x87   : > { %v402_v12 = vsel %vm401_vm0, %v394_v6, %v396_v5 }
  0x88   : > { %2373 = vrot.lane.b32.xlu0 %v17036_v4, %s16831_s19  ;;  %2663 = vrot.lane.b32.xlu1 %v17036_v4, %s16832_s20 }
  0x8a   : > { %v17082_v7 = vpop.permute.xlu0 %397  ;;  %v654_v8 = vpop.permute.xlu1 %653 }
  0x8b   : > { %v403_v9 = vsel %vm401_vm0, %v396_v5, %v17082_v7  ;;  %v17326_v5 = vld [vmem:[%s21450_s2 + $0x88] sm:$0xff] }
  0x8c   : > { %433 = vmatprep.subr.mxu0 %v403_v9  ;;  %14998 = vmatprep.subr.mxu1 %v403_v9  ;;  %v17340_v9 = vld [vmem:[%s21450_s2 + $0x90] sm:$0xff] }
  0x8d   : > { %434 = vmatpush1.msra.mxu0 %v402_v12  ;;  %14999 = vmatpush1.msra.mxu1 %v402_v12 }
  0x8e   : > { %v17095_v13 = vpop.permute.xlu0 %655  ;;  %12843 = vmatmul.mubr.msk.f32.vlgmr.msra.gmra.mrb[0].mxu0 %vm408_vm1, %v12835_v10  ;;  %v652_v14 = vpop.permute.xlu1 %651  ;;  %12850 = vmatmul.mubr.msk.f32.vlgmr.msra.gmra.mrb[0].mxu1 %vm408_vm1, %v17092_v11 }
  0x8f   : > { %v660_v15 = vsel %vm659_vm2, %v652_v14, %v654_v8  ;;  %503 = vmatprep.mubr.f32.mxu0 %v16823_v0  ;;  %v661_v17 = vsel %vm659_vm2, %v654_v8, %v17095_v13  ;;  %13939 = vmatprep.mubr.msk.f32.mxu1 %vm408_vm1, %v12835_v10 }
  0x90   : > { %690 = vmatprep.subr.mxu0 %v661_v17  ;;  %5271 = vrot.lane.b32.xlu1 %v16961_v3, %s16841_s16 }
  0x91   : > { %691 = vmatpush1.msra.mxu0 %v660_v15  ;;  %5269 = vrot.lane.b32.xlu0 %v16951_v1, %s16841_s16  ;;  %v17354_v15 = vld [vmem:[%s21450_s2 + $0x98] sm:$0xff] }
  0x92   : > { %v920_v18 = vpop.permute.xlu0 %919  ;;  %12844 = vmatmul.mubr.msk.f32.gmra.mrb[2].mxu0 %vm408_vm1, %v17105_v16  ;;  %v17116_v19 = vpop.permute.xlu1 %921 }
  0x93   : > { %509 = vmatprep.mubr.f32.mxu0 %v16823_v0  ;;  %v927_v21 = vsel %vm925_vm3, %v920_v18, %v17116_v19 }
  0x94   : > { %956 = vmatprep.subr.mxu0 %v927_v21  ;;  %2953 = vrot.lane.b32.xlu1 %v17036_v4, %s16833_s21  ;;  %v17373_v21 = vld [vmem:[%s21450_s2 + $0xa0] sm:$0xff] }
  0x95   : > { %5267 = vrot.lane.b32.xlu0 %v16954_v2, %s16841_s16 }
  0x96   : > { %v918_v22 = vpop.permute.xlu0 %917  ;;  %12845 = vmatmul.mubr.msk.f32.gmra.mrb[4].mxu0 %vm408_vm1, %v17122_v20  ;;  %v17132_v23 = vpop.permute.xlu1 %1209 }
  0x97   : > { %515 = vmatprep.mubr.f32.mxu0 %v16823_v0  ;;  %v926_v37 = vsel %vm925_vm3, %v918_v22, %v920_v18 }
  0x98   : > { %5558 = vrot.lane.b32.xlu1 %v16951_v1, %s16842_s13 }
  0x99   : > { %3243 = vrot.lane.b32.xlu0 %v17036_v4, %s16834_s22  ;;  %s16843_s22 = smov 6  }
  0x9a   : > { %v17144_v25 = vpop.permute.xlu0 %1211  ;;  %12846 = vmatmul.mubr.msk.f32.gmra.mrb[6].mxu0 %vm408_vm1, %v17138_v24  ;;  %v17148_v26 = vpop.permute.xlu1 %1207 }
  0x9b   : > { %521 = vmatprep.mubr.f32.mxu0 %v16823_v0  ;;  %v1217_v38 = vsel %vm1215_vm4, %v17132_v23, %v17144_v25  ;;  %v1216_v63 = vsel %vm1215_vm4, %v17148_v26, %v17132_v23  ;;  %v17394_v26 = vld [vmem:[%s21450_s2 + $0xa8] sm:$0xff] }
  0x9c   : > { %5556 = vrot.lane.b32.xlu1 %v16954_v2, %s16842_s13 }
  0x9d   : > { %5560 = vrot.lane.b32.xlu0 %v16961_v3, %s16842_s13 }
  0x9e   : > { %v17160_v28 = vpop.permute.xlu0 %1499  ;;  %12847 = vmatmul.mubr.msk.f32.gmra.mrb[8].mxu0 %vm408_vm1, %v17154_v27  ;;  %v17164_v29 = vpop.permute.xlu1 %1501 }
  0x9f   : > { %527 = vmatprep.mubr.f32.mxu0 %v16823_v0 }
  0xa0   : > { %3823 = vrot.lane.b32.xlu1 %v17036_v4, %s16836_s24 }
  0xa1   : > { %3533 = vrot.lane.b32.xlu0 %v17036_v4, %s16835_s23 }
  0xa2   : > { %v17176_v31 = vpop.permute.xlu0 %1497  ;;  %12848 = vmatmul.mubr.msk.f32.gmra.mrb[10].mxu0 %vm408_vm1, %v17170_v30  ;;  %v17180_v32 = vpop.permute.xlu1 %1789 }
  0xa3   : > { %533 = vmatprep.mubr.f32.mxu0 %v16823_v0 }
  0xa4   : > { %5850 = vrot.lane.b32.xlu1 %v16961_v3, %s16843_s22 }
  0xa5   : > { %5848 = vrot.lane.b32.xlu0 %v16951_v1, %s16843_s22  ;;  %v1507_v1 = vsel %vm1505_vm5, %v17160_v28, %v17164_v29 }
  0xa6   : > { %v17188_v34 = vpop.permute.xlu0 %1791  ;;  %12849 = vmatmul.mubr.msk.f32.gmra.mrb[12].mxu0 %vm408_vm1, %v17186_v33  ;;  %v17192_v35 = vpop.permute.xlu1 %1787 }
  0xa7   : > { %754 = vmatprep.mubr.f32.mxu0 %v16823_v0 }
  0xa8   : > { %4113 = vrot.lane.b32.xlu1 %v17036_v4, %s16837_s25 }
  0xa9   : > { %5846 = vrot.lane.b32.xlu0 %v16954_v2, %s16843_s22 }
  0xaa   : > { %v17204_v39 = vpop.permute.xlu0 %2079  ;;  %12859 = vmatmul.mubr.msk.f32.vlgmr.msra.gmra.mrb[0].mxu0 %vm408_vm1, %v17198_v36  ;;  %v17208_v40 = vpop.permute.xlu1 %2081 }
  0xab   : > { %760 = vmatprep.mubr.f32.mxu0 %v16823_v0  ;;  %957 = vmatpush1.msra.mxu0 %v926_v37 }
  0xac   : > { %1246 = vmatprep.subr.mxu0 %v1217_v38  ;;  %v1506_v38 = vsel %vm1505_vm5, %v17176_v31, %v17160_v28  ;;  %v12901_v28 = vld [vmem:[%s21450_s2 + $0xd0] sm:$0xff] }
  0xad   : > { %4403 = vrot.lane.b32.xlu0 %v17036_v4, %s16838_s26  ;;  %s16847_s26 = smov 111  }
  0xae   : > { %v17220_v42 = vpop.permute.xlu0 %2077  ;;  %12860 = vmatmul.mubr.msk.f32.gmra.mrb[2].mxu0 %vm408_vm1, %v17214_v41  ;;  %v17224_v43 = vpop.permute.xlu1 %2369 }
  0xaf   : > { %766 = vmatprep.mubr.f32.mxu0 %v16823_v0 }
  0xb1   : > { %6148 = vrot.lane.b32.xlu0 %v17036_v4, %s16844_s15 }
  0xb2   : > { %v17236_v45 = vpop.permute.xlu0 %2371  ;;  %12861 = vmatmul.mubr.msk.f32.gmra.mrb[4].mxu0 %vm408_vm1, %v17230_v44  ;;  %v17240_v46 = vpop.permute.xlu1 %2367 }
  0xb3   : > { %772 = vmatprep.mubr.f32.mxu0 %v16823_v0 }
  0xb5   : > { %4693 = vrot.lane.b32.xlu0 %v17036_v4, %s16839_s29 }
  0xb6   : > { %v17250_v48 = vpop.permute.xlu0 %2659  ;;  %12862 = vmatmul.mubr.msk.f32.gmra.mrb[6].mxu0 %vm408_vm1, %v17246_v47  ;;  %v17254_v49 = vpop.permute.xlu1 %2661 }
  0xb7   : > { %778 = vmatprep.mubr.f32.mxu0 %v16823_v0 }
  0xba   : > { %v17262_v51 = vpop.permute.xlu0 %2657  ;;  %12863 = vmatmul.mubr.msk.f32.gmra.mrb[8].mxu0 %vm408_vm1, %v17260_v50  ;;  %v17266_v52 = vpop.permute.xlu1 %2949 }
  0xbb   : > { %784 = vmatprep.mubr.f32.mxu0 %v16823_v0 }
  0xbe   : > { %v17274_v54 = vpop.permute.xlu0 %2951  ;;  %12864 = vmatmul.mubr.msk.f32.gmra.mrb[10].mxu0 %vm408_vm1, %v17272_v53  ;;  %v17278_v55 = vpop.permute.xlu1 %2947 }
  0xbf   : > { %790 = vmatprep.mubr.f32.mxu0 %v16823_v0 }
  0xc2   : > { %v17286_v57 = vpop.permute.xlu0 %3239  ;;  %12865 = vmatmul.mubr.msk.f32.gmra.mrb[12].mxu0 %vm408_vm1, %v17284_v56  ;;  %v17290_v58 = vpop.permute.xlu1 %3241 }
  0xc3   : > { %796 = vmatprep.mubr.f32.mxu0 %v16823_v0 }
  0xc6   : > { %v17298_v60 = vpop.permute.xlu0 %3237  ;;  %12866 = vmatmul.mubr.msk.f32.gmra.mrb[14].mxu0 %vm408_vm1, %v17296_v59  ;;  %v17302_v61 = vpop.permute.xlu1 %3529 }
  0xc7   : > { %1020 = vmatprep.mubr.f32.mxu0 %v16823_v0 }
  0xca   : > { %v17316_v2 = vpop.permute.xlu0 %3531  ;;  %12883 = vmatmul.mubr.msk.f32.vlgmr.msra.gmra.mrb[0].mxu0 %vm408_vm1, %v17308_v62  ;;  %v17320_v3 = vpop.permute.xlu1 %3527 }
  0xcb   : > { %1026 = vmatprep.mubr.f32.mxu0 %v16823_v0  ;;  %1247 = vmatpush1.msra.mxu0 %v1216_v63  ;;  %v12906_v63 = vld [vmem:[%s21450_s2 + $0xf8] sm:$0xff] }
  0xcc   : > { %1536 = vmatprep.subr.mxu0 %v1507_v1 }
  0xce   : > { %v17330_v6 = vpop.permute.xlu0 %3819  ;;  %12884 = vmatmul.mubr.msk.f32.gmra.mrb[2].mxu0 %vm408_vm1, %v17326_v5  ;;  %v17334_v8 = vpop.permute.xlu1 %3821 }
  0xcf   : > { %1032 = vmatprep.mubr.f32.mxu0 %v16823_v0 }
  0xd2   : > { %v17344_v10 = vpop.permute.xlu0 %3817  ;;  %12885 = vmatmul.mubr.msk.f32.gmra.mrb[4].mxu0 %vm408_vm1, %v17340_v9  ;;  %v400_v12 = vpop.permute.xlu1 %399 }
  0xd3   : > { %v404_v14 = vsel %vm401_vm0, %v17082_v7, %v400_v12  ;;  %1038 = vmatprep.mubr.f32.mxu0 %v16823_v0  ;;  %v17365_v7 = vld [vmem:[%s16948_s11 + $0x10] sm:$0xff]  ;;  %v2087_v12 = vsel %vm2085_vm7, %v17204_v39, %v17208_v40  ;;  %vm4695_vm0 = vcmask 80896  }
  0xd4   : > { %13937 = vmatprep.subr.mxu1 %v404_v14  ;;  %6146 = vrot.lane.b32.xlu1 %v17365_v7, %s16844_s15 }
  0xd5   : > { %13938 = vmatpush3.msra.mxu1 %v404_v14  ;;  %6436 = vrot.lane.b32.xlu0 %v17365_v7, %s16845_s17  ;;  %v12924_v14 = vld [vmem:[%s21450_s2 + $0x108] sm:$0xff] }
  0xd6   : > { %v17356_v17 = vpop.permute.xlu0 %4109  ;;  %13940 = vmatmul.mubr.msk.f32.vlgmr.msra.gmra.mrb[2].mxu1 %vm408_vm1, %v17105_v16  ;;  %12886 = vmatmul.mubr.msk.f32.gmra.mrb[6].mxu0 %vm408_vm1, %v17354_v15  ;;  %v17362_v18 = vpop.permute.xlu1 %4111 }
  0xd7   : > { %13942 = vmatprep.mubr.msk.f32.mxu1 %vm408_vm1, %v17122_v20  ;;  %1044 = vmatprep.mubr.f32.mxu0 %v16823_v0  ;;  %v17384_v20 = vld [vmem:[%s16948_s11 + $0x8] sm:$0xff] }
  0xd8   : > { %6144 = vrot.lane.b32.xlu1 %v17384_v20, %s16844_s15 }
  0xd9   : > { %6434 = vrot.lane.b32.xlu0 %v17384_v20, %s16845_s17 }
  0xda   : > { %v17377_v16 = vpop.permute.xlu0 %4107  ;;  %13943 = vmatmul.mubr.msk.f32.gmra.mrb[4].mxu1 %vm408_vm1, %v17138_v24  ;;  %12887 = vmatmul.mubr.msk.f32.gmra.mrb[8].mxu0 %vm408_vm1, %v17373_v21  ;;  %v658_v22 = vpop.permute.xlu1 %657 }
  0xdb   : > { %v662_v23 = vsel %vm659_vm2, %v17095_v13, %v658_v22  ;;  %13945 = vmatprep.mubr.msk.f32.mxu1 %vm408_vm1, %v17154_v27  ;;  %1050 = vmatprep.mubr.f32.mxu0 %v16823_v0  ;;  %v17410_v27 = vld [vmem:[%s21450_s2 + $0xb0] sm:$0xff]  ;;  %vm4985_vm2 = vcmask 72704  }
  0xdc   : > { %13951 = vmatprep.subr.mxu1 %v662_v23  ;;  %4983 = vrot.lane.b32.xlu1 %v17036_v4, %s16840_s30 }
  0xdd   : > { %13952 = vmatpush3.msra.mxu1 %v662_v23  ;;  %5562 = vrot.lane.b32.xlu0 %v17036_v4, %s16842_s13  ;;  %v12927_v23 = vld [vmem:[%s21450_s2 + $0x120] sm:$0xff] }
  0xde   : > { %v924_v24 = vpop.permute.xlu0 %923  ;;  %13946 = vmatmul.mubr.msk.f32.gmra.mrb[6].mxu1 %vm408_vm1, %v17170_v30  ;;  %12888 = vmatmul.mubr.msk.f32.gmra.mrb[10].mxu0 %vm408_vm1, %v17394_v26  ;;  %v17429_v37 = vpop.permute.xlu1 %4399 }
  0xdf   : > { %v928_v13 = vsel %vm925_vm3, %v17116_v19, %v924_v24  ;;  %13948 = vmatprep.mubr.msk.f32.mxu1 %vm408_vm1, %v17186_v33  ;;  %1056 = vmatprep.mubr.f32.mxu0 %v16823_v0  ;;  %v12882_v19 = vld [vmem:[%s21450_s2 + $0xb8] sm:$0xff]  ;;  %vm5564_vm3 = vcmask 56320  }
  0xe0   : > { %13965 = vmatprep.subr.mxu1 %v928_v13  ;;  %6438 = vrot.lane.b32.xlu1 %v17036_v4, %s16845_s17 }
  0xe1   : > { %6728 = vrot.lane.b32.xlu0 %v17036_v4, %s16846_s12 }
  0xe2   : > { %v17414_v30 = vpop.permute.xlu0 %4401  ;;  %13949 = vmatmul.mubr.msk.f32.gmra.mrb[8].mxu1 %vm408_vm1, %v17092_v11  ;;  %12889 = vmatmul.mubr.msk.f32.gmra.mrb[12].mxu0 %vm408_vm1, %v17410_v27 }
  0xe3   : > { %13953 = vmatprep.mubr.msk.f32.mxu1 %vm408_vm1, %v17198_v36  ;;  %1062 = vmatprep.mubr.f32.mxu0 %v16823_v0  ;;  %v12899_v36 = vld [vmem:[%s21450_s2 + $0xc0] sm:$0xff] }
  0xe4   : > { %5273 = vrot.lane.b32.xlu1 %v17036_v4, %s16841_s16 }
  0xe5   : > { %5852 = vrot.lane.b32.xlu0 %v17036_v4, %s16843_s22 }
  0xe6   : > { %v1214_v33 = vpop.permute.xlu0 %1213  ;;  %13954 = vmatmul.mubr.msk.f32.vlgmr.msra.gmra.mrb[2].mxu1 %vm408_vm1, %v17214_v41  ;;  %12890 = vmatmul.mubr.msk.f32.gmra.mrb[14].mxu0 %vm408_vm1, %v12882_v19  ;;  %v12900_v41 = vld [vmem:[%s21450_s2 + $0xc8] sm:$0xff] }
  0xe7   : > { %13966 = vmatpush3.msra.mxu1 %v928_v13  ;;  %v1218_v11 = vsel %vm1215_vm4, %v17144_v25, %v1214_v33  ;;  %13956 = vmatprep.mubr.msk.f32.mxu1 %vm408_vm1, %v17230_v44  ;;  %v1797_v25 = vsel %vm1795_vm6, %v17180_v32, %v17188_v34  ;;  %v17454_v44 = vpop.permute.xlu1 %4397  ;;  %v17594_v13 = vld [vmem:[%s16948_s11 + $0x20] sm:$0xff]  ;;  %v12948_v33 = vld [vmem:[%s21450_s2 + $0x148] sm:$0xff]  ;;  %vm5854_vm4 = vcmask 48128  }
  0xe8   : > { %13979 = vmatprep.subr.mxu1 %v1218_v11  ;;  %1310 = vmatprep.mubr.f32.mxu0 %v16823_v0 }
  0xe9   : > { %6726 = vrot.lane.b32.xlu1 %v17365_v7, %s16846_s12  ;;  %7016 = vrot.lane.b32.xlu0 %v17365_v7, %s16847_s26 }
  0xea   : > { %13957 = vmatmul.mubr.msk.f32.gmra.mrb[4].mxu1 %vm408_vm1, %v17246_v47  ;;  %12907 = vmatmul.mubr.msk.f32.vlgmr.msra.gmra.mrb[0].mxu0 %vm408_vm1, %v12899_v36  ;;  %v12902_v47 = vld [vmem:[%s21450_s2 + $0xd8] sm:$0xff] }
  0xeb   : > { %13959 = vmatprep.mubr.msk.f32.mxu1 %vm408_vm1, %v17260_v50  ;;  %1316 = vmatprep.mubr.f32.mxu0 %v16823_v0  ;;  %v1504_v31 = vpop.permute.xlu1 %1503 }
  0xec   : > { %1537 = vmatpush1.msra.mxu0 %v1506_v38  ;;  %v1508_v50 = vsel %vm1505_vm5, %v17164_v29, %v1504_v31  ;;  %v12904_v29 = vld [vmem:[%s21450_s2 + $0xe8] sm:$0xff]  ;;  %v2086_v31 = vsel %vm2085_vm7, %v17220_v42, %v17204_v39  ;;  %v12953_v39 = vld [vmem:[%s21450_s2 + $0x170] sm:$0xff]  ;;  %vm6152_vm5 = vcmask 932864  }
  0xed   : > { %1826 = vmatprep.subr.mxu0 %v1797_v25  ;;  %6724 = vrot.lane.b32.xlu1 %v17384_v20, %s16846_s12  ;;  %v12950_v25 = vld [vmem:[%s21450_s2 + $0x158] sm:$0xff] }
  0xee   : > { %13960 = vmatmul.mubr.msk.f32.gmra.mrb[6].mxu1 %vm408_vm1, %v17272_v53  ;;  %12908 = vmatmul.mubr.msk.f32.gmra.mrb[2].mxu0 %vm408_vm1, %v12900_v41  ;;  %v12903_v53 = vld [vmem:[%s21450_s2 + $0xe0] sm:$0xff] }
  0xef   : > { %13962 = vmatprep.mubr.msk.f32.mxu1 %vm408_vm1, %v17284_v56  ;;  %1322 = vmatprep.mubr.f32.mxu0 %v16823_v0  ;;  %v17504_v56 = vpop.permute.xlu1 %4691 }
  0xf0   : > { %7014 = vrot.lane.b32.xlu0 %v17384_v20, %s16847_s26 }
  0xf1   : > { %6150 = vrot.lane.b32.xlu1 %v17594_v13, %s16844_s15 }
  0xf2   : > { %13963 = vmatmul.mubr.msk.f32.gmra.mrb[8].mxu1 %vm408_vm1, %v17296_v59  ;;  %12909 = vmatmul.mubr.msk.f32.gmra.mrb[4].mxu0 %vm408_vm1, %v12901_v28  ;;  %v12905_v59 = vld [vmem:[%s21450_s2 + $0xf0] sm:$0xff] }
  0xf3   : > { %13967 = vmatprep.mubr.msk.f32.mxu1 %vm408_vm1, %v17308_v62  ;;  %1328 = vmatprep.mubr.f32.mxu0 %v16823_v0  ;;  %v1794_v62 = vpop.permute.xlu1 %1793 }
  0xf4   : > { %v1798_v1 = vsel %vm1795_vm6, %v17188_v34, %v1794_v62  ;;  %v1796_v34 = vsel %vm1795_vm6, %v17192_v35, %v17180_v32  ;;  %v12925_v32 = vld [vmem:[%s21450_s2 + $0x110] sm:$0xff]  ;;  %6730 = vrot.lane.b32.xlu0 %v17594_v13, %s16846_s12  ;;  %s16848_s12 = smov 110   ;;  %vm6442_vm6 = vcmask 924672  }
  0xf5   : > { %7018 = vrot.lane.b32.xlu1 %v17036_v4, %s16847_s26  ;;  %v17676_v62 = vld [vmem:[%s21450_s2 + $0x190] sm:$0xff] }
  0xf6   : > { %13968 = vmatmul.mubr.msk.f32.vlgmr.msra.gmra.mrb[2].mxu1 %vm408_vm1, %v17326_v5  ;;  %12910 = vmatmul.mubr.msk.f32.gmra.mrb[6].mxu0 %vm408_vm1, %v12902_v47  ;;  %v17526_v5 = vpop.permute.xlu0 %4689 }
  0xf7   : > { %13980 = vmatpush3.msra.mxu1 %v1218_v11  ;;  %13970 = vmatprep.mubr.msk.f32.mxu1 %vm408_vm1, %v17340_v9  ;;  %v12923_v9 = vld [vmem:[%s21450_s2 + $0x100] sm:$0xff] }
  0xf8   : > { %13993 = vmatprep.subr.mxu1 %v1508_v50  ;;  %1334 = vmatprep.mubr.f32.mxu0 %v16823_v0 }
  0xf9   : > { %6440 = vrot.lane.b32.xlu1 %v17594_v13, %s16845_s17  ;;  %7308 = vrot.lane.b32.xlu0 %v17036_v4, %s16848_s12  ;;  %v17804_v4 = vld [vmem:[%s21450_s2 + $0x1f8] sm:$0xff] }
  0xfa   : > { %13971 = vmatmul.mubr.msk.f32.gmra.mrb[4].mxu1 %vm408_vm1, %v17354_v15  ;;  %12911 = vmatmul.mubr.msk.f32.gmra.mrb[8].mxu0 %vm408_vm1, %v12903_v53  ;;  %v17546_v15 = vpop.permute.xlu0 %4687 }
  0xfb   : > { %13973 = vmatprep.mubr.msk.f32.mxu1 %vm408_vm1, %v17373_v21  ;;  %1340 = vmatprep.mubr.f32.mxu0 %v16823_v0  ;;  %v12926_v21 = vld [vmem:[%s21450_s2 + $0x118] sm:$0xff] }
  0xfd   : > { %7306 = vrot.lane.b32.xlu1 %v17365_v7, %s16848_s12  ;;  %7020 = vrot.lane.b32.xlu0 %v17594_v13, %s16847_s26  ;;  %v17824_v7 = vld [vmem:[%s21450_s2 + $0x208] sm:$0xff]  ;;  %s16850_s26 = smov 96  }
  0xfe   : > { %13974 = vmatmul.mubr.msk.f32.gmra.mrb[6].mxu1 %vm408_vm1, %v17394_v26  ;;  %12912 = vmatmul.mubr.msk.f32.gmra.mrb[10].mxu0 %vm408_vm1, %v12904_v29  ;;  %v2084_v35 = vpop.permute.xlu0 %2083  ;;  %v12929_v26 = vld [vmem:[%s21450_s2 + $0x130] sm:$0xff] }
  0xff   : > { %13976 = vmatprep.mubr.msk.f32.mxu1 %vm408_vm1, %v17410_v27  ;;  %1346 = vmatprep.mubr.f32.mxu0 %v16823_v0  ;;  %v2088_v22 = vsel %vm2085_vm7, %v17208_v40, %v2084_v35  ;;  %v12928_v40 = vld [vmem:[%s21450_s2 + $0x128] sm:$0xff]  ;;  %v12930_v27 = vld [vmem:[%s21450_s2 + $0x138] sm:$0xff]  ;;  %v17729_v35 = vld [vmem:[%s21450_s2 + $0x1c0] sm:$0xff] }
 0x101   : > { %7304 = vrot.lane.b32.xlu1 %v17384_v20, %s16848_s12  ;;  %v17829_v20 = vld [vmem:[%s21450_s2 + $0x210] sm:$0xff] }
 0x102   : > { %13977 = vmatmul.mubr.msk.f32.gmra.mrb[8].mxu1 %vm408_vm1, %v12882_v19  ;;  %12913 = vmatmul.mubr.msk.f32.gmra.mrb[12].mxu0 %vm408_vm1, %v12905_v59  ;;  %v17589_v24 = vpop.permute.xlu0 %4981  ;;  %v12947_v19 = vld [vmem:[%s21450_s2 + $0x140] sm:$0xff] }
 0x103   : > { %1352 = vmatprep.mubr.f32.mxu0 %v16823_v0  ;;  %13981 = vmatprep.mubr.msk.f32.mxu1 %vm408_vm1, %v12899_v36  ;;  %v12949_v36 = vld [vmem:[%s21450_s2 + $0x150] sm:$0xff] }
 0x105   : > { %7310 = vrot.lane.b32.xlu1 %v17594_v13, %s16848_s12  ;;  %v17849_v13 = vld [vmem:[%s21450_s2 + $0x220] sm:$0xff] }
 0x106   : > { %12914 = vmatmul.mubr.msk.f32.gmra.mrb[14].mxu0 %vm408_vm1, %v12906_v63  ;;  %13982 = vmatmul.mubr.msk.f32.vlgmr.msra.gmra.mrb[2].mxu1 %vm408_vm1, %v12900_v41  ;;  %v2374_v11 = vpop.permute.xlu0 %2373  ;;  %v17625_v41 = vpop.permute.xlu1 %4979 }
 0x107   : > { %13994 = vmatpush3.msra.mxu1 %v1508_v50  ;;  %13984 = vmatprep.mubr.msk.f32.mxu1 %vm408_vm1, %v12901_v28  ;;  %v2378_v38 = vsel %vm2375_vm8, %v17236_v45, %v2374_v11  ;;  %21504 = vst [vmem:[#allocation4_spill] sm:$0xff] %v17625_v41  ;;  %v12951_v28 = vld [vmem:[%s21450_s2 + $0x160] sm:$0xff]  ;;  %v12952_v50 = vld [vmem:[%s21450_s2 + $0x168] sm:$0xff]  ;;  %v2667_v11 = vsel %vm2665_vm9, %v17250_v48, %v17254_v49 }
 0x108   : > { %1600 = vmatprep.mubr.f32.mxu0 %v16823_v0  ;;  %14007 = vmatprep.subr.mxu1 %v1798_v1 }
 0x10a   : > { %13985 = vmatmul.mubr.msk.f32.gmra.mrb[4].mxu1 %vm408_vm1, %v12902_v47  ;;  %12931 = vmatmul.mubr.msk.f32.vlgmr.msra.gmra.mrb[0].mxu0 %vm408_vm1, %v12923_v9  ;;  %v2377_v47 = vsel %vm2375_vm8, %v17224_v43, %v17236_v45  ;;  %v17648_v42 = vpop.permute.xlu1 %4977  ;;  %v12954_v45 = vld [vmem:[%s21450_s2 + $0x178] sm:$0xff] }
 0x10b   : > { %13987 = vmatprep.mubr.msk.f32.mxu1 %vm408_vm1, %v12903_v53  ;;  %1606 = vmatprep.mubr.f32.mxu0 %v16823_v0  ;;  %21505 = vst [vmem:[#allocation5_spill] sm:$0xff] %v17648_v42  ;;  %v12971_v53 = vld [vmem:[%s21450_s2 + $0x180] sm:$0xff]  ;;  %v18220_v42 = vld [vmem:[%s21450_s2 + $0x358] sm:$0xff] }
 0x10c   : > { %1827 = vmatpush1.msra.mxu0 %v1796_v34  ;;  %v17706_v34 = vld [vmem:[%s21450_s2 + $0x1a8] sm:$0xff] }
 0x10d   : > { %2116 = vmatprep.subr.mxu0 %v2087_v12  ;;  %v17711_v12 = vld [vmem:[%s21450_s2 + $0x1b0] sm:$0xff] }
 0x10e   : > { %13988 = vmatmul.mubr.msk.f32.gmra.mrb[6].mxu1 %vm408_vm1, %v12904_v29  ;;  %12932 = vmatmul.mubr.msk.f32.gmra.mrb[2].mxu0 %vm408_vm1, %v12924_v14  ;;  %v12972_v29 = vld [vmem:[%s21450_s2 + $0x188] sm:$0xff] }
 0x10f   : > { %13990 = vmatprep.mubr.msk.f32.mxu1 %vm408_vm1, %v12905_v59  ;;  %1612 = vmatprep.mubr.f32.mxu0 %v16823_v0  ;;  %v2664_v59 = vpop.permute.xlu1 %2663 }
 0x112   : > { %13991 = vmatmul.mubr.msk.f32.gmra.mrb[8].mxu1 %vm408_vm1, %v12906_v63  ;;  %12933 = vmatmul.mubr.msk.f32.gmra.mrb[4].mxu0 %vm408_vm1, %v12925_v32  ;;  %v2668_v63 = vsel %vm2665_vm9, %v17254_v49, %v2664_v59  ;;  %v17809_v49 = vld [vmem:[%s21450_s2 + $0x200] sm:$0xff]  ;;  %v17902_v59 = vld [vmem:[%s21450_s2 + $0x250] sm:$0xff] }
 0x113   : > { %1618 = vmatprep.mubr.f32.mxu0 %v16823_v0  ;;  %13995 = vmatprep.mubr.msk.f32.mxu1 %vm408_vm1, %v12923_v9  ;;  %v17695_v9 = vld [vmem:[%s21450_s2 + $0x1a0] sm:$0xff] }
 0x116   : > { %12934 = vmatmul.mubr.msk.f32.gmra.mrb[6].mxu0 %vm408_vm1, %v12926_v21  ;;  %13996 = vmatmul.mubr.msk.f32.vlgmr.msra.gmra.mrb[2].mxu1 %vm408_vm1, %v12924_v14  ;;  %v17713_v14 = vpop.permute.xlu1 %5271 }
 0x117   : > { %14008 = vmatpush3.msra.mxu1 %v1798_v1  ;;  %1624 = vmatprep.mubr.f32.mxu0 %v16823_v0  ;;  %v17690_v1 = vld [vmem:[%s21450_s2 + $0x198] sm:$0xff] }
 0x118   : > { %13998 = vmatprep.mubr.msk.f32.mxu1 %vm408_vm1, %v12925_v32  ;;  %14021 = vmatprep.subr.mxu1 %v2088_v22  ;;  %v17724_v32 = vld [vmem:[%s21450_s2 + $0x1b8] sm:$0xff] }
 0x11a   : > { %12935 = vmatmul.mubr.msk.f32.gmra.mrb[8].mxu0 %vm408_vm1, %v12927_v23  ;;  %13999 = vmatmul.mubr.msk.f32.gmra.mrb[4].mxu1 %vm408_vm1, %v12926_v21  ;;  %v17740_v21 = vld [vmem:[%s21450_s2 + $0x1c8] sm:$0xff] }
 0x11b   : > { %1630 = vmatprep.mubr.f32.mxu0 %v16823_v0  ;;  %14001 = vmatprep.mubr.msk.f32.mxu1 %vm408_vm1, %v12927_v23  ;;  %v17745_v23 = vld [vmem:[%s21450_s2 + $0x1d0] sm:$0xff] }
 0x11e   : > { %12936 = vmatmul.mubr.msk.f32.gmra.mrb[10].mxu0 %vm408_vm1, %v12928_v40  ;;  %14002 = vmatmul.mubr.msk.f32.gmra.mrb[6].mxu1 %vm408_vm1, %v12928_v40 }
 0x11f   : > { %1636 = vmatprep.mubr.f32.mxu0 %v16823_v0  ;;  %14004 = vmatprep.mubr.msk.f32.mxu1 %vm408_vm1, %v12929_v26 }
 0x122   : > { %12937 = vmatmul.mubr.msk.f32.gmra.mrb[12].mxu0 %vm408_vm1, %v12929_v26  ;;  %14005 = vmatmul.mubr.msk.f32.gmra.mrb[8].mxu1 %vm408_vm1, %v12930_v27  ;;  %v17758_v26 = vld [vmem:[%s21450_s2 + $0x1d8] sm:$0xff] }
 0x123   : > { %1642 = vmatprep.mubr.f32.mxu0 %v16823_v0  ;;  %14009 = vmatprep.mubr.msk.f32.mxu1 %vm408_vm1, %v12947_v19 }
 0x126   : > { %12938 = vmatmul.mubr.msk.f32.gmra.mrb[14].mxu0 %vm408_vm1, %v12930_v27  ;;  %14010 = vmatmul.mubr.msk.f32.vlgmr.msra.gmra.mrb[2].mxu1 %vm408_vm1, %v12948_v33  ;;  %v17760_v27 = vpop.permute.xlu0 %5269 }
 0x127   : > { %1890 = vmatprep.mubr.f32.mxu0 %v16823_v0  ;;  %14012 = vmatprep.mubr.msk.f32.mxu1 %vm408_vm1, %v12949_v36  ;;  %21506 = vst [vmem:[#allocation6_spill] sm:$0xff] %v17760_v27  ;;  %v18206_v27 = vld [vmem:[%s21450_s2 + $0x350] sm:$0xff] }
 0x128   : > { %14022 = vmatpush3.msra.mxu1 %v2088_v22  ;;  %v2954_v22 = vpop.permute.xlu1 %2953 }
 0x129   : > { %14035 = vmatprep.subr.mxu1 %v2378_v38  ;;  %v2958_v40 = vsel %vm2955_vm10, %v17274_v54, %v2954_v22 }
 0x12a   : > { %12955 = vmatmul.mubr.msk.f32.vlgmr.msra.gmra.mrb[0].mxu0 %vm408_vm1, %v12947_v19  ;;  %14013 = vmatmul.mubr.msk.f32.gmra.mrb[4].mxu1 %vm408_vm1, %v12950_v25  ;;  %v17765_v19 = vld [vmem:[%s21450_s2 + $0x1e0] sm:$0xff] }
 0x12b   : > { %1896 = vmatprep.mubr.f32.mxu0 %v16823_v0  ;;  %14015 = vmatprep.mubr.msk.f32.mxu1 %vm408_vm1, %v12951_v28 }
 0x12c   : > { %2117 = vmatpush1.msra.mxu0 %v2086_v31  ;;  %v17861_v31 = vld [vmem:[%s21450_s2 + $0x228] sm:$0xff] }
 0x12d   : > { %2406 = vmatprep.subr.mxu0 %v2377_v47  ;;  %v17866_v47 = vld [vmem:[%s21450_s2 + $0x230] sm:$0xff] }
 0x12e   : > { %12956 = vmatmul.mubr.msk.f32.gmra.mrb[2].mxu0 %vm408_vm1, %v12948_v33  ;;  %14016 = vmatmul.mubr.msk.f32.gmra.mrb[6].mxu1 %vm408_vm1, %v12952_v50  ;;  %v2376_v33 = vsel %vm2375_vm8, %v17240_v46, %v17224_v43  ;;  %v17787_v43 = vld [vmem:[%s21450_s2 + $0x1f0] sm:$0xff]  ;;  %v17790_v46 = vpop.permute.xlu0 %5267 }
 0x12f   : > { %1902 = vmatprep.mubr.f32.mxu0 %v16823_v0  ;;  %14018 = vmatprep.mubr.msk.f32.mxu1 %vm408_vm1, %v12953_v39  ;;  %21507 = vst [vmem:[#allocation7_spill] sm:$0xff] %v17790_v46 }
 0x132   : > { %12957 = vmatmul.mubr.msk.f32.gmra.mrb[4].mxu0 %vm408_vm1, %v12949_v36  ;;  %14019 = vmatmul.mubr.msk.f32.gmra.mrb[8].mxu1 %vm408_vm1, %v12954_v45  ;;  %v17782_v36 = vld [vmem:[%s21450_s2 + $0x1e8] sm:$0xff] }
 0x133   : > { %1908 = vmatprep.mubr.f32.mxu0 %v16823_v0  ;;  %14023 = vmatprep.mubr.msk.f32.mxu1 %vm408_vm1, %v12971_v53 }
 0x136   : > { %12958 = vmatmul.mubr.msk.f32.gmra.mrb[6].mxu0 %vm408_vm1, %v12950_v25  ;;  %14024 = vmatmul.mubr.msk.f32.vlgmr.msra.gmra.mrb[2].mxu1 %vm408_vm1, %v12972_v29 }
 0x137   : > { %1914 = vmatprep.mubr.f32.mxu0 %v16823_v0  ;;  %14026 = vmatprep.mubr.msk.f32.mxu1 %vm408_vm1, %v17676_v62 }
 0x138   : > { %14036 = vmatpush3.msra.mxu1 %v2378_v38  ;;  %v3244_v38 = vpop.permute.xlu0 %3243 }
 0x139   : > { %14049 = vmatprep.subr.mxu1 %v2668_v63  ;;  %v3248_v25 = vsel %vm3245_vm11, %v17290_v58, %v3244_v38  ;;  %v18018_v38 = vld [vmem:[%s21450_s2 + $0x2b0] sm:$0xff] }
 0x13a   : > { %12959 = vmatmul.mubr.msk.f32.gmra.mrb[8].mxu0 %vm408_vm1, %v12951_v28  ;;  %14027 = vmatmul.mubr.msk.f32.gmra.mrb[4].mxu1 %vm408_vm1, %v17690_v1  ;;  %v17844_v28 = vld [vmem:[%s21450_s2 + $0x218] sm:$0xff] }
 0x13b   : > { %1920 = vmatprep.mubr.f32.mxu0 %v16823_v0  ;;  %14029 = vmatprep.mubr.msk.f32.mxu1 %vm408_vm1, %v17695_v9 }
 0x13e   : > { %12960 = vmatmul.mubr.msk.f32.gmra.mrb[10].mxu0 %vm408_vm1, %v12952_v50  ;;  %14030 = vmatmul.mubr.msk.f32.gmra.mrb[6].mxu1 %vm408_vm1, %v17706_v34  ;;  %v17868_v50 = vpop.permute.xlu0 %5560 }
 0x13f   : > { %1926 = vmatprep.mubr.f32.mxu0 %v16823_v0  ;;  %14032 = vmatprep.mubr.msk.f32.mxu1 %vm408_vm1, %v17711_v12 }
 0x142   : > { %12961 = vmatmul.mubr.msk.f32.gmra.mrb[12].mxu0 %vm408_vm1, %v12953_v39  ;;  %14033 = vmatmul.mubr.msk.f32.gmra.mrb[8].mxu1 %vm408_vm1, %v17724_v32  ;;  %v17880_v39 = vld [vmem:[%s21450_s2 + $0x238] sm:$0xff] }
 0x143   : > { %1932 = vmatprep.mubr.f32.mxu0 %v16823_v0  ;;  %14037 = vmatprep.mubr.msk.f32.mxu1 %vm408_vm1, %v17729_v35 }
 0x146   : > { %12962 = vmatmul.mubr.msk.f32.gmra.mrb[14].mxu0 %vm408_vm1, %v12954_v45  ;;  %14038 = vmatmul.mubr.msk.f32.vlgmr.msra.gmra.mrb[2].mxu1 %vm408_vm1, %v17740_v21  ;;  %v17885_v45 = vld [vmem:[%s21450_s2 + $0x240] sm:$0xff] }
 0x147   : > { %2180 = vmatprep.mubr.f32.mxu0 %v16823_v0  ;;  %14040 = vmatprep.mubr.msk.f32.mxu1 %vm408_vm1, %v17745_v23 }
 0x148   : > { %14050 = vmatpush3.msra.mxu1 %v2668_v63  ;;  %v17916_v63 = vld [vmem:[%s21450_s2 + $0x258] sm:$0xff] }
 0x149   : > { %14063 = vmatprep.subr.mxu1 %v2958_v40 }
 0x14a   : > { %12979 = vmatmul.mubr.msk.f32.vlgmr.msra.gmra.mrb[0].mxu0 %vm408_vm1, %v12971_v53  ;;  %14041 = vmatmul.mubr.msk.f32.gmra.mrb[4].mxu1 %vm408_vm1, %v17758_v26  ;;  %v17897_v53 = vld [vmem:[%s21450_s2 + $0x248] sm:$0xff] }
 0x14b   : > { %2186 = vmatprep.mubr.f32.mxu0 %v16823_v0  ;;  %14043 = vmatprep.mubr.msk.f32.mxu1 %vm408_vm1, %v17765_v19  ;;  %v17796_v0 = vld [vmem:[#allocation2] sm:$0xff] }
 0x14c   : > { %2407 = vmatpush1.msra.mxu0 %v2376_v33  ;;  %v17996_v33 = vld [vmem:[%s21450_s2 + $0x298] sm:$0xff] }
 0x14d   : > { %2696 = vmatprep.subr.mxu0 %v2667_v11  ;;  %v18013_v11 = vld [vmem:[%s21450_s2 + $0x2a8] sm:$0xff] }
 0x14e   : > { %12980 = vmatmul.mubr.msk.f32.gmra.mrb[2].mxu0 %vm408_vm1, %v12972_v29  ;;  %14044 = vmatmul.mubr.msk.f32.gmra.mrb[6].mxu1 %vm408_vm1, %v17782_v36  ;;  %v3534_v29 = vpop.permute.xlu0 %3533 }
 0x14f   : > { %2192 = vmatprep.mubr.f32.mxu0 %v17796_v0  ;;  %14046 = vmatprep.mubr.msk.f32.mxu1 %vm408_vm1, %v17787_v43 }
 0x152   : > { %12981 = vmatmul.mubr.msk.f32.gmra.mrb[4].mxu0 %vm408_vm1, %v17676_v62  ;;  %14047 = vmatmul.mubr.msk.f32.gmra.mrb[8].mxu1 %vm408_vm1, %v17804_v4  ;;  %v3538_v62 = vsel %vm3535_vm12, %v17316_v2, %v3534_v29  ;;  %v18037_v29 = vld [vmem:[%s21450_s2 + $0x2c0] sm:$0xff] }
 0x153   : > { %2198 = vmatprep.mubr.f32.mxu0 %v17796_v0  ;;  %14051 = vmatprep.mubr.msk.f32.mxu1 %vm408_vm1, %v17809_v49 }
 0x156   : > { %12982 = vmatmul.mubr.msk.f32.gmra.mrb[6].mxu0 %vm408_vm1, %v17690_v1  ;;  %14052 = vmatmul.mubr.msk.f32.vlgmr.msra.gmra.mrb[2].mxu1 %vm408_vm1, %v17824_v7  ;;  %v17918_v1 = vpop.permute.xlu1 %5558 }
 0x157   : > { %2204 = vmatprep.mubr.f32.mxu0 %v17796_v0  ;;  %14054 = vmatprep.mubr.msk.f32.mxu1 %vm408_vm1, %v17829_v20  ;;  %21508 = vst [vmem:[#allocation8_spill] sm:$0xff] %v17918_v1  ;;  %v18189_v1 = vld [vmem:[%s21450_s2 + $0x340] sm:$0xff] }
 0x158   : > { %14064 = vmatpush3.msra.mxu1 %v2958_v40  ;;  %v17982_v40 = vld [vmem:[%s21450_s2 + $0x290] sm:$0xff] }
 0x159   : > { %14077 = vmatprep.subr.mxu1 %v3248_v25 }
 0x15a   : > { %12983 = vmatmul.mubr.msk.f32.gmra.mrb[8].mxu0 %vm408_vm1, %v17695_v9  ;;  %14055 = vmatmul.mubr.msk.f32.gmra.mrb[4].mxu1 %vm408_vm1, %v17844_v28  ;;  %v17923_v9 = vld [vmem:[%s21450_s2 + $0x260] sm:$0xff] }
 0x15b   : > { %2210 = vmatprep.mubr.f32.mxu0 %v17796_v0  ;;  %14057 = vmatprep.mubr.msk.f32.mxu1 %vm408_vm1, %v17849_v13 }
 0x15e   : > { %12984 = vmatmul.mubr.msk.f32.gmra.mrb[10].mxu0 %vm408_vm1, %v17706_v34  ;;  %14058 = vmatmul.mubr.msk.f32.gmra.mrb[6].mxu1 %vm408_vm1, %v17861_v31  ;;  %v2666_v34 = vsel %vm2665_vm9, %v17262_v51, %v17250_v48  ;;  %v17941_v48 = vld [vmem:[%s21450_s2 + $0x268] sm:$0xff]  ;;  %v17946_v51 = vld [vmem:[%s21450_s2 + $0x270] sm:$0xff] }
 0x15f   : > { %2216 = vmatprep.mubr.f32.mxu0 %v17796_v0  ;;  %14060 = vmatprep.mubr.msk.f32.mxu1 %vm408_vm1, %v17866_v47 }
 0x162   : > { %12985 = vmatmul.mubr.msk.f32.gmra.mrb[12].mxu0 %vm408_vm1, %v17711_v12  ;;  %14061 = vmatmul.mubr.msk.f32.gmra.mrb[8].mxu1 %vm408_vm1, %v17880_v39  ;;  %v2957_v12 = vsel %vm2955_vm10, %v17266_v52, %v17274_v54  ;;  %v17960_v54 = vld [vmem:[%s21450_s2 + $0x278] sm:$0xff] }
 0x163   : > { %2222 = vmatprep.mubr.f32.mxu0 %v17796_v0  ;;  %14065 = vmatprep.mubr.msk.f32.mxu1 %vm408_vm1, %v17885_v45 }
 0x166   : > { %12986 = vmatmul.mubr.msk.f32.gmra.mrb[14].mxu0 %vm408_vm1, %v17724_v32  ;;  %14066 = vmatmul.mubr.msk.f32.vlgmr.msra.gmra.mrb[2].mxu1 %vm408_vm1, %v17897_v53  ;;  %v17948_v32 = vpop.permute.xlu1 %5556 }
 0x167   : > { %2470 = vmatprep.mubr.f32.mxu0 %v17796_v0  ;;  %14068 = vmatprep.mubr.msk.f32.mxu1 %vm408_vm1, %v17902_v59  ;;  %21509 = vst [vmem:[#allocation9_spill] sm:$0xff] %v17948_v32 }
 0x168   : > { %14078 = vmatpush3.msra.mxu1 %v3248_v25 }
 0x169   : > { %14091 = vmatprep.subr.mxu1 %v3538_v62 }
 0x16a   : > { %13003 = vmatmul.mubr.msk.f32.vlgmr.msra.gmra.mrb[0].mxu0 %vm408_vm1, %v17729_v35  ;;  %14069 = vmatmul.mubr.msk.f32.gmra.mrb[4].mxu1 %vm408_vm1, %v17916_v63  ;;  %v17965_v35 = vld [vmem:[%s21450_s2 + $0x280] sm:$0xff]  ;;  %v3824_v22 = vpop.permute.xlu1 %3823 }
 0x16b   : > { %2476 = vmatprep.mubr.f32.mxu0 %v17796_v0  ;;  %14071 = vmatprep.mubr.msk.f32.mxu1 %vm408_vm1, %v17923_v9 }
 0x16c   : > { %2697 = vmatpush1.msra.mxu0 %v2666_v34  ;;  %v18054_v34 = vld [vmem:[%s21450_s2 + $0x2d0] sm:$0xff] }
 0x16d   : > { %2986 = vmatprep.subr.mxu0 %v2957_v12  ;;  %v18068_v12 = vld [vmem:[%s21450_s2 + $0x2d8] sm:$0xff] }
 0x16e   : > { %13004 = vmatmul.mubr.msk.f32.gmra.mrb[2].mxu0 %vm408_vm1, %v17740_v21  ;;  %14072 = vmatmul.mubr.msk.f32.gmra.mrb[6].mxu1 %vm408_vm1, %v17941_v48  ;;  %v17977_v21 = vld [vmem:[%s21450_s2 + $0x288] sm:$0xff]  ;;  %v18020_v25 = vpop.permute.xlu1 %5850 }
 0x16f   : > { %2482 = vmatprep.mubr.f32.mxu0 %v17796_v0  ;;  %14074 = vmatprep.mubr.msk.f32.mxu1 %vm408_vm1, %v17946_v51 }
 0x172   : > { %13005 = vmatmul.mubr.msk.f32.gmra.mrb[4].mxu0 %vm408_vm1, %v17745_v23  ;;  %14075 = vmatmul.mubr.msk.f32.gmra.mrb[8].mxu1 %vm408_vm1, %v17960_v54  ;;  %v3828_v23 = vsel %vm3825_vm13, %v17334_v8, %v3824_v22  ;;  %v18070_v22 = vpop.permute.xlu0 %5848 }
 0x173   : > { %2488 = vmatprep.mubr.f32.mxu0 %v17796_v0  ;;  %14079 = vmatprep.mubr.msk.f32.mxu1 %vm408_vm1, %v17965_v35  ;;  %21510 = vst [vmem:[#allocation10_spill] sm:$0xff] %v18070_v22  ;;  %v3247_v22 = vsel %vm3245_vm11, %v17286_v57, %v17290_v58  ;;  %v18112_v58 = vld [vmem:[%s21450_s2 + $0x2f8] sm:$0xff] }
 0x176   : > { %13006 = vmatmul.mubr.msk.f32.gmra.mrb[6].mxu0 %vm408_vm1, %v17758_v26  ;;  %14080 = vmatmul.mubr.msk.f32.vlgmr.msra.gmra.mrb[2].mxu1 %vm408_vm1, %v17977_v21  ;;  %v18001_v26 = vld [vmem:[%s21450_s2 + $0x2a0] sm:$0xff] }
 0x177   : > { %2494 = vmatprep.mubr.f32.mxu0 %v17796_v0  ;;  %14082 = vmatprep.mubr.msk.f32.mxu1 %vm408_vm1, %v17982_v40 }
 0x178   : > { %14092 = vmatpush3.msra.mxu1 %v3538_v62  ;;  %v4114_v62 = vpop.permute.xlu1 %4113 }
 0x179   : > { %14105 = vmatprep.subr.mxu1 %v3828_v23 }
 0x17a   : > { %13007 = vmatmul.mubr.msk.f32.gmra.mrb[8].mxu0 %vm408_vm1, %v17765_v19  ;;  %14083 = vmatmul.mubr.msk.f32.gmra.mrb[4].mxu1 %vm408_vm1, %v17996_v33  ;;  %v18032_v19 = vld [vmem:[%s21450_s2 + $0x2b8] sm:$0xff] }
 0x17b   : > { %2500 = vmatprep.mubr.f32.mxu0 %v17796_v0  ;;  %14085 = vmatprep.mubr.msk.f32.mxu1 %vm408_vm1, %v18001_v26 }
 0x17c   : > { %v18222_v41 = vpop.permute.xlu1 %6146 }
 0x17d   : > { %21512 = vst [vmem:[#allocation12_spill] sm:$0xff] %v18222_v41  ;;  %v3537_v41 = vsel %vm3535_vm12, %v17302_v61, %v17316_v2  ;;  %v18264_v2 = vld [vmem:[%s21450_s2 + $0x378] sm:$0xff] }
 0x17e   : > { %13008 = vmatmul.mubr.msk.f32.gmra.mrb[10].mxu0 %vm408_vm1, %v17782_v36  ;;  %14086 = vmatmul.mubr.msk.f32.gmra.mrb[6].mxu1 %vm408_vm1, %v18013_v11  ;;  %v18049_v36 = vld [vmem:[%s21450_s2 + $0x2c8] sm:$0xff] }
 0x17f   : > { %2506 = vmatprep.mubr.f32.mxu0 %v17796_v0  ;;  %14088 = vmatprep.mubr.msk.f32.mxu1 %vm408_vm1, %v18018_v38 }
 0x182   : > { %13009 = vmatmul.mubr.msk.f32.gmra.mrb[12].mxu0 %vm408_vm1, %v17787_v43  ;;  %14089 = vmatmul.mubr.msk.f32.gmra.mrb[8].mxu1 %vm408_vm1, %v18032_v19  ;;  %v4118_v43 = vsel %vm4115_vm14, %v17362_v18, %v4114_v62  ;;  %v2956_v62 = vsel %vm2955_vm10, %v17278_v55, %v17266_v52  ;;  %v18093_v52 = vld [vmem:[%s21450_s2 + $0x2e8] sm:$0xff]  ;;  %v18098_v55 = vld [vmem:[%s21450_s2 + $0x2f0] sm:$0xff]  ;;  %vm6732_vm10 = vcmask 916480  }
 0x183   : > { %2512 = vmatprep.mubr.f32.mxu0 %v17796_v0  ;;  %14093 = vmatprep.mubr.msk.f32.mxu1 %vm408_vm1, %v18037_v29 }
 0x186   : > { %13010 = vmatmul.mubr.msk.f32.gmra.mrb[14].mxu0 %vm408_vm1, %v17804_v4  ;;  %14094 = vmatmul.mubr.msk.f32.vlgmr.msra.gmra.mrb[2].mxu1 %vm408_vm1, %v18049_v36  ;;  %v18075_v4 = vld [vmem:[%s21450_s2 + $0x2e0] sm:$0xff] }
 0x187   : > { %2760 = vmatprep.mubr.f32.mxu0 %v17796_v0  ;;  %14096 = vmatprep.mubr.msk.f32.mxu1 %vm408_vm1, %v18054_v34 }
 0x188   : > { %14106 = vmatpush3.msra.mxu1 %v3828_v23  ;;  %v18117_v23 = vld [vmem:[%s21450_s2 + $0x300] sm:$0xff] }
 0x189   : > { %14119 = vmatprep.subr.mxu1 %v4118_v43 }
 0x18a   : > { %13027 = vmatmul.mubr.msk.f32.vlgmr.msra.gmra.mrb[0].mxu0 %vm408_vm1, %v17809_v49  ;;  %14097 = vmatmul.mubr.msk.f32.gmra.mrb[4].mxu1 %vm408_vm1, %v18068_v12  ;;  %v18100_v49 = vpop.permute.xlu0 %5846 }
 0x18b   : > { %2766 = vmatprep.mubr.f32.mxu0 %v17796_v0  ;;  %14099 = vmatprep.mubr.msk.f32.mxu1 %vm408_vm1, %v18075_v4  ;;  %21511 = vst [vmem:[#allocation11_spill] sm:$0xff] %v18100_v49  ;;  %v18148_v49 = vld [vmem:[%s21450_s2 + $0x318] sm:$0xff] }
 0x18c   : > { %2987 = vmatpush1.msra.mxu0 %v2956_v62  ;;  %v18134_v62 = vld [vmem:[%s21450_s2 + $0x310] sm:$0xff] }
 0x18d   : > { %3276 = vmatprep.subr.mxu0 %v3247_v22 }
 0x18e   : > { %13028 = vmatmul.mubr.msk.f32.gmra.mrb[2].mxu0 %vm408_vm1, %v17824_v7  ;;  %14100 = vmatmul.mubr.msk.f32.gmra.mrb[6].mxu1 %vm408_vm1, %v18093_v52  ;;  %v18129_v7 = vld [vmem:[%s21450_s2 + $0x308] sm:$0xff]  ;;  %v4404_v22 = vpop.permute.xlu0 %4403 }
 0x18f   : > { %2772 = vmatprep.mubr.f32.mxu0 %v17796_v0  ;;  %14102 = vmatprep.mubr.msk.f32.mxu1 %vm408_vm1, %v18098_v55 }
 0x192   : > { %13029 = vmatmul.mubr.msk.f32.gmra.mrb[4].mxu0 %vm408_vm1, %v17829_v20  ;;  %14103 = vmatmul.mubr.msk.f32.gmra.mrb[8].mxu1 %vm408_vm1, %v18112_v58  ;;  %v4408_v20 = vsel %vm4405_vm15, %v17414_v30, %v4404_v22  ;;  %v18165_v22 = vld [vmem:[%s21450_s2 + $0x328] sm:$0xff]  ;;  %v18172_v32 = vpop.permute.xlu0 %6148 }
 0x193   : > { %2778 = vmatprep.mubr.f32.mxu0 %v17796_v0  ;;  %14107 = vmatprep.mubr.msk.f32.mxu1 %vm408_vm1, %v18117_v23 }
 0x196   : > { %13030 = vmatmul.mubr.msk.f32.gmra.mrb[6].mxu0 %vm408_vm1, %v17844_v28  ;;  %14108 = vmatmul.mubr.msk.f32.vlgmr.msra.gmra.mrb[2].mxu1 %vm408_vm1, %v18129_v7  ;;  %v18153_v28 = vld [vmem:[%s21450_s2 + $0x320] sm:$0xff]  ;;  %v4694_v46 = vpop.permute.xlu0 %4693 }
 0x197   : > { %2784 = vmatprep.mubr.f32.mxu0 %v17796_v0  ;;  %14110 = vmatprep.mubr.msk.f32.mxu1 %vm408_vm1, %v18134_v62 }
 0x198   : > { %14120 = vmatpush3.msra.mxu1 %v4118_v43  ;;  %v18170_v43 = vld [vmem:[%s21450_s2 + $0x330] sm:$0xff] }
 0x199   : > { %14133 = vmatprep.subr.mxu1 %v4408_v20 }
 0x19a   : > { %13031 = vmatmul.mubr.msk.f32.gmra.mrb[8].mxu0 %vm408_vm1, %v17849_v13  ;;  %14111 = vmatmul.mubr.msk.f32.gmra.mrb[4].mxu1 %vm408_vm1, %v18148_v49  ;;  %v18184_v13 = vld [vmem:[%s21450_s2 + $0x338] sm:$0xff] }
 0x19b   : > { %2790 = vmatprep.mubr.f32.mxu0 %v17796_v0  ;;  %14113 = vmatprep.mubr.msk.f32.mxu1 %vm408_vm1, %v18153_v28 }
 0x19e   : > { %13032 = vmatmul.mubr.msk.f32.gmra.mrb[10].mxu0 %vm408_vm1, %v17861_v31  ;;  %14114 = vmatmul.mubr.msk.f32.gmra.mrb[6].mxu1 %vm408_vm1, %v18165_v22  ;;  %v18201_v31 = vld [vmem:[%s21450_s2 + $0x348] sm:$0xff] }
 0x19f   : > { %2796 = vmatprep.mubr.f32.mxu0 %v17796_v0  ;;  %14116 = vmatprep.mubr.msk.f32.mxu1 %vm408_vm1, %v18170_v43 }
 0x1a2   : > { %13033 = vmatmul.mubr.msk.f32.gmra.mrb[12].mxu0 %vm408_vm1, %v17866_v47  ;;  %14117 = vmatmul.mubr.msk.f32.gmra.mrb[8].mxu1 %vm408_vm1, %v18184_v13  ;;  %v4698_v47 = vsel %vm4695_vm0, %v17504_v56, %v4694_v46  ;;  %v3246_v46 = vsel %vm3245_vm11, %v17298_v60, %v17286_v57  ;;  %v18245_v57 = vld [vmem:[%s21450_s2 + $0x368] sm:$0xff]  ;;  %v18250_v60 = vld [vmem:[%s21450_s2 + $0x370] sm:$0xff]  ;;  %vm7022_vm11 = vcmask 908288  }
 0x1a3   : > { %2802 = vmatprep.mubr.f32.mxu0 %v17796_v0  ;;  %14121 = vmatprep.mubr.msk.f32.mxu1 %vm408_vm1, %v18189_v1 }
 0x1a6   : > { %13034 = vmatmul.mubr.msk.f32.gmra.mrb[14].mxu0 %vm408_vm1, %v17880_v39  ;;  %14122 = vmatmul.mubr.msk.f32.vlgmr.msra.gmra.mrb[2].mxu1 %vm408_vm1, %v18201_v31  ;;  %v18227_v39 = vld [vmem:[%s21450_s2 + $0x360] sm:$0xff] }
 0x1a7   : > { %3050 = vmatprep.mubr.f32.mxu0 %v17796_v0  ;;  %14124 = vmatprep.mubr.msk.f32.mxu1 %vm408_vm1, %v18206_v27 }
 0x1a8   : > { %14134 = vmatpush3.msra.mxu1 %v4408_v20 }
 0x1a9   : > { %14147 = vmatprep.subr.mxu1 %v4698_v47 }
 0x1aa   : > { %13051 = vmatmul.mubr.msk.f32.vlgmr.msra.gmra.mrb[0].mxu0 %vm408_vm1, %v17885_v45  ;;  %14125 = vmatmul.mubr.msk.f32.gmra.mrb[4].mxu1 %vm408_vm1, %v18220_v42  ;;  %v18252_v45 = vpop.permute.xlu1 %6144 }
 0x1ab   : > { %3056 = vmatprep.mubr.f32.mxu0 %v17796_v0  ;;  %14127 = vmatprep.mubr.msk.f32.mxu1 %vm408_vm1, %v18227_v39  ;;  %21513 = vst [vmem:[#allocation13_spill] sm:$0xff] %v18252_v45  ;;  %v18300_v45 = vld [vmem:[%s21450_s2 + $0x398] sm:$0xff] }
 0x1ac   : > { %3277 = vmatpush1.msra.mxu0 %v3246_v46  ;;  %v18286_v46 = vld [vmem:[%s21450_s2 + $0x390] sm:$0xff] }
 0x1ad   : > { %3566 = vmatprep.subr.mxu0 %v3537_v41  ;;  %v18269_v41 = vld [vmem:[%s21450_s2 + $0x380] sm:$0xff]  ;;  %21514 = vst [vmem:[#allocation14_spill] sm:$0xff] %v18286_v46 }
 0x1ae   : > { %13052 = vmatmul.mubr.msk.f32.gmra.mrb[2].mxu0 %vm408_vm1, %v17897_v53  ;;  %14128 = vmatmul.mubr.msk.f32.gmra.mrb[6].mxu1 %vm408_vm1, %v18245_v57  ;;  %v18281_v53 = vld [vmem:[%s21450_s2 + $0x388] sm:$0xff]  ;;  %v4984_v20 = vpop.permute.xlu1 %4983 }
 0x1af   : > { %3062 = vmatprep.mubr.f32.mxu0 %v17796_v0  ;;  %14130 = vmatprep.mubr.msk.f32.mxu1 %vm408_vm1, %v18250_v60 }
 0x1b2   : > { %13053 = vmatmul.mubr.msk.f32.gmra.mrb[4].mxu0 %vm408_vm1, %v17902_v59  ;;  %14131 = vmatmul.mubr.msk.f32.gmra.mrb[8].mxu1 %vm408_vm1, %v18264_v2  ;;  %v4988_v59 = vsel %vm4985_vm2, %v17589_v24, %v4984_v20  ;;  %v18317_v20 = vld [vmem:[%s21450_s2 + $0x3a8] sm:$0xff] }
 0x1b3   : > { %3068 = vmatprep.mubr.f32.mxu0 %v17796_v0  ;;  %14135 = vmatprep.mubr.msk.f32.mxu1 %vm408_vm1, %v18269_v41  ;;  %21516 = vst [vmem:[#allocation16_spill] sm:$0xff] %v18317_v20 }
 0x1b6   : > { %13054 = vmatmul.mubr.msk.f32.gmra.mrb[6].mxu0 %vm408_vm1, %v17916_v63  ;;  %14136 = vmatmul.mubr.msk.f32.vlgmr.msra.gmra.mrb[2].mxu1 %vm408_vm1, %v18281_v53  ;;  %v18305_v63 = vld [vmem:[%s21450_s2 + $0x3a0] sm:$0xff] }
 0x1b7   : > { %3074 = vmatprep.mubr.f32.mxu0 %v17796_v0  ;;  %14138 = vmatprep.mubr.msk.f32.mxu1 %vm408_vm1, %v18286_v46  ;;  %21515 = vst [vmem:[#allocation15_spill] sm:$0xff] %v18305_v63  ;;  %v18324_v46 = vpop.permute.xlu1 %6438 }
 0x1b8   : > { %14148 = vmatpush3.msra.mxu1 %v4698_v47  ;;  %v18322_v47 = vld [vmem:[%s21450_s2 + $0x3b0] sm:$0xff] }
 0x1b9   : > { %14161 = vmatprep.subr.mxu1 %v4988_v59  ;;  %21517 = vst [vmem:[#allocation17_spill] sm:$0xff] %v18322_v47 }
 0x1ba   : > { %13055 = vmatmul.mubr.msk.f32.gmra.mrb[8].mxu0 %vm408_vm1, %v17923_v9  ;;  %14139 = vmatmul.mubr.msk.f32.gmra.mrb[4].mxu1 %vm408_vm1, %v18300_v45  ;;  %v18336_v9 = vld [vmem:[%s21450_s2 + $0x3b8] sm:$0xff] }
 0x1bb   : > { %3080 = vmatprep.mubr.f32.mxu0 %v17796_v0  ;;  %14141 = vmatprep.mubr.msk.f32.mxu1 %vm408_vm1, %v18305_v63  ;;  %21518 = vst [vmem:[#allocation18_spill] sm:$0xff] %v18336_v9  ;;  %v18341_v63 = vld [vmem:[%s21450_s2 + $0x3c0] sm:$0xff] }
 0x1bc   : > { %21519 = vst [vmem:[#allocation19_spill] sm:$0xff] %v18341_v63 }
 0x1be   : > { %13056 = vmatmul.mubr.msk.f32.gmra.mrb[10].mxu0 %vm408_vm1, %v17941_v48  ;;  %14142 = vmatmul.mubr.msk.f32.gmra.mrb[6].mxu1 %vm408_vm1, %v18317_v20  ;;  %v18353_v48 = vld [vmem:[%s21450_s2 + $0x3c8] sm:$0xff]  ;;  %v18358_v20 = vld [vmem:[%s21450_s2 + $0x3d0] sm:$0xff] }
 0x1bf   : > { %3086 = vmatprep.mubr.f32.mxu0 %v17796_v0  ;;  %14144 = vmatprep.mubr.msk.f32.mxu1 %vm408_vm1, %v18322_v47  ;;  %v5274_v47 = vpop.permute.xlu1 %5273 }
 0x1c2   : > { %13057 = vmatmul.mubr.msk.f32.gmra.mrb[12].mxu0 %vm408_vm1, %v17946_v51  ;;  %14145 = vmatmul.mubr.msk.f32.gmra.mrb[8].mxu1 %vm408_vm1, %v18336_v9  ;;  %v5277_v51 = vsel %vm408_vm1, %v17713_v14, %v5274_v47  ;;  %v18374_v9 = vpop.permute.xlu0 %6436  ;;  %v3536_v47 = vsel %vm3535_vm12, %v17320_v3, %v17302_v61  ;;  %v18397_v61 = vld [vmem:[%s21450_s2 + $0x3e8] sm:$0xff]  ;;  %v18402_v3 = vld [vmem:[%s21450_s2 + $0x3f0] sm:$0xff] }
 0x1c3   : > { %3092 = vmatprep.mubr.f32.mxu0 %v17796_v0  ;;  %14149 = vmatprep.mubr.msk.f32.mxu1 %vm408_vm1, %v18341_v63  ;;  %v18372_v63 = vld [vmem:[%s21450_s2 + $0x3d8] sm:$0xff]  ;;  %21520 = vst [vmem:[#allocation20_spill] sm:$0xff] %v18374_v9  ;;  %v3827_v9 = vsel %vm3825_vm13, %v17330_v6, %v17334_v8 }
 0x1c4   : > { %v18416_v8 = vld [vmem:[%s21450_s2 + $0x3f8] sm:$0xff] }
 0x1c6   : > { %13058 = vmatmul.mubr.msk.f32.gmra.mrb[14].mxu0 %vm408_vm1, %v17960_v54  ;;  %14150 = vmatmul.mubr.msk.f32.vlgmr.msra.gmra.mrb[2].mxu1 %vm408_vm1, %v18353_v48  ;;  %v18379_v54 = vld [vmem:[%s21450_s2 + $0x3e0] sm:$0xff] }
 0x1c7   : > { %3340 = vmatprep.mubr.f32.mxu0 %v17796_v0  ;;  %14152 = vmatprep.mubr.msk.f32.mxu1 %vm408_vm1, %v18358_v20 }
 0x1c8   : > { %14162 = vmatpush3.msra.mxu1 %v4988_v59  ;;  %v18421_v59 = vld [vmem:[%s21450_s2 + $0x400] sm:$0xff] }
 0x1c9   : > { %14175 = vmatprep.subr.mxu1 %v5277_v51 }
 0x1ca   : > { %13075 = vmatmul.mubr.msk.f32.vlgmr.msra.gmra.mrb[0].mxu0 %vm408_vm1, %v17965_v35  ;;  %14153 = vmatmul.mubr.msk.f32.gmra.mrb[4].mxu1 %vm408_vm1, %v18372_v63  ;;  %v18404_v35 = vpop.permute.xlu0 %6434 }
 0x1cb   : > { %3346 = vmatprep.mubr.f32.mxu0 %v17796_v0  ;;  %14155 = vmatprep.mubr.msk.f32.mxu1 %vm408_vm1, %v18379_v54  ;;  %21521 = vst [vmem:[#allocation21_spill] sm:$0xff] %v18404_v35  ;;  %v18452_v35 = vld [vmem:[%s21450_s2 + $0x418] sm:$0xff] }
 0x1cc   : > { %3567 = vmatpush1.msra.mxu0 %v3536_v47  ;;  %v18438_v47 = vld [vmem:[%s21450_s2 + $0x410] sm:$0xff] }
 0x1cd   : > { %3856 = vmatprep.subr.mxu0 %v3827_v9  ;;  %21522 = vst [vmem:[#allocation22_spill] sm:$0xff] %v18438_v47 }
 0x1ce   : > { %13076 = vmatmul.mubr.msk.f32.gmra.mrb[2].mxu0 %vm408_vm1, %v17977_v21  ;;  %14156 = vmatmul.mubr.msk.f32.gmra.mrb[6].mxu1 %vm408_vm1, %v18397_v61  ;;  %v18433_v21 = vld [vmem:[%s21450_s2 + $0x408] sm:$0xff]  ;;  %v5563_v9 = vpop.permute.xlu0 %5562 }
 0x1cf   : > { %3352 = vmatprep.mubr.f32.mxu0 %v17796_v0  ;;  %14158 = vmatprep.mubr.msk.f32.mxu1 %vm408_vm1, %v18402_v3 }
 0x1d2   : > { %13077 = vmatmul.mubr.msk.f32.gmra.mrb[4].mxu0 %vm408_vm1, %v17982_v40  ;;  %14159 = vmatmul.mubr.msk.f32.gmra.mrb[8].mxu1 %vm408_vm1, %v18416_v8  ;;  %v5567_v40 = vsel %vm5564_vm3, %v17868_v50, %v5563_v9  ;;  %v18469_v9 = vld [vmem:[%s21450_s2 + $0x428] sm:$0xff] }
 0x1d3   : > { %3358 = vmatprep.mubr.f32.mxu0 %v17796_v0  ;;  %14163 = vmatprep.mubr.msk.f32.mxu1 %vm408_vm1, %v18421_v59  ;;  %21524 = vst [vmem:[#allocation24_spill] sm:$0xff] %v18469_v9 }
 0x1d6   : > { %13078 = vmatmul.mubr.msk.f32.gmra.mrb[6].mxu0 %vm408_vm1, %v17996_v33  ;;  %14164 = vmatmul.mubr.msk.f32.vlgmr.msra.gmra.mrb[2].mxu1 %vm408_vm1, %v18433_v21  ;;  %v18457_v33 = vld [vmem:[%s21450_s2 + $0x420] sm:$0xff] }
 0x1d7   : > { %3364 = vmatprep.mubr.f32.mxu0 %v17796_v0  ;;  %14166 = vmatprep.mubr.msk.f32.mxu1 %vm408_vm1, %v18438_v47  ;;  %21523 = vst [vmem:[#allocation23_spill] sm:$0xff] %v18457_v33  ;;  %v18476_v47 = vpop.permute.xlu0 %6728 }
 0x1d8   : > { %14176 = vmatpush3.msra.mxu1 %v5277_v51  ;;  %v18474_v51 = vld [vmem:[%s21450_s2 + $0x430] sm:$0xff] }
 0x1d9   : > { %14189 = vmatprep.subr.mxu1 %v5567_v40  ;;  %21525 = vst [vmem:[#allocation25_spill] sm:$0xff] %v18474_v51 }
 0x1da   : > { %13079 = vmatmul.mubr.msk.f32.gmra.mrb[8].mxu0 %vm408_vm1, %v18001_v26  ;;  %14167 = vmatmul.mubr.msk.f32.gmra.mrb[4].mxu1 %vm408_vm1, %v18452_v35  ;;  %v18488_v26 = vld [vmem:[%s21450_s2 + $0x438] sm:$0xff] }
 0x1db   : > { %3370 = vmatprep.mubr.f32.mxu0 %v17796_v0  ;;  %14169 = vmatprep.mubr.msk.f32.mxu1 %vm408_vm1, %v18457_v33  ;;  %21526 = vst [vmem:[#allocation26_spill] sm:$0xff] %v18488_v26  ;;  %v18493_v33 = vld [vmem:[%s21450_s2 + $0x440] sm:$0xff] }
 0x1dc   : > { %21527 = vst [vmem:[#allocation27_spill] sm:$0xff] %v18493_v33 }
 0x1de   : > { %13080 = vmatmul.mubr.msk.f32.gmra.mrb[10].mxu0 %vm408_vm1, %v18013_v11  ;;  %14170 = vmatmul.mubr.msk.f32.gmra.mrb[6].mxu1 %vm408_vm1, %v18469_v9  ;;  %v18505_v11 = vld [vmem:[%s21450_s2 + $0x448] sm:$0xff]  ;;  %v18510_v9 = vld [vmem:[%s21450_s2 + $0x450] sm:$0xff] }
 0x1df   : > { %3376 = vmatprep.mubr.f32.mxu0 %v17796_v0  ;;  %14172 = vmatprep.mubr.msk.f32.mxu1 %vm408_vm1, %v18474_v51  ;;  %v5853_v51 = vpop.permute.xlu0 %5852 }
 0x1e2   : > { %13081 = vmatmul.mubr.msk.f32.gmra.mrb[12].mxu0 %vm408_vm1, %v18018_v38  ;;  %14173 = vmatmul.mubr.msk.f32.gmra.mrb[8].mxu1 %vm408_vm1, %v18488_v26  ;;  %v5857_v38 = vsel %vm5854_vm4, %v18020_v25, %v5853_v51  ;;  %v18526_v26 = vpop.permute.xlu1 %6726  ;;  %v3826_v51 = vsel %vm3825_vm13, %v17344_v10, %v17330_v6  ;;  %v18549_v6 = vld [vmem:[%s21450_s2 + $0x468] sm:$0xff]  ;;  %v18554_v10 = vld [vmem:[%s21450_s2 + $0x470] sm:$0xff] }
 0x1e3   : > { %3382 = vmatprep.mubr.f32.mxu0 %v17796_v0  ;;  %14177 = vmatprep.mubr.msk.f32.mxu1 %vm408_vm1, %v18493_v33  ;;  %v18524_v33 = vld [vmem:[%s21450_s2 + $0x458] sm:$0xff]  ;;  %21528 = vst [vmem:[#allocation28_spill] sm:$0xff] %v18526_v26  ;;  %v4117_v26 = vsel %vm4115_vm14, %v17356_v17, %v17362_v18 }
 0x1e4   : > { %v18568_v18 = vld [vmem:[%s21450_s2 + $0x478] sm:$0xff] }
 0x1e6   : > { %13082 = vmatmul.mubr.msk.f32.gmra.mrb[14].mxu0 %vm408_vm1, %v18032_v19  ;;  %14178 = vmatmul.mubr.msk.f32.vlgmr.msra.gmra.mrb[2].mxu1 %vm408_vm1, %v18505_v11  ;;  %v18531_v19 = vld [vmem:[%s21450_s2 + $0x460] sm:$0xff] }
 0x1e7   : > { %3630 = vmatprep.mubr.f32.mxu0 %v17796_v0  ;;  %14180 = vmatprep.mubr.msk.f32.mxu1 %vm408_vm1, %v18510_v9 }
 0x1e8   : > { %14190 = vmatpush3.msra.mxu1 %v5567_v40  ;;  %v18573_v40 = vld [vmem:[%s21450_s2 + $0x480] sm:$0xff] }
 0x1e9   : > { %14203 = vmatprep.subr.mxu1 %v5857_v38 }
 0x1ea   : > { %13099 = vmatmul.mubr.msk.f32.vlgmr.msra.gmra.mrb[0].mxu0 %vm408_vm1, %v18037_v29  ;;  %14181 = vmatmul.mubr.msk.f32.gmra.mrb[4].mxu1 %vm408_vm1, %v18524_v33  ;;  %v18556_v29 = vpop.permute.xlu1 %6724 }
 0x1eb   : > { %3636 = vmatprep.mubr.f32.mxu0 %v17796_v0  ;;  %14183 = vmatprep.mubr.msk.f32.mxu1 %vm408_vm1, %v18531_v19  ;;  %21529 = vst [vmem:[#allocation29_spill] sm:$0xff] %v18556_v29  ;;  %v18604_v29 = vld [vmem:[%s21450_s2 + $0x498] sm:$0xff] }
 0x1ec   : > { %3857 = vmatpush1.msra.mxu0 %v3826_v51  ;;  %v18590_v51 = vld [vmem:[%s21450_s2 + $0x490] sm:$0xff] }
 0x1ed   : > { %4146 = vmatprep.subr.mxu0 %v4117_v26  ;;  %21530 = vst [vmem:[#allocation30_spill] sm:$0xff] %v18590_v51 }
 0x1ee   : > { %13100 = vmatmul.mubr.msk.f32.gmra.mrb[2].mxu0 %vm408_vm1, %v18049_v36  ;;  %14184 = vmatmul.mubr.msk.f32.gmra.mrb[6].mxu1 %vm408_vm1, %v18549_v6  ;;  %v18585_v36 = vld [vmem:[%s21450_s2 + $0x488] sm:$0xff]  ;;  %v6151_v26 = vpop.permute.xlu1 %6150 }
 0x1ef   : > { %3642 = vmatprep.mubr.f32.mxu0 %v17796_v0  ;;  %14186 = vmatprep.mubr.msk.f32.mxu1 %vm408_vm1, %v18554_v10 }
 0x1f2   : > { %13101 = vmatmul.mubr.msk.f32.gmra.mrb[4].mxu0 %vm408_vm1, %v18054_v34  ;;  %14187 = vmatmul.mubr.msk.f32.gmra.mrb[8].mxu1 %vm408_vm1, %v18568_v18  ;;  %v6155_v34 = vsel %vm6152_vm5, %v18172_v32, %v6151_v26  ;;  %v18621_v26 = vld [vmem:[%s21450_s2 + $0x4a8] sm:$0xff] }
 0x1f3   : > { %3648 = vmatprep.mubr.f32.mxu0 %v17796_v0  ;;  %14191 = vmatprep.mubr.msk.f32.mxu1 %vm408_vm1, %v18573_v40  ;;  %21532 = vst [vmem:[#allocation32_spill] sm:$0xff] %v18621_v26 }
 0x1f6   : > { %13102 = vmatmul.mubr.msk.f32.gmra.mrb[6].mxu0 %vm408_vm1, %v18068_v12  ;;  %14192 = vmatmul.mubr.msk.f32.vlgmr.msra.gmra.mrb[2].mxu1 %vm408_vm1, %v18585_v36  ;;  %v18609_v12 = vld [vmem:[%s21450_s2 + $0x4a0] sm:$0xff] }
 0x1f7   : > { %3654 = vmatprep.mubr.f32.mxu0 %v17796_v0  ;;  %14194 = vmatprep.mubr.msk.f32.mxu1 %vm408_vm1, %v18590_v51  ;;  %21531 = vst [vmem:[#allocation31_spill] sm:$0xff] %v18609_v12  ;;  %v18628_v51 = vpop.permute.xlu1 %7018 }
 0x1f8   : > { %14204 = vmatpush3.msra.mxu1 %v5857_v38  ;;  %v18626_v38 = vld [vmem:[%s21450_s2 + $0x4b0] sm:$0xff] }
 0x1f9   : > { %14217 = vmatprep.subr.mxu1 %v6155_v34  ;;  %21533 = vst [vmem:[#allocation33_spill] sm:$0xff] %v18626_v38 }
 0x1fa   : > { %13103 = vmatmul.mubr.msk.f32.gmra.mrb[8].mxu0 %vm408_vm1, %v18075_v4  ;;  %14195 = vmatmul.mubr.msk.f32.gmra.mrb[4].mxu1 %vm408_vm1, %v18604_v29  ;;  %v18640_v4 = vld [vmem:[%s21450_s2 + $0x4b8] sm:$0xff] }
 0x1fb   : > { %3660 = vmatprep.mubr.f32.mxu0 %v17796_v0  ;;  %14197 = vmatprep.mubr.msk.f32.mxu1 %vm408_vm1, %v18609_v12  ;;  %21534 = vst [vmem:[#allocation34_spill] sm:$0xff] %v18640_v4  ;;  %v18645_v12 = vld [vmem:[%s21450_s2 + $0x4c0] sm:$0xff] }
 0x1fc   : > { %21535 = vst [vmem:[#allocation35_spill] sm:$0xff] %v18645_v12 }
 0x1fe   : > { %13104 = vmatmul.mubr.msk.f32.gmra.mrb[10].mxu0 %vm408_vm1, %v18093_v52  ;;  %14198 = vmatmul.mubr.msk.f32.gmra.mrb[6].mxu1 %vm408_vm1, %v18621_v26  ;;  %v18657_v52 = vld [vmem:[%s21450_s2 + $0x4c8] sm:$0xff]  ;;  %v18662_v26 = vld [vmem:[%s21450_s2 + $0x4d0] sm:$0xff] }
 0x1ff   : > { %3666 = vmatprep.mubr.f32.mxu0 %v17796_v0  ;;  %14200 = vmatprep.mubr.msk.f32.mxu1 %vm408_vm1, %v18626_v38  ;;  %v6441_v38 = vpop.permute.xlu1 %6440 }
 0x202   : > { %13105 = vmatmul.mubr.msk.f32.gmra.mrb[12].mxu0 %vm408_vm1, %v18098_v55  ;;  %14201 = vmatmul.mubr.msk.f32.gmra.mrb[8].mxu1 %vm408_vm1, %v18640_v4  ;;  %v6445_v55 = vsel %vm6442_vm6, %v18324_v46, %v6441_v38  ;;  %v18678_v4 = vpop.permute.xlu0 %7016  ;;  %v4116_v38 = vsel %vm4115_vm14, %v17377_v16, %v17356_v17  ;;  %v18701_v17 = vld [vmem:[%s21450_s2 + $0x4e8] sm:$0xff]  ;;  %v18706_v16 = vld [vmem:[%s21450_s2 + $0x4f0] sm:$0xff] }
 0x203   : > { %3672 = vmatprep.mubr.f32.mxu0 %v17796_v0  ;;  %14205 = vmatprep.mubr.msk.f32.mxu1 %vm408_vm1, %v18645_v12  ;;  %v18676_v12 = vld [vmem:[%s21450_s2 + $0x4d8] sm:$0xff]  ;;  %21536 = vst [vmem:[#allocation36_spill] sm:$0xff] %v18678_v4  ;;  %v4407_v4 = vsel %vm4405_vm15, %v17429_v37, %v17414_v30 }
 0x204   : > { %v18720_v30 = vld [vmem:[%s21450_s2 + $0x4f8] sm:$0xff] }
 0x206   : > { %13106 = vmatmul.mubr.msk.f32.gmra.mrb[14].mxu0 %vm408_vm1, %v18112_v58  ;;  %14206 = vmatmul.mubr.msk.f32.vlgmr.msra.gmra.mrb[2].mxu1 %vm408_vm1, %v18657_v52  ;;  %v18683_v58 = vld [vmem:[%s21450_s2 + $0x4e0] sm:$0xff] }
 0x207   : > { %3920 = vmatprep.mubr.f32.mxu0 %v17796_v0  ;;  %14208 = vmatprep.mubr.msk.f32.mxu1 %vm408_vm1, %v18662_v26 }
 0x208   : > { %14218 = vmatpush3.msra.mxu1 %v6155_v34  ;;  %v18725_v34 = vld [vmem:[%s21450_s2 + $0x500] sm:$0xff] }
 0x209   : > { %14231 = vmatprep.subr.mxu1 %v6445_v55 }
 0x20a   : > { %13123 = vmatmul.mubr.msk.f32.vlgmr.msra.gmra.mrb[0].mxu0 %vm408_vm1, %v18117_v23  ;;  %14209 = vmatmul.mubr.msk.f32.gmra.mrb[4].mxu1 %vm408_vm1, %v18676_v12  ;;  %v18708_v23 = vpop.permute.xlu0 %7014 }
 0x20b   : > { %3926 = vmatprep.mubr.f32.mxu0 %v17796_v0  ;;  %14211 = vmatprep.mubr.msk.f32.mxu1 %vm408_vm1, %v18683_v58  ;;  %21537 = vst [vmem:[#allocation37_spill] sm:$0xff] %v18708_v23  ;;  %v18756_v23 = vld [vmem:[%s21450_s2 + $0x518] sm:$0xff] }
 0x20c   : > { %4147 = vmatpush1.msra.mxu0 %v4116_v38  ;;  %v18742_v38 = vld [vmem:[%s21450_s2 + $0x510] sm:$0xff] }
 0x20d   : > { %4436 = vmatprep.subr.mxu0 %v4407_v4  ;;  %21538 = vst [vmem:[#allocation38_spill] sm:$0xff] %v18742_v38 }
 0x20e   : > { %13124 = vmatmul.mubr.msk.f32.gmra.mrb[2].mxu0 %vm408_vm1, %v18129_v7  ;;  %14212 = vmatmul.mubr.msk.f32.gmra.mrb[6].mxu1 %vm408_vm1, %v18701_v17  ;;  %v18737_v7 = vld [vmem:[%s21450_s2 + $0x508] sm:$0xff]  ;;  %v6731_v4 = vpop.permute.xlu0 %6730 }
 0x20f   : > { %3932 = vmatprep.mubr.f32.mxu0 %v17796_v0  ;;  %14214 = vmatprep.mubr.msk.f32.mxu1 %vm408_vm1, %v18706_v16 }
 0x212   : > { %13125 = vmatmul.mubr.msk.f32.gmra.mrb[4].mxu0 %vm408_vm1, %v18134_v62  ;;  %14215 = vmatmul.mubr.msk.f32.gmra.mrb[8].mxu1 %vm408_vm1, %v18720_v30  ;;  %v6735_v62 = vsel %vm6732_vm10, %v18476_v47, %v6731_v4  ;;  %v18773_v4 = vld [vmem:[%s21450_s2 + $0x528] sm:$0xff] }
 0x213   : > { %3938 = vmatprep.mubr.f32.mxu0 %v17796_v0  ;;  %14219 = vmatprep.mubr.msk.f32.mxu1 %vm408_vm1, %v18725_v34  ;;  %21540 = vst [vmem:[#allocation40_spill] sm:$0xff] %v18773_v4 }
 0x216   : > { %13126 = vmatmul.mubr.msk.f32.gmra.mrb[6].mxu0 %vm408_vm1, %v18148_v49  ;;  %14220 = vmatmul.mubr.msk.f32.vlgmr.msra.gmra.mrb[2].mxu1 %vm408_vm1, %v18737_v7  ;;  %v18761_v49 = vld [vmem:[%s21450_s2 + $0x520] sm:$0xff] }
 0x217   : > { %3944 = vmatprep.mubr.f32.mxu0 %v17796_v0  ;;  %14222 = vmatprep.mubr.msk.f32.mxu1 %vm408_vm1, %v18742_v38  ;;  %21539 = vst [vmem:[#allocation39_spill] sm:$0xff] %v18761_v49  ;;  %v18780_v38 = vpop.permute.xlu0 %7308 }
 0x218   : > { %14232 = vmatpush3.msra.mxu1 %v6445_v55  ;;  %v18778_v55 = vld [vmem:[%s21450_s2 + $0x530] sm:$0xff] }
 0x219   : > { %14245 = vmatprep.subr.mxu1 %v6735_v62  ;;  %21541 = vst [vmem:[#allocation41_spill] sm:$0xff] %v18778_v55 }
 0x21a   : > { %13127 = vmatmul.mubr.msk.f32.gmra.mrb[8].mxu0 %vm408_vm1, %v18153_v28  ;;  %14223 = vmatmul.mubr.msk.f32.gmra.mrb[4].mxu1 %vm408_vm1, %v18756_v23  ;;  %v18792_v28 = vld [vmem:[%s21450_s2 + $0x538] sm:$0xff] }
 0x21b   : > { %3950 = vmatprep.mubr.f32.mxu0 %v17796_v0  ;;  %14225 = vmatprep.mubr.msk.f32.mxu1 %vm408_vm1, %v18761_v49  ;;  %21542 = vst [vmem:[#allocation42_spill] sm:$0xff] %v18792_v28  ;;  %v18797_v49 = vld [vmem:[%s21450_s2 + $0x540] sm:$0xff] }
 0x21c   : > { %21543 = vst [vmem:[#allocation43_spill] sm:$0xff] %v18797_v49 }
 0x21e   : > { %13128 = vmatmul.mubr.msk.f32.gmra.mrb[10].mxu0 %vm408_vm1, %v18165_v22  ;;  %14226 = vmatmul.mubr.msk.f32.gmra.mrb[6].mxu1 %vm408_vm1, %v18773_v4  ;;  %v18809_v22 = vld [vmem:[%s21450_s2 + $0x548] sm:$0xff]  ;;  %v18814_v4 = vld [vmem:[%s21450_s2 + $0x550] sm:$0xff] }
 0x21f   : > { %3956 = vmatprep.mubr.f32.mxu0 %v17796_v0  ;;  %14228 = vmatprep.mubr.msk.f32.mxu1 %vm408_vm1, %v18778_v55  ;;  %21544 = vst [vmem:[#allocation44_spill] sm:$0xff] %v18809_v22  ;;  %v7021_v55 = vpop.permute.xlu0 %7020  ;;  %21545 = vst [vmem:[#allocation45_spill] sm:$0xff] %v18814_v4 }
 0x222   : > { %13129 = vmatmul.mubr.msk.f32.gmra.mrb[12].mxu0 %vm408_vm1, %v18170_v43  ;;  %14229 = vmatmul.mubr.msk.f32.gmra.mrb[8].mxu1 %vm408_vm1, %v18792_v28  ;;  %v7025_v43 = vsel %vm7022_vm11, %v18628_v51, %v7021_v55  ;;  %v18830_v28 = vpop.permute.xlu1 %7306  ;;  %v4406_v55 = vsel %vm4405_vm15, %v17454_v44, %v17429_v37  ;;  %v7586_v37 = vld [vmem:[%s21451_s3 + $0x8] sm:$0xff]  ;;  %vm7312_vm15 = vcmask 900096  }
 0x223   : > { %3962 = vmatprep.mubr.f32.mxu0 %v17796_v0  ;;  %14233 = vmatprep.mubr.msk.f32.mxu1 %vm408_vm1, %v18797_v49  ;;  %v18828_v49 = vld [vmem:[%s21450_s2 + $0x558] sm:$0xff]  ;;  %21546 = vst [vmem:[#allocation46_spill] sm:$0xff] %v18830_v28  ;;  %v18859_v44 = vld [vmem:[%s21450_s2 + $0x568] sm:$0xff]  ;;  %v7587_v28 = vld [vmem:[%s21451_s3 + $0x10] sm:$0xff] }
 0x226   : > { %13130 = vmatmul.mubr.msk.f32.gmra.mrb[14].mxu0 %vm408_vm1, %v18184_v13  ;;  %14234 = vmatmul.mubr.msk.f32.vlgmr.msra.gmra.mrb[2].mxu1 %vm408_vm1, %v18809_v22  ;;  %v18835_v13 = vld [vmem:[%s21450_s2 + $0x560] sm:$0xff]  ;;  %v16849_v22 = vmov 0  }
 0x227   : > { %4210 = vmatprep.mubr.f32.mxu0 %v17796_v0  ;;  %14236 = vmatprep.mubr.msk.f32.mxu1 %vm408_vm1, %v18814_v4  ;;  %v7585_v4 = vld [vmem:[%s21451_s3] sm:$0xff] }
 0x228   : > { %14246 = vmatpush3.msra.mxu1 %v6735_v62  ;;  %15729 = vset.pattern.permute.xlu1 %v16849_v22  ;;  %v4697_v62 = vsel %vm4695_vm0, %v17526_v5, %v17504_v56  ;;  %v18866_v56 = vpop.permute.xlu1 %7304 }
 0x229   : > { %14259 = vmatprep.subr.mxu1 %v7025_v43  ;;  %15728 = vset.pattern.permute.xlu0 %v16849_v22  ;;  %21547 = vst [vmem:[#allocation47_spill] sm:$0xff] %v18866_v56  ;;  %v7588_v22 = vld [vmem:[%s21451_s3 + $0x18] sm:$0xff] }
 0x22a   : > { %13147 = vmatmul.mubr.msk.f32.vlgmr.msra.gmra.mrb[0].mxu0 %vm408_vm1, %v18189_v1  ;;  %14237 = vmatmul.mubr.msk.f32.gmra.mrb[4].mxu1 %vm408_vm1, %v18828_v49  ;;  %v18864_v1 = vld [vmem:[%s21450_s2 + $0x570] sm:$0xff] }
 0x22b   : > { %4216 = vmatprep.mubr.f32.mxu0 %v17796_v0  ;;  %14239 = vmatprep.mubr.msk.f32.mxu1 %vm408_vm1, %v18835_v13 }
 0x22c   : > { %4437 = vmatpush1.msra.mxu0 %v4406_v55  ;;  %7595 = vperm.xlu0 %15728, %v7585_v4   ;;  %v18884_v4 = vld [vmem:[%s21450_s2 + $0x578] sm:$0xff]  ;;  %v7590_v55 = vld [vmem:[%s21451_s3 + $0x28] sm:$0xff] }
 0x22d   : > { %4726 = vmatprep.subr.mxu0 %v4697_v62  ;;  %7600 = vperm.xlu1 %15729, %v7586_v37   ;;  %v7589_v62 = vld [vmem:[%s21451_s3 + $0x20] sm:$0xff]  ;;  %v7311_v37 = vpop.permute.xlu1 %7310 }
 0x22e   : > { %13148 = vmatmul.mubr.msk.f32.gmra.mrb[2].mxu0 %vm408_vm1, %v18201_v31  ;;  %14240 = vmatmul.mubr.msk.f32.gmra.mrb[6].mxu1 %vm408_vm1, %v18859_v44  ;;  %v18889_v31 = vld [vmem:[%s21450_s2 + $0x580] sm:$0xff]  ;;  %v7315_v56 = vsel %vm7312_vm15, %v18780_v38, %v7311_v37  ;;  %v18988_v37 = vld [vmem:[%s21450_s2 + $0x5d0] sm:$0xff] }
 0x22f   : > { %4222 = vmatprep.mubr.f32.mxu0 %v17796_v0  ;;  %14242 = vmatprep.mubr.msk.f32.mxu1 %vm408_vm1, %v18864_v1  ;;  %21548 = vst [vmem:[#allocation48_spill] sm:$0xff] %v18889_v31  ;;  %21551 = vst [vmem:[#allocation51_spill] sm:$0xff] %v18988_v37 }
 0x230   : > { %7610 = vperm.xlu0 %15728, %v7588_v22   ;;  %v7592_v22 = vld [vmem:[%s21451_s3 + $0x38] sm:$0xff] }
 0x231   : > { %7605 = vperm.xlu1 %15729, %v7587_v28   ;;  %v18907_v28 = vld [vmem:[%s21450_s2 + $0x588] sm:$0xff] }
 0x232   : > { %13149 = vmatmul.mubr.msk.f32.gmra.mrb[4].mxu0 %vm408_vm1, %v18206_v27  ;;  %14243 = vmatmul.mubr.msk.f32.gmra.mrb[8].mxu1 %vm408_vm1, %v18884_v4  ;;  %v18912_v27 = vld [vmem:[%s21450_s2 + $0x590] sm:$0xff] }
 0x233   : > { %4228 = vmatprep.mubr.f32.mxu0 %v17796_v0  ;;  %14247 = vmatprep.mubr.msk.f32.mxu1 %vm408_vm1, %v18889_v31  ;;  %v7591_v31 = vld [vmem:[%s21451_s3 + $0x30] sm:$0xff] }
 0x234   : > { %7620 = vperm.xlu0 %15728, %v7590_v55   ;;  %v18932_v55 = vld [vmem:[%s21450_s2 + $0x598] sm:$0xff] }
 0x235   : > { %7615 = vperm.xlu1 %15729, %v7589_v62   ;;  %v18949_v62 = vld [vmem:[%s21450_s2 + $0x5a8] sm:$0xff] }
 0x236   : > { %13150 = vmatmul.mubr.msk.f32.gmra.mrb[6].mxu0 %vm408_vm1, %v18220_v42  ;;  %14248 = vmatmul.mubr.msk.f32.vlgmr.msra.gmra.mrb[2].mxu1 %vm408_vm1, %v18907_v28  ;;  %v18937_v42 = vld [vmem:[%s21450_s2 + $0x5a0] sm:$0xff] }
 0x237   : > { %4234 = vmatprep.mubr.f32.mxu0 %v17796_v0  ;;  %14250 = vmatprep.mubr.msk.f32.mxu1 %vm408_vm1, %v18912_v27 }
 0x238   : > { %14260 = vmatpush3.msra.mxu1 %v7025_v43  ;;  %7630 = vperm.xlu0 %15728, %v7592_v22   ;;  %v18954_v43 = vld [vmem:[%s21450_s2 + $0x5b0] sm:$0xff]  ;;  %v19007_v22 = vld [vmem:[%s21450_s2 + $0x5e0] sm:$0xff] }
 0x239   : > { %14273 = vmatprep.subr.mxu1 %v7315_v56  ;;  %7625 = vperm.xlu1 %15729, %v7591_v31   ;;  %v18971_v31 = vld [vmem:[%s21450_s2 + $0x5c0] sm:$0xff] }
 0x23a   : > { %13151 = vmatmul.mubr.msk.f32.gmra.mrb[8].mxu0 %vm408_vm1, %v18227_v39  ;;  %14251 = vmatmul.mubr.msk.f32.gmra.mrb[4].mxu1 %vm408_vm1, %v18932_v55  ;;  %v18966_v39 = vld [vmem:[%s21450_s2 + $0x5b8] sm:$0xff]  ;;  %21549 = vst [vmem:[#allocation49_spill] sm:$0xff] %v18971_v31 }
 0x23b   : > { %4240 = vmatprep.mubr.f32.mxu0 %v17796_v0  ;;  %14253 = vmatprep.mubr.msk.f32.mxu1 %vm408_vm1, %v18937_v42 }
 0x23e   : > { %13152 = vmatmul.mubr.msk.f32.gmra.mrb[10].mxu0 %vm408_vm1, %v18245_v57  ;;  %14254 = vmatmul.mubr.msk.f32.gmra.mrb[6].mxu1 %vm408_vm1, %v18949_v62  ;;  %v18983_v57 = vld [vmem:[%s21450_s2 + $0x5c8] sm:$0xff] }
 0x23f   : > { %4246 = vmatprep.mubr.f32.mxu0 %v17796_v0  ;;  %14256 = vmatprep.mubr.msk.f32.mxu1 %vm408_vm1, %v18954_v43  ;;  %21550 = vst [vmem:[#allocation50_spill] sm:$0xff] %v18983_v57 }
 0x242   : > { %13153 = vmatmul.mubr.msk.f32.gmra.mrb[12].mxu0 %vm408_vm1, %v18250_v60  ;;  %14257 = vmatmul.mubr.msk.f32.gmra.mrb[8].mxu1 %vm408_vm1, %v18966_v39  ;;  %v19002_v60 = vld [vmem:[%s21450_s2 + $0x5d8] sm:$0xff] }
 0x243   : > { %4252 = vmatprep.mubr.f32.mxu0 %v17796_v0  ;;  %14261 = vmatprep.mubr.msk.f32.mxu1 %vm408_vm1, %v18971_v31  ;;  %v18994_v0 = vld [vmem:[#allocation2] sm:$0xff]  ;;  %v19019_v31 = vpop.f32.mrb[0].mxu1 }
 0x246   : > { %13154 = vmatmul.mubr.msk.f32.gmra.mrb[14].mxu0 %vm408_vm1, %v18264_v2  ;;  %14262 = vmatmul.mubr.msk.f32.vlgmr.msra.gmra.mrb[2].mxu1 %vm408_vm1, %v18983_v57  ;;  %v4696_v2 = vsel %vm4695_vm0, %v17546_v15, %v17526_v5  ;;  %v19027_v5 = vld [vmem:[%s21450_s2 + $0x5e8] sm:$0xff]  ;;  %v19029_v15 = vpop.f32.mrb[1].mxu1  ;;  %vm7793_vm0 = vcmask 785408  }
 0x247   : > { %4500 = vmatprep.mubr.f32.mxu0 %v18994_v0  ;;  %14264 = vmatprep.mubr.msk.f32.mxu1 %vm408_vm1, %v18988_v37  ;;  %v21552_v37 = vld [vmem:[#allocation4_spill] sm:$0xff]  ;;  %21554 = vst [vmem:[#allocation52_spill] sm:$0xff] %v19029_v15 }
 0x248   : > { %14274 = vmatpush3.msra.mxu1 %v7315_v56  ;;  %v4987_v57 = vsel %vm4985_vm2, %v21552_v37, %v17589_v24  ;;  %21553 = vst [vmem:[#allocation4_spill] sm:$0xff] %v19019_v31  ;;  %v19046_v24 = vld [vmem:[%s21450_s2 + $0x5f8] sm:$0xff]  ;;  %v19051_v56 = vld [vmem:[%s21450_s2 + $0x600] sm:$0xff] }
 0x249   : > { %21555 = vst [vmem:[#allocation53_spill] sm:$0xff] %v19051_v56  ;;  %v19085_v15 = vld [vmem:[%s21450_s2 + $0x620] sm:$0xff]  ;;  %v21561_v31 = vld [vmem:[#allocation15_spill] sm:$0xff] }
 0x24a   : > { %13171 = vmatmul.mubr.msk.f32.vlgmr.msra.gmra.mrb[0].mxu0 %vm408_vm1, %v18269_v41  ;;  %14265 = vmatmul.mubr.msk.f32.gmra.mrb[4].mxu1 %vm408_vm1, %v19002_v60  ;;  %v19034_v41 = vld [vmem:[%s21450_s2 + $0x5f0] sm:$0xff]  ;;  %21560 = vst [vmem:[#allocation56_spill] sm:$0xff] %v19085_v15 }
 0x24b   : > { %4506 = vmatprep.mubr.f32.mxu0 %v18994_v0  ;;  %14267 = vmatprep.mubr.msk.f32.mxu1 %vm408_vm1, %v19007_v22 }
 0x24c   : > { %4727 = vmatpush1.msra.mxu0 %v4696_v2  ;;  %v19068_v2 = vld [vmem:[%s21450_s2 + $0x610] sm:$0xff] }
 0x24d   : > { %5016 = vmatprep.subr.mxu0 %v4987_v57  ;;  %v21556_v57 = vld [vmem:[#allocation14_spill] sm:$0xff]  ;;  %21558 = vst [vmem:[#allocation54_spill] sm:$0xff] %v19068_v2 }
 0x24e   : > { %13172 = vmatmul.mubr.msk.f32.gmra.mrb[2].mxu0 %vm408_vm1, %v18281_v53  ;;  %14268 = vmatmul.mubr.msk.f32.gmra.mrb[6].mxu1 %vm408_vm1, %v19027_v5  ;;  %v19063_v53 = vld [vmem:[%s21450_s2 + $0x608] sm:$0xff] }
 0x24f   : > { %4512 = vmatprep.mubr.f32.mxu0 %v18994_v0  ;;  %14270 = vmatprep.mubr.msk.f32.mxu1 %vm408_vm1, %v19034_v41  ;;  %21557 = vst [vmem:[#allocation14_spill] sm:$0xff] %v19063_v53 }
 0x252   : > { %13173 = vmatmul.mubr.msk.f32.gmra.mrb[4].mxu0 %vm408_vm1, %v21556_v57  ;;  %14271 = vmatmul.mubr.msk.f32.gmra.mrb[8].mxu1 %vm408_vm1, %v19046_v24  ;;  %v19080_v57 = vld [vmem:[%s21450_s2 + $0x618] sm:$0xff] }
 0x253   : > { %4518 = vmatprep.mubr.f32.mxu0 %v18994_v0  ;;  %14275 = vmatprep.mubr.msk.f32.mxu1 %vm408_vm1, %v19051_v56  ;;  %21559 = vst [vmem:[#allocation55_spill] sm:$0xff] %v19080_v57  ;;  %v21569_v56 = vld [vmem:[#allocation19_spill] sm:$0xff] }
 0x256   : > { %13174 = vmatmul.mubr.msk.f32.gmra.mrb[6].mxu0 %vm408_vm1, %v18300_v45  ;;  %14276 = vmatmul.mubr.msk.f32.vlgmr.msra.gmra.mrb[2].mxu1 %vm408_vm1, %v19063_v53  ;;  %v19097_v45 = vld [vmem:[%s21450_s2 + $0x628] sm:$0xff]  ;;  %v21564_v53 = vld [vmem:[#allocation16_spill] sm:$0xff] }
 0x257   : > { %4524 = vmatprep.mubr.f32.mxu0 %v18994_v0  ;;  %14278 = vmatprep.mubr.msk.f32.mxu1 %vm408_vm1, %v19068_v2  ;;  %21562 = vst [vmem:[#allocation15_spill] sm:$0xff] %v19097_v45  ;;  %v19102_v2 = vld [vmem:[%s21450_s2 + $0x630] sm:$0xff] }
 0x258   : > { %21563 = vst [vmem:[#allocation57_spill] sm:$0xff] %v19102_v2 }
 0x25a   : > { %13175 = vmatmul.mubr.msk.f32.gmra.mrb[8].mxu0 %vm408_vm1, %v21561_v31  ;;  %14279 = vmatmul.mubr.msk.f32.gmra.mrb[4].mxu1 %vm408_vm1, %v19080_v57  ;;  %v19114_v31 = vld [vmem:[%s21450_s2 + $0x638] sm:$0xff]  ;;  %v21568_v57 = vld [vmem:[#allocation6_spill] sm:$0xff] }
 0x25b   : > { %4530 = vmatprep.mubr.f32.mxu0 %v18994_v0  ;;  %14281 = vmatprep.mubr.msk.f32.mxu1 %vm408_vm1, %v19085_v15  ;;  %v21565_v15 = vld [vmem:[#allocation17_spill] sm:$0xff] }
 0x25e   : > { %13176 = vmatmul.mubr.msk.f32.gmra.mrb[10].mxu0 %vm408_vm1, %v21564_v53  ;;  %14282 = vmatmul.mubr.msk.f32.gmra.mrb[6].mxu1 %vm408_vm1, %v19097_v45  ;;  %v21566_v53 = vld [vmem:[#allocation18_spill] sm:$0xff] }
 0x25f   : > { %4536 = vmatprep.mubr.f32.mxu0 %v18994_v0  ;;  %14284 = vmatprep.mubr.msk.f32.mxu1 %vm408_vm1, %v19102_v2  ;;  %v21567_v2 = vld [vmem:[#allocation5_spill] sm:$0xff] }
 0x260   : > { %v4986_v45 = vsel %vm4985_vm2, %v21567_v2, %v21552_v37 }
 0x262   : > { %13177 = vmatmul.mubr.msk.f32.gmra.mrb[12].mxu0 %vm408_vm1, %v21565_v15  ;;  %14285 = vmatmul.mubr.msk.f32.gmra.mrb[8].mxu1 %vm408_vm1, %v19114_v31  ;;  %v5276_v15 = vsel %vm408_vm1, %v21568_v57, %v17713_v14  ;;  %v21570_v14 = vld [vmem:[#allocation7_spill] sm:$0xff] }
 0x263   : > { %4542 = vmatprep.mubr.f32.mxu0 %v18994_v0  ;;  %8136 = vmatprep.mubr.f32.mxu1 %v18994_v0 }
 0x266   : > { %13178 = vmatmul.mubr.msk.f32.gmra.mrb[14].mxu0 %vm408_vm1, %v21566_v53 }
 0x267   : > { %4790 = vmatprep.mubr.f32.mxu0 %v18994_v0 }
 0x26a   : > { %13195 = vmatmul.mubr.msk.f32.vlgmr.msra.gmra.mrb[0].mxu0 %vm408_vm1, %v21569_v56  ;;  %v21579_v56 = vld [vmem:[#allocation27_spill] sm:$0xff] }
 0x26b   : > { %4796 = vmatprep.mubr.f32.mxu0 %v18994_v0  ;;  %5017 = vmatpush1.msra.mxu0 %v4986_v45  ;;  %v21596_v45 = vld [vmem:[#allocation42_spill] sm:$0xff] }
 0x26c   : > { %5305 = vmatprep.subr.mxu0 %v5276_v15  ;;  %v19315_v15 = vld [vmem:[%s21449_s1] sm:$0x7] }
 0x26e   : > { %13196 = vmatmul.mubr.msk.f32.gmra.mrb[2].mxu0 %vm408_vm1, %v18353_v48 }
 0x26f   : > { %4802 = vmatprep.mubr.f32.mxu0 %v18994_v0 }
 0x272   : > { %13197 = vmatmul.mubr.msk.f32.gmra.mrb[4].mxu0 %vm408_vm1, %v18358_v20  ;;  %v21571_v20 = vld [vmem:[#allocation8_spill] sm:$0xff] }
 0x273   : > { %4808 = vmatprep.mubr.f32.mxu0 %v18994_v0  ;;  %v5566_v48 = vsel %vm5564_vm3, %v21571_v20, %v17868_v50  ;;  %v21573_v50 = vld [vmem:[#allocation23_spill] sm:$0xff] }
 0x276   : > { %13198 = vmatmul.mubr.msk.f32.gmra.mrb[6].mxu0 %vm408_vm1, %v18372_v63  ;;  %v5275_v63 = vsel %vm408_vm1, %v21570_v14, %v21568_v57  ;;  %v21589_v57 = vld [vmem:[#allocation35_spill] sm:$0xff]  ;;  %v21597_v14 = vld [vmem:[#allocation29_spill] sm:$0xff] }
 0x277   : > { %4814 = vmatprep.mubr.f32.mxu0 %v18994_v0 }
 0x27a   : > { %13199 = vmatmul.mubr.msk.f32.gmra.mrb[8].mxu0 %vm408_vm1, %v18379_v54  ;;  %v21572_v54 = vld [vmem:[#allocation22_spill] sm:$0xff] }
 0x27b   : > { %4820 = vmatprep.mubr.f32.mxu0 %v18994_v0 }
 0x27e   : > { %13200 = vmatmul.mubr.msk.f32.gmra.mrb[10].mxu0 %vm408_vm1, %v18397_v61  ;;  %v21574_v61 = vld [vmem:[#allocation24_spill] sm:$0xff] }
 0x27f   : > { %4826 = vmatprep.mubr.f32.mxu0 %v18994_v0 }
 0x282   : > { %13201 = vmatmul.mubr.msk.f32.gmra.mrb[12].mxu0 %vm408_vm1, %v18402_v3  ;;  %v21575_v3 = vld [vmem:[#allocation25_spill] sm:$0xff] }
 0x283   : > { %4832 = vmatprep.mubr.f32.mxu0 %v18994_v0 }
 0x286   : > { %13202 = vmatmul.mubr.msk.f32.gmra.mrb[14].mxu0 %vm408_vm1, %v18416_v8  ;;  %v21576_v8 = vld [vmem:[#allocation26_spill] sm:$0xff] }
 0x287   : > { %5080 = vmatprep.mubr.f32.mxu0 %v18994_v0 }
 0x28a   : > { %13219 = vmatmul.mubr.msk.f32.vlgmr.msra.gmra.mrb[0].mxu0 %vm408_vm1, %v18421_v59 }
 0x28b   : > { %5086 = vmatprep.mubr.f32.mxu0 %v18994_v0  ;;  %5306 = vmatpush1.msra.mxu0 %v5275_v63 }
 0x28c   : > { %5595 = vmatprep.subr.mxu0 %v5566_v48 }
 0x28e   : > { %13220 = vmatmul.mubr.msk.f32.gmra.mrb[2].mxu0 %vm408_vm1, %v18433_v21  ;;  %v21578_v21 = vld [vmem:[#allocation10_spill] sm:$0xff] }
 0x28f   : > { %5092 = vmatprep.mubr.f32.mxu0 %v18994_v0  ;;  %v5856_v37 = vsel %vm5854_vm4, %v21578_v21, %v18020_v25  ;;  %v21580_v25 = vld [vmem:[#allocation11_spill] sm:$0xff] }
 0x292   : > { %13221 = vmatmul.mubr.msk.f32.gmra.mrb[4].mxu0 %vm408_vm1, %v21572_v54 }
 0x293   : > { %5098 = vmatprep.mubr.f32.mxu0 %v18994_v0 }
 0x296   : > { %13222 = vmatmul.mubr.msk.f32.gmra.mrb[6].mxu0 %vm408_vm1, %v18452_v35  ;;  %v21577_v35 = vld [vmem:[#allocation9_spill] sm:$0xff] }
 0x297   : > { %5104 = vmatprep.mubr.f32.mxu0 %v18994_v0  ;;  %v5565_v59 = vsel %vm5564_vm3, %v21577_v35, %v21571_v20 }
 0x29a   : > { %13223 = vmatmul.mubr.msk.f32.gmra.mrb[8].mxu0 %vm408_vm1, %v21573_v50  ;;  %v21598_v50 = vld [vmem:[#allocation36_spill] sm:$0xff] }
 0x29b   : > { %5110 = vmatprep.mubr.f32.mxu0 %v18994_v0 }
 0x29e   : > { %13224 = vmatmul.mubr.msk.f32.gmra.mrb[10].mxu0 %vm408_vm1, %v21574_v61  ;;  %v7024_v61 = vsel %vm7022_vm11, %v21598_v50, %v18628_v51 }
 0x29f   : > { %5116 = vmatprep.mubr.f32.mxu0 %v18994_v0 }
 0x2a2   : > { %13225 = vmatmul.mubr.msk.f32.gmra.mrb[12].mxu0 %vm408_vm1, %v21575_v3 }
 0x2a3   : > { %5122 = vmatprep.mubr.f32.mxu0 %v18994_v0 }
 0x2a6   : > { %13226 = vmatmul.mubr.msk.f32.gmra.mrb[14].mxu0 %vm408_vm1, %v21576_v8  ;;  %v21599_v8 = vld [vmem:[#allocation43_spill] sm:$0xff] }
 0x2a7   : > { %5369 = vmatprep.mubr.f32.mxu0 %v18994_v0 }
 0x2aa   : > { %13243 = vmatmul.mubr.msk.f32.vlgmr.msra.gmra.mrb[0].mxu0 %vm408_vm1, %v21579_v56 }
 0x2ab   : > { %5375 = vmatprep.mubr.f32.mxu0 %v18994_v0  ;;  %5596 = vmatpush1.msra.mxu0 %v5565_v59 }
 0x2ac   : > { %5885 = vmatprep.subr.mxu0 %v5856_v37 }
 0x2ae   : > { %13244 = vmatmul.mubr.msk.f32.gmra.mrb[2].mxu0 %vm408_vm1, %v18505_v11 }
 0x2af   : > { %5381 = vmatprep.mubr.f32.mxu0 %v18994_v0 }
 0x2b2   : > { %13245 = vmatmul.mubr.msk.f32.gmra.mrb[4].mxu0 %vm408_vm1, %v18510_v9  ;;  %v21581_v9 = vld [vmem:[#allocation12_spill] sm:$0xff] }
 0x2b3   : > { %5387 = vmatprep.mubr.f32.mxu0 %v18994_v0  ;;  %v6154_v11 = vsel %vm6152_vm5, %v21581_v9, %v18172_v32  ;;  %v21583_v32 = vld [vmem:[#allocation31_spill] sm:$0xff] }
 0x2b6   : > { %13246 = vmatmul.mubr.msk.f32.gmra.mrb[6].mxu0 %vm408_vm1, %v18524_v33  ;;  %v5855_v33 = vsel %vm5854_vm4, %v21580_v25, %v21578_v21  ;;  %vm7842_vm4 = vcmask 1048320  }
 0x2b7   : > { %5393 = vmatprep.mubr.f32.mxu0 %v18994_v0 }
 0x2ba   : > { %13247 = vmatmul.mubr.msk.f32.gmra.mrb[8].mxu0 %vm408_vm1, %v18531_v19  ;;  %v21582_v19 = vld [vmem:[#allocation30_spill] sm:$0xff] }
 0x2bb   : > { %5399 = vmatprep.mubr.f32.mxu0 %v18994_v0 }
 0x2be   : > { %13248 = vmatmul.mubr.msk.f32.gmra.mrb[10].mxu0 %vm408_vm1, %v18549_v6  ;;  %v21584_v6 = vld [vmem:[#allocation32_spill] sm:$0xff] }
 0x2bf   : > { %5405 = vmatprep.mubr.f32.mxu0 %v18994_v0 }
 0x2c2   : > { %13249 = vmatmul.mubr.msk.f32.gmra.mrb[12].mxu0 %vm408_vm1, %v18554_v10  ;;  %v21585_v10 = vld [vmem:[#allocation33_spill] sm:$0xff] }
 0x2c3   : > { %5411 = vmatprep.mubr.f32.mxu0 %v18994_v0 }
 0x2c6   : > { %13250 = vmatmul.mubr.msk.f32.gmra.mrb[14].mxu0 %vm408_vm1, %v18568_v18  ;;  %v21586_v18 = vld [vmem:[#allocation34_spill] sm:$0xff] }
 0x2c7   : > { %5659 = vmatprep.mubr.f32.mxu0 %v18994_v0 }
 0x2ca   : > { %13267 = vmatmul.mubr.msk.f32.vlgmr.msra.gmra.mrb[0].mxu0 %vm408_vm1, %v18573_v40 }
 0x2cb   : > { %5665 = vmatprep.mubr.f32.mxu0 %v18994_v0  ;;  %5886 = vmatpush1.msra.mxu0 %v5855_v33  ;;  %v21600_v33 = vld [vmem:[#allocation44_spill] sm:$0xff] }
 0x2cc   : > { %6183 = vmatprep.subr.mxu0 %v6154_v11 }
 0x2ce   : > { %13268 = vmatmul.mubr.msk.f32.gmra.mrb[2].mxu0 %vm408_vm1, %v18585_v36  ;;  %v21588_v36 = vld [vmem:[#allocation20_spill] sm:$0xff] }
 0x2cf   : > { %5671 = vmatprep.mubr.f32.mxu0 %v18994_v0  ;;  %v6444_v2 = vsel %vm6442_vm6, %v21588_v36, %v18324_v46  ;;  %v21590_v46 = vld [vmem:[#allocation21_spill] sm:$0xff] }
 0x2d2   : > { %13269 = vmatmul.mubr.msk.f32.gmra.mrb[4].mxu0 %vm408_vm1, %v21582_v19 }
 0x2d3   : > { %5677 = vmatprep.mubr.f32.mxu0 %v18994_v0 }
 0x2d6   : > { %13270 = vmatmul.mubr.msk.f32.gmra.mrb[6].mxu0 %vm408_vm1, %v18604_v29  ;;  %v21587_v29 = vld [vmem:[#allocation13_spill] sm:$0xff] }
 0x2d7   : > { %5683 = vmatprep.mubr.f32.mxu0 %v18994_v0  ;;  %v6153_v40 = vsel %vm6152_vm5, %v21587_v29, %v21581_v9  ;;  %vm310_vm5 = vcmask 523264  }
 0x2da   : > { %13271 = vmatmul.mubr.msk.f32.gmra.mrb[8].mxu0 %vm408_vm1, %v21583_v32 }
 0x2db   : > { %5689 = vmatprep.mubr.f32.mxu0 %v18994_v0 }
 0x2de   : > { %13272 = vmatmul.mubr.msk.f32.gmra.mrb[10].mxu0 %vm408_vm1, %v21584_v6 }
 0x2df   : > { %5695 = vmatprep.mubr.f32.mxu0 %v18994_v0 }
 0x2e2   : > { %13273 = vmatmul.mubr.msk.f32.gmra.mrb[12].mxu0 %vm408_vm1, %v21585_v10 }
 0x2e3   : > { %5701 = vmatprep.mubr.f32.mxu0 %v18994_v0 }
 0x2e6   : > { %13274 = vmatmul.mubr.msk.f32.gmra.mrb[14].mxu0 %vm408_vm1, %v21586_v18 }
 0x2e7   : > { %5949 = vmatprep.mubr.f32.mxu0 %v18994_v0 }
 0x2ea   : > { %13291 = vmatmul.mubr.msk.f32.vlgmr.msra.gmra.mrb[0].mxu0 %vm408_vm1, %v21589_v57  ;;  %v21601_v57 = vld [vmem:[#allocation45_spill] sm:$0xff] }
 0x2eb   : > { %5955 = vmatprep.mubr.f32.mxu0 %v18994_v0  ;;  %6184 = vmatpush1.msra.mxu0 %v6153_v40 }
 0x2ec   : > { %6473 = vmatprep.subr.mxu0 %v6444_v2 }
 0x2ee   : > { %13292 = vmatmul.mubr.msk.f32.gmra.mrb[2].mxu0 %vm408_vm1, %v18657_v52 }
 0x2ef   : > { %5961 = vmatprep.mubr.f32.mxu0 %v18994_v0 }
 0x2f2   : > { %13293 = vmatmul.mubr.msk.f32.gmra.mrb[4].mxu0 %vm408_vm1, %v18662_v26  ;;  %v21591_v26 = vld [vmem:[#allocation28_spill] sm:$0xff] }
 0x2f3   : > { %5967 = vmatprep.mubr.f32.mxu0 %v18994_v0  ;;  %v6734_v52 = vsel %vm6732_vm10, %v21591_v26, %v18476_v47  ;;  %v21593_v47 = vld [vmem:[#allocation39_spill] sm:$0xff]  ;;  %v6733_v63 = vsel %vm6732_vm10, %v21597_v14, %v21591_v26 }
 0x2f6   : > { %13294 = vmatmul.mubr.msk.f32.gmra.mrb[6].mxu0 %vm408_vm1, %v18676_v12  ;;  %v6443_v12 = vsel %vm6442_vm6, %v21590_v46, %v21588_v36  ;;  %vm16852_vm6 = vmmov 0  }
 0x2f7   : > { %5973 = vmatprep.mubr.f32.mxu0 %v18994_v0 }
 0x2fa   : > { %13295 = vmatmul.mubr.msk.f32.gmra.mrb[8].mxu0 %vm408_vm1, %v18683_v58  ;;  %v21592_v58 = vld [vmem:[#allocation38_spill] sm:$0xff] }
 0x2fb   : > { %5979 = vmatprep.mubr.f32.mxu0 %v18994_v0 }
 0x2fe   : > { %13296 = vmatmul.mubr.msk.f32.gmra.mrb[10].mxu0 %vm408_vm1, %v18701_v17  ;;  %v21594_v17 = vld [vmem:[#allocation40_spill] sm:$0xff] }
 0x2ff   : > { %5985 = vmatprep.mubr.f32.mxu0 %v18994_v0 }
 0x302   : > { %13297 = vmatmul.mubr.msk.f32.gmra.mrb[12].mxu0 %vm408_vm1, %v18706_v16  ;;  %v7682_v16 = vlaneseq }
 0x303   : > { %5991 = vmatprep.mubr.f32.mxu0 %v18994_v0 }
 0x306   : > { %13298 = vmatmul.mubr.msk.f32.gmra.mrb[14].mxu0 %vm408_vm1, %v18720_v30  ;;  %v21595_v30 = vld [vmem:[#allocation41_spill] sm:$0xff] }
 0x307   : > { %6247 = vmatprep.mubr.f32.mxu0 %v18994_v0 }
 0x30a   : > { %13315 = vmatmul.mubr.msk.f32.vlgmr.msra.gmra.mrb[0].mxu0 %vm408_vm1, %v18725_v34  ;;  %v19301_v34 = vpop.permute.xlu1 %7600 }
 0x30b   : > { %6253 = vmatprep.mubr.f32.mxu0 %v18994_v0  ;;  %6474 = vmatpush1.msra.mxu0 %v6443_v12 }
 0x30c   : > { %6763 = vmatprep.subr.mxu0 %v6734_v52 }
 0x30e   : > { %13316 = vmatmul.mubr.msk.f32.gmra.mrb[2].mxu0 %vm408_vm1, %v18737_v7  ;;  %v19303_v7 = vshrl.u32 %v7682_v16, 7  ;;  %v19320_v20 = vpop.permute.xlu1 %7605 }
 0x30f   : > { %6259 = vmatprep.mubr.f32.mxu0 %v18994_v0 }
 0x310   : > { %v7692_v53 = vsub.s32 2, %v19303_v7 }
 0x312   : > { %13317 = vmatmul.mubr.msk.f32.gmra.mrb[4].mxu0 %vm408_vm1, %v21592_v58  ;;  %v19331_v59 = vrot.slane %v19315_v15, %v7692_v53  ;;  %v19339_v19 = vpop.permute.xlu1 %7615 }
 0x313   : > { %6265 = vmatprep.mubr.f32.mxu0 %v18994_v0 }
 0x316   : > { %13318 = vmatmul.mubr.msk.f32.gmra.mrb[6].mxu0 %vm408_vm1, %v18756_v23  ;;  %v19306_v23 = vpop.permute.xlu0 %7595  ;;  %v19356_v58 = vpop.permute.xlu1 %7625 }
 0x317   : > { %6271 = vmatprep.mubr.f32.mxu0 %v18994_v0 }
 0x31a   : > { %13319 = vmatmul.mubr.msk.f32.gmra.mrb[8].mxu0 %vm408_vm1, %v21593_v47  ;;  %v19322_v54 = vpop.permute.xlu0 %7610 }
 0x31b   : > { %6277 = vmatprep.mubr.f32.mxu0 %v18994_v0 }
 0x31e   : > { %13320 = vmatmul.mubr.msk.f32.gmra.mrb[10].mxu0 %vm408_vm1, %v21594_v17  ;;  %v19343_v10 = vpop.permute.xlu0 %7620 }
 0x31f   : > { %6283 = vmatprep.mubr.f32.mxu0 %v18994_v0 }
 0x322   : > { %13321 = vmatmul.mubr.msk.f32.gmra.mrb[12].mxu0 %vm408_vm1, %v21595_v30 }
 0x323   : > { %6289 = vmatprep.mubr.f32.mxu0 %v18994_v0 }
 0x326   : > { %13322 = vmatmul.mubr.msk.f32.gmra.mrb[14].mxu0 %vm408_vm1, %v21596_v45 }
 0x327   : > { %6537 = vmatprep.mubr.f32.mxu0 %v18994_v0 }
 0x329   : > { %v14277_v48 = vpop.f32.mrb[2].mxu1 }
 0x32a   : > { %v7638_v3 = vadd.f32 %v14277_v48, %v19301_v34  ;;  %13339 = vmatmul.mubr.msk.f32.vlgmr.msra.gmra.mrb[0].mxu0 %vm408_vm1, %v21599_v8  ;;  %v7522_v35 = vpop.f32.mrb[3].mxu1  ;;  %v21603_v48 = vld [vmem:[#allocation46_spill] sm:$0xff] }
 0x32b   : > { %v7635_v21 = vadd.f32 %v19306_v23, %v7522_v35  ;;  %6543 = vmatprep.mubr.f32.mxu0 %v18994_v0  ;;  %6764 = vmatpush1.msra.mxu0 %v6733_v63 }
 0x32c   : > { %v7662_v37 = vmax.f32 %v7638_v3, 0.0  ;;  %7053 = vmatprep.subr.mxu0 %v7024_v61  ;;  %v21604_v61 = vld [vmem:[#allocation48_spill] sm:$0xff] }
 0x32d   : > { %v7659_v56 = vmax.f32 %v7635_v21, 0.0  ;;  %v14280_v25 = vpop.f32.mrb[4].mxu1 }
 0x32e   : > { %v7644_v51 = vadd.f32 %v14280_v25, %v19322_v54  ;;  %13340 = vmatmul.mubr.msk.f32.gmra.mrb[2].mxu0 %vm408_vm1, %v21600_v33  ;;  %v7532_v9 = vpop.f32.mrb[5].mxu1  ;;  %v7702_v11 = vmul.f32 %v19331_v59, %v7662_v37 }
 0x32f   : > { %v7699_v32 = vmul.f32 %v19331_v59, %v7659_v56  ;;  %v7641_v6 = vadd.f32 %v19320_v20, %v7532_v9  ;;  %6549 = vmatprep.mubr.f32.mxu0 %v18994_v0 }
 0x330   : > { %v7668_v18 = vmax.f32 %v7644_v51, 0.0  ;;  %7755 = vrot.lane.b32.xlu0 %v7702_v11, %s16850_s26 }
 0x331   : > { %v7665_v29 = vmax.f32 %v7641_v6, 0.0  ;;  %7749 = vrot.lane.b32.xlu1 %v7699_v32, %s16850_s26  ;;  %v14283_v40 = vpop.f32.mrb[6].mxu1  ;;  %v7684_v32 = vsub.s32 0, %v19303_v7  ;;  %v7688_v6 = vsub.s32 1, %v19303_v7 }
 0x332   : > { %v7708_v36 = vmul.f32 %v19331_v59, %v7668_v18  ;;  %v7650_v2 = vadd.f32 %v14283_v40, %v19343_v10  ;;  %13341 = vmatmul.mubr.msk.f32.gmra.mrb[4].mxu0 %vm408_vm1, %v21601_v57  ;;  %v7542_v46 = vpop.f32.mrb[7].mxu1 }
 0x333   : > { %v7647_v12 = vadd.f32 %v19339_v19, %v7542_v46  ;;  %6555 = vmatprep.mubr.f32.mxu0 %v18994_v0  ;;  %v7705_v26 = vmul.f32 %v19331_v59, %v7665_v29  ;;  %v19503_v40 = vrot.slane %v19315_v15, %v7684_v32  ;;  %v19507_v57 = vrot.slane %v19315_v15, %v7688_v6 }
 0x334   : > { %v7674_v52 = vmax.f32 %v7650_v2, 0.0  ;;  %7767 = vrot.lane.b32.xlu0 %v7708_v36, %s16850_s26 }
 0x335   : > { %v7671_v47 = vmax.f32 %v7647_v12, 0.0  ;;  %v19358_v17 = vpop.f32.mrb[8].mxu1  ;;  %7761 = vrot.lane.b32.xlu1 %v7705_v26, %s16850_s26 }
 0x336   : > { %v7714_v16 = vmul.f32 %v19331_v59, %v7674_v52  ;;  %13342 = vmatmul.mubr.msk.f32.gmra.mrb[6].mxu0 %vm408_vm1, %v18828_v49  ;;  %v7552_v30 = vpop.f32.mrb[9].mxu1  ;;  %v21602_v49 = vld [vmem:[#allocation37_spill] sm:$0xff] }
 0x337   : > { %v7653_v45 = vadd.f32 %v19356_v58, %v7552_v30  ;;  %6561 = vmatprep.mubr.f32.mxu0 %v18994_v0  ;;  %v7711_v53 = vmul.f32 %v19331_v59, %v7671_v47 }
 0x338   : > { %7779 = vrot.lane.b32.xlu0 %v7714_v16, %s16850_s26 }
 0x339   : > { %v7677_v14 = vmax.f32 %v7653_v45, 0.0  ;;  %7773 = vrot.lane.b32.xlu1 %v7711_v53, %s16850_s26 }
 0x33a   : > { %13343 = vmatmul.mubr.msk.f32.gmra.mrb[8].mxu0 %vm408_vm1, %v18835_v13  ;;  %v7023_v13 = vsel %vm7022_vm11, %v21602_v49, %v21598_v50 }
 0x33b   : > { %6567 = vmatprep.mubr.f32.mxu0 %v18994_v0  ;;  %v7717_v63 = vmul.f32 %v19331_v59, %v7677_v14 }
 0x33d   : > { %7785 = vrot.lane.b32.xlu1 %v7717_v63, %s16850_s26 }
 0x33e   : > { %13344 = vmatmul.mubr.msk.f32.gmra.mrb[10].mxu0 %vm408_vm1, %v18859_v44  ;;  %v7314_v44 = vsel %vm7312_vm15, %v21603_v48, %v18780_v38  ;;  %v21605_v38 = vld [vmem:[#allocation47_spill] sm:$0xff] }
 0x33f   : > { %6573 = vmatprep.mubr.f32.mxu0 %v18994_v0 }
 0x342   : > { %13345 = vmatmul.mubr.msk.f32.gmra.mrb[12].mxu0 %vm408_vm1, %v18864_v1  ;;  %v7313_v1 = vsel %vm7312_vm15, %v21605_v38, %v21603_v48 }
 0x343   : > { %6579 = vmatprep.mubr.f32.mxu0 %v18994_v0 }
 0x346   : > { %13346 = vmatmul.mubr.msk.f32.gmra.mrb[14].mxu0 %vm408_vm1, %v18884_v4  ;;  %v21606_v4 = vld [vmem:[#allocation49_spill] sm:$0xff] }
 0x347   : > { %6827 = vmatprep.mubr.f32.mxu0 %v18994_v0 }
 0x34a   : > { %13363 = vmatmul.mubr.msk.f32.vlgmr.msra.gmra.mrb[0].mxu0 %vm408_vm1, %v21604_v61 }
 0x34b   : > { %6833 = vmatprep.mubr.f32.mxu0 %v18994_v0  ;;  %7054 = vmatpush1.msra.mxu0 %v7023_v13 }
 0x34c   : > { %7343 = vmatprep.subr.mxu0 %v7314_v44 }
 0x34e   : > { %13364 = vmatmul.mubr.msk.f32.gmra.mrb[2].mxu0 %vm408_vm1, %v18907_v28  ;;  %v21607_v28 = vld [vmem:[#allocation50_spill] sm:$0xff] }
 0x34f   : > { %6839 = vmatprep.mubr.f32.mxu0 %v18994_v0 }
 0x352   : > { %13365 = vmatmul.mubr.msk.f32.gmra.mrb[4].mxu0 %vm408_vm1, %v18912_v27  ;;  %v21608_v27 = vld [vmem:[#allocation51_spill] sm:$0xff] }
 0x353   : > { %6845 = vmatprep.mubr.f32.mxu0 %v18994_v0 }
 0x356   : > { %13366 = vmatmul.mubr.msk.f32.gmra.mrb[6].mxu0 %vm408_vm1, %v18932_v55  ;;  %v21609_v55 = vld [vmem:[#allocation53_spill] sm:$0xff] }
 0x357   : > { %6851 = vmatprep.mubr.f32.mxu0 %v18994_v0 }
 0x35a   : > { %13367 = vmatmul.mubr.msk.f32.gmra.mrb[8].mxu0 %vm408_vm1, %v18937_v42  ;;  %v21610_v42 = vld [vmem:[#allocation14_spill] sm:$0xff] }
 0x35b   : > { %6857 = vmatprep.mubr.f32.mxu0 %v18994_v0 }
 0x35e   : > { %13368 = vmatmul.mubr.msk.f32.gmra.mrb[10].mxu0 %vm408_vm1, %v18949_v62  ;;  %v21611_v62 = vld [vmem:[#allocation54_spill] sm:$0xff] }
 0x35f   : > { %6863 = vmatprep.mubr.f32.mxu0 %v18994_v0 }
 0x362   : > { %13369 = vmatmul.mubr.msk.f32.gmra.mrb[12].mxu0 %vm408_vm1, %v18954_v43  ;;  %v21612_v43 = vld [vmem:[#allocation55_spill] sm:$0xff] }
 0x363   : > { %6869 = vmatprep.mubr.f32.mxu0 %v18994_v0 }
 0x366   : > { %13370 = vmatmul.mubr.msk.f32.gmra.mrb[14].mxu0 %vm408_vm1, %v18966_v39  ;;  %v21613_v39 = vld [vmem:[#allocation56_spill] sm:$0xff] }
 0x367   : > { %7117 = vmatprep.mubr.f32.mxu0 %v18994_v0 }
 0x36a   : > { %13387 = vmatmul.mubr.msk.f32.vlgmr.msra.gmra.mrb[0].mxu0 %vm408_vm1, %v21606_v4 }
 0x36b   : > { %7123 = vmatprep.mubr.f32.mxu0 %v18994_v0  ;;  %7344 = vmatpush1.msra.mxu0 %v7313_v1 }
 0x36e   : > { %13388 = vmatmul.mubr.msk.f32.gmra.mrb[2].mxu0 %vm408_vm1, %v21607_v28 }
 0x36f   : > { %7129 = vmatprep.mubr.f32.mxu0 %v18994_v0 }
 0x372   : > { %13389 = vmatmul.mubr.msk.f32.gmra.mrb[4].mxu0 %vm408_vm1, %v21608_v27 }
 0x373   : > { %7135 = vmatprep.mubr.f32.mxu0 %v18994_v0 }
 0x376   : > { %13390 = vmatmul.mubr.msk.f32.gmra.mrb[6].mxu0 %vm408_vm1, %v19002_v60  ;;  %v19455_v60 = vpop.permute.xlu0 %7630 }
 0x377   : > { %7141 = vmatprep.mubr.f32.mxu0 %v18994_v0 }
 0x37a   : > { %13391 = vmatmul.mubr.msk.f32.gmra.mrb[8].mxu0 %vm408_vm1, %v19007_v22  ;;  %v21614_v22 = vld [vmem:[#allocation15_spill] sm:$0xff] }
 0x37b   : > { %7147 = vmatprep.mubr.f32.mxu0 %v18994_v0 }
 0x37e   : > { %13392 = vmatmul.mubr.msk.f32.gmra.mrb[10].mxu0 %vm408_vm1, %v19027_v5  ;;  %v21615_v5 = vld [vmem:[#allocation57_spill] sm:$0xff] }
 0x37f   : > { %7153 = vmatprep.mubr.f32.mxu0 %v18994_v0 }
 0x382   : > { %13393 = vmatmul.mubr.msk.f32.gmra.mrb[12].mxu0 %vm408_vm1, %v19034_v41 }
 0x383   : > { %7159 = vmatprep.mubr.f32.mxu0 %v18994_v0 }
 0x386   : > { %13394 = vmatmul.mubr.msk.f32.gmra.mrb[14].mxu0 %vm408_vm1, %v19046_v24 }
 0x387   : > { %7407 = vmatprep.mubr.f32.mxu0 %v18994_v0 }
 0x38a   : > { %13411 = vmatmul.mubr.msk.f32.vlgmr.msra.gmra.mrb[0].mxu0 %vm408_vm1, %v21609_v55 }
 0x38b   : > { %7413 = vmatprep.mubr.f32.mxu0 %v18994_v0 }
 0x38e   : > { %13412 = vmatmul.mubr.msk.f32.gmra.mrb[2].mxu0 %vm408_vm1, %v21610_v42 }
 0x38f   : > { %7419 = vmatprep.mubr.f32.mxu0 %v18994_v0 }
 0x392   : > { %13413 = vmatmul.mubr.msk.f32.gmra.mrb[4].mxu0 %vm408_vm1, %v21611_v62 }
 0x393   : > { %7425 = vmatprep.mubr.f32.mxu0 %v18994_v0 }
 0x396   : > { %13414 = vmatmul.mubr.msk.f32.gmra.mrb[6].mxu0 %vm408_vm1, %v21612_v43 }
 0x397   : > { %7431 = vmatprep.mubr.f32.mxu0 %v18994_v0 }
 0x39a   : > { %13415 = vmatmul.mubr.msk.f32.gmra.mrb[8].mxu0 %vm408_vm1, %v21613_v39 }
 0x39b   : > { %7437 = vmatprep.mubr.f32.mxu0 %v18994_v0 }
 0x39e   : > { %13416 = vmatmul.mubr.msk.f32.gmra.mrb[10].mxu0 %vm408_vm1, %v21614_v22 }
 0x39f   : > { %7443 = vmatprep.mubr.f32.mxu0 %v18994_v0 }
 0x3a2   : > { %13417 = vmatmul.mubr.msk.f32.gmra.mrb[12].mxu0 %vm408_vm1, %v21615_v5  ;;  %v19462_v41 = vpop.permute.xlu0 %7755 }
 0x3a3   : > { %7850 = vst.msk [vmem:[#allocation2 + $0x40] sm:$0xff] %vm7793_vm0, %v19462_v41  ;;  %v19466_v24 = vpop.permute.xlu1 %7749  ;;  %7449 = vmatprep.mubr.f32.mxu0 %v18994_v0 }
 0x3a4   : > { %7846 = vst.msk [vmem:[#allocation2 + $0x18] sm:$0xff] %vm7793_vm0, %v19466_v24 }
 0x3a6   : > { %13418 = vmatmul.mubr.msk.f32.gmra.mrb[14].mxu0 %vm408_vm1, %v19114_v31  ;;  %v19473_v50 = vpop.permute.xlu0 %7767 }
 0x3a7   : > { %7858 = vst.msk [vmem:[#allocation2 + $0x90] sm:$0xff] %vm7793_vm0, %v19473_v50  ;;  %v19477_v3 = vpop.permute.xlu1 %7761 }
 0x3a8   : > { %7854 = vst.msk [vmem:[#allocation2 + $0x68] sm:$0xff] %vm7793_vm0, %v19477_v3 }
 0x3aa   : > { %v19481_v8 = vpop.permute.xlu0 %7779  ;;  %v7886_v35 = vld [vmem:[#allocation2 + $0x40] sm:$0xff] }
 0x3ab   : > { %7866 = vst.msk [vmem:[#allocation2 + $0xe0] sm:$0xff] %vm7793_vm0, %v19481_v8  ;;  %v19485_v0 = vpop.permute.xlu1 %7773  ;;  %v7882_v21 = vld [vmem:[#allocation2 + $0x18] sm:$0xff] }
 0x3ac   : > { %7862 = vst.msk [vmem:[#allocation2 + $0xb8] sm:$0xff] %vm7793_vm0, %v19485_v0  ;;  %v19489_v31 = vpack.i.bf16 %v7886_v35, %v7882_v21 }
 0x3ae   : > { %v7894_v37 = vld [vmem:[#allocation2 + $0x90] sm:$0xff] }
 0x3af   : > { %v19491_v56 = vpop.permute.xlu1 %7785  ;;  %v7890_v25 = vld [vmem:[#allocation2 + $0x68] sm:$0xff] }
 0x3b0   : > { %7870 = vst.msk [vmem:[#allocation2 + $0x108] sm:$0xff] %vm7793_vm0, %v19491_v56  ;;  %v19495_v51 = vpack.i.bf16 %v7894_v37, %v7890_v25 }
 0x3b2   : > { %v7902_v33 = vld [vmem:[#allocation2 + $0xe0] sm:$0xff] }
 0x3b3   : > { %v7898_v9 = vld [vmem:[#allocation2 + $0xb8] sm:$0xff] }
 0x3b4   : > { %v19497_v11 = vpack.i.bf16 %v7902_v33, %v7898_v9 }
 0x45d   : > { %v7409_v18 = vpop.f32.mrb[0].mxu0 }
 0x45e   : > { %v7633_v29 = vadd.f32 %v19306_v23, %v7409_v18  ;;  %v7411_v36 = vpop.f32.mrb[1].mxu0 }
 0x45f   : > { %v7634_v2 = vadd.f32 %v19306_v23, %v7411_v36 }
 0x460   : > { %v7657_v46 = vmax.f32 %v7633_v29, 0.0 }
 0x461   : > { %v7658_v12 = vmax.f32 %v7634_v2, 0.0  ;;  %v7415_v26 = vpop.f32.mrb[2].mxu0 }
 0x462   : > { %v7697_v52 = vmul.f32 %v19503_v40, %v7657_v46  ;;  %v7636_v47 = vadd.f32 %v19301_v34, %v7415_v26  ;;  %v7417_v7 = vpop.f32.mrb[3].mxu0 }
 0x463   : > { %v7698_v16 = vmul.f32 %v19507_v57, %v7658_v12  ;;  %v7637_v30 = vadd.f32 %v19301_v34, %v7417_v7 }
 0x464   : > { %v7660_v45 = vmax.f32 %v7636_v47, 0.0  ;;  %7745 = vrot.lane.b32.xlu1 %v7697_v52, %s16850_s26  ;;  %v21616_v47 = vld [vmem:[#allocation4_spill] sm:$0xff] }
 0x465   : > { %v7661_v53 = vmax.f32 %v7637_v30, 0.0  ;;  %v7421_v23 = vpop.f32.mrb[4].mxu0  ;;  %7747 = vrot.lane.b32.xlu0 %v7698_v16, %s16850_s26 }
 0x466   : > { %v7700_v15 = vmul.f32 %v19503_v40, %v7660_v45  ;;  %v7639_v14 = vadd.f32 %v19320_v20, %v7421_v23  ;;  %v7423_v63 = vpop.f32.mrb[5].mxu0  ;;  %v21617_v45 = vld [vmem:[#allocation52_spill] sm:$0xff]  ;;  %v7656_v23 = vadd.f32 %v19358_v17, %v19455_v60 }
 0x467   : > { %v7701_v49 = vmul.f32 %v19507_v57, %v7661_v53  ;;  %v7640_v13 = vadd.f32 %v19320_v20, %v7423_v63 }
 0x468   : > { %v7663_v48 = vmax.f32 %v7639_v14, 0.0 }
 0x469   : > { %v7664_v44 = vmax.f32 %v7640_v13, 0.0  ;;  %v7427_v61 = vpop.f32.mrb[6].mxu0  ;;  %7751 = vrot.lane.b32.xlu0 %v7700_v15, %s16850_s26  ;;  %7753 = vrot.lane.b32.xlu1 %v7701_v49, %s16850_s26  ;;  %v7680_v49 = vmax.f32 %v7656_v23, 0.0 }
 0x46a   : > { %v7703_v34 = vmul.f32 %v19503_v40, %v7663_v48  ;;  %v7642_v38 = vadd.f32 %v19322_v54, %v7427_v61  ;;  %v7429_v1 = vpop.f32.mrb[7].mxu0 }
 0x46b   : > { %v7704_v4 = vmul.f32 %v19507_v57, %v7664_v44  ;;  %v7643_v28 = vadd.f32 %v19322_v54, %v7429_v1  ;;  %v7720_v17 = vmul.f32 %v19331_v59, %v7680_v49  ;;  %v7906_v49 = vld [vmem:[#allocation2 + $0x108] sm:$0xff] }
 0x46c   : > { %v7666_v27 = vmax.f32 %v7642_v38, 0.0 }
 0x46d   : > { %v7667_v55 = vmax.f32 %v7643_v28, 0.0  ;;  %v7433_v42 = vpop.f32.mrb[8].mxu0  ;;  %7759 = vrot.lane.b32.xlu0 %v7704_v4, %s16850_s26  ;;  %7757 = vrot.lane.b32.xlu1 %v7703_v34, %s16850_s26 }
 0x46e   : > { %v7706_v20 = vmul.f32 %v19503_v40, %v7666_v27  ;;  %v7645_v62 = vadd.f32 %v19339_v19, %v7433_v42  ;;  %v7435_v43 = vpop.f32.mrb[9].mxu0 }
 0x46f   : > { %v7707_v39 = vmul.f32 %v19507_v57, %v7667_v55  ;;  %v7646_v22 = vadd.f32 %v19339_v19, %v7435_v43 }
 0x470   : > { %v7669_v5 = vmax.f32 %v7645_v62, 0.0 }
 0x471   : > { %v7670_v35 = vmax.f32 %v7646_v22, 0.0  ;;  %v7439_v21 = vpop.f32.mrb[10].mxu0  ;;  %7763 = vrot.lane.b32.xlu0 %v7706_v20, %s16850_s26  ;;  %7765 = vrot.lane.b32.xlu1 %v7707_v39, %s16850_s26 }
 0x472   : > { %v7709_v54 = vmul.f32 %v19503_v40, %v7669_v5  ;;  %v7648_v37 = vadd.f32 %v19343_v10, %v7439_v21  ;;  %v7441_v25 = vpop.f32.mrb[11].mxu0 }
 0x473   : > { %v7710_v33 = vmul.f32 %v19507_v57, %v7670_v35  ;;  %v7649_v9 = vadd.f32 %v19343_v10, %v7441_v25 }
 0x474   : > { %v7672_v32 = vmax.f32 %v7648_v37, 0.0 }
 0x475   : > { %v7673_v6 = vmax.f32 %v7649_v9, 0.0  ;;  %v7445_v18 = vpop.f32.mrb[12].mxu0  ;;  %7771 = vrot.lane.b32.xlu0 %v7710_v33, %s16850_s26  ;;  %7769 = vrot.lane.b32.xlu1 %v7709_v54, %s16850_s26 }
 0x476   : > { %v7712_v19 = vmul.f32 %v19503_v40, %v7672_v32  ;;  %v7651_v29 = vadd.f32 %v19356_v58, %v7445_v18  ;;  %v7447_v36 = vpop.f32.mrb[13].mxu0 }
 0x477   : > { %v7713_v2 = vmul.f32 %v19507_v57, %v7673_v6  ;;  %v7652_v46 = vadd.f32 %v19356_v58, %v7447_v36 }
 0x478   : > { %v7675_v12 = vmax.f32 %v7651_v29, 0.0 }
 0x479   : > { %v7676_v26 = vmax.f32 %v7652_v46, 0.0  ;;  %v7451_v52 = vpop.f32.mrb[14].mxu0  ;;  %7775 = vrot.lane.b32.xlu0 %v7712_v19, %s16850_s26  ;;  %7777 = vrot.lane.b32.xlu1 %v7713_v2, %s16850_s26 }
 0x47a   : > { %v7715_v10 = vmul.f32 %v19503_v40, %v7675_v12  ;;  %v15000_v7 = vadd.f32 %v7451_v52, %v21616_v47  ;;  %v7453_v16 = vpop.f32.mrb[15].mxu0 }
 0x47b   : > { %v7716_v30 = vmul.f32 %v19507_v57, %v7676_v26  ;;  %v15001_v53 = vadd.f32 %v7453_v16, %v21617_v45 }
 0x47c   : > { %v7654_v58 = vadd.f32 %v15000_v7, %v19455_v60 }
 0x47d   : > { %v7655_v15 = vadd.f32 %v15001_v53, %v19455_v60  ;;  %7783 = vrot.lane.b32.xlu0 %v7716_v30, %s16850_s26  ;;  %7781 = vrot.lane.b32.xlu1 %v7715_v10, %s16850_s26 }
 0x47e   : > { %v7678_v14 = vmax.f32 %v7654_v58, 0.0 }
 0x47f   : > { %v7679_v63 = vmax.f32 %v7655_v15, 0.0 }
 0x480   : > { %v7718_v13 = vmul.f32 %v19503_v40, %v7678_v14  ;;  %v19637_v14 = vld [vmem:[#allocation3] sm:$0xff] }
 0x481   : > { %v7719_v48 = vmul.f32 %v19507_v57, %v7679_v63 }
 0x482   : > { %7787 = vrot.lane.b32.xlu0 %v7718_v13, %s16850_s26 }
 0x483   : > { %7789 = vrot.lane.b32.xlu1 %v7719_v48, %s16850_s26 }
 0x486   : > { %7791 = vrot.lane.b32.xlu0 %v7720_v17, %s16850_s26 }
 0x4d6   : > { %v7746_v60 = vpop.permute.xlu1 %7745 }
 0x4d7   : > { %7843 = vst.msk [vmem:[#allocation2] sm:$0xff] %vm7842_vm4, %v7746_v60  ;;  %v7748_v44 = vpop.permute.xlu0 %7747 }
 0x4d8   : > { %v7794_v61 = vsel %vm7793_vm0, %v7746_v60, %v7748_v44  ;;  %v7795_v34 = vsel %vm7793_vm0, %v7748_v44, %v19466_v24 }
 0x4d9   : > { %v19565_v38 = vpack.i.bf16 %v7795_v34, %v7794_v61 }
 0x4db   : > { %v7752_v1 = vpop.permute.xlu0 %7751  ;;  %v7754_v4 = vpop.permute.xlu1 %7753  ;;  %15731 = vrot.lane.b32.xlu1 %v19565_v38, %s16831_s19 }
 0x4dc   : > { %7847 = vst.msk [vmem:[#allocation2 + $0x28] sm:$0xff] %vm7842_vm4, %v7752_v1  ;;  %v7796_v28 = vsel %vm7793_vm0, %v7752_v1, %v7754_v4  ;;  %v7797_v27 = vsel %vm7793_vm0, %v7754_v4, %v19462_v41 }
 0x4dd   : > { %v19573_v55 = vpack.i.bf16 %v7797_v27, %v7796_v28 }
 0x4de   : > { %v7879_v5 = vld [vmem:[#allocation2] sm:$0xff] }
 0x4df   : > { %v7760_v42 = vpop.permute.xlu0 %7759  ;;  %v7758_v20 = vpop.permute.xlu1 %7757  ;;  %15741 = vrot.lane.b32.xlu0 %v19573_v55, %s16831_s19 }
 0x4e0   : > { %v7799_v24 = vsel %vm7793_vm0, %v7760_v42, %v19477_v3  ;;  %v7798_v62 = vsel %vm7793_vm0, %v7758_v20, %v7760_v42  ;;  %7851 = vst.msk [vmem:[#allocation2 + $0x50] sm:$0xff] %vm7842_vm4, %v7758_v20 }
 0x4e1   : > { %v19581_v43 = vpack.i.bf16 %v7799_v24, %v7798_v62 }
 0x4e3   : > { %v7764_v39 = vpop.permute.xlu0 %7763  ;;  %v7766_v22 = vpop.permute.xlu1 %7765  ;;  %v7883_v41 = vld [vmem:[#allocation2 + $0x28] sm:$0xff]  ;;  %15746 = vrot.lane.b32.xlu0 %v19581_v43, %s16831_s19 }
 0x4e4   : > { %7855 = vst.msk [vmem:[#allocation2 + $0x78] sm:$0xff] %vm7842_vm4, %v7764_v39  ;;  %v7800_v35 = vsel %vm7793_vm0, %v7764_v39, %v7766_v22  ;;  %v7801_v3 = vsel %vm7793_vm0, %v7766_v22, %v19473_v50  ;;  %v19589_v21 = vpack.i.bf16 %v7883_v41, %v7879_v5 }
 0x4e5   : > { %v19593_v54 = vpack.i.bf16 %v7801_v3, %v7800_v35 }
 0x4e6   : > { %15736 = vrot.lane.b32.xlu1 %v19589_v21, %s16831_s19 }
 0x4e7   : > { %v7772_v37 = vpop.permute.xlu0 %7771  ;;  %v7770_v25 = vpop.permute.xlu1 %7769  ;;  %v7887_v18 = vld [vmem:[#allocation2 + $0x50] sm:$0xff] }
 0x4e8   : > { %v7803_v33 = vsel %vm7793_vm0, %v7772_v37, %v19485_v0  ;;  %v7802_v9 = vsel %vm7793_vm0, %v7770_v25, %v7772_v37  ;;  %7859 = vst.msk [vmem:[#allocation2 + $0xa0] sm:$0xff] %vm7842_vm4, %v7770_v25 }
 0x4e9   : > { %v19599_v32 = vpack.i.bf16 %v7803_v33, %v7802_v9 }
 0x4ea   : > { %15756 = vrot.lane.b32.xlu1 %v19593_v54, %s16831_s19 }
 0x4eb   : > { %v7776_v50 = vpop.permute.xlu0 %7775  ;;  %v7778_v6 = vpop.permute.xlu1 %7777  ;;  %v7891_v19 = vld [vmem:[#allocation2 + $0x78] sm:$0xff] }
 0x4ec   : > { %7863 = vst.msk [vmem:[#allocation2 + $0xc8] sm:$0xff] %vm7842_vm4, %v7776_v50  ;;  %v7804_v29 = vsel %vm7793_vm0, %v7776_v50, %v7778_v6  ;;  %v7805_v0 = vsel %vm7793_vm0, %v7778_v6, %v19481_v8  ;;  %v19607_v36 = vpack.i.bf16 %v7891_v19, %v7887_v18 }
 0x4ed   : > { %v19613_v12 = vpack.i.bf16 %v7805_v0, %v7804_v29 }
 0x4ee   : > { %15751 = vrot.lane.b32.xlu0 %v19607_v36, %s16831_s19  ;;  %15761 = vrot.lane.b32.xlu1 %v19599_v32, %s16831_s19 }
 0x4ef   : > { %v7784_v2 = vpop.permute.xlu0 %7783  ;;  %v7782_v46 = vpop.permute.xlu1 %7781  ;;  %v7895_v10 = vld [vmem:[#allocation2 + $0xa0] sm:$0xff] }
 0x4f0   : > { %v7807_v26 = vsel %vm7793_vm0, %v7784_v2, %v19491_v56  ;;  %v7806_v52 = vsel %vm7793_vm0, %v7782_v46, %v7784_v2  ;;  %7867 = vst.msk [vmem:[#allocation2 + $0xf0] sm:$0xff] %vm7842_vm4, %v7782_v46 }
 0x4f1   : > { %v19619_v8 = vpack.i.bf16 %v7807_v26, %v7806_v52 }
 0x4f2   : > { %15771 = vrot.lane.b32.xlu0 %v19613_v12, %s16831_s19 }
 0x4f3   : > { %v7899_v47 = vld [vmem:[#allocation2 + $0xc8] sm:$0xff] }
 0x4f4   : > { %v7788_v7 = vpop.permute.xlu0 %7787  ;;  %v19623_v16 = vpack.i.bf16 %v7899_v47, %v7895_v10 }
 0x4f5   : > { %7871 = vst.msk [vmem:[#allocation2 + $0x118] sm:$0xff] %vm7842_vm4, %v7788_v7  ;;  %v7790_v30 = vpop.permute.xlu1 %7789 }
 0x4f6   : > { %v7808_v45 = vsel %vm7793_vm0, %v7788_v7, %v7790_v30  ;;  %15766 = vrot.lane.b32.xlu1 %v19623_v16, %s16831_s19  ;;  %15776 = vrot.lane.b32.xlu0 %v19619_v8, %s16831_s19 }
 0x4f7   : > { %v7903_v58 = vld [vmem:[#allocation2 + $0xf0] sm:$0xff] }
 0x4f8   : > { %v7792_v56 = vpop.permute.xlu0 %7791 }
 0x4f9   : > { %v7809_v53 = vsel %vm7793_vm0, %v7790_v30, %v7792_v56  ;;  %7874 = vst.msk [vmem:[#allocation2 + $0x130] sm:$0xff] %vm7793_vm0, %v7792_v56 }
 0x4fa   : > { %v19633_v23 = vpack.i.bf16 %v7809_v53, %v7808_v45 }
 0x4fc   : > { %v7907_v15 = vld [vmem:[#allocation2 + $0x118] sm:$0xff]  ;;  %15786 = vrot.lane.b32.xlu1 %v19633_v23, %s16831_s19 }
 0x4fd   : > { %v19639_v63 = vpack.i.bf16 %v7907_v15, %v7903_v58 }
 0x4ff   : > { %15781 = vrot.lane.b32.xlu0 %v19639_v63, %s16831_s19 }
 0x500   : > { %v7910_v13 = vld [vmem:[#allocation2 + $0x130] sm:$0xff]  ;;  %15791 = vrot.lane.b32.xlu1 %v19489_v31, %s16831_s19 }
 0x501   : > { %v19645_v48 = vpack.i.bf16 %v7910_v13, %v7906_v49 }
 0x503   : > { %15796 = vrot.lane.b32.xlu0 %v19495_v51, %s16831_s19 }
 0x504   : > { %15801 = vrot.lane.b32.xlu1 %v19497_v11, %s16831_s19 }
 0x507   : > { %15806 = vrot.lane.b32.xlu0 %v19645_v48, %s16831_s19 }
 0x508   : > { %15811 = vrot.lane.b32.xlu1 %v19565_v38, %s16830_s18 }
 0x50b   : > { %15816 = vrot.lane.b32.xlu0 %v19573_v55, %s16830_s18 }
 0x50c   : > { %15821 = vrot.lane.b32.xlu1 %v19589_v21, %s16830_s18 }
 0x50f   : > { %15826 = vrot.lane.b32.xlu0 %v19581_v43, %s16830_s18 }
 0x510   : > { %15831 = vrot.lane.b32.xlu1 %v19593_v54, %s16830_s18 }
 0x513   : > { %15836 = vrot.lane.b32.xlu0 %v19607_v36, %s16830_s18 }
 0x514   : > { %15841 = vrot.lane.b32.xlu1 %v19599_v32, %s16830_s18 }
 0x517   : > { %15846 = vrot.lane.b32.xlu0 %v19613_v12, %s16830_s18 }
 0x518   : > { %15851 = vrot.lane.b32.xlu1 %v19623_v16, %s16830_s18 }
 0x51b   : > { %15856 = vrot.lane.b32.xlu0 %v19619_v8, %s16830_s18 }
 0x51c   : > { %15866 = vrot.lane.b32.xlu1 %v19633_v23, %s16830_s18 }
 0x51f   : > { %15861 = vrot.lane.b32.xlu0 %v19639_v63, %s16830_s18 }
 0x520   : > { %15871 = vrot.lane.b32.xlu1 %v19489_v31, %s16830_s18 }
 0x523   : > { %15876 = vrot.lane.b32.xlu0 %v19495_v51, %s16830_s18 }
 0x524   : > { %15881 = vrot.lane.b32.xlu1 %v19497_v11, %s16830_s18 }
 0x527   : > { %15886 = vrot.lane.b32.xlu0 %v19645_v48, %s16830_s18 }
 0x528   : > { %15891 = vrot.lane.b32.xlu1 %v19565_v38, %s16832_s20 }
 0x52b   : > { %15896 = vrot.lane.b32.xlu0 %v19573_v55, %s16832_s20 }
 0x52c   : > { %15901 = vrot.lane.b32.xlu1 %v19589_v21, %s16832_s20 }
 0x52f   : > { %15906 = vrot.lane.b32.xlu0 %v19581_v43, %s16832_s20 }
 0x530   : > { %15911 = vrot.lane.b32.xlu1 %v19593_v54, %s16832_s20 }
 0x533   : > { %15916 = vrot.lane.b32.xlu0 %v19607_v36, %s16832_s20 }
 0x534   : > { %15921 = vrot.lane.b32.xlu1 %v19599_v32, %s16832_s20 }
 0x537   : > { %15926 = vrot.lane.b32.xlu0 %v19613_v12, %s16832_s20 }
 0x538   : > { %15931 = vrot.lane.b32.xlu1 %v19623_v16, %s16832_s20 }
 0x53b   : > { %15936 = vrot.lane.b32.xlu0 %v19619_v8, %s16832_s20 }
 0x53c   : > { %15946 = vrot.lane.b32.xlu1 %v19633_v23, %s16832_s20 }
 0x53f   : > { %15941 = vrot.lane.b32.xlu0 %v19639_v63, %s16832_s20 }
 0x540   : > { %15951 = vrot.lane.b32.xlu1 %v19489_v31, %s16832_s20 }
 0x543   : > { %15956 = vrot.lane.b32.xlu0 %v19495_v51, %s16832_s20 }
 0x544   : > { %15961 = vrot.lane.b32.xlu1 %v19497_v11, %s16832_s20 }
 0x547   : > { %15966 = vrot.lane.b32.xlu0 %v19645_v48, %s16832_s20 }
 0x548   : > { %15971 = vrot.lane.b32.xlu1 %v19565_v38, %s16835_s23 }
 0x54b   : > { %15976 = vrot.lane.b32.xlu0 %v19573_v55, %s16835_s23 }
 0x54c   : > { %15981 = vrot.lane.b32.xlu1 %v19589_v21, %s16835_s23 }
 0x54d   : > { %v19723_v17 = vpop.permute.xlu1 %15731 }
 0x54e   : > { %v15734_v60 = vunpack.i.h.bf16 %v19723_v17  ;;  %v15733_v44 = vunpack.i.l.bf16 %v19723_v17  ;;  %v19832_v17 = vld [vmem:[%s21452_s4 + $0x20] sm:$0xff] }
 0x54f   : > { %15986 = vrot.lane.b32.xlu0 %v19581_v43, %s16835_s23 }
 0x550   : > { %15991 = vrot.lane.b32.xlu1 %v19593_v54, %s16835_s23  ;;  %v8013_v4 = vsel %vm2375_vm8, %v15733_v44, %v15734_v60 }
 0x551   : > { %v19731_v61 = vpop.permute.xlu0 %15741 }
 0x552   : > { %v15744_v34 = vunpack.i.h.bf16 %v19731_v61  ;;  %v15743_v1 = vunpack.i.l.bf16 %v19731_v61 }
 0x553   : > { %15996 = vrot.lane.b32.xlu0 %v19607_v36, %s16835_s23 }
 0x554   : > { %16001 = vrot.lane.b32.xlu1 %v19599_v32, %s16835_s23  ;;  %v8016_v28 = vsel %vm2375_vm8, %v15743_v1, %v15744_v34 }
 0x555   : > { %v14584_v27 = vpack.c.bf16 %v8016_v28, %v8013_v4  ;;  %v19747_v20 = vpop.permute.xlu0 %15746 }
 0x556   : > { %v15749_v5 = vunpack.i.h.bf16 %v19747_v20  ;;  %v15748_v41 = vunpack.i.l.bf16 %v19747_v20  ;;  %v19851_v20 = vld [vmem:[%s21452_s4 + $0x28] sm:$0xff] }
 0x557   : > { %16006 = vrot.lane.b32.xlu0 %v19613_v12, %s16835_s23  ;;  %14585 = vmatprep.subr.bf16.mxu1 %v14584_v27 }
 0x558   : > { %v15737_v42 = vpop.permute.xlu1 %15736  ;;  %16011 = vrot.lane.b32.xlu1 %v19623_v16, %s16835_s23  ;;  %v8019_v33 = vsel %vm2375_vm8, %v15748_v41, %v15749_v5 }
 0x559   : > { %v15739_v24 = vunpack.i.h.bf16 %v15737_v42  ;;  %v15738_v62 = vunpack.i.l.bf16 %v15737_v42 }
 0x55b   : > { %v8015_v39 = vsel %vm2375_vm8, %v15739_v24, %v15743_v1  ;;  %v8012_v22 = vsel %vm2375_vm8, %v15738_v62, %v15733_v44  ;;  %16016 = vrot.lane.b32.xlu0 %v19619_v8, %s16835_s23 }
 0x55c   : > { %v14586_v35 = vpack.c.bf16 %v8015_v39, %v8012_v22  ;;  %v19757_v3 = vpop.permute.xlu1 %15756  ;;  %16026 = vrot.lane.b32.xlu1 %v19633_v23, %s16835_s23 }
 0x55d   : > { %v15759_v37 = vunpack.i.h.bf16 %v19757_v3  ;;  %v15758_v25 = vunpack.i.l.bf16 %v19757_v3 }
 0x55e   : > { %14587 = vmatpush1.bf16.msra.mxu1 %v14586_v35 }
 0x55f   : > { %16021 = vrot.lane.b32.xlu0 %v19639_v63, %s16835_s23  ;;  %v8022_v9 = vsel %vm2375_vm8, %v15758_v25, %v15759_v37 }
 0x560   : > { %v15752_v50 = vpop.permute.xlu0 %15751  ;;  %v19771_v6 = vpop.permute.xlu1 %15761  ;;  %v14588_v18 = vpack.c.bf16 %v8022_v9, %v8019_v33  ;;  %16031 = vrot.lane.b32.xlu1 %v19489_v31, %s16835_s23 }
 0x561   : > { %v15754_v19 = vunpack.i.h.bf16 %v15752_v50  ;;  %v15753_v29 = vunpack.i.l.bf16 %v15752_v50  ;;  %v15764_v46 = vunpack.i.h.bf16 %v19771_v6  ;;  %v15763_v26 = vunpack.i.l.bf16 %v19771_v6 }
 0x562   : > { %14589 = vmatprep.subr.bf16.mxu1 %v14588_v18 }
 0x563   : > { %v8018_v0 = vsel %vm2375_vm8, %v15753_v29, %v15748_v41  ;;  %v8021_v2 = vsel %vm2375_vm8, %v15754_v19, %v15758_v25  ;;  %16036 = vrot.lane.b32.xlu0 %v19495_v51, %s16835_s23  ;;  %v8025_v30 = vsel %vm2375_vm8, %v15763_v26, %v15764_v46 }
 0x564   : > { %v14590_v52 = vpack.c.bf16 %v8021_v2, %v8018_v0  ;;  %v19781_v10 = vpop.permute.xlu0 %15771  ;;  %16041 = vrot.lane.b32.xlu1 %v19497_v11, %s16835_s23 }
 0x565   : > { %v15774_v47 = vunpack.i.h.bf16 %v19781_v10  ;;  %v15773_v7 = vunpack.i.l.bf16 %v19781_v10  ;;  %v19873_v10 = vld [vmem:[%s21452_s4 + $0x30] sm:$0xff] }
 0x566   : > { %14591 = vmatpush1.bf16.msra.mxu1 %v14590_v52 }
 0x567   : > { %16046 = vrot.lane.b32.xlu0 %v19645_v48, %s16835_s23  ;;  %v8028_v45 = vsel %vm2375_vm8, %v15773_v7, %v15774_v47 }
 0x568   : > { %v15767_v56 = vpop.permute.xlu1 %15766  ;;  %v14592_v53 = vpack.c.bf16 %v8028_v45, %v8025_v30  ;;  %16051 = vrot.lane.b32.xlu1 %v19565_v38, %s16836_s24  ;;  %v19797_v49 = vpop.permute.xlu0 %15776 }
 0x569   : > { %v15769_v58 = vunpack.i.h.bf16 %v15767_v56  ;;  %v15768_v15 = vunpack.i.l.bf16 %v15767_v56  ;;  %v15779_v4 = vunpack.i.h.bf16 %v19797_v49  ;;  %v15778_v28 = vunpack.i.l.bf16 %v19797_v49 }
 0x56a   : > { %14593 = vmatprep.subr.bf16.mxu1 %v14592_v53 }
 0x56b   : > { %v8027_v13 = vsel %vm2375_vm8, %v15769_v58, %v15773_v7  ;;  %v8024_v44 = vsel %vm2375_vm8, %v15768_v15, %v15763_v26  ;;  %16056 = vrot.lane.b32.xlu0 %v19573_v55, %s16836_s24  ;;  %v8031_v39 = vsel %vm2375_vm8, %v15778_v28, %v15779_v4 }
 0x56c   : > { %v14594_v1 = vpack.c.bf16 %v8027_v13, %v8024_v44  ;;  %16061 = vrot.lane.b32.xlu1 %v19589_v21, %s16836_s24 }
 0x56e   : > { %14595 = vmatpush1.bf16.msra.mxu1 %v14594_v1  ;;  %v15787_v27 = vpop.permute.xlu1 %15786 }
 0x56f   : > { %16066 = vrot.lane.b32.xlu0 %v19581_v43, %s16836_s24  ;;  %v15789_v42 = vunpack.i.h.bf16 %v15787_v27  ;;  %v15788_v24 = vunpack.i.l.bf16 %v15787_v27 }
 0x570   : > { %16071 = vrot.lane.b32.xlu1 %v19593_v54, %s16836_s24 }
 0x571   : > { %v15782_v62 = vpop.permute.xlu0 %15781  ;;  %v8034_v22 = vsel %vm2375_vm8, %v15788_v24, %v15789_v42 }
 0x572   : > { %v15784_v41 = vunpack.i.h.bf16 %v15782_v62  ;;  %v15783_v35 = vunpack.i.l.bf16 %v15782_v62  ;;  %v15792_v25 = vpop.permute.xlu1 %15791  ;;  %v14596_v33 = vpack.c.bf16 %v8034_v22, %v8031_v39 }
 0x573   : > { %16076 = vrot.lane.b32.xlu0 %v19607_v36, %s16836_s24  ;;  %v15794_v9 = vunpack.i.h.bf16 %v15792_v25  ;;  %v15793_v50 = vunpack.i.l.bf16 %v15792_v25 }
 0x574   : > { %v8030_v18 = vsel %vm2375_vm8, %v15783_v35, %v15778_v28  ;;  %v8033_v19 = vsel %vm2375_vm8, %v15784_v41, %v15788_v24  ;;  %16081 = vrot.lane.b32.xlu1 %v19599_v32, %s16836_s24  ;;  %14597 = vmatprep.subr.bf16.mxu1 %v14596_v33 }
 0x575   : > { %v15797_v29 = vpop.permute.xlu0 %15796  ;;  %v14598_v0 = vpack.c.bf16 %v8033_v19, %v8030_v18  ;;  %v8014_v2 = vsel %vm2375_vm8, %v15734_v60, %v15793_v50  ;;  %v8017_v26 = vsel %vm2375_vm8, %v15744_v34, %v15794_v9  ;;  %v13430_v50 = vld [vmem:[%s21452_s4 + $0x38] sm:$0xff] }
 0x576   : > { %v15799_v52 = vunpack.i.h.bf16 %v15797_v29  ;;  %v15798_v7 = vunpack.i.l.bf16 %v15797_v29  ;;  %v15802_v30 = vpop.permute.xlu1 %15801  ;;  %v14600_v45 = vpack.c.bf16 %v8017_v26, %v8014_v2 }
 0x577   : > { %16086 = vrot.lane.b32.xlu0 %v19613_v12, %s16836_s24  ;;  %14599 = vmatpush1.bf16.msra.mxu1 %v14598_v0  ;;  %v15804_v56 = vunpack.i.h.bf16 %v15802_v30  ;;  %v15803_v53 = vunpack.i.l.bf16 %v15802_v30 }
 0x578   : > { %16091 = vrot.lane.b32.xlu1 %v19623_v16, %s16836_s24  ;;  %14601 = vmatprep.subr.bf16.mxu1 %v14600_v45  ;;  %v8020_v60 = vsel %vm2375_vm8, %v15749_v5, %v15798_v7  ;;  %v8023_v61 = vsel %vm2375_vm8, %v15759_v37, %v15799_v52 }
 0x579   : > { %v15807_v34 = vpop.permute.xlu0 %15806  ;;  %v14604_v58 = vpack.c.bf16 %v8023_v61, %v8020_v60  ;;  %v8026_v5 = vsel %vm2375_vm8, %v15764_v46, %v15803_v53  ;;  %v8029_v3 = vsel %vm2375_vm8, %v15774_v47, %v15804_v56 }
 0x57a   : > { %13431 = vmatmul.mubr.msk.f32.vlgmr.msra.gmra.mrb[10].mxu1 %vm310_vm5, %v19832_v17  ;;  %v19844_v15 = vpop.permute.xlu1 %15811  ;;  %v15809_v13 = vunpack.i.h.bf16 %v15807_v34  ;;  %v15808_v44 = vunpack.i.l.bf16 %v15807_v34  ;;  %v14608_v46 = vpack.c.bf16 %v8029_v3, %v8026_v5 }
 0x57b   : > { %16096 = vrot.lane.b32.xlu0 %v19619_v8, %s16836_s24  ;;  %14603 = vmatpush3.bf16.msra.mxu1 %v14600_v45  ;;  %v15814_v24 = vunpack.i.h.bf16 %v19844_v15  ;;  %v15813_v62 = vunpack.i.l.bf16 %v19844_v15  ;;  %v19986_v15 = vld [vmem:[%s21452_s4] sm:$0xff] }
 0x57c   : > { %14605 = vmatprep.subr.bf16.mxu1 %v14604_v58  ;;  %16106 = vrot.lane.b32.xlu1 %v19633_v23, %s16836_s24  ;;  %v8032_v47 = vsel %vm2375_vm8, %v15779_v4, %v15808_v44  ;;  %v8035_v27 = vsel %vm2375_vm8, %v15789_v42, %v15809_v13 }
 0x57d   : > { %v19861_v37 = vpop.permute.xlu0 %15816  ;;  %8142 = vmatprep.mubr.f32.mxu1 %v19637_v14  ;;  %v14612_v35 = vpack.c.bf16 %v8035_v27, %v8032_v47  ;;  %v8311_v18 = vsel %vm2085_vm7, %v15813_v62, %v15814_v24 }
 0x57e   : > { %v15819_v1 = vunpack.i.h.bf16 %v19861_v37  ;;  %v15818_v28 = vunpack.i.l.bf16 %v19861_v37  ;;  %13432 = vmatmul.mubr.msk.f32.gmra.mrb[12].mxu1 %vm310_vm5, %v19851_v20  ;;  %v15822_v6 = vpop.permute.xlu1 %15821 }
 0x57f   : > { %16101 = vrot.lane.b32.xlu0 %v19639_v63, %s16836_s24  ;;  %14607 = vmatpush3.bf16.msra.mxu1 %v14604_v58  ;;  %v15824_v22 = vunpack.i.h.bf16 %v15822_v6  ;;  %v15823_v41 = vunpack.i.l.bf16 %v15822_v6 }
 0x580   : > { %14609 = vmatprep.subr.bf16.mxu1 %v14608_v46  ;;  %16111 = vrot.lane.b32.xlu1 %v19489_v31, %s16836_s24  ;;  %v8314_v25 = vsel %vm2085_vm7, %v15818_v28, %v15819_v1 }
 0x581   : > { %v19883_v39 = vpop.permute.xlu0 %15826  ;;  %8148 = vmatprep.mubr.f32.mxu1 %v19637_v14  ;;  %v8313_v29 = vsel %vm2085_vm7, %v15824_v22, %v15818_v28  ;;  %v8310_v0 = vsel %vm2085_vm7, %v15823_v41, %v15813_v62  ;;  %v14616_v2 = vpack.c.bf16 %v8314_v25, %v8311_v18 }
 0x582   : > { %v15829_v49 = vunpack.i.h.bf16 %v19883_v39  ;;  %v15828_v4 = vunpack.i.l.bf16 %v19883_v39  ;;  %13433 = vmatmul.mubr.msk.f32.gmra.mrb[14].mxu1 %vm310_vm5, %v19873_v10  ;;  %v19890_v42 = vpop.permute.xlu1 %15831  ;;  %v14618_v61 = vpack.c.bf16 %v8313_v29, %v8310_v0  ;;  %v20005_v39 = vld [vmem:[%s21452_s4 + $0x8] sm:$0xff] }
 0x583   : > { %16116 = vrot.lane.b32.xlu0 %v19495_v51, %s16836_s24  ;;  %14611 = vmatpush3.bf16.msra.mxu1 %v14608_v46  ;;  %v15834_v33 = vunpack.i.h.bf16 %v19890_v42  ;;  %v15833_v9 = vunpack.i.l.bf16 %v19890_v42 }
 0x584   : > { %14613 = vmatprep.subr.bf16.mxu1 %v14612_v35  ;;  %16121 = vrot.lane.b32.xlu1 %v19497_v11, %s16836_s24  ;;  %v8317_v30 = vsel %vm2085_vm7, %v15828_v4, %v15829_v49 }
 0x585   : > { %v15837_v19 = vpop.permute.xlu0 %15836  ;;  %8154 = vmatprep.mubr.f32.mxu1 %v19637_v14  ;;  %v8320_v45 = vsel %vm2085_vm7, %v15833_v9, %v15834_v33 }
 0x586   : > { %v15839_v26 = vunpack.i.h.bf16 %v15837_v19  ;;  %v15838_v52 = vunpack.i.l.bf16 %v15837_v19  ;;  %13434 = vmatmul.mubr.msk.f32.gmra.mrb[16].mxu1 %vm310_vm5, %v13430_v50  ;;  %v19911_v7 = vpop.permute.xlu1 %15841  ;;  %v14620_v34 = vpack.c.bf16 %v8320_v45, %v8317_v30 }
 0x587   : > { %16126 = vrot.lane.b32.xlu0 %v19645_v48, %s16836_s24  ;;  %14615 = vmatpush3.bf16.msra.mxu1 %v14612_v35  ;;  %v15844_v56 = vunpack.i.h.bf16 %v19911_v7  ;;  %v15843_v53 = vunpack.i.l.bf16 %v19911_v7 }
 0x588   : > { %14617 = vmatprep.subr.bf16.mxu1 %v14616_v2  ;;  %16131 = vrot.lane.b32.xlu1 %v19565_v38, %s16837_s25  ;;  %v8316_v58 = vsel %vm2085_vm7, %v15838_v52, %v15828_v4  ;;  %v8319_v5 = vsel %vm2085_vm7, %v15839_v26, %v15833_v9 }
 0x589   : > { %v19925_v60 = vpop.permute.xlu0 %15846  ;;  %14303 = vmatprep.mubr.msk.f32.mxu1 %vm310_vm5, %v19832_v17  ;;  %v8323_v6 = vsel %vm2085_vm7, %v15843_v53, %v15844_v56  ;;  %v14622_v47 = vpack.c.bf16 %v8319_v5, %v8316_v58 }
 0x58a   : > { %v15849_v13 = vunpack.i.h.bf16 %v19925_v60  ;;  %v15848_v44 = vunpack.i.l.bf16 %v19925_v60  ;;  %14304 = vmatmul.mubr.msk.f32.vlgmr.msra.gmra.mrb[18].mxu1 %vm310_vm5, %v19851_v20  ;;  %v15852_v3 = vpop.permute.xlu1 %15851  ;;  %v20027_v60 = vld [vmem:[%s21452_s4 + $0x10] sm:$0xff] }
 0x58b   : > { %16136 = vrot.lane.b32.xlu0 %v19573_v55, %s16837_s25  ;;  %14619 = vmatpush1.bf16.msra.mxu1 %v14618_v61  ;;  %v15854_v28 = vunpack.i.h.bf16 %v15852_v3  ;;  %v15853_v17 = vunpack.i.l.bf16 %v15852_v3 }
 0x58c   : > { %14621 = vmatprep.subr.bf16.mxu1 %v14620_v34  ;;  %16141 = vrot.lane.b32.xlu1 %v19589_v21, %s16837_s25  ;;  %v8326_v46 = vsel %vm2085_vm7, %v15848_v44, %v15849_v13 }
 0x58d   : > { %v19945_v20 = vpop.permute.xlu0 %15856  ;;  %v14624_v27 = vpack.c.bf16 %v8326_v46, %v8323_v6  ;;  %14306 = vmatprep.mubr.msk.f32.mxu1 %vm310_vm5, %v19873_v10  ;;  %v8325_v41 = vsel %vm2085_vm7, %v15854_v28, %v15848_v44  ;;  %v8322_v4 = vsel %vm2085_vm7, %v15853_v17, %v15843_v53 }
 0x58e   : > { %v15859_v62 = vunpack.i.h.bf16 %v19945_v20  ;;  %v15858_v22 = vunpack.i.l.bf16 %v19945_v20  ;;  %v19953_v35 = vpop.permute.xlu1 %15866  ;;  %14307 = vmatmul.mubr.msk.f32.gmra.mrb[20].mxu1 %vm310_vm5, %v13430_v50  ;;  %v14626_v19 = vpack.c.bf16 %v8325_v41, %v8322_v4 }
 0x58f   : > { %16146 = vrot.lane.b32.xlu0 %v19581_v43, %s16837_s25  ;;  %14623 = vmatpush1.bf16.msra.mxu1 %v14622_v47  ;;  %v15869_v25 = vunpack.i.h.bf16 %v19953_v35  ;;  %v15868_v10 = vunpack.i.l.bf16 %v19953_v35 }
 0x590   : > { %14625 = vmatprep.subr.bf16.mxu1 %v14624_v27  ;;  %16151 = vrot.lane.b32.xlu1 %v19593_v54, %s16837_s25  ;;  %v8329_v9 = vsel %vm2085_vm7, %v15858_v22, %v15859_v62 }
 0x591   : > { %v15862_v18 = vpop.permute.xlu0 %15861  ;;  %v8332_v50 = vsel %vm2085_vm7, %v15868_v10, %v15869_v25  ;;  %8434 = vmatprep.mubr.f32.mxu1 %v19637_v14 }
 0x592   : > { %v15864_v29 = vunpack.i.h.bf16 %v15862_v18  ;;  %v15863_v0 = vunpack.i.l.bf16 %v15862_v18  ;;  %v15872_v2 = vpop.permute.xlu1 %15871  ;;  %v14628_v26 = vpack.c.bf16 %v8332_v50, %v8329_v9 }
 0x593   : > { %16156 = vrot.lane.b32.xlu0 %v19607_v36, %s16837_s25  ;;  %14627 = vmatpush1.bf16.msra.mxu1 %v14626_v19  ;;  %v15874_v52 = vunpack.i.h.bf16 %v15872_v2  ;;  %v15873_v30 = vunpack.i.l.bf16 %v15872_v2 }
 0x594   : > { %v8328_v45 = vsel %vm2085_vm7, %v15863_v0, %v15858_v22  ;;  %v8331_v53 = vsel %vm2085_vm7, %v15864_v29, %v15868_v10  ;;  %16161 = vrot.lane.b32.xlu1 %v19599_v32, %s16837_s25  ;;  %14629 = vmatprep.subr.bf16.mxu1 %v14628_v26 }
 0x595   : > { %v15877_v61 = vpop.permute.xlu0 %15876  ;;  %v14630_v34 = vpack.c.bf16 %v8331_v53, %v8328_v45  ;;  %v8312_v58 = vsel %vm2085_vm7, %v15814_v24, %v15873_v30  ;;  %v8315_v44 = vsel %vm2085_vm7, %v15819_v1, %v15874_v52  ;;  %v7878_v30 = vld [vmem:[%s21452_s4 + $0x18] sm:$0xff] }
 0x596   : > { %v15879_v5 = vunpack.i.h.bf16 %v15877_v61  ;;  %v15878_v3 = vunpack.i.l.bf16 %v15877_v61  ;;  %v15882_v28 = vpop.permute.xlu1 %15881  ;;  %v14632_v17 = vpack.c.bf16 %v8315_v44, %v8312_v58 }
 0x597   : > { %16166 = vrot.lane.b32.xlu0 %v19613_v12, %s16837_s25  ;;  %14631 = vmatpush1.bf16.msra.mxu1 %v14630_v34  ;;  %v15884_v6 = vunpack.i.h.bf16 %v15882_v28  ;;  %v15883_v46 = vunpack.i.l.bf16 %v15882_v28 }
 0x598   : > { %16171 = vrot.lane.b32.xlu1 %v19623_v16, %s16837_s25  ;;  %14633 = vmatprep.subr.bf16.mxu1 %v14632_v17  ;;  %v8318_v37 = vsel %vm2085_vm7, %v15829_v49, %v15878_v3  ;;  %v8321_v1 = vsel %vm2085_vm7, %v15834_v33, %v15879_v5 }
 0x599   : > { %v15887_v24 = vpop.permute.xlu0 %15886  ;;  %v14636_v47 = vpack.c.bf16 %v8321_v1, %v8318_v37  ;;  %v8324_v49 = vsel %vm2085_vm7, %v15844_v56, %v15883_v46  ;;  %v8327_v42 = vsel %vm2085_vm7, %v15849_v13, %v15884_v6 }
 0x59a   : > { %13439 = vmatmul.mubr.msk.f32.vlgmr.msra.gmra.mrb[10].mxu1 %vm310_vm5, %v19986_v15  ;;  %v19998_v27 = vpop.permute.xlu1 %15891  ;;  %v15889_v22 = vunpack.i.h.bf16 %v15887_v24  ;;  %v15888_v41 = vunpack.i.l.bf16 %v15887_v24  ;;  %v14640_v56 = vpack.c.bf16 %v8327_v42, %v8324_v49 }
 0x59b   : > { %16176 = vrot.lane.b32.xlu0 %v19619_v8, %s16837_s25  ;;  %14635 = vmatpush3.bf16.msra.mxu1 %v14632_v17  ;;  %v15894_v18 = vunpack.i.h.bf16 %v19998_v27  ;;  %v15893_v19 = vunpack.i.l.bf16 %v19998_v27  ;;  %v20142_v27 = vld [vmem:[%s21452_s4 + $0x40] sm:$0xff] }
 0x59c   : > { %14637 = vmatprep.subr.bf16.mxu1 %v14636_v47  ;;  %16186 = vrot.lane.b32.xlu1 %v19633_v23, %s16837_s25  ;;  %v8330_v13 = vsel %vm2085_vm7, %v15859_v62, %v15888_v41  ;;  %v8333_v9 = vsel %vm2085_vm7, %v15869_v25, %v15889_v22 }
 0x59d   : > { %v20015_v33 = vpop.permute.xlu0 %15896  ;;  %8440 = vmatprep.mubr.f32.mxu1 %v19637_v14  ;;  %v14644_v25 = vpack.c.bf16 %v8333_v9, %v8330_v13  ;;  %v8614_v45 = vsel %vm2665_vm9, %v15893_v19, %v15894_v18 }
 0x59e   : > { %v15899_v4 = vunpack.i.h.bf16 %v20015_v33  ;;  %v15898_v10 = vunpack.i.l.bf16 %v20015_v33  ;;  %13440 = vmatmul.mubr.msk.f32.gmra.mrb[12].mxu1 %vm310_vm5, %v20005_v39  ;;  %v15902_v7 = vpop.permute.xlu1 %15901 }
 0x59f   : > { %16181 = vrot.lane.b32.xlu0 %v19639_v63, %s16837_s25  ;;  %14639 = vmatpush3.bf16.msra.mxu1 %v14636_v47  ;;  %v15904_v29 = vunpack.i.h.bf16 %v15902_v7  ;;  %v15903_v0 = vunpack.i.l.bf16 %v15902_v7 }
 0x5a0   : > { %14641 = vmatprep.subr.bf16.mxu1 %v14640_v56  ;;  %16191 = vrot.lane.b32.xlu1 %v19489_v31, %s16837_s25  ;;  %v8617_v2 = vsel %vm2665_vm9, %v15898_v10, %v15899_v4 }
 0x5a1   : > { %v20039_v50 = vpop.permute.xlu0 %15906  ;;  %8446 = vmatprep.mubr.f32.mxu1 %v19637_v14  ;;  %v8616_v61 = vsel %vm2665_vm9, %v15904_v29, %v15898_v10  ;;  %v8613_v34 = vsel %vm2665_vm9, %v15903_v0, %v15893_v19  ;;  %v14648_v58 = vpack.c.bf16 %v8617_v2, %v8614_v45 }
 0x5a2   : > { %v15909_v20 = vunpack.i.h.bf16 %v20039_v50  ;;  %v15908_v62 = vunpack.i.l.bf16 %v20039_v50  ;;  %13441 = vmatmul.mubr.msk.f32.gmra.mrb[14].mxu1 %vm310_vm5, %v20027_v60  ;;  %v20046_v35 = vpop.permute.xlu1 %15911  ;;  %v14650_v1 = vpack.c.bf16 %v8616_v61, %v8613_v34  ;;  %v20161_v50 = vld [vmem:[%s21452_s4 + $0x48] sm:$0xff] }
 0x5a3   : > { %16196 = vrot.lane.b32.xlu0 %v19495_v51, %s16837_s25  ;;  %14643 = vmatpush3.bf16.msra.mxu1 %v14640_v56  ;;  %v15914_v26 = vunpack.i.h.bf16 %v20046_v35  ;;  %v15913_v52 = vunpack.i.l.bf16 %v20046_v35 }
 0x5a4   : > { %14645 = vmatprep.subr.bf16.mxu1 %v14644_v25  ;;  %16201 = vrot.lane.b32.xlu1 %v19497_v11, %s16837_s25  ;;  %v8620_v28 = vsel %vm2665_vm9, %v15908_v62, %v15909_v20 }
 0x5a5   : > { %v15917_v53 = vpop.permute.xlu0 %15916  ;;  %8452 = vmatprep.mubr.f32.mxu1 %v19637_v14  ;;  %v8623_v17 = vsel %vm2665_vm9, %v15913_v52, %v15914_v26 }
 0x5a6   : > { %v15919_v44 = vunpack.i.h.bf16 %v15917_v53  ;;  %v15918_v5 = vunpack.i.l.bf16 %v15917_v53  ;;  %13442 = vmatmul.mubr.msk.f32.gmra.mrb[16].mxu1 %vm310_vm5, %v7878_v30  ;;  %v20067_v3 = vpop.permute.xlu1 %15921  ;;  %v14652_v24 = vpack.c.bf16 %v8623_v17, %v8620_v28 }
 0x5a7   : > { %16206 = vrot.lane.b32.xlu0 %v19645_v48, %s16837_s25  ;;  %14647 = vmatpush3.bf16.msra.mxu1 %v14644_v25  ;;  %v15924_v6 = vunpack.i.h.bf16 %v20067_v3  ;;  %v15923_v46 = vunpack.i.l.bf16 %v20067_v3 }
 0x5a8   : > { %14649 = vmatprep.subr.bf16.mxu1 %v14648_v58  ;;  %16211 = vrot.lane.b32.xlu1 %v19565_v38, %s16840_s30  ;;  %v8619_v47 = vsel %vm2665_vm9, %v15918_v5, %v15908_v62  ;;  %v8622_v49 = vsel %vm2665_vm9, %v15919_v44, %v15913_v52 }
 0x5a9   : > { %v20081_v37 = vpop.permute.xlu0 %15926  ;;  %14325 = vmatprep.mubr.msk.f32.mxu1 %vm310_vm5, %v19986_v15  ;;  %v8626_v7 = vsel %vm2665_vm9, %v15923_v46, %v15924_v6  ;;  %v14654_v13 = vpack.c.bf16 %v8622_v49, %v8619_v47 }
 0x5aa   : > { %v15929_v22 = vunpack.i.h.bf16 %v20081_v37  ;;  %v15928_v41 = vunpack.i.l.bf16 %v20081_v37  ;;  %14326 = vmatmul.mubr.msk.f32.vlgmr.msra.gmra.mrb[18].mxu1 %vm310_vm5, %v20005_v39  ;;  %v15932_v42 = vpop.permute.xlu1 %15931  ;;  %v20183_v37 = vld [vmem:[%s21452_s4 + $0x50] sm:$0xff] }
 0x5ab   : > { %16216 = vrot.lane.b32.xlu0 %v19573_v55, %s16840_s30  ;;  %14651 = vmatpush1.bf16.msra.mxu1 %v14650_v1  ;;  %v15934_v10 = vunpack.i.h.bf16 %v15932_v42  ;;  %v15933_v15 = vunpack.i.l.bf16 %v15932_v42 }
 0x5ac   : > { %14653 = vmatprep.subr.bf16.mxu1 %v14652_v24  ;;  %16221 = vrot.lane.b32.xlu1 %v19589_v21, %s16840_s30  ;;  %v8629_v56 = vsel %vm2665_vm9, %v15928_v41, %v15929_v22 }
 0x5ad   : > { %v20101_v39 = vpop.permute.xlu0 %15936  ;;  %v14656_v9 = vpack.c.bf16 %v8629_v56, %v8626_v7  ;;  %14328 = vmatprep.mubr.msk.f32.mxu1 %vm310_vm5, %v20027_v60  ;;  %v8628_v0 = vsel %vm2665_vm9, %v15934_v10, %v15928_v41  ;;  %v8625_v62 = vsel %vm2665_vm9, %v15933_v15, %v15923_v46 }
 0x5ae   : > { %v15939_v19 = vunpack.i.h.bf16 %v20101_v39  ;;  %v15938_v29 = vunpack.i.l.bf16 %v20101_v39  ;;  %v20109_v25 = vpop.permute.xlu1 %15946  ;;  %14329 = vmatmul.mubr.msk.f32.gmra.mrb[20].mxu1 %vm310_vm5, %v7878_v30  ;;  %v14658_v53 = vpack.c.bf16 %v8628_v0, %v8625_v62 }
 0x5af   : > { %16226 = vrot.lane.b32.xlu0 %v19581_v43, %s16840_s30  ;;  %14655 = vmatpush1.bf16.msra.mxu1 %v14654_v13  ;;  %v15949_v2 = vunpack.i.h.bf16 %v20109_v25  ;;  %v15948_v60 = vunpack.i.l.bf16 %v20109_v25 }
 0x5b0   : > { %14657 = vmatprep.subr.bf16.mxu1 %v14656_v9  ;;  %16231 = vrot.lane.b32.xlu1 %v19593_v54, %s16840_s30  ;;  %v8632_v52 = vsel %vm2665_vm9, %v15938_v29, %v15939_v19 }
 0x5b1   : > { %v15942_v45 = vpop.permute.xlu0 %15941  ;;  %v8635_v30 = vsel %vm2665_vm9, %v15948_v60, %v15949_v2  ;;  %8737 = vmatprep.mubr.f32.mxu1 %v19637_v14 }
 0x5b2   : > { %v15944_v61 = vunpack.i.h.bf16 %v15942_v45  ;;  %v15943_v34 = vunpack.i.l.bf16 %v15942_v45  ;;  %v15952_v58 = vpop.permute.xlu1 %15951  ;;  %v14660_v44 = vpack.c.bf16 %v8635_v30, %v8632_v52 }
 0x5b3   : > { %16236 = vrot.lane.b32.xlu0 %v19607_v36, %s16840_s30  ;;  %14659 = vmatpush1.bf16.msra.mxu1 %v14658_v53  ;;  %v15954_v5 = vunpack.i.h.bf16 %v15952_v58  ;;  %v15953_v28 = vunpack.i.l.bf16 %v15952_v58 }
 0x5b4   : > { %v8631_v17 = vsel %vm2665_vm9, %v15943_v34, %v15938_v29  ;;  %v8634_v46 = vsel %vm2665_vm9, %v15944_v61, %v15948_v60  ;;  %16241 = vrot.lane.b32.xlu1 %v19599_v32, %s16840_s30  ;;  %14661 = vmatprep.subr.bf16.mxu1 %v14660_v44 }
 0x5b5   : > { %v15957_v1 = vpop.permute.xlu0 %15956  ;;  %v14662_v24 = vpack.c.bf16 %v8634_v46, %v8631_v17  ;;  %v8615_v47 = vsel %vm2665_vm9, %v15894_v18, %v15953_v28  ;;  %v8618_v41 = vsel %vm2665_vm9, %v15899_v4, %v15954_v5  ;;  %v13450_v28 = vld [vmem:[%s21452_s4 + $0x58] sm:$0xff] }
 0x5b6   : > { %v15959_v49 = vunpack.i.h.bf16 %v15957_v1  ;;  %v15958_v42 = vunpack.i.l.bf16 %v15957_v1  ;;  %v15962_v10 = vpop.permute.xlu1 %15961  ;;  %v14664_v15 = vpack.c.bf16 %v8618_v41, %v8615_v47 }
 0x5b7   : > { %16246 = vrot.lane.b32.xlu0 %v19613_v12, %s16840_s30  ;;  %14663 = vmatpush1.bf16.msra.mxu1 %v14662_v24  ;;  %v15964_v7 = vunpack.i.h.bf16 %v15962_v10  ;;  %v15963_v56 = vunpack.i.l.bf16 %v15962_v10 }
 0x5b8   : > { %16251 = vrot.lane.b32.xlu1 %v19623_v16, %s16840_s30  ;;  %14665 = vmatprep.subr.bf16.mxu1 %v14664_v15  ;;  %v8621_v33 = vsel %vm2665_vm9, %v15909_v20, %v15958_v42  ;;  %v8624_v4 = vsel %vm2665_vm9, %v15914_v26, %v15959_v49 }
 0x5b9   : > { %v15967_v18 = vpop.permute.xlu0 %15966  ;;  %v14668_v13 = vpack.c.bf16 %v8624_v4, %v8621_v33  ;;  %v8627_v20 = vsel %vm2665_vm9, %v15924_v6, %v15963_v56  ;;  %v8630_v35 = vsel %vm2665_vm9, %v15929_v22, %v15964_v7 }
 0x5ba   : > { %13451 = vmatmul.mubr.msk.f32.vlgmr.msra.gmra.mrb[10].mxu1 %vm310_vm5, %v20142_v27  ;;  %v20154_v9 = vpop.permute.xlu1 %15971  ;;  %v15969_v29 = vunpack.i.h.bf16 %v15967_v18  ;;  %v15968_v0 = vunpack.i.l.bf16 %v15967_v18  ;;  %v14672_v6 = vpack.c.bf16 %v8630_v35, %v8627_v20 }
 0x5bb   : > { %16256 = vrot.lane.b32.xlu0 %v19619_v8, %s16840_s30  ;;  %14667 = vmatpush3.bf16.msra.mxu1 %v14664_v15  ;;  %v15974_v45 = vunpack.i.h.bf16 %v20154_v9  ;;  %v15973_v53 = vunpack.i.l.bf16 %v20154_v9  ;;  %v20300_v9 = vld [vmem:[%s21452_s4 + $0x60] sm:$0xff] }
 0x5bc   : > { %14669 = vmatprep.subr.bf16.mxu1 %v14668_v13  ;;  %16266 = vrot.lane.b32.xlu1 %v19633_v23, %s16840_s30  ;;  %v8633_v22 = vsel %vm2665_vm9, %v15939_v19, %v15968_v0  ;;  %v8636_v52 = vsel %vm2665_vm9, %v15949_v2, %v15969_v29 }
 0x5bd   : > { %v20171_v26 = vpop.permute.xlu0 %15976  ;;  %8743 = vmatprep.mubr.f32.mxu1 %v19637_v14  ;;  %v14676_v2 = vpack.c.bf16 %v8636_v52, %v8633_v22  ;;  %v8929_v17 = vsel %vm3535_vm12, %v15973_v53, %v15974_v45 }
 0x5be   : > { %v15979_v62 = vunpack.i.h.bf16 %v20171_v26  ;;  %v15978_v60 = vunpack.i.l.bf16 %v20171_v26  ;;  %13452 = vmatmul.mubr.msk.f32.gmra.mrb[12].mxu1 %vm310_vm5, %v20161_v50  ;;  %v15982_v3 = vpop.permute.xlu1 %15981 }
 0x5bf   : > { %16261 = vrot.lane.b32.xlu0 %v19639_v63, %s16840_s30  ;;  %14671 = vmatpush3.bf16.msra.mxu1 %v14668_v13  ;;  %v15984_v61 = vunpack.i.h.bf16 %v15982_v3  ;;  %v15983_v34 = vunpack.i.l.bf16 %v15982_v3 }
 0x5c0   : > { %14673 = vmatprep.subr.bf16.mxu1 %v14672_v6  ;;  %16271 = vrot.lane.b32.xlu1 %v19489_v31, %s16840_s30  ;;  %v8932_v58 = vsel %vm3535_vm12, %v15978_v60, %v15979_v62 }
 0x5c1   : > { %v20195_v30 = vpop.permute.xlu0 %15986  ;;  %8749 = vmatprep.mubr.f32.mxu1 %v19637_v14  ;;  %v8931_v1 = vsel %vm3535_vm12, %v15984_v61, %v15978_v60  ;;  %v8928_v24 = vsel %vm3535_vm12, %v15983_v34, %v15973_v53  ;;  %v14680_v47 = vpack.c.bf16 %v8932_v58, %v8929_v17 }
 0x5c2   : > { %v15989_v39 = vunpack.i.h.bf16 %v20195_v30  ;;  %v15988_v19 = vunpack.i.l.bf16 %v20195_v30  ;;  %13453 = vmatmul.mubr.msk.f32.gmra.mrb[14].mxu1 %vm310_vm5, %v20183_v37  ;;  %v20202_v25 = vpop.permute.xlu1 %15991  ;;  %v14682_v33 = vpack.c.bf16 %v8931_v1, %v8928_v24  ;;  %v20319_v30 = vld [vmem:[%s21452_s4 + $0x68] sm:$0xff] }
 0x5c3   : > { %16276 = vrot.lane.b32.xlu0 %v19495_v51, %s16840_s30  ;;  %14675 = vmatpush3.bf16.msra.mxu1 %v14672_v6  ;;  %v15994_v44 = vunpack.i.h.bf16 %v20202_v25  ;;  %v15993_v5 = vunpack.i.l.bf16 %v20202_v25 }
 0x5c4   : > { %14677 = vmatprep.subr.bf16.mxu1 %v14676_v2  ;;  %16281 = vrot.lane.b32.xlu1 %v19497_v11, %s16840_s30  ;;  %v8935_v10 = vsel %vm3535_vm12, %v15988_v19, %v15989_v39 }
 0x5c5   : > { %v15997_v46 = vpop.permute.xlu0 %15996  ;;  %8755 = vmatprep.mubr.f32.mxu1 %v19637_v14  ;;  %v8938_v15 = vsel %vm3535_vm12, %v15993_v5, %v15994_v44 }
 0x5c6   : > { %v15999_v41 = vunpack.i.h.bf16 %v15997_v46  ;;  %v15998_v49 = vunpack.i.l.bf16 %v15997_v46  ;;  %13454 = vmatmul.mubr.msk.f32.gmra.mrb[16].mxu1 %vm310_vm5, %v13450_v28  ;;  %v20223_v42 = vpop.permute.xlu1 %16001  ;;  %v14684_v4 = vpack.c.bf16 %v8938_v15, %v8935_v10  ;;  %v20280_v46 = vld [vmem:[#allocation3] sm:$0xff] }
 0x5c7   : > { %16286 = vrot.lane.b32.xlu0 %v19645_v48, %s16840_s30  ;;  %14679 = vmatpush3.bf16.msra.mxu1 %v14676_v2  ;;  %v16004_v14 = vunpack.i.h.bf16 %v20223_v42  ;;  %v16003_v7 = vunpack.i.l.bf16 %v20223_v42 }
 0x5c8   : > { %14681 = vmatprep.subr.bf16.mxu1 %v14680_v47  ;;  %16291 = vrot.lane.b32.xlu1 %v19565_v38, %s16841_s16  ;;  %v8934_v18 = vsel %vm3535_vm12, %v15998_v49, %v15988_v19  ;;  %v8937_v0 = vsel %vm3535_vm12, %v15999_v41, %v15993_v5 }
 0x5c9   : > { %v20237_v56 = vpop.permute.xlu0 %16006  ;;  %14347 = vmatprep.mubr.msk.f32.mxu1 %vm310_vm5, %v20142_v27  ;;  %v8941_v60 = vsel %vm3535_vm12, %v16003_v7, %v16004_v14  ;;  %v14686_v6 = vpack.c.bf16 %v8937_v0, %v8934_v18 }
 0x5ca   : > { %v16009_v13 = vunpack.i.h.bf16 %v20237_v56  ;;  %v16008_v29 = vunpack.i.l.bf16 %v20237_v56  ;;  %14348 = vmatmul.mubr.msk.f32.vlgmr.msra.gmra.mrb[18].mxu1 %vm310_vm5, %v20161_v50  ;;  %v16012_v20 = vpop.permute.xlu1 %16011  ;;  %v20341_v56 = vld [vmem:[%s21452_s4 + $0x70] sm:$0xff] }
 0x5cb   : > { %16296 = vrot.lane.b32.xlu0 %v19573_v55, %s16841_s16  ;;  %14683 = vmatpush1.bf16.msra.mxu1 %v14682_v33  ;;  %v16014_v35 = vunpack.i.h.bf16 %v16012_v20  ;;  %v16013_v27 = vunpack.i.l.bf16 %v16012_v20 }
 0x5cc   : > { %14685 = vmatprep.subr.bf16.mxu1 %v14684_v4  ;;  %16301 = vrot.lane.b32.xlu1 %v19589_v21, %s16841_s16  ;;  %v8944_v3 = vsel %vm3535_vm12, %v16008_v29, %v16009_v13 }
 0x5cd   : > { %v20257_v50 = vpop.permute.xlu0 %16016  ;;  %v14688_v22 = vpack.c.bf16 %v8944_v3, %v8941_v60  ;;  %14350 = vmatprep.mubr.msk.f32.mxu1 %vm310_vm5, %v20183_v37  ;;  %v8943_v61 = vsel %vm3535_vm12, %v16014_v35, %v16008_v29  ;;  %v8940_v34 = vsel %vm3535_vm12, %v16013_v27, %v16003_v7 }
 0x5ce   : > { %v16019_v52 = vunpack.i.h.bf16 %v20257_v50  ;;  %v16018_v53 = vunpack.i.l.bf16 %v20257_v50  ;;  %v20265_v19 = vpop.permute.xlu1 %16026  ;;  %14351 = vmatmul.mubr.msk.f32.gmra.mrb[20].mxu1 %vm310_vm5, %v13450_v28  ;;  %v14690_v17 = vpack.c.bf16 %v8943_v61, %v8940_v34 }
 0x5cf   : > { %16306 = vrot.lane.b32.xlu0 %v19581_v43, %s16841_s16  ;;  %14687 = vmatpush1.bf16.msra.mxu1 %v14686_v6  ;;  %v16029_v2 = vunpack.i.h.bf16 %v20265_v19  ;;  %v16028_v37 = vunpack.i.l.bf16 %v20265_v19 }
 0x5d0   : > { %14689 = vmatprep.subr.bf16.mxu1 %v14688_v22  ;;  %16311 = vrot.lane.b32.xlu1 %v19593_v54, %s16841_s16  ;;  %v8947_v58 = vsel %vm3535_vm12, %v16018_v53, %v16019_v52 }
 0x5d1   : > { %v16022_v5 = vpop.permute.xlu0 %16021  ;;  %v8950_v28 = vsel %vm3535_vm12, %v16028_v37, %v16029_v2  ;;  %9052 = vmatprep.mubr.f32.mxu1 %v20280_v46 }
 0x5d2   : > { %v16024_v1 = vunpack.i.h.bf16 %v16022_v5  ;;  %v16023_v24 = vunpack.i.l.bf16 %v16022_v5  ;;  %v16032_v47 = vpop.permute.xlu1 %16031  ;;  %v14692_v41 = vpack.c.bf16 %v8950_v28, %v8947_v58 }
 0x5d3   : > { %16316 = vrot.lane.b32.xlu0 %v19607_v36, %s16841_s16  ;;  %14691 = vmatpush1.bf16.msra.mxu1 %v14690_v17  ;;  %v16034_v49 = vunpack.i.h.bf16 %v16032_v47  ;;  %v16033_v10 = vunpack.i.l.bf16 %v16032_v47 }
 0x5d4   : > { %v8946_v15 = vsel %vm3535_vm12, %v16023_v24, %v16018_v53  ;;  %v8949_v7 = vsel %vm3535_vm12, %v16024_v1, %v16028_v37  ;;  %16321 = vrot.lane.b32.xlu1 %v19599_v32, %s16841_s16  ;;  %14693 = vmatprep.subr.bf16.mxu1 %v14692_v41 }
 0x5d5   : > { %v16037_v33 = vpop.permute.xlu0 %16036  ;;  %v14694_v4 = vpack.c.bf16 %v8949_v7, %v8946_v15  ;;  %v8930_v18 = vsel %vm3535_vm12, %v15974_v45, %v16033_v10  ;;  %v8933_v29 = vsel %vm3535_vm12, %v15979_v62, %v16034_v49  ;;  %v13462_v10 = vld [vmem:[%s21452_s4 + $0x78] sm:$0xff] }
 0x5d6   : > { %v16039_v0 = vunpack.i.h.bf16 %v16037_v33  ;;  %v16038_v20 = vunpack.i.l.bf16 %v16037_v33  ;;  %v16042_v35 = vpop.permute.xlu1 %16041  ;;  %v14696_v27 = vpack.c.bf16 %v8933_v29, %v8930_v18 }
 0x5d7   : > { %16326 = vrot.lane.b32.xlu0 %v19613_v12, %s16841_s16  ;;  %14695 = vmatpush1.bf16.msra.mxu1 %v14694_v4  ;;  %v16044_v60 = vunpack.i.h.bf16 %v16042_v35  ;;  %v16043_v3 = vunpack.i.l.bf16 %v16042_v35 }
 0x5d8   : > { %16331 = vrot.lane.b32.xlu1 %v19623_v16, %s16841_s16  ;;  %14697 = vmatprep.subr.bf16.mxu1 %v14696_v27  ;;  %v8936_v26 = vsel %vm3535_vm12, %v15989_v39, %v16038_v20  ;;  %v8939_v62 = vsel %vm3535_vm12, %v15994_v44, %v16039_v0 }
 0x5d9   : > { %v16047_v45 = vpop.permute.xlu0 %16046  ;;  %v14700_v6 = vpack.c.bf16 %v8939_v62, %v8936_v26  ;;  %v8942_v39 = vsel %vm3535_vm12, %v16004_v14, %v16043_v3  ;;  %v8945_v25 = vsel %vm3535_vm12, %v16009_v13, %v16044_v60 }
 0x5da   : > { %13463 = vmatmul.mubr.msk.f32.vlgmr.msra.gmra.mrb[10].mxu1 %vm310_vm5, %v20300_v9  ;;  %v20312_v22 = vpop.permute.xlu1 %16051  ;;  %v16049_v53 = vunpack.i.h.bf16 %v16047_v45  ;;  %v16048_v61 = vunpack.i.l.bf16 %v16047_v45  ;;  %v14704_v14 = vpack.c.bf16 %v8945_v25, %v8942_v39 }
 0x5db   : > { %16336 = vrot.lane.b32.xlu0 %v19619_v8, %s16841_s16  ;;  %14699 = vmatpush3.bf16.msra.mxu1 %v14696_v27  ;;  %v16054_v5 = vunpack.i.h.bf16 %v20312_v22  ;;  %v16053_v17 = vunpack.i.l.bf16 %v20312_v22  ;;  %v20456_v22 = vld [vmem:[%s21452_s4 + $0x80] sm:$0xff] }
 0x5dc   : > { %14701 = vmatprep.subr.bf16.mxu1 %v14700_v6  ;;  %16346 = vrot.lane.b32.xlu1 %v19633_v23, %s16841_s16  ;;  %v8948_v13 = vsel %vm3535_vm12, %v16019_v52, %v16048_v61  ;;  %v8951_v58 = vsel %vm3535_vm12, %v16029_v2, %v16049_v53 }
 0x5dd   : > { %v20329_v44 = vpop.permute.xlu0 %16056  ;;  %9058 = vmatprep.mubr.f32.mxu1 %v20280_v46  ;;  %v14708_v2 = vpack.c.bf16 %v8951_v58, %v8948_v13  ;;  %v9244_v15 = vsel %vm3825_vm13, %v16053_v17, %v16054_v5 }
 0x5de   : > { %v16059_v34 = vunpack.i.h.bf16 %v20329_v44  ;;  %v16058_v37 = vunpack.i.l.bf16 %v20329_v44  ;;  %13464 = vmatmul.mubr.msk.f32.gmra.mrb[12].mxu1 %vm310_vm5, %v20319_v30  ;;  %v16062_v42 = vpop.permute.xlu1 %16061 }
 0x5df   : > { %16341 = vrot.lane.b32.xlu0 %v19639_v63, %s16841_s16  ;;  %14703 = vmatpush3.bf16.msra.mxu1 %v14700_v6  ;;  %v16064_v1 = vunpack.i.h.bf16 %v16062_v42  ;;  %v16063_v24 = vunpack.i.l.bf16 %v16062_v42 }
 0x5e0   : > { %14705 = vmatprep.subr.bf16.mxu1 %v14704_v14  ;;  %16351 = vrot.lane.b32.xlu1 %v19489_v31, %s16841_s16  ;;  %v9247_v47 = vsel %vm3825_vm13, %v16058_v37, %v16059_v34 }
 0x5e1   : > { %v20353_v28 = vpop.permute.xlu0 %16066  ;;  %9064 = vmatprep.mubr.f32.mxu1 %v20280_v46  ;;  %v9246_v33 = vsel %vm3825_vm13, %v16064_v1, %v16058_v37  ;;  %v9243_v4 = vsel %vm3825_vm13, %v16063_v24, %v16053_v17  ;;  %v14712_v18 = vpack.c.bf16 %v9247_v47, %v9244_v15 }
 0x5e2   : > { %v16069_v50 = vunpack.i.h.bf16 %v20353_v28  ;;  %v16068_v52 = vunpack.i.l.bf16 %v20353_v28  ;;  %13465 = vmatmul.mubr.msk.f32.gmra.mrb[14].mxu1 %vm310_vm5, %v20341_v56  ;;  %v20360_v19 = vpop.permute.xlu1 %16071  ;;  %v14714_v62 = vpack.c.bf16 %v9246_v33, %v9243_v4 }
 0x5e3   : > { %16356 = vrot.lane.b32.xlu0 %v19495_v51, %s16841_s16  ;;  %14707 = vmatpush3.bf16.msra.mxu1 %v14704_v14  ;;  %v16074_v41 = vunpack.i.h.bf16 %v20360_v19  ;;  %v16073_v49 = vunpack.i.l.bf16 %v20360_v19 }
 0x5e4   : > { %14709 = vmatprep.subr.bf16.mxu1 %v14708_v2  ;;  %16361 = vrot.lane.b32.xlu1 %v19497_v11, %s16841_s16  ;;  %v9250_v35 = vsel %vm3825_vm13, %v16068_v52, %v16069_v50 }
 0x5e5   : > { %v16077_v7 = vpop.permute.xlu0 %16076  ;;  %9070 = vmatprep.mubr.f32.mxu1 %v20280_v46  ;;  %v9253_v27 = vsel %vm3825_vm13, %v16073_v49, %v16074_v41 }
 0x5e6   : > { %v16079_v29 = vunpack.i.h.bf16 %v16077_v7  ;;  %v16078_v0 = vunpack.i.l.bf16 %v16077_v7  ;;  %13466 = vmatmul.mubr.msk.f32.gmra.mrb[16].mxu1 %vm310_vm5, %v13462_v10  ;;  %v20381_v20 = vpop.permute.xlu1 %16081  ;;  %v14716_v45 = vpack.c.bf16 %v9253_v27, %v9250_v35 }
 0x5e7   : > { %16366 = vrot.lane.b32.xlu0 %v19645_v48, %s16841_s16  ;;  %14711 = vmatpush3.bf16.msra.mxu1 %v14708_v2  ;;  %v16084_v60 = vunpack.i.h.bf16 %v20381_v20  ;;  %v16083_v3 = vunpack.i.l.bf16 %v20381_v20 }
 0x5e8   : > { %14713 = vmatprep.subr.bf16.mxu1 %v14712_v18  ;;  %16371 = vrot.lane.b32.xlu1 %v19565_v38, %s16842_s13  ;;  %v9249_v6 = vsel %vm3825_vm13, %v16078_v0, %v16068_v52  ;;  %v9252_v39 = vsel %vm3825_vm13, %v16079_v29, %v16073_v49 }
 0x5e9   : > { %v20395_v26 = vpop.permute.xlu0 %16086  ;;  %14369 = vmatprep.mubr.msk.f32.mxu1 %vm310_vm5, %v20300_v9  ;;  %v9256_v37 = vsel %vm3825_vm13, %v16083_v3, %v16084_v60  ;;  %v14718_v14 = vpack.c.bf16 %v9252_v39, %v9249_v6 }
 0x5ea   : > { %v16089_v53 = vunpack.i.h.bf16 %v20395_v26  ;;  %v16088_v61 = vunpack.i.l.bf16 %v20395_v26  ;;  %14370 = vmatmul.mubr.msk.f32.vlgmr.msra.gmra.mrb[18].mxu1 %vm310_vm5, %v20319_v30  ;;  %v16092_v25 = vpop.permute.xlu1 %16091 }
 0x5eb   : > { %16376 = vrot.lane.b32.xlu0 %v19573_v55, %s16842_s13  ;;  %14715 = vmatpush1.bf16.msra.mxu1 %v14714_v62  ;;  %v16094_v38 = vunpack.i.h.bf16 %v16092_v25  ;;  %v16093_v9 = vunpack.i.l.bf16 %v16092_v25 }
 0x5ec   : > { %14717 = vmatprep.subr.bf16.mxu1 %v14716_v45  ;;  %16381 = vrot.lane.b32.xlu1 %v19589_v21, %s16842_s13  ;;  %v9259_v42 = vsel %vm3825_vm13, %v16088_v61, %v16089_v53 }
 0x5ed   : > { %v20415_v30 = vpop.permute.xlu0 %16096  ;;  %v14720_v13 = vpack.c.bf16 %v9259_v42, %v9256_v37  ;;  %14372 = vmatprep.mubr.msk.f32.mxu1 %vm310_vm5, %v20341_v56  ;;  %v9258_v21 = vsel %vm3825_vm13, %v16094_v38, %v16088_v61  ;;  %v9255_v17 = vsel %vm3825_vm13, %v16093_v9, %v16083_v3 }
 0x5ee   : > { %v16099_v55 = vunpack.i.h.bf16 %v20415_v30  ;;  %v16098_v58 = vunpack.i.l.bf16 %v20415_v30  ;;  %v20423_v1 = vpop.permute.xlu1 %16106  ;;  %14373 = vmatmul.mubr.msk.f32.gmra.mrb[20].mxu1 %vm310_vm5, %v13462_v10  ;;  %v14722_v47 = vpack.c.bf16 %v9258_v21, %v9255_v17  ;;  %v13474_v17 = vld [vmem:[%s21452_s4 + $0x98] sm:$0xff] }
 0x5ef   : > { %16386 = vrot.lane.b32.xlu0 %v19581_v43, %s16842_s13  ;;  %14719 = vmatpush1.bf16.msra.mxu1 %v14718_v14  ;;  %v16109_v24 = vunpack.i.h.bf16 %v20423_v1  ;;  %v16108_v56 = vunpack.i.l.bf16 %v20423_v1 }
 0x5f0   : > { %14721 = vmatprep.subr.bf16.mxu1 %v14720_v13  ;;  %16391 = vrot.lane.b32.xlu1 %v19593_v54, %s16842_s13  ;;  %v9262_v52 = vsel %vm3825_vm13, %v16098_v58, %v16099_v55 }
 0x5f1   : > { %v16102_v2 = vpop.permute.xlu0 %16101  ;;  %v9265_v49 = vsel %vm3825_vm13, %v16108_v56, %v16109_v24  ;;  %9367 = vmatprep.mubr.f32.mxu1 %v20280_v46 }
 0x5f2   : > { %v16104_v43 = vunpack.i.h.bf16 %v16102_v2  ;;  %v16103_v10 = vunpack.i.l.bf16 %v16102_v2  ;;  %v16112_v15 = vpop.permute.xlu1 %16111  ;;  %v14724_v7 = vpack.c.bf16 %v9265_v49, %v9262_v52  ;;  %v10749_v2 = vld [vmem:[%s21453_s5] sm:$0xff] }
 0x5f3   : > { %16396 = vrot.lane.b32.xlu0 %v19607_v36, %s16842_s13  ;;  %14723 = vmatpush1.bf16.msra.mxu1 %v14722_v47  ;;  %v16114_v54 = vunpack.i.h.bf16 %v16112_v15  ;;  %v16113_v33 = vunpack.i.l.bf16 %v16112_v15  ;;  %v10750_v15 = vld [vmem:[%s21453_s5 + $0x8] sm:$0xff] }
 0x5f4   : > { %v9261_v4 = vsel %vm3825_vm13, %v16103_v10, %v16098_v58  ;;  %v9264_v18 = vsel %vm3825_vm13, %v16104_v43, %v16108_v56  ;;  %16401 = vrot.lane.b32.xlu1 %v19599_v32, %s16842_s13  ;;  %14725 = vmatprep.subr.bf16.mxu1 %v14724_v7 }
 0x5f5   : > { %v16117_v29 = vpop.permute.xlu0 %16116  ;;  %v14726_v0 = vpack.c.bf16 %v9264_v18, %v9261_v4  ;;  %v9245_v35 = vsel %vm3825_vm13, %v16054_v5, %v16113_v33  ;;  %v9248_v36 = vsel %vm3825_vm13, %v16059_v34, %v16114_v54 }
 0x5f6   : > { %v16119_v27 = vunpack.i.h.bf16 %v16117_v29  ;;  %v16118_v3 = vunpack.i.l.bf16 %v16117_v29  ;;  %v16122_v62 = vpop.permute.xlu1 %16121  ;;  %v14728_v45 = vpack.c.bf16 %v9248_v36, %v9245_v35 }
 0x5f7   : > { %16406 = vrot.lane.b32.xlu0 %v19613_v12, %s16842_s13  ;;  %14727 = vmatpush1.bf16.msra.mxu1 %v14726_v0  ;;  %v16124_v32 = vunpack.i.h.bf16 %v16122_v62  ;;  %v16123_v6 = vunpack.i.l.bf16 %v16122_v62 }
 0x5f8   : > { %16411 = vrot.lane.b32.xlu1 %v19623_v16, %s16842_s13  ;;  %14729 = vmatprep.subr.bf16.mxu1 %v14728_v45  ;;  %v9251_v44 = vsel %vm3825_vm13, %v16069_v50, %v16118_v3  ;;  %v9254_v12 = vsel %vm3825_vm13, %v16074_v41, %v16119_v27  ;;  %v20475_v16 = vld [vmem:[%s21452_s4 + $0x88] sm:$0xff] }
 0x5f9   : > { %v16127_v34 = vpop.permute.xlu0 %16126  ;;  %v14732_v5 = vpack.c.bf16 %v9254_v12, %v9251_v44  ;;  %v9257_v28 = vsel %vm3825_vm13, %v16084_v60, %v16123_v6  ;;  %v9260_v50 = vsel %vm3825_vm13, %v16089_v53, %v16124_v32 }
 0x5fa   : > { %13475 = vmatmul.mubr.msk.f32.vlgmr.msra.gmra.mrb[10].mxu1 %vm310_vm5, %v20456_v22  ;;  %v20468_v61 = vpop.permute.xlu1 %16131  ;;  %v16129_v39 = vunpack.i.h.bf16 %v16127_v34  ;;  %v16128_v25 = vunpack.i.l.bf16 %v16127_v34  ;;  %v14736_v60 = vpack.c.bf16 %v9260_v50, %v9257_v28 }
 0x5fb   : > { %16416 = vrot.lane.b32.xlu0 %v19619_v8, %s16842_s13  ;;  %14731 = vmatpush3.bf16.msra.mxu1 %v14728_v45  ;;  %v16134_v38 = vunpack.i.h.bf16 %v20468_v61  ;;  %v16133_v9 = vunpack.i.l.bf16 %v20468_v61  ;;  %v10752_v45 = vld [vmem:[%s21453_s5 + $0x18] sm:$0xff] }
 0x5fc   : > { %14733 = vmatprep.subr.bf16.mxu1 %v14732_v5  ;;  %16426 = vrot.lane.b32.xlu1 %v19633_v23, %s16842_s13  ;;  %v20497_v23 = vld [vmem:[%s21452_s4 + $0x90] sm:$0xff]  ;;  %v9263_v26 = vsel %vm3825_vm13, %v16099_v55, %v16128_v25  ;;  %v9266_v53 = vsel %vm3825_vm13, %v16109_v24, %v16129_v39 }
 0x5fd   : > { %v20485_v19 = vpop.permute.xlu0 %16136  ;;  %9373 = vmatprep.mubr.f32.mxu1 %v20280_v46  ;;  %v14740_v55 = vpack.c.bf16 %v9266_v53, %v9263_v26  ;;  %v9559_v1 = vsel %vm4115_vm14, %v16133_v9, %v16134_v38 }
 0x5fe   : > { %v16139_v8 = vunpack.i.h.bf16 %v20485_v19  ;;  %v16138_v41 = vunpack.i.l.bf16 %v20485_v19  ;;  %13476 = vmatmul.mubr.msk.f32.gmra.mrb[12].mxu1 %vm310_vm5, %v20475_v16  ;;  %v16142_v20 = vpop.permute.xlu1 %16141 }
 0x5ff   : > { %16421 = vrot.lane.b32.xlu0 %v19639_v63, %s16842_s13  ;;  %14735 = vmatpush3.bf16.msra.mxu1 %v14732_v5  ;;  %v16144_v37 = vunpack.i.h.bf16 %v16142_v20  ;;  %v16143_v42 = vunpack.i.l.bf16 %v16142_v20 }
 0x600   : > { %14737 = vmatprep.subr.bf16.mxu1 %v14736_v60  ;;  %16431 = vrot.lane.b32.xlu1 %v19489_v31, %s16842_s13  ;;  %v9562_v31 = vsel %vm4115_vm14, %v16138_v41, %v16139_v8 }
 0x601   : > { %v20509_v63 = vpop.permute.xlu0 %16146  ;;  %9379 = vmatprep.mubr.f32.mxu1 %v20280_v46  ;;  %v9558_v56 = vsel %vm4115_vm14, %v16143_v42, %v16133_v9  ;;  %v14744_v52 = vpack.c.bf16 %v9562_v31, %v9559_v1 }
 0x602   : > { %v16149_v30 = vunpack.i.h.bf16 %v20509_v63  ;;  %v16148_v14 = vunpack.i.l.bf16 %v20509_v63  ;;  %13477 = vmatmul.mubr.msk.f32.gmra.mrb[14].mxu1 %vm310_vm5, %v20497_v23  ;;  %v20516_v13 = vpop.permute.xlu1 %16151  ;;  %v13484_v63 = vld [vmem:[%s21452_s4 + $0xa8] sm:$0xff] }
 0x603   : > { %16436 = vrot.lane.b32.xlu0 %v19495_v51, %s16842_s13  ;;  %14739 = vmatpush3.bf16.msra.mxu1 %v14736_v60  ;;  %v16154_v58 = vunpack.i.h.bf16 %v20516_v13  ;;  %v16153_v21 = vunpack.i.l.bf16 %v20516_v13  ;;  %v9561_v51 = vsel %vm4115_vm14, %v16144_v37, %v16138_v41 }
 0x604   : > { %14741 = vmatprep.subr.bf16.mxu1 %v14740_v55  ;;  %16441 = vrot.lane.b32.xlu1 %v19497_v11, %s16842_s13  ;;  %v9565_v43 = vsel %vm4115_vm14, %v16148_v14, %v16149_v30  ;;  %v14746_v4 = vpack.c.bf16 %v9561_v51, %v9558_v56 }
 0x605   : > { %v16157_v24 = vpop.permute.xlu0 %16156  ;;  %9385 = vmatprep.mubr.f32.mxu1 %v20280_v46  ;;  %v9568_v10 = vsel %vm4115_vm14, %v16153_v21, %v16154_v58 }
 0x606   : > { %v16159_v47 = vunpack.i.h.bf16 %v16157_v24  ;;  %v16158_v49 = vunpack.i.l.bf16 %v16157_v24  ;;  %13478 = vmatmul.mubr.msk.f32.gmra.mrb[16].mxu1 %vm310_vm5, %v13474_v17  ;;  %v20540_v11 = vpop.permute.xlu1 %16161  ;;  %v14748_v18 = vpack.c.bf16 %v9568_v10, %v9565_v43  ;;  %v13483_v43 = vld [vmem:[%s21452_s4 + $0xa0] sm:$0xff] }
 0x607   : > { %16446 = vrot.lane.b32.xlu0 %v19645_v48, %s16842_s13  ;;  %14743 = vmatpush3.bf16.msra.mxu1 %v14740_v55  ;;  %v16164_v7 = vunpack.i.h.bf16 %v20540_v11  ;;  %v16163_v54 = vunpack.i.l.bf16 %v20540_v11  ;;  %v10751_v48 = vld [vmem:[%s21453_s5 + $0x10] sm:$0xff] }
 0x608   : > { %14745 = vmatprep.subr.bf16.mxu1 %v14744_v52  ;;  %10755 = vperm.xlu1 %15729, %v10749_v2   ;;  %v9564_v29 = vsel %vm4115_vm14, %v16158_v49, %v16148_v14  ;;  %v9567_v36 = vsel %vm4115_vm14, %v16159_v47, %v16153_v21  ;;  %v13485_v11 = vld [vmem:[%s21452_s4 + $0xb0] sm:$0xff] }
 0x609   : > { %v20555_v33 = vpop.permute.xlu0 %16166  ;;  %14391 = vmatprep.mubr.msk.f32.mxu1 %vm310_vm5, %v20456_v22  ;;  %v9571_v32 = vsel %vm4115_vm14, %v16163_v54, %v16164_v7  ;;  %v14750_v44 = vpack.c.bf16 %v9567_v36, %v9564_v29 }
 0x60a   : > { %v16169_v0 = vunpack.i.h.bf16 %v20555_v33  ;;  %v16168_v35 = vunpack.i.l.bf16 %v20555_v33  ;;  %14392 = vmatmul.mubr.msk.f32.vlgmr.msra.gmra.mrb[18].mxu1 %vm310_vm5, %v20475_v16  ;;  %v16172_v27 = vpop.permute.xlu1 %16171 }
 0x60b   : > { %10760 = vperm.xlu0 %15728, %v10750_v15   ;;  %14747 = vmatpush1.bf16.msra.mxu1 %v14746_v4  ;;  %v16174_v3 = vunpack.i.h.bf16 %v16172_v27  ;;  %v16173_v62 = vunpack.i.l.bf16 %v16172_v27 }
 0x60c   : > { %14749 = vmatprep.subr.bf16.mxu1 %v14748_v18  ;;  %10765 = vperm.xlu1 %15729, %v10751_v48   ;;  %v9574_v6 = vsel %vm4115_vm14, %v16168_v35, %v16169_v0 }
 0x60d   : > { %v20577_v22 = vpop.permute.xlu0 %16176  ;;  %v14752_v12 = vpack.c.bf16 %v9574_v6, %v9571_v32  ;;  %14394 = vmatprep.mubr.msk.f32.mxu1 %vm310_vm5, %v20497_v23  ;;  %v9573_v39 = vsel %vm4115_vm14, %v16174_v3, %v16168_v35  ;;  %v9570_v25 = vsel %vm4115_vm14, %v16173_v62, %v16163_v54 }
 0x60e   : > { %v16179_v34 = vunpack.i.h.bf16 %v20577_v22  ;;  %v16178_v5 = vunpack.i.l.bf16 %v20577_v22  ;;  %v16187_v16 = vpop.permute.xlu1 %16186  ;;  %14395 = vmatmul.mubr.msk.f32.gmra.mrb[20].mxu1 %vm310_vm5, %v13474_v17  ;;  %v14754_v60 = vpack.c.bf16 %v9573_v39, %v9570_v25 }
 0x60f   : > { %10770 = vperm.xlu0 %15728, %v10752_v45   ;;  %14751 = vmatpush1.bf16.msra.mxu1 %v14750_v44  ;;  %v16189_v28 = vunpack.i.h.bf16 %v16187_v16  ;;  %v16188_v50 = vunpack.i.l.bf16 %v16187_v16 }
 0x610   : > { %14753 = vmatprep.subr.bf16.mxu1 %v14752_v12  ;;  %v9577_v41 = vsel %vm4115_vm14, %v16178_v5, %v16179_v34  ;;  %9682 = vmatprep.mubr.f32.mxu1 %v20280_v46 }
 0x611   : > { %v16182_v20 = vpop.permute.xlu0 %16181  ;;  %v9580_v23 = vsel %vm4115_vm14, %v16188_v50, %v16189_v28 }
 0x612   : > { %v16184_v26 = vunpack.i.h.bf16 %v16182_v20  ;;  %v16183_v53 = vunpack.i.l.bf16 %v16182_v20  ;;  %v16192_v9 = vpop.permute.xlu1 %16191  ;;  %v14756_v37 = vpack.c.bf16 %v9580_v23, %v9577_v41 }
 0x613   : > { %14755 = vmatpush1.bf16.msra.mxu1 %v14754_v60  ;;  %v16194_v42 = vunpack.i.h.bf16 %v16192_v9  ;;  %v16193_v14 = vunpack.i.l.bf16 %v16192_v9 }
 0x614   : > { %v9576_v55 = vsel %vm4115_vm14, %v16183_v53, %v16178_v5  ;;  %v9579_v31 = vsel %vm4115_vm14, %v16184_v26, %v16188_v50  ;;  %14757 = vmatprep.subr.bf16.mxu1 %v14756_v37 }
 0x615   : > { %v16197_v21 = vpop.permute.xlu0 %16196  ;;  %v14758_v17 = vpack.c.bf16 %v9579_v31, %v9576_v55  ;;  %v9560_v1 = vsel %vm4115_vm14, %v16134_v38, %v16193_v14  ;;  %v9563_v24 = vsel %vm4115_vm14, %v16139_v8, %v16194_v42 }
 0x616   : > { %v16199_v51 = vunpack.i.h.bf16 %v16197_v21  ;;  %v16198_v56 = vunpack.i.l.bf16 %v16197_v21  ;;  %v16202_v52 = vpop.permute.xlu1 %16201  ;;  %v14760_v2 = vpack.c.bf16 %v9563_v24, %v9560_v1 }
 0x617   : > { %14759 = vmatpush1.bf16.msra.mxu1 %v14758_v17  ;;  %v16204_v47 = vunpack.i.h.bf16 %v16202_v52  ;;  %v16203_v49 = vunpack.i.l.bf16 %v16202_v52 }
 0x618   : > { %14761 = vmatprep.subr.bf16.mxu1 %v14760_v2  ;;  %v9566_v61 = vsel %vm4115_vm14, %v16149_v30, %v16198_v56  ;;  %v9569_v19 = vsel %vm4115_vm14, %v16154_v58, %v16199_v51 }
 0x619   : > { %v16207_v8 = vpop.permute.xlu0 %16206  ;;  %v14764_v38 = vpack.c.bf16 %v9569_v19, %v9566_v61  ;;  %v9572_v30 = vsel %vm4115_vm14, %v16164_v7, %v16203_v49  ;;  %v9575_v13 = vsel %vm4115_vm14, %v16169_v0, %v16204_v47 }
 0x61a   : > { %13487 = vmatmul.mubr.msk.f32.vlgmr.msra.gmra.mrb[10].mxu1 %vm310_vm5, %v13483_v43  ;;  %v20609_v10 = vpop.permute.xlu1 %16211  ;;  %v16209_v15 = vunpack.i.h.bf16 %v16207_v8  ;;  %v16208_v54 = vunpack.i.l.bf16 %v16207_v8  ;;  %v14768_v29 = vpack.c.bf16 %v9575_v13, %v9572_v30 }
 0x61b   : > { %14763 = vmatpush3.bf16.msra.mxu1 %v14760_v2  ;;  %9688 = vmatprep.mubr.f32.mxu1 %v20280_v46  ;;  %v16214_v0 = vunpack.i.h.bf16 %v20609_v10  ;;  %v16213_v35 = vunpack.i.l.bf16 %v20609_v10 }
 0x61c   : > { %14765 = vmatprep.subr.bf16.mxu1 %v14764_v38  ;;  %v9578_v7 = vsel %vm4115_vm14, %v16179_v34, %v16208_v54  ;;  %v9581_v33 = vsel %vm4115_vm14, %v16189_v28, %v16209_v15  ;;  %v13486_v34 = vld [vmem:[%s21452_s4 + $0xb8] sm:$0xff] }
 0x61d   : > { %v20621_v58 = vpop.permute.xlu0 %16216  ;;  %v14772_v6 = vpack.c.bf16 %v9581_v33, %v9578_v7  ;;  %v9874_v5 = vsel %vm4985_vm2, %v16213_v35, %v16214_v0 }
 0x61e   : > { %v16219_v4 = vunpack.i.h.bf16 %v20621_v58  ;;  %v16218_v18 = vunpack.i.l.bf16 %v20621_v58  ;;  %13488 = vmatmul.mubr.msk.f32.gmra.mrb[12].mxu1 %vm310_vm5, %v13484_v63  ;;  %v16222_v48 = vpop.permute.xlu1 %16221 }
 0x61f   : > { %14767 = vmatpush3.bf16.msra.mxu1 %v14764_v38  ;;  %9694 = vmatprep.mubr.f32.mxu1 %v20280_v46  ;;  %v16224_v27 = vunpack.i.h.bf16 %v16222_v48  ;;  %v16223_v3 = vunpack.i.l.bf16 %v16222_v48 }
 0x620   : > { %14769 = vmatprep.subr.bf16.mxu1 %v14768_v29  ;;  %v9877_v22 = vsel %vm4985_vm2, %v16218_v18, %v16219_v4 }
 0x621   : > { %v20636_v36 = vpop.permute.xlu0 %16226  ;;  %v9876_v25 = vsel %vm4985_vm2, %v16224_v27, %v16218_v18  ;;  %v9873_v16 = vsel %vm4985_vm2, %v16223_v3, %v16213_v35  ;;  %v14776_v28 = vpack.c.bf16 %v9877_v22, %v9874_v5 }
 0x622   : > { %v16229_v62 = vunpack.i.h.bf16 %v20636_v36  ;;  %v16228_v45 = vunpack.i.l.bf16 %v20636_v36  ;;  %13489 = vmatmul.mubr.msk.f32.gmra.mrb[14].mxu1 %vm310_vm5, %v13485_v11  ;;  %v20641_v32 = vpop.permute.xlu1 %16231  ;;  %v14778_v37 = vpack.c.bf16 %v9876_v25, %v9873_v16  ;;  %v13496_v36 = vld [vmem:[%s21452_s4 + $0xc8] sm:$0xff] }
 0x623   : > { %14771 = vmatpush3.bf16.msra.mxu1 %v14768_v29  ;;  %v16234_v44 = vunpack.i.h.bf16 %v20641_v32  ;;  %v16233_v12 = vunpack.i.l.bf16 %v20641_v32  ;;  %9700 = vmatprep.mubr.f32.mxu1 %v20280_v46 }
 0x624   : > { %14773 = vmatprep.subr.bf16.mxu1 %v14772_v6  ;;  %v9880_v60 = vsel %vm4985_vm2, %v16228_v45, %v16229_v62 }
 0x625   : > { %v16237_v39 = vpop.permute.xlu0 %16236  ;;  %v9883_v23 = vsel %vm4985_vm2, %v16233_v12, %v16234_v44 }
 0x626   : > { %v16239_v50 = vunpack.i.h.bf16 %v16237_v39  ;;  %v16238_v41 = vunpack.i.l.bf16 %v16237_v39  ;;  %13490 = vmatmul.mubr.msk.f32.gmra.mrb[16].mxu1 %vm310_vm5, %v13486_v34  ;;  %v20658_v20 = vpop.permute.xlu1 %16241  ;;  %v14780_v42 = vpack.c.bf16 %v9883_v23, %v9880_v60 }
 0x627   : > { %14775 = vmatpush3.bf16.msra.mxu1 %v14772_v6  ;;  %14413 = vmatprep.mubr.msk.f32.mxu1 %vm310_vm5, %v13483_v43  ;;  %v16244_v26 = vunpack.i.h.bf16 %v20658_v20  ;;  %v16243_v53 = vunpack.i.l.bf16 %v20658_v20  ;;  %v13497_v20 = vld [vmem:[%s21452_s4 + $0xd0] sm:$0xff] }
 0x628   : > { %14777 = vmatprep.subr.bf16.mxu1 %v14776_v28  ;;  %v9879_v14 = vsel %vm4985_vm2, %v16238_v41, %v16228_v45  ;;  %v9882_v21 = vsel %vm4985_vm2, %v16239_v50, %v16233_v12  ;;  %v13495_v28 = vld [vmem:[%s21452_s4 + $0xc0] sm:$0xff] }
 0x629   : > { %v20669_v9 = vpop.permute.xlu0 %16246  ;;  %v9886_v51 = vsel %vm4985_vm2, %v16243_v53, %v16244_v26  ;;  %v14782_v2 = vpack.c.bf16 %v9882_v21, %v9879_v14 }
 0x62a   : > { %v16249_v55 = vunpack.i.h.bf16 %v20669_v9  ;;  %v16248_v31 = vunpack.i.l.bf16 %v20669_v9  ;;  %14414 = vmatmul.mubr.msk.f32.vlgmr.msra.gmra.mrb[18].mxu1 %vm310_vm5, %v13484_v63  ;;  %v16252_v17 = vpop.permute.xlu1 %16251 }
 0x62b   : > { %14779 = vmatpush1.bf16.msra.mxu1 %v14778_v37  ;;  %v16254_v1 = vunpack.i.h.bf16 %v16252_v17  ;;  %v16253_v24 = vunpack.i.l.bf16 %v16252_v17  ;;  %14416 = vmatprep.mubr.msk.f32.mxu1 %vm310_vm5, %v13485_v11 }
 0x62c   : > { %14781 = vmatprep.subr.bf16.mxu1 %v14780_v42  ;;  %v9889_v56 = vsel %vm4985_vm2, %v16248_v31, %v16249_v55 }
 0x62d   : > { %v20683_v52 = vpop.permute.xlu0 %16256  ;;  %v14784_v47 = vpack.c.bf16 %v9889_v56, %v9886_v51  ;;  %v9888_v61 = vsel %vm4985_vm2, %v16254_v1, %v16248_v31  ;;  %v9885_v19 = vsel %vm4985_vm2, %v16253_v24, %v16243_v53 }
 0x62e   : > { %v16259_v49 = vunpack.i.h.bf16 %v20683_v52  ;;  %v16258_v43 = vunpack.i.l.bf16 %v20683_v52  ;;  %v16267_v8 = vpop.permute.xlu1 %16266  ;;  %14417 = vmatmul.mubr.msk.f32.gmra.mrb[20].mxu1 %vm310_vm5, %v13486_v34  ;;  %v14786_v30 = vpack.c.bf16 %v9888_v61, %v9885_v19 }
 0x62f   : > { %14783 = vmatpush1.bf16.msra.mxu1 %v14782_v2  ;;  %v16269_v38 = vunpack.i.h.bf16 %v16267_v8  ;;  %v16268_v15 = vunpack.i.l.bf16 %v16267_v8  ;;  %9997 = vmatprep.mubr.f32.mxu1 %v20280_v46 }
 0x630   : > { %14785 = vmatprep.subr.bf16.mxu1 %v14784_v47  ;;  %v9892_v54 = vsel %vm4985_vm2, %v16258_v43, %v16259_v49 }
 0x631   : > { %v16262_v63 = vpop.permute.xlu0 %16261  ;;  %v9895_v13 = vsel %vm4985_vm2, %v16268_v15, %v16269_v38 }
 0x632   : > { %v16264_v18 = vunpack.i.h.bf16 %v16262_v63  ;;  %v16263_v48 = vunpack.i.l.bf16 %v16262_v63  ;;  %v16272_v29 = vpop.permute.xlu1 %16271  ;;  %v14788_v11 = vpack.c.bf16 %v9895_v13, %v9892_v54 }
 0x633   : > { %14787 = vmatpush1.bf16.msra.mxu1 %v14786_v30  ;;  %v16274_v7 = vunpack.i.h.bf16 %v16272_v29  ;;  %v16273_v33 = vunpack.i.l.bf16 %v16272_v29 }
 0x634   : > { %v9891_v35 = vsel %vm4985_vm2, %v16263_v48, %v16258_v43  ;;  %v9894_v27 = vsel %vm4985_vm2, %v16264_v18, %v16268_v15  ;;  %14789 = vmatprep.subr.bf16.mxu1 %v14788_v11 }
 0x635   : > { %v16277_v3 = vpop.permute.xlu0 %16276  ;;  %v14790_v45 = vpack.c.bf16 %v9894_v27, %v9891_v35  ;;  %v9875_v6 = vsel %vm4985_vm2, %v16214_v0, %v16273_v33  ;;  %v9878_v22 = vsel %vm4985_vm2, %v16219_v4, %v16274_v7 }
 0x636   : > { %v16279_v12 = vunpack.i.h.bf16 %v16277_v3  ;;  %v16278_v34 = vunpack.i.l.bf16 %v16277_v3  ;;  %v16282_v5 = vpop.permute.xlu1 %16281  ;;  %v14792_v39 = vpack.c.bf16 %v9878_v22, %v9875_v6 }
 0x637   : > { %14791 = vmatpush1.bf16.msra.mxu1 %v14790_v45  ;;  %v16284_v25 = vunpack.i.h.bf16 %v16282_v5  ;;  %v16283_v16 = vunpack.i.l.bf16 %v16282_v5 }
 0x638   : > { %14793 = vmatprep.subr.bf16.mxu1 %v14792_v39  ;;  %v9881_v10 = vsel %vm4985_vm2, %v16229_v62, %v16278_v34  ;;  %v9884_v58 = vsel %vm4985_vm2, %v16234_v44, %v16279_v12 }
 0x639   : > { %v16287_v4 = vpop.permute.xlu0 %16286  ;;  %v14796_v0 = vpack.c.bf16 %v9884_v58, %v9881_v10  ;;  %v9887_v62 = vsel %vm4985_vm2, %v16244_v26, %v16283_v16  ;;  %v9890_v32 = vsel %vm4985_vm2, %v16249_v55, %v16284_v25 }
 0x63a   : > { %13499 = vmatmul.mubr.msk.f32.vlgmr.msra.gmra.mrb[10].mxu1 %vm310_vm5, %v13495_v28  ;;  %v20711_v50 = vpop.permute.xlu1 %16291  ;;  %v16289_v41 = vunpack.i.h.bf16 %v16287_v4  ;;  %v16288_v60 = vunpack.i.l.bf16 %v16287_v4  ;;  %v14800_v42 = vpack.c.bf16 %v9890_v32, %v9887_v62 }
 0x63b   : > { %14795 = vmatpush3.bf16.msra.mxu1 %v14792_v39  ;;  %10003 = vmatprep.mubr.f32.mxu1 %v20280_v46  ;;  %v16294_v14 = vunpack.i.h.bf16 %v20711_v50  ;;  %v16293_v55 = vunpack.i.l.bf16 %v20711_v50 }
 0x63c   : > { %14797 = vmatprep.subr.bf16.mxu1 %v14796_v0  ;;  %v9893_v26 = vsel %vm4985_vm2, %v16259_v49, %v16288_v60  ;;  %v9896_v9 = vsel %vm4985_vm2, %v16269_v38, %v16289_v41  ;;  %v13498_v49 = vld [vmem:[%s21452_s4 + $0xd8] sm:$0xff] }
 0x63d   : > { %v20723_v44 = vpop.permute.xlu0 %16296  ;;  %v14804_v56 = vpack.c.bf16 %v9896_v9, %v9893_v26  ;;  %v10189_v43 = vsel %vm408_vm1, %v16293_v55, %v16294_v14 }
 0x63e   : > { %v16299_v23 = vunpack.i.h.bf16 %v20723_v44  ;;  %v16298_v53 = vunpack.i.l.bf16 %v20723_v44  ;;  %13500 = vmatmul.mubr.msk.f32.gmra.mrb[12].mxu1 %vm310_vm5, %v13496_v36  ;;  %v16302_v37 = vpop.permute.xlu1 %16301 }
 0x63f   : > { %14799 = vmatpush3.bf16.msra.mxu1 %v14796_v0  ;;  %10009 = vmatprep.mubr.f32.mxu1 %v20280_v46  ;;  %v16304_v21 = vunpack.i.h.bf16 %v16302_v37  ;;  %v16303_v17 = vunpack.i.l.bf16 %v16302_v37 }
 0x640   : > { %14801 = vmatprep.subr.bf16.mxu1 %v14800_v42  ;;  %v10192_v52 = vsel %vm408_vm1, %v16298_v53, %v16299_v23 }
 0x641   : > { %v20736_v31 = vpop.permute.xlu0 %16306  ;;  %v10191_v19 = vsel %vm408_vm1, %v16304_v21, %v16298_v53  ;;  %v10188_v8 = vsel %vm408_vm1, %v16303_v17, %v16293_v55  ;;  %v14808_v38 = vpack.c.bf16 %v10192_v52, %v10189_v43 }
 0x642   : > { %v16309_v1 = vunpack.i.h.bf16 %v20736_v31  ;;  %v16308_v24 = vunpack.i.l.bf16 %v20736_v31  ;;  %13501 = vmatmul.mubr.msk.f32.gmra.mrb[14].mxu1 %vm310_vm5, %v13497_v20  ;;  %v20741_v51 = vpop.permute.xlu1 %16311  ;;  %v14810_v11 = vpack.c.bf16 %v10191_v19, %v10188_v8  ;;  %v13507_v8 = vld [vmem:[%s21452_s4 + $0xe0] sm:$0xff]  ;;  %v13508_v31 = vld [vmem:[%s21452_s4 + $0xe8] sm:$0xff] }
 0x643   : > { %14803 = vmatpush3.bf16.msra.mxu1 %v14800_v42  ;;  %v16314_v2 = vunpack.i.h.bf16 %v20741_v51  ;;  %v16313_v47 = vunpack.i.l.bf16 %v20741_v51  ;;  %10015 = vmatprep.mubr.f32.mxu1 %v20280_v46 }
 0x644   : > { %14805 = vmatprep.subr.bf16.mxu1 %v14804_v56  ;;  %v10195_v30 = vsel %vm408_vm1, %v16308_v24, %v16309_v1 }
 0x645   : > { %v16317_v61 = vpop.permute.xlu0 %16316  ;;  %v10198_v13 = vsel %vm408_vm1, %v16313_v47, %v16314_v2 }
 0x646   : > { %v16319_v15 = vunpack.i.h.bf16 %v16317_v61  ;;  %v16318_v54 = vunpack.i.l.bf16 %v16317_v61  ;;  %13502 = vmatmul.mubr.msk.f32.gmra.mrb[16].mxu1 %vm310_vm5, %v13498_v49  ;;  %v20758_v63 = vpop.permute.xlu1 %16321  ;;  %v14812_v7 = vpack.c.bf16 %v10198_v13, %v10195_v30  ;;  %v20815_v30 = vld [vmem:[#allocation3] sm:$0xff] }
 0x647   : > { %14807 = vmatpush3.bf16.msra.mxu1 %v14804_v56  ;;  %14435 = vmatprep.mubr.msk.f32.mxu1 %vm310_vm5, %v13495_v28  ;;  %v16324_v18 = vunpack.i.h.bf16 %v20758_v63  ;;  %v16323_v48 = vunpack.i.l.bf16 %v20758_v63  ;;  %v13509_v63 = vld [vmem:[%s21452_s4 + $0xf0] sm:$0xff] }
 0x648   : > { %14809 = vmatprep.subr.bf16.mxu1 %v14808_v38  ;;  %v10194_v33 = vsel %vm408_vm1, %v16318_v54, %v16308_v24  ;;  %v10197_v3 = vsel %vm408_vm1, %v16319_v15, %v16313_v47  ;;  %14570 = vmatprep.mubr.msk.f32.mxu0 %vm16852_vm6, %v20815_v30 }
 0x649   : > { %v20769_v29 = vpop.permute.xlu0 %16326  ;;  %v10201_v12 = vsel %vm408_vm1, %v16323_v48, %v16324_v18  ;;  %v14814_v39 = vpack.c.bf16 %v10197_v3, %v10194_v33 }
 0x64a   : > { %v16329_v35 = vunpack.i.h.bf16 %v20769_v29  ;;  %v16328_v27 = vunpack.i.l.bf16 %v20769_v29  ;;  %14436 = vmatmul.mubr.msk.f32.vlgmr.msra.gmra.mrb[18].mxu1 %vm310_vm5, %v13496_v36  ;;  %v16332_v45 = vpop.permute.xlu1 %16331 }
 0x64b   : > { %14811 = vmatpush1.bf16.msra.mxu1 %v14810_v11  ;;  %v16334_v6 = vunpack.i.h.bf16 %v16332_v45  ;;  %v16333_v22 = vunpack.i.l.bf16 %v16332_v45  ;;  %14438 = vmatprep.mubr.msk.f32.mxu1 %vm310_vm5, %v13497_v20 }
 0x64c   : > { %14813 = vmatprep.subr.bf16.mxu1 %v14812_v7  ;;  %v10204_v34 = vsel %vm408_vm1, %v16328_v27, %v16329_v35 }
 0x64d   : > { %v20783_v5 = vpop.permute.xlu0 %16336  ;;  %v14816_v25 = vpack.c.bf16 %v10204_v34, %v10201_v12  ;;  %v10203_v10 = vsel %vm408_vm1, %v16334_v6, %v16328_v27  ;;  %v10200_v58 = vsel %vm408_vm1, %v16333_v22, %v16323_v48 }
 0x64e   : > { %v16339_v16 = vunpack.i.h.bf16 %v20783_v5  ;;  %v16338_v28 = vunpack.i.l.bf16 %v20783_v5  ;;  %v16347_v4 = vpop.permute.xlu1 %16346  ;;  %14439 = vmatmul.mubr.msk.f32.gmra.mrb[20].mxu1 %vm310_vm5, %v13498_v49  ;;  %v14818_v62 = vpack.c.bf16 %v10203_v10, %v10200_v58 }
 0x64f   : > { %14815 = vmatpush1.bf16.msra.mxu1 %v14814_v39  ;;  %v16349_v0 = vunpack.i.h.bf16 %v16347_v4  ;;  %v16348_v41 = vunpack.i.l.bf16 %v16347_v4  ;;  %10312 = vmatprep.mubr.f32.mxu1 %v20280_v46 }
 0x650   : > { %14817 = vmatprep.subr.bf16.mxu1 %v14816_v25  ;;  %v10207_v60 = vsel %vm408_vm1, %v16338_v28, %v16339_v16 }
 0x651   : > { %v16342_v36 = vpop.permute.xlu0 %16341  ;;  %v10210_v32 = vsel %vm408_vm1, %v16348_v41, %v16349_v0 }
 0x652   : > { %v16344_v53 = vunpack.i.h.bf16 %v16342_v36  ;;  %v16343_v37 = vunpack.i.l.bf16 %v16342_v36  ;;  %v16352_v42 = vpop.permute.xlu1 %16351  ;;  %v14820_v20 = vpack.c.bf16 %v10210_v32, %v10207_v60 }
 0x653   : > { %14819 = vmatpush1.bf16.msra.mxu1 %v14818_v62  ;;  %v16354_v26 = vunpack.i.h.bf16 %v16352_v42  ;;  %v16353_v9 = vunpack.i.l.bf16 %v16352_v42 }
 0x654   : > { %v10206_v55 = vsel %vm408_vm1, %v16343_v37, %v16338_v28  ;;  %v10209_v46 = vsel %vm408_vm1, %v16344_v53, %v16348_v41  ;;  %14821 = vmatprep.subr.bf16.mxu1 %v14820_v20 }
 0x655   : > { %v16357_v21 = vpop.permute.xlu0 %16356  ;;  %v14822_v17 = vpack.c.bf16 %v10209_v46, %v10206_v55  ;;  %v10190_v24 = vsel %vm408_vm1, %v16294_v14, %v16353_v9  ;;  %v10193_v56 = vsel %vm408_vm1, %v16299_v23, %v16354_v26 }
 0x656   : > { %v16359_v52 = vunpack.i.h.bf16 %v16357_v21  ;;  %v16358_v47 = vunpack.i.l.bf16 %v16357_v21  ;;  %v16362_v49 = vpop.permute.xlu1 %16361  ;;  %v14824_v43 = vpack.c.bf16 %v10193_v56, %v10190_v24 }
 0x657   : > { %14823 = vmatpush1.bf16.msra.mxu1 %v14822_v17  ;;  %v16364_v61 = vunpack.i.h.bf16 %v16362_v49  ;;  %v16363_v19 = vunpack.i.l.bf16 %v16362_v49 }
 0x658   : > { %14825 = vmatprep.subr.bf16.mxu1 %v14824_v43  ;;  %v10196_v50 = vsel %vm408_vm1, %v16309_v1, %v16358_v47  ;;  %v10199_v44 = vsel %vm408_vm1, %v16314_v2, %v16359_v52 }
 0x659   : > { %v16367_v23 = vpop.permute.xlu0 %16366  ;;  %v14828_v14 = vpack.c.bf16 %v10199_v44, %v10196_v50  ;;  %v10202_v1 = vsel %vm408_vm1, %v16324_v18, %v16363_v19  ;;  %v10205_v51 = vsel %vm408_vm1, %v16329_v35, %v16364_v61 }
 0x65a   : > { %13511 = vmatmul.mubr.msk.f32.vlgmr.msra.gmra.mrb[10].mxu1 %vm310_vm5, %v13507_v8  ;;  %v20813_v38 = vpop.permute.xlu1 %16371  ;;  %v16369_v15 = vunpack.i.h.bf16 %v16367_v23  ;;  %v16368_v54 = vunpack.i.l.bf16 %v16367_v23  ;;  %v14832_v7 = vpack.c.bf16 %v10205_v51, %v10202_v1 }
 0x65b   : > { %14827 = vmatpush3.bf16.msra.mxu1 %v14824_v43  ;;  %10318 = vmatprep.mubr.f32.mxu1 %v20815_v30  ;;  %v16374_v33 = vunpack.i.h.bf16 %v20813_v38  ;;  %v16373_v35 = vunpack.i.l.bf16 %v20813_v38 }
 0x65c   : > { %14829 = vmatprep.subr.bf16.mxu1 %v14828_v14  ;;  %v10208_v18 = vsel %vm408_vm1, %v16339_v16, %v16368_v54  ;;  %v10211_v29 = vsel %vm408_vm1, %v16349_v0, %v16369_v15  ;;  %v13510_v16 = vld [vmem:[%s21452_s4 + $0xf8] sm:$0xff] }
 0x65d   : > { %v20827_v2 = vpop.permute.xlu0 %16376  ;;  %v14836_v34 = vpack.c.bf16 %v10211_v29, %v10208_v18  ;;  %v10504_v28 = vsel %vm5564_vm3, %v16373_v35, %v16374_v33 }
 0x65e   : > { %v16379_v13 = vunpack.i.h.bf16 %v20827_v2  ;;  %v16378_v48 = vunpack.i.l.bf16 %v20827_v2  ;;  %13512 = vmatmul.mubr.msk.f32.gmra.mrb[12].mxu1 %vm310_vm5, %v13508_v31  ;;  %v16382_v11 = vpop.permute.xlu1 %16381 }
 0x65f   : > { %14831 = vmatpush3.bf16.msra.mxu1 %v14828_v14  ;;  %10324 = vmatprep.mubr.f32.mxu1 %v20815_v30  ;;  %v16384_v3 = vunpack.i.h.bf16 %v16382_v11  ;;  %v16383_v45 = vunpack.i.l.bf16 %v16382_v11 }
 0x660   : > { %14833 = vmatprep.subr.bf16.mxu1 %v14832_v7  ;;  %v10507_v5 = vsel %vm5564_vm3, %v16378_v48, %v16379_v13 }
 0x661   : > { %v20842_v27 = vpop.permute.xlu0 %16386  ;;  %v10506_v58 = vsel %vm5564_vm3, %v16384_v3, %v16378_v48  ;;  %v10503_v4 = vsel %vm5564_vm3, %v16383_v45, %v16373_v35  ;;  %v14840_v0 = vpack.c.bf16 %v10507_v5, %v10504_v28 }
 0x662   : > { %v16389_v6 = vunpack.i.h.bf16 %v20842_v27  ;;  %v16388_v22 = vunpack.i.l.bf16 %v20842_v27  ;;  %13513 = vmatmul.mubr.msk.f32.gmra.mrb[14].mxu1 %vm310_vm5, %v13509_v63  ;;  %v20847_v12 = vpop.permute.xlu1 %16391  ;;  %v14842_v20 = vpack.c.bf16 %v10506_v58, %v10503_v4 }
 0x663   : > { %14835 = vmatpush3.bf16.msra.mxu1 %v14832_v7  ;;  %v16394_v39 = vunpack.i.h.bf16 %v20847_v12  ;;  %v16393_v25 = vunpack.i.l.bf16 %v20847_v12  ;;  %10330 = vmatprep.mubr.f32.mxu1 %v20815_v30 }
 0x664   : > { %14837 = vmatprep.subr.bf16.mxu1 %v14836_v34  ;;  %v10510_v62 = vsel %vm5564_vm3, %v16388_v22, %v16389_v6 }
 0x665   : > { %v16397_v10 = vpop.permute.xlu0 %16396  ;;  %v10513_v32 = vsel %vm5564_vm3, %v16393_v25, %v16394_v39 }
 0x666   : > { %v16399_v41 = vunpack.i.h.bf16 %v16397_v10  ;;  %v16398_v60 = vunpack.i.l.bf16 %v16397_v10  ;;  %13514 = vmatmul.mubr.msk.f32.gmra.mrb[16].mxu1 %vm310_vm5, %v13510_v16  ;;  %v20864_v36 = vpop.permute.xlu1 %16401  ;;  %v14844_v26 = vpack.c.bf16 %v10513_v32, %v10510_v62  ;;  %v13520_v62 = vld [vmem:[%s21452_s4 + $0x108] sm:$0xff] }
 0x667   : > { %14839 = vmatpush3.bf16.msra.mxu1 %v14836_v34  ;;  %14457 = vmatprep.mubr.msk.f32.mxu1 %vm310_vm5, %v13507_v8  ;;  %v16404_v53 = vunpack.i.h.bf16 %v20864_v36  ;;  %v16403_v37 = vunpack.i.l.bf16 %v20864_v36 }
 0x668   : > { %14841 = vmatprep.subr.bf16.mxu1 %v14840_v0  ;;  %v10509_v9 = vsel %vm5564_vm3, %v16398_v60, %v16388_v22  ;;  %v10512_v21 = vsel %vm5564_vm3, %v16399_v41, %v16393_v25  ;;  %v13519_v0 = vld [vmem:[%s21452_s4 + $0x100] sm:$0xff] }
 0x669   : > { %v20875_v42 = vpop.permute.xlu0 %16406  ;;  %v10516_v52 = vsel %vm5564_vm3, %v16403_v37, %v16404_v53  ;;  %v14846_v43 = vpack.c.bf16 %v10512_v21, %v10509_v9 }
 0x66a   : > { %v16409_v55 = vunpack.i.h.bf16 %v20875_v42  ;;  %v16408_v46 = vunpack.i.l.bf16 %v20875_v42  ;;  %14458 = vmatmul.mubr.msk.f32.vlgmr.msra.gmra.mrb[18].mxu1 %vm310_vm5, %v13508_v31  ;;  %v16412_v17 = vpop.permute.xlu1 %16411 }
 0x66b   : > { %14843 = vmatpush1.bf16.msra.mxu1 %v14842_v20  ;;  %v16414_v24 = vunpack.i.h.bf16 %v16412_v17  ;;  %v16413_v56 = vunpack.i.l.bf16 %v16412_v17  ;;  %14460 = vmatprep.mubr.msk.f32.mxu1 %vm310_vm5, %v13509_v63 }
 0x66c   : > { %14845 = vmatprep.subr.bf16.mxu1 %v14844_v26  ;;  %v10519_v47 = vsel %vm5564_vm3, %v16408_v46, %v16409_v55 }
 0x66d   : > { %v16417_v49 = vpop.permute.xlu0 %16416  ;;  %v14848_v61 = vpack.c.bf16 %v10519_v47, %v10516_v52  ;;  %v10518_v50 = vsel %vm5564_vm3, %v16414_v24, %v16408_v46  ;;  %v10515_v44 = vsel %vm5564_vm3, %v16413_v56, %v16403_v37  ;;  %v13522_v37 = vld [vmem:[%s21452_s4 + $0x118] sm:$0xff] }
 0x66e   : > { %v16419_v19 = vunpack.i.h.bf16 %v16417_v49  ;;  %v16418_v8 = vunpack.i.l.bf16 %v16417_v49  ;;  %v16427_v23 = vpop.permute.xlu1 %16426  ;;  %14461 = vmatmul.mubr.msk.f32.gmra.mrb[20].mxu1 %vm310_vm5, %v13510_v16  ;;  %v14850_v1 = vpack.c.bf16 %v10518_v50, %v10515_v44 }
 0x66f   : > { %14847 = vmatpush1.bf16.msra.mxu1 %v14846_v43  ;;  %v16429_v14 = vunpack.i.h.bf16 %v16427_v23  ;;  %v16428_v15 = vunpack.i.l.bf16 %v16427_v23  ;;  %10627 = vmatprep.mubr.f32.mxu1 %v20815_v30 }
 0x670   : > { %14849 = vmatprep.subr.bf16.mxu1 %v14848_v61  ;;  %v10522_v54 = vsel %vm5564_vm3, %v16418_v8, %v16419_v19 }
 0x671   : > { %v16422_v31 = vpop.permute.xlu0 %16421  ;;  %v10525_v51 = vsel %vm5564_vm3, %v16428_v15, %v16429_v14 }
 0x672   : > { %v16424_v48 = vunpack.i.h.bf16 %v16422_v31  ;;  %v16423_v11 = vunpack.i.l.bf16 %v16422_v31  ;;  %v16432_v7 = vpop.permute.xlu1 %16431  ;;  %v14852_v63 = vpack.c.bf16 %v10525_v51, %v10522_v54 }
 0x673   : > { %14851 = vmatpush1.bf16.msra.mxu1 %v14850_v1  ;;  %v16434_v18 = vunpack.i.h.bf16 %v16432_v7  ;;  %v16433_v29 = vunpack.i.l.bf16 %v16432_v7 }
 0x674   : > { %v10521_v35 = vsel %vm5564_vm3, %v16423_v11, %v16418_v8  ;;  %v10524_v3 = vsel %vm5564_vm3, %v16424_v48, %v16428_v15  ;;  %14853 = vmatprep.subr.bf16.mxu1 %v14852_v63 }
 0x675   : > { %v16437_v45 = vpop.permute.xlu0 %16436  ;;  %v14854_v22 = vpack.c.bf16 %v10524_v3, %v10521_v35  ;;  %v10505_v34 = vsel %vm5564_vm3, %v16374_v33, %v16433_v29  ;;  %v10508_v5 = vsel %vm5564_vm3, %v16379_v13, %v16434_v18 }
 0x676   : > { %v16439_v25 = vunpack.i.h.bf16 %v16437_v45  ;;  %v16438_v16 = vunpack.i.l.bf16 %v16437_v45  ;;  %v16442_v28 = vpop.permute.xlu1 %16441  ;;  %v14856_v10 = vpack.c.bf16 %v10508_v5, %v10505_v34 }
 0x677   : > { %14855 = vmatpush1.bf16.msra.mxu1 %v14854_v22  ;;  %v16444_v58 = vunpack.i.h.bf16 %v16442_v28  ;;  %v16443_v4 = vunpack.i.l.bf16 %v16442_v28 }
 0x678   : > { %14857 = vmatprep.subr.bf16.mxu1 %v14856_v10  ;;  %v10511_v38 = vsel %vm5564_vm3, %v16389_v6, %v16438_v16  ;;  %v10514_v2 = vsel %vm5564_vm3, %v16394_v39, %v16439_v25  ;;  %v13521_v39 = vld [vmem:[%s21452_s4 + $0x110] sm:$0xff] }
 0x679   : > { %v16447_v13 = vpop.permute.xlu0 %16446  ;;  %v14860_v33 = vpack.c.bf16 %v10514_v2, %v10511_v38  ;;  %v10517_v27 = vsel %vm5564_vm3, %v16404_v53, %v16443_v4  ;;  %v10520_v6 = vsel %vm5564_vm3, %v16409_v55, %v16444_v58 }
 0x67a   : > { %13523 = vmatmul.mubr.msk.f32.vlgmr.msra.gmra.mrb[10].mxu1 %vm310_vm5, %v13519_v0  ;;  %v16449_v41 = vunpack.i.h.bf16 %v16447_v13  ;;  %v16448_v60 = vunpack.i.l.bf16 %v16447_v13  ;;  %v14864_v12 = vpack.c.bf16 %v10520_v6, %v10517_v27 }
 0x67b   : > { %14859 = vmatpush3.bf16.msra.mxu1 %v14856_v10  ;;  %10633 = vmatprep.mubr.f32.mxu1 %v20815_v30 }
 0x67c   : > { %14861 = vmatprep.subr.bf16.mxu1 %v14860_v33  ;;  %v10523_v32 = vsel %vm5564_vm3, %v16419_v19, %v16448_v60  ;;  %v10526_v36 = vsel %vm5564_vm3, %v16429_v14, %v16449_v41 }
 0x67d   : > { %v14868_v53 = vpack.c.bf16 %v10526_v36, %v10523_v32 }
 0x67e   : > { %13524 = vmatmul.mubr.msk.f32.gmra.mrb[12].mxu1 %vm310_vm5, %v13520_v62 }
 0x67f   : > { %14863 = vmatpush3.bf16.msra.mxu1 %v14860_v33  ;;  %10639 = vmatprep.mubr.f32.mxu1 %v20815_v30 }
 0x680   : > { %14865 = vmatprep.subr.bf16.mxu1 %v14864_v12 }
 0x682   : > { %13525 = vmatmul.mubr.msk.f32.gmra.mrb[14].mxu1 %vm310_vm5, %v13521_v39 }
 0x683   : > { %14867 = vmatpush3.bf16.msra.mxu1 %v14864_v12  ;;  %10645 = vmatprep.mubr.f32.mxu1 %v20815_v30 }
 0x684   : > { %14869 = vmatprep.subr.bf16.mxu1 %v14868_v53 }
 0x686   : > { %13526 = vmatmul.mubr.msk.f32.gmra.mrb[16].mxu1 %vm310_vm5, %v13522_v37 }
 0x687   : > { %14871 = vmatpush3.bf16.msra.mxu1 %v14868_v53  ;;  %14479 = vmatprep.mubr.msk.f32.mxu1 %vm310_vm5, %v13519_v0  ;;  %v10756_v42 = vpop.permute.xlu1 %10755 }
 0x68a   : > { %14480 = vmatmul.mubr.msk.f32.vlgmr.msra.gmra.mrb[18].mxu1 %vm310_vm5, %v13520_v62  ;;  %v10761_v21 = vpop.permute.xlu0 %10760 }
 0x68b   : > { %14482 = vmatprep.mubr.msk.f32.mxu1 %vm310_vm5, %v13521_v39  ;;  %v10766_v19 = vpop.permute.xlu1 %10765 }
 0x68e   : > { %14483 = vmatmul.mubr.msk.f32.gmra.mrb[20].mxu1 %vm310_vm5, %v13522_v37  ;;  %v10771_v1 = vpop.permute.xlu0 %10770 }
 0x68f   : > { %11043 = vmatprep.mubr.f32.mxu1 %v20815_v30 }
 0x74d   : > { %v10629_v20 = vpop.f32.mrb[10].mxu1 }
 0x74e   : > { %v10773_v26 = vadd.f32 %v10756_v42, %v10629_v20  ;;  %v10631_v9 = vpop.f32.mrb[11].mxu1 }
 0x74f   : > { %v10774_v55 = vadd.f32 %v10756_v42, %v10631_v9 }
 0x750   : > { %v10785_v46 = vmax.f32 %v10773_v26, 0.0 }
 0x751   : > { %v10786_v17 = vmax.f32 %v10774_v55, 0.0  ;;  %v10635_v24 = vpop.f32.mrb[12].mxu1 }
 0x752   : > { %v10797_v56 = vmul.f32 %v10785_v46, %v19503_v40  ;;  %v10776_v52 = vadd.f32 %v10761_v21, %v10635_v24  ;;  %v10637_v47 = vpop.f32.mrb[13].mxu1 }
 0x753   : > { %v10798_v49 = vmul.f32 %v10786_v17, %v19507_v57  ;;  %v10777_v43 = vadd.f32 %v10761_v21, %v10637_v47 }
 0x754   : > { %v10788_v61 = vmax.f32 %v10776_v52, 0.0  ;;  %10821 = vrot.lane.b32.xlu1 %v10797_v56, %s16850_s26 }
 0x755   : > { %v10789_v8 = vmax.f32 %v10777_v43, 0.0  ;;  %10823 = vrot.lane.b32.xlu0 %v10798_v49, %s16850_s26  ;;  %v10641_v50 = vpop.f32.mrb[14].mxu1 }
 0x756   : > { %v10800_v44 = vmul.f32 %v10788_v61, %v19503_v40  ;;  %v10779_v23 = vadd.f32 %v10766_v19, %v10641_v50  ;;  %v10643_v14 = vpop.f32.mrb[15].mxu1 }
 0x757   : > { %v10801_v15 = vmul.f32 %v10789_v8, %v19507_v57  ;;  %v10780_v54 = vadd.f32 %v10766_v19, %v10643_v14 }
 0x758   : > { %v10791_v31 = vmax.f32 %v10779_v23, 0.0 }
 0x759   : > { %v10792_v51 = vmax.f32 %v10780_v54, 0.0  ;;  %10827 = vrot.lane.b32.xlu0 %v10800_v44, %s16850_s26  ;;  %10829 = vrot.lane.b32.xlu1 %v10801_v15, %s16850_s26  ;;  %v10647_v48 = vpop.f32.mrb[16].mxu1 }
 0x75a   : > { %v10803_v11 = vmul.f32 %v10791_v31, %v19503_v40  ;;  %v10782_v7 = vadd.f32 %v10771_v1, %v10647_v48  ;;  %v10649_v63 = vpop.f32.mrb[17].mxu1 }
 0x75b   : > { %v10804_v18 = vmul.f32 %v10792_v51, %v19507_v57  ;;  %v10783_v4 = vadd.f32 %v10771_v1, %v10649_v63  ;;  %v16851_v51 = vmov 0.0|0.0  }
 0x75c   : > { %v10794_v29 = vmax.f32 %v10782_v7, 0.0  ;;  %14978 = vmatprep.subr.bf16.mxu0 %v16851_v51 }
 0x75d   : > { %10833 = vrot.lane.b32.xlu1 %v10803_v11, %s16850_s26  ;;  %10835 = vrot.lane.b32.xlu0 %v10804_v18, %s16850_s26  ;;  %v14481_v35 = vpop.f32.mrb[18].mxu1  ;;  %v10795_v33 = vmax.f32 %v10783_v4, 0.0 }
 0x75e   : > { %v10806_v3 = vmul.f32 %v10794_v29, %v19503_v40  ;;  %v10778_v45 = vadd.f32 %v14481_v35, %v10761_v21  ;;  %v10718_v22 = vpop.f32.mrb[19].mxu1 }
 0x75f   : > { %v10775_v34 = vadd.f32 %v10756_v42, %v10718_v22  ;;  %v10807_v60 = vmul.f32 %v10795_v33, %v19507_v57 }
 0x760   : > { %v10790_v5 = vmax.f32 %v10778_v45, 0.0 }
 0x761   : > { %v10787_v25 = vmax.f32 %v10775_v34, 0.0  ;;  %10839 = vrot.lane.b32.xlu0 %v10806_v3, %s16850_s26  ;;  %v14484_v16 = vpop.f32.mrb[20].mxu1 }
 0x762   : > { %v10802_v28 = vmul.f32 %v10790_v5, %v19331_v59  ;;  %v10784_v10 = vadd.f32 %v14484_v16, %v10771_v1  ;;  %v10728_v58 = vpop.f32.mrb[21].mxu1 }
 0x763   : > { %v10799_v0 = vmul.f32 %v10787_v25, %v19331_v59  ;;  %v10781_v38 = vadd.f32 %v10766_v19, %v10728_v58 }
 0x764   : > { %v10796_v2 = vmax.f32 %v10784_v10, 0.0 }
 0x765   : > { %v10793_v13 = vmax.f32 %v10781_v38, 0.0  ;;  %10831 = vrot.lane.b32.xlu0 %v10802_v28, %s16850_s26  ;;  %10825 = vrot.lane.b32.xlu1 %v10799_v0, %s16850_s26 }
 0x766   : > { %v10808_v40 = vmul.f32 %v10796_v2, %v19331_v59 }
 0x767   : > { %v10805_v41 = vmul.f32 %v10793_v13, %v19331_v59 }
 0x769   : > { %10843 = vrot.lane.b32.xlu0 %v10808_v40, %s16850_s26  ;;  %10837 = vrot.lane.b32.xlu1 %v10805_v41, %s16850_s26 }
 0x76d   : > { %10841 = vrot.lane.b32.xlu1 %v10807_v60, %s16850_s26 }
 0x7c6   : > { %v10822_v62 = vpop.permute.xlu1 %10821 }
 0x7c7   : > { %10869 = vst.msk [vmem:[#allocation3] sm:$0xff] %vm7842_vm4, %v10822_v62  ;;  %v10824_v27 = vpop.permute.xlu0 %10823 }
 0x7c8   : > { %v10845_v6 = vsel %vm7793_vm0, %v10822_v62, %v10824_v27 }
 0x7cb   : > { %v10828_v12 = vpop.permute.xlu0 %10827  ;;  %v10830_v39 = vpop.permute.xlu1 %10829 }
 0x7cc   : > { %10873 = vst.msk [vmem:[#allocation3 + $0x28] sm:$0xff] %vm7842_vm4, %v10828_v12  ;;  %v10847_v59 = vsel %vm7793_vm0, %v10828_v12, %v10830_v39 }
 0x7ce   : > { %v10886_v37 = vld [vmem:[#allocation3] sm:$0xff] }
 0x7cf   : > { %v10834_v32 = vpop.permute.xlu1 %10833  ;;  %v10836_v36 = vpop.permute.xlu0 %10835 }
 0x7d0   : > { %10877 = vst.msk [vmem:[#allocation3 + $0x50] sm:$0xff] %vm7842_vm4, %v10834_v32  ;;  %v10849_v57 = vsel %vm7793_vm0, %v10834_v32, %v10836_v36 }
 0x7d3   : > { %v10840_v53 = vpop.permute.xlu0 %10839  ;;  %v10890_v42 = vld [vmem:[#allocation3 + $0x28] sm:$0xff] }
 0x7d4   : > { %10881 = vst.msk [vmem:[#allocation3 + $0x78] sm:$0xff] %vm7842_vm4, %v10840_v53  ;;  %v20972_v20 = vpack.i.bf16 %v10890_v42, %v10886_v37 }
 0x7d6   : > { %16451 = vrot.lane.b32.xlu1 %v20972_v20, %s16831_s19 }
 0x7d7   : > { %v10832_v26 = vpop.permute.xlu0 %10831  ;;  %v10826_v9 = vpop.permute.xlu1 %10825  ;;  %v10894_v24 = vld [vmem:[#allocation3 + $0x50] sm:$0xff] }
 0x7d8   : > { %v10848_v55 = vsel %vm7793_vm0, %v10830_v39, %v10832_v26  ;;  %10876 = vst.msk [vmem:[#allocation3 + $0x40] sm:$0xff] %vm7793_vm0, %v10832_v26  ;;  %v10846_v46 = vsel %vm7793_vm0, %v10824_v27, %v10826_v9  ;;  %10872 = vst.msk [vmem:[#allocation3 + $0x18] sm:$0xff] %vm7793_vm0, %v10826_v9 }
 0x7d9   : > { %v20991_v44 = vpack.i.bf16 %v10848_v55, %v10847_v59  ;;  %v20997_v15 = vpack.i.bf16 %v10846_v46, %v10845_v6 }
 0x7db   : > { %v10844_v21 = vpop.permute.xlu0 %10843  ;;  %v10838_v17 = vpop.permute.xlu1 %10837  ;;  %v10898_v56 = vld [vmem:[#allocation3 + $0x78] sm:$0xff] }
 0x7dc   : > { %10884 = vst.msk [vmem:[#allocation3 + $0x90] sm:$0xff] %vm7793_vm0, %v10844_v21  ;;  %v10850_v52 = vsel %vm7793_vm0, %v10836_v36, %v10838_v17  ;;  %10880 = vst.msk [vmem:[#allocation3 + $0x68] sm:$0xff] %vm7793_vm0, %v10838_v17  ;;  %v20983_v47 = vpack.i.bf16 %v10898_v56, %v10894_v24 }
 0x7dd   : > { %v21011_v1 = vpack.i.bf16 %v10850_v52, %v10849_v57 }
 0x7de   : > { %16456 = vrot.lane.b32.xlu0 %v20983_v47, %s16831_s19 }
 0x7df   : > { %v10842_v49 = vpop.permute.xlu1 %10841  ;;  %v10889_v43 = vld [vmem:[#allocation3 + $0x18] sm:$0xff]  ;;  %v10893_v61 = vld [vmem:[#allocation3 + $0x40] sm:$0xff] }
 0x7e0   : > { %v10851_v19 = vsel %vm7793_vm0, %v10840_v53, %v10842_v49  ;;  %v10852_v8 = vsel %vm7793_vm0, %v10842_v49, %v10844_v21  ;;  %v20989_v50 = vpack.i.bf16 %v10893_v61, %v10889_v43  ;;  %v13531_v21 = vld [vmem:[%s21454_s6 + $0x4] sm:$0xf]  ;;  %v12755_v61 = vld [vmem:[%s21455_s7] sm:$0xf] }
 0x7e1   : > { %v21009_v31 = vpack.i.bf16 %v10852_v8, %v10851_v19 }
 0x7e2   : > { %16466 = vrot.lane.b32.xlu1 %v20989_v50, %s16831_s19  ;;  %16461 = vrot.lane.b32.xlu0 %v20991_v44, %s16831_s19 }
 0x7e3   : > { %v10897_v23 = vld [vmem:[#allocation3 + $0x68] sm:$0xff]  ;;  %v10901_v14 = vld [vmem:[#allocation3 + $0x90] sm:$0xff] }
 0x7e4   : > { %v20999_v54 = vpack.i.bf16 %v10901_v14, %v10897_v23 }
 0x7e6   : > { %16476 = vrot.lane.b32.xlu1 %v20997_v15, %s16831_s19  ;;  %16471 = vrot.lane.b32.xlu0 %v20991_v44, %s16830_s18 }
 0x7ea   : > { %16481 = vrot.lane.b32.xlu1 %v20997_v15, %s16830_s18  ;;  %16496 = vrot.lane.b32.xlu0 %v20999_v54, %s16831_s19 }
 0x7ee   : > { %16486 = vrot.lane.b32.xlu1 %v21009_v31, %s16831_s19  ;;  %16506 = vrot.lane.b32.xlu0 %v21011_v1, %s16831_s19 }
 0x7f2   : > { %16491 = vrot.lane.b32.xlu1 %v20972_v20, %s16830_s18  ;;  %16511 = vrot.lane.b32.xlu0 %v20983_v47, %s16830_s18 }
 0x7f6   : > { %16501 = vrot.lane.b32.xlu1 %v21009_v31, %s16830_s18  ;;  %16521 = vrot.lane.b32.xlu0 %v20999_v54, %s16830_s18 }
 0x7fa   : > { %16516 = vrot.lane.b32.xlu1 %v20989_v50, %s16830_s18  ;;  %16531 = vrot.lane.b32.xlu0 %v20991_v44, %s16832_s20 }
 0x7fe   : > { %16526 = vrot.lane.b32.xlu1 %v20997_v15, %s16832_s20  ;;  %16546 = vrot.lane.b32.xlu0 %v21011_v1, %s16830_s18  ;;  %s15689_s18 = smul.u32 12, %s21619_s28 }
 0x802   : > { %16536 = vrot.lane.b32.xlu1 %v20972_v20, %s16832_s20  ;;  %16551 = vrot.lane.b32.xlu0 %v20983_v47, %s16832_s20 }
 0x806   : > { %16541 = vrot.lane.b32.xlu1 %v21009_v31, %s16832_s20  ;;  %16561 = vrot.lane.b32.xlu0 %v20999_v54, %s16832_s20 }
 0x80a   : > { %16556 = vrot.lane.b32.xlu1 %v20989_v50, %s16832_s20  ;;  %16571 = vrot.lane.b32.xlu0 %v20991_v44, %s16835_s23 }
 0x80e   : > { %16566 = vrot.lane.b32.xlu1 %v20997_v15, %s16835_s23  ;;  %16586 = vrot.lane.b32.xlu0 %v21011_v1, %s16832_s20 }
 0x812   : > { %16576 = vrot.lane.b32.xlu1 %v20972_v20, %s16835_s23  ;;  %16591 = vrot.lane.b32.xlu0 %v20983_v47, %s16835_s23 }
 0x816   : > { %16581 = vrot.lane.b32.xlu1 %v21009_v31, %s16835_s23  ;;  %16601 = vrot.lane.b32.xlu0 %v20999_v54, %s16835_s23 }
 0x81a   : > { %16596 = vrot.lane.b32.xlu1 %v20989_v50, %s16835_s23  ;;  %16611 = vrot.lane.b32.xlu0 %v20991_v44, %s16836_s24 }
 0x81e   : > { %16606 = vrot.lane.b32.xlu1 %v20997_v15, %s16836_s24  ;;  %16626 = vrot.lane.b32.xlu0 %v21011_v1, %s16835_s23  ;;  %s305_s23 = scalar_lea.vmem %s21456_s8, %s15689_s18 }
 0x822   : > { %16616 = vrot.lane.b32.xlu1 %v20972_v20, %s16836_s24  ;;  %16631 = vrot.lane.b32.xlu0 %v20983_v47, %s16836_s24 }
 0x826   : > { %16621 = vrot.lane.b32.xlu1 %v21009_v31, %s16836_s24  ;;  %16641 = vrot.lane.b32.xlu0 %v20999_v54, %s16836_s24 }
 0x82a   : > { %16636 = vrot.lane.b32.xlu1 %v20989_v50, %s16836_s24  ;;  %16651 = vrot.lane.b32.xlu0 %v20991_v44, %s16837_s25 }
 0x82e   : > { %16646 = vrot.lane.b32.xlu1 %v20997_v15, %s16837_s25  ;;  %16666 = vrot.lane.b32.xlu0 %v21011_v1, %s16836_s24 }
 0x832   : > { %16656 = vrot.lane.b32.xlu1 %v20972_v20, %s16837_s25  ;;  %16671 = vrot.lane.b32.xlu0 %v20983_v47, %s16837_s25 }
 0x836   : > { %16661 = vrot.lane.b32.xlu1 %v21009_v31, %s16837_s25  ;;  %16681 = vrot.lane.b32.xlu0 %v20999_v54, %s16837_s25 }
 0x83a   : > { %16676 = vrot.lane.b32.xlu1 %v20989_v50, %s16837_s25  ;;  %16691 = vrot.lane.b32.xlu0 %v20991_v44, %s16840_s30 }
 0x83e   : > { %16686 = vrot.lane.b32.xlu1 %v20997_v15, %s16840_s30  ;;  %16706 = vrot.lane.b32.xlu0 %v21011_v1, %s16837_s25 }
 0x842   : > { %16696 = vrot.lane.b32.xlu1 %v20972_v20, %s16840_s30  ;;  %16711 = vrot.lane.b32.xlu0 %v20983_v47, %s16840_s30 }
 0x846   : > { %16701 = vrot.lane.b32.xlu1 %v21009_v31, %s16840_s30  ;;  %16721 = vrot.lane.b32.xlu0 %v20999_v54, %s16840_s30 }
 0x848   : > { %v16452_v48 = vpop.permute.xlu1 %16451 }
 0x849   : > { %v16454_v45 = vunpack.i.h.bf16 %v16452_v48  ;;  %v16453_v22 = vunpack.i.l.bf16 %v16452_v48 }
 0x84a   : > { %16716 = vrot.lane.b32.xlu1 %v20989_v50, %s16840_s30  ;;  %16731 = vrot.lane.b32.xlu0 %v20991_v44, %s16841_s16 }
 0x84e   : > { %16726 = vrot.lane.b32.xlu1 %v20997_v15, %s16841_s16  ;;  %16741 = vrot.lane.b32.xlu0 %v21011_v1, %s16840_s30 }
 0x850   : > { %v16457_v11 = vpop.permute.xlu0 %16456 }
 0x851   : > { %v16459_v2 = vunpack.i.h.bf16 %v16457_v11  ;;  %v16458_v13 = vunpack.i.l.bf16 %v16457_v11 }
 0x852   : > { %16736 = vrot.lane.b32.xlu1 %v20972_v20, %s16841_s16  ;;  %16746 = vrot.lane.b32.xlu0 %v20989_v50, %s16841_s16 }
 0x854   : > { %v16467_v7 = vpop.permute.xlu1 %16466  ;;  %v16462_v63 = vpop.permute.xlu0 %16461 }
 0x855   : > { %v16464_v18 = vunpack.i.h.bf16 %v16462_v63  ;;  %v16463_v29 = vunpack.i.l.bf16 %v16462_v63  ;;  %v16469_v53 = vunpack.i.h.bf16 %v16467_v7  ;;  %v16468_v37 = vunpack.i.l.bf16 %v16467_v7 }
 0x856   : > { %16756 = vrot.lane.b32.xlu1 %v20983_v47, %s16841_s16  ;;  %16751 = vrot.lane.b32.xlu0 %v21009_v31, %s16841_s16 }
 0x857   : > { %v10955_v25 = vsel %vm2375_vm8, %v16454_v45, %v16463_v29  ;;  %v10956_v10 = vsel %vm2375_vm8, %v16463_v29, %v16464_v18  ;;  %v10957_v17 = vsel %vm2375_vm8, %v16464_v18, %v16469_v53 }
 0x858   : > { %v16477_v35 = vpop.permute.xlu1 %16476  ;;  %v21124_v3 = vpop.permute.xlu0 %16471 }
 0x859   : > { %v16479_v34 = vunpack.i.h.bf16 %v16477_v35  ;;  %v16478_v5 = vunpack.i.l.bf16 %v16477_v35  ;;  %v16474_v49 = vunpack.i.h.bf16 %v21124_v3  ;;  %v16473_v43 = vunpack.i.l.bf16 %v21124_v3 }
 0x85a   : > { %16766 = vrot.lane.b32.xlu1 %v20997_v15, %s16842_s13  ;;  %16761 = vrot.lane.b32.xlu0 %v20999_v54, %s16841_s16 }
 0x85b   : > { %v10952_v16 = vsel %vm2375_vm8, %v16453_v22, %v16478_v5  ;;  %v10953_v28 = vsel %vm2375_vm8, %v16478_v5, %v16479_v34 }
 0x85c   : > { %v14874_v58 = vpack.c.bf16 %v10955_v25, %v10952_v16  ;;  %v21134_v4 = vpop.permute.xlu1 %16481  ;;  %v16497_v0 = vpop.permute.xlu0 %16496  ;;  %v14872_v38 = vpack.c.bf16 %v10956_v10, %v10953_v28 }
 0x85d   : > { %v16484_v55 = vunpack.i.h.bf16 %v21134_v4  ;;  %v16483_v46 = vunpack.i.l.bf16 %v21134_v4  ;;  %v16499_v24 = vunpack.i.h.bf16 %v16497_v0  ;;  %v16498_v56 = vunpack.i.l.bf16 %v16497_v0 }
 0x85e   : > { %16776 = vrot.lane.b32.xlu1 %v21011_v1, %s16841_s16  ;;  %14873 = vmatprep.subr.bf16.mxu1 %v14872_v38 }
 0x85f   : > { %16771 = vrot.lane.b32.xlu0 %v20991_v44, %s16842_s13  ;;  %14875 = vmatpush1.bf16.msra.mxu1 %v14874_v58  ;;  %v11153_v14 = vsel %vm2085_vm7, %v16483_v46, %v16484_v55 }
 0x860   : > { %v16487_v40 = vpop.permute.xlu1 %16486  ;;  %v16507_v33 = vpop.permute.xlu0 %16506 }
 0x861   : > { %v16489_v41 = vunpack.i.h.bf16 %v16487_v40  ;;  %v16488_v60 = vunpack.i.l.bf16 %v16487_v40  ;;  %v16509_v62 = vunpack.i.h.bf16 %v16507_v33  ;;  %v16508_v27 = vunpack.i.l.bf16 %v16507_v33 }
 0x862   : > { %16781 = vrot.lane.b32.xlu1 %v20972_v20, %s16842_s13  ;;  %v10954_v20 = vsel %vm2375_vm8, %v16479_v34, %v16468_v37 }
 0x863   : > { %v10961_v6 = vsel %vm2375_vm8, %v16459_v2, %v16488_v60  ;;  %v10958_v12 = vsel %vm2375_vm8, %v16458_v13, %v16508_v27  ;;  %16786 = vrot.lane.b32.xlu0 %v20989_v50, %s16842_s13  ;;  %v10959_v32 = vsel %vm2375_vm8, %v16508_v27, %v16509_v62  ;;  %v10962_v36 = vsel %vm2375_vm8, %v16488_v60, %v16489_v41 }
 0x864   : > { %v16492_v39 = vpop.permute.xlu1 %16491  ;;  %v16512_v59 = vpop.permute.xlu0 %16511  ;;  %v14878_v57 = vpack.c.bf16 %v10961_v6, %v10958_v12  ;;  %v14876_v42 = vpack.c.bf16 %v10962_v36, %v10959_v32  ;;  %v14881_v52 = vpack.c.bf16 %v10957_v17, %v10954_v20  ;;  %v10963_v19 = vsel %vm2375_vm8, %v16489_v41, %v16499_v24 }
 0x865   : > { %v10960_v8 = vsel %vm2375_vm8, %v16509_v62, %v16498_v56  ;;  %v16494_v50 = vunpack.i.h.bf16 %v16492_v39  ;;  %v16513_v29 = vunpack.i.l.bf16 %v16512_v59  ;;  %v16514_v45 = vunpack.i.h.bf16 %v16512_v59  ;;  %v10885_v62 = vld [vmem:[%s21454_s6] sm:$0xf] }
 0x866   : > { %16796 = vrot.lane.b32.xlu1 %v21011_v1, %s16842_s13  ;;  %14877 = vmatprep.subr.bf16.mxu1 %v14876_v42  ;;  %v14884_v15 = vpack.c.bf16 %v10963_v19, %v10960_v8  ;;  %v11156_v1 = vsel %vm2085_vm7, %v16473_v43, %v16474_v49 }
 0x867   : > { %16791 = vrot.lane.b32.xlu0 %v21009_v31, %s16842_s13  ;;  %14879 = vmatpush1.bf16.msra.mxu1 %v14878_v57  ;;  %v11155_v48 = vsel %vm2085_vm7, %v16494_v50, %v16473_v43  ;;  %v14886_v18 = vpack.c.bf16 %v11156_v1, %v11153_v14 }
 0x868   : > { %v21153_v26 = vpop.permute.xlu1 %16501  ;;  %v21155_v9 = vpop.permute.xlu0 %16521  ;;  %14880 = vmatprep.subr.bf16.mxu1 %v16851_v51 }
 0x869   : > { %v16503_v31 = vunpack.i.l.bf16 %v21153_v26  ;;  %v16524_v27 = vunpack.i.h.bf16 %v21155_v9  ;;  %v16523_v6 = vunpack.i.l.bf16 %v21155_v9 }
 0x86a   : > { %16801 = vrot.lane.b32.xlu1 %v20983_v47, %s16842_s13  ;;  %v16493_v47 = vunpack.i.l.bf16 %v16492_v39  ;;  %13532 = vmatmul.mubr.msk.f32.vlgmr.msra.gmra.mrb[22].mxu1 %vm3825_vm13, %v13531_v21 }
 0x86b   : > { %16806 = vrot.lane.b32.xlu0 %v20999_v54, %s16842_s13  ;;  %14882 = vmatpush3.bf16.msra.mxu1 %v14881_v52  ;;  %v16504_v54 = vunpack.i.h.bf16 %v21153_v26  ;;  %v11161_v16 = vsel %vm2085_vm7, %v16514_v45, %v16503_v31 }
 0x86c   : > { %v16517_v44 = vpop.permute.xlu1 %16516  ;;  %v21176_v23 = vpop.permute.xlu0 %16531  ;;  %14493 = vmatprep.mubr.msk.f32.mxu1 %vm16852_vm6, %v20815_v30  ;;  %14883 = vmatprep.subr.bf16.mxu1 %v16851_v51  ;;  %v11152_v11 = vsel %vm2085_vm7, %v16493_v47, %v16483_v46 }
 0x86d   : > { %v14888_v22 = vpack.c.bf16 %v11155_v48, %v11152_v11  ;;  %v11162_v25 = vsel %vm2085_vm7, %v16503_v31, %v16504_v54  ;;  %v16519_v28 = vunpack.i.h.bf16 %v16517_v44  ;;  %v16518_v10 = vunpack.i.l.bf16 %v16517_v44 }
 0x86e   : > { %12758 = vperm.xlu1 %15729, %v12755_v61   ;;  %v16534_v39 = vunpack.i.h.bf16 %v21176_v23  ;;  %v16533_v59 = vunpack.i.l.bf16 %v21176_v23  ;;  %v11163_v20 = vsel %vm2085_vm7, %v16504_v54, %v16524_v27 }
 0x86f   : > { %14885 = vmatpush3.bf16.msra.mxu1 %v14884_v15  ;;  %v11157_v2 = vsel %vm2085_vm7, %v16474_v49, %v16519_v28  ;;  %v11154_v13 = vsel %vm2085_vm7, %v16484_v55, %v16518_v10 }
 0x870   : > { %v21187_v7 = vpop.permute.xlu1 %16526  ;;  %v16547_v63 = vpop.permute.xlu0 %16546  ;;  %14887 = vmatprep.subr.bf16.mxu1 %v14886_v18  ;;  %v14895_v12 = vpack.c.bf16 %v11157_v2, %v11154_v13  ;;  %v11358_v46 = vsel %vm2665_vm9, %v16533_v59, %v16534_v39 }
 0x871   : > { %v16549_v35 = vunpack.i.h.bf16 %v16547_v63  ;;  %v16548_v3 = vunpack.i.l.bf16 %v16547_v63  ;;  %v16529_v41 = vunpack.i.h.bf16 %v21187_v7  ;;  %v16528_v60 = vunpack.i.l.bf16 %v21187_v7 }
 0x872   : > { %14494 = vmatmul.mubr.msk.f32.vlgmr.msra.gmra.mrb[24].mxu1 %vm3825_vm13, %v13531_v21 }
 0x873   : > { %v11158_v34 = vsel %vm2085_vm7, %v16513_v29, %v16548_v3  ;;  %v11159_v5 = vsel %vm2085_vm7, %v16548_v3, %v16549_v35  ;;  %14889 = vmatpush1.bf16.msra.mxu1 %v14888_v22  ;;  %11243 = vmatprep.mubr.f32.mxu1 %v20815_v30  ;;  %v11160_v32 = vsel %vm2085_vm7, %v16549_v35, %v16523_v6  ;;  %v13536_v3 = vld [vmem:[%s21454_s6 + $0x8] sm:$0xf] }
 0x874   : > { %v16537_v58 = vpop.permute.xlu1 %16536  ;;  %v16552_v4 = vpop.permute.xlu0 %16551  ;;  %v14890_v0 = vpack.c.bf16 %v11162_v25, %v11159_v5  ;;  %v14892_v38 = vpack.c.bf16 %v11161_v16, %v11158_v34  ;;  %v11355_v42 = vsel %vm2665_vm9, %v16528_v60, %v16529_v41  ;;  %v14898_v26 = vpack.c.bf16 %v11163_v20, %v11160_v32 }
 0x875   : > { %v16539_v36 = vunpack.i.h.bf16 %v16537_v58  ;;  %v16538_v57 = vunpack.i.l.bf16 %v16537_v58  ;;  %v14900_v52 = vpack.c.bf16 %v11358_v46, %v11355_v42  ;;  %v16553_v49 = vunpack.i.l.bf16 %v16552_v4 }
 0x876   : > { %14891 = vmatprep.subr.bf16.mxu1 %v14890_v0  ;;  %v16554_v19 = vunpack.i.h.bf16 %v16552_v4 }
 0x877   : > { %14893 = vmatpush1.bf16.msra.mxu1 %v14892_v38  ;;  %v11357_v21 = vsel %vm2665_vm9, %v16539_v36, %v16533_v59  ;;  %v11354_v17 = vsel %vm2665_vm9, %v16538_v57, %v16528_v60 }
 0x878   : > { %v21197_v40 = vpop.permute.xlu1 %16541  ;;  %v21199_v33 = vpop.permute.xlu0 %16561  ;;  %14894 = vmatprep.subr.bf16.mxu1 %v16851_v51  ;;  %v14902_v8 = vpack.c.bf16 %v11357_v21, %v11354_v17 }
 0x879   : > { %v16544_v9 = vunpack.i.h.bf16 %v21197_v40  ;;  %v16543_v55 = vunpack.i.l.bf16 %v21197_v40  ;;  %v16564_v45 = vunpack.i.h.bf16 %v21199_v33  ;;  %v16563_v22 = vunpack.i.l.bf16 %v21199_v33 }
 0x87a   : > { %13534 = vmatmul.mubr.msk.f32.vlgmr.msra.gmra.mrb[22].mxu1 %vm3825_vm13, %v10885_v62 }
 0x87b   : > { %14896 = vmatpush3.bf16.msra.mxu1 %v14895_v12  ;;  %14504 = vmatprep.mubr.msk.f32.mxu1 %vm16852_vm6, %v20815_v30  ;;  %v11364_v44 = vsel %vm2665_vm9, %v16543_v55, %v16544_v9  ;;  %v11363_v23 = vsel %vm2665_vm9, %v16554_v19, %v16543_v55  ;;  %v11365_v38 = vsel %vm2665_vm9, %v16544_v9, %v16564_v45 }
 0x87c   : > { %v16557_v53 = vpop.permute.xlu1 %16556  ;;  %v21213_v37 = vpop.permute.xlu0 %16571  ;;  %14897 = vmatprep.subr.bf16.mxu1 %v16851_v51 }
 0x87d   : > { %v16559_v14 = vunpack.i.h.bf16 %v16557_v53  ;;  %v16558_v15 = vunpack.i.l.bf16 %v16557_v53  ;;  %v16574_v5 = vunpack.i.h.bf16 %v21213_v37  ;;  %v16573_v25 = vunpack.i.l.bf16 %v21213_v37 }
 0x87f   : > { %14899 = vmatpush3.bf16.msra.mxu1 %v14898_v26  ;;  %v11359_v11 = vsel %vm2665_vm9, %v16534_v39, %v16559_v14  ;;  %v11356_v7 = vsel %vm2665_vm9, %v16529_v41, %v16558_v15  ;;  %v11563_v33 = vsel %vm3535_vm12, %v16573_v25, %v16574_v5 }
 0x880   : > { %v21225_v24 = vpop.permute.xlu1 %16566  ;;  %v16587_v56 = vpop.permute.xlu0 %16586  ;;  %14901 = vmatprep.subr.bf16.mxu1 %v14900_v52  ;;  %v14909_v34 = vpack.c.bf16 %v11359_v11, %v11356_v7 }
 0x881   : > { %v16589_v43 = vunpack.i.h.bf16 %v16587_v56  ;;  %v16588_v61 = vunpack.i.l.bf16 %v16587_v56  ;;  %v16569_v29 = vunpack.i.h.bf16 %v21225_v24  ;;  %v16568_v35 = vunpack.i.l.bf16 %v21225_v24 }
 0x882   : > { %14505 = vmatmul.mubr.msk.f32.vlgmr.msra.gmra.mrb[26].mxu1 %vm3825_vm13, %v10885_v62 }
 0x883   : > { %v11360_v50 = vsel %vm2665_vm9, %v16553_v49, %v16588_v61  ;;  %v11361_v47 = vsel %vm2665_vm9, %v16588_v61, %v16589_v43  ;;  %14903 = vmatpush1.bf16.msra.mxu1 %v14902_v8  ;;  %11445 = vmatprep.mubr.f32.mxu1 %v20815_v30  ;;  %v11362_v16 = vsel %vm2665_vm9, %v16589_v43, %v16563_v22  ;;  %v13539_v61 = vld [vmem:[%s21454_s6 + $0xc] sm:$0xf] }
 0x884   : > { %v16577_v54 = vpop.permute.xlu1 %16576  ;;  %v16592_v31 = vpop.permute.xlu0 %16591  ;;  %v14904_v1 = vpack.c.bf16 %v11364_v44, %v11361_v47  ;;  %v14906_v48 = vpack.c.bf16 %v11363_v23, %v11360_v50  ;;  %v11560_v0 = vsel %vm3535_vm12, %v16568_v35, %v16569_v29  ;;  %v14912_v2 = vpack.c.bf16 %v11365_v38, %v11362_v16 }
 0x885   : > { %v16579_v28 = vunpack.i.h.bf16 %v16577_v54  ;;  %v16578_v10 = vunpack.i.l.bf16 %v16577_v54  ;;  %v14914_v6 = vpack.c.bf16 %v11563_v33, %v11560_v0  ;;  %v16593_v12 = vunpack.i.l.bf16 %v16592_v31 }
 0x886   : > { %14905 = vmatprep.subr.bf16.mxu1 %v14904_v1  ;;  %v16594_v32 = vunpack.i.h.bf16 %v16592_v31 }
 0x887   : > { %14907 = vmatpush1.bf16.msra.mxu1 %v14906_v48  ;;  %v11562_v41 = vsel %vm3535_vm12, %v16579_v28, %v16573_v25  ;;  %v11559_v60 = vsel %vm3535_vm12, %v16578_v10, %v16568_v35 }
 0x888   : > { %v21235_v63 = vpop.permute.xlu1 %16581  ;;  %v21237_v18 = vpop.permute.xlu0 %16601  ;;  %14908 = vmatprep.subr.bf16.mxu1 %v16851_v51  ;;  %v14916_v36 = vpack.c.bf16 %v11562_v41, %v11559_v60 }
 0x889   : > { %v16584_v13 = vunpack.i.h.bf16 %v21235_v63  ;;  %v16583_v40 = vunpack.i.l.bf16 %v21235_v63  ;;  %v16604_v19 = vunpack.i.h.bf16 %v21237_v18  ;;  %v16603_v8 = vunpack.i.l.bf16 %v21237_v18 }
 0x88a   : > { %13537 = vmatmul.mubr.msk.f32.vlgmr.msra.gmra.mrb[22].mxu1 %vm3825_vm13, %v13536_v3 }
 0x88b   : > { %14910 = vmatpush3.bf16.msra.mxu1 %v14909_v34  ;;  %14515 = vmatprep.mubr.msk.f32.mxu1 %vm16852_vm6, %v20815_v30  ;;  %v11569_v37 = vsel %vm3535_vm12, %v16583_v40, %v16584_v13  ;;  %v11568_v42 = vsel %vm3535_vm12, %v16594_v32, %v16583_v40  ;;  %v11570_v48 = vsel %vm3535_vm12, %v16584_v13, %v16604_v19 }
 0x88c   : > { %v16597_v58 = vpop.permute.xlu1 %16596  ;;  %v21251_v4 = vpop.permute.xlu0 %16611  ;;  %14911 = vmatprep.subr.bf16.mxu1 %v16851_v51 }
 0x88d   : > { %v16599_v20 = vunpack.i.h.bf16 %v16597_v58  ;;  %v16598_v26 = vunpack.i.l.bf16 %v16597_v58  ;;  %v16614_v47 = vunpack.i.h.bf16 %v21251_v4  ;;  %v16613_v44 = vunpack.i.l.bf16 %v21251_v4 }
 0x88f   : > { %14913 = vmatpush3.bf16.msra.mxu1 %v14912_v2  ;;  %v11564_v17 = vsel %vm3535_vm12, %v16574_v5, %v16599_v20  ;;  %v11561_v24 = vsel %vm3535_vm12, %v16569_v29, %v16598_v26  ;;  %v11768_v18 = vsel %vm3825_vm13, %v16613_v44, %v16614_v47 }
 0x890   : > { %v21263_v62 = vpop.permute.xlu1 %16606  ;;  %v16627_v27 = vpop.permute.xlu0 %16626  ;;  %14915 = vmatprep.subr.bf16.mxu1 %v14914_v6  ;;  %v14923_v50 = vpack.c.bf16 %v11564_v17, %v11561_v24 }
 0x891   : > { %v16629_v39 = vunpack.i.h.bf16 %v16627_v27  ;;  %v16628_v59 = vunpack.i.l.bf16 %v16627_v27  ;;  %v16609_v49 = vunpack.i.h.bf16 %v21263_v62  ;;  %v16608_v43 = vunpack.i.l.bf16 %v21263_v62 }
 0x892   : > { %14516 = vmatmul.mubr.msk.f32.vlgmr.msra.gmra.mrb[28].mxu1 %vm3825_vm13, %v13536_v3 }
 0x893   : > { %v11565_v57 = vsel %vm3535_vm12, %v16593_v12, %v16628_v59  ;;  %v11566_v53 = vsel %vm3535_vm12, %v16628_v59, %v16629_v39  ;;  %14917 = vmatpush1.bf16.msra.mxu1 %v14916_v36  ;;  %11650 = vmatprep.mubr.f32.mxu1 %v20815_v30  ;;  %v11567_v23 = vsel %vm3535_vm12, %v16629_v39, %v16603_v8  ;;  %v13542_v59 = vld [vmem:[%s21454_s6 + $0x10] sm:$0xf] }
 0x894   : > { %v16617_v9 = vpop.permute.xlu1 %16616  ;;  %v16632_v55 = vpop.permute.xlu0 %16631  ;;  %v14918_v46 = vpack.c.bf16 %v11569_v37, %v11566_v53  ;;  %v14920_v21 = vpack.c.bf16 %v11568_v42, %v11565_v57  ;;  %v11765_v1 = vsel %vm3825_vm13, %v16608_v43, %v16609_v49  ;;  %v14926_v11 = vpack.c.bf16 %v11570_v48, %v11567_v23 }
 0x895   : > { %v16619_v14 = vunpack.i.h.bf16 %v16617_v9  ;;  %v16618_v15 = vunpack.i.l.bf16 %v16617_v9  ;;  %v14928_v22 = vpack.c.bf16 %v11768_v18, %v11765_v1  ;;  %v16633_v34 = vunpack.i.l.bf16 %v16632_v55 }
 0x896   : > { %14919 = vmatprep.subr.bf16.mxu1 %v14918_v46  ;;  %v16634_v16 = vunpack.i.h.bf16 %v16632_v55 }
 0x897   : > { %14921 = vmatpush1.bf16.msra.mxu1 %v14920_v21  ;;  %v11767_v29 = vsel %vm3825_vm13, %v16619_v14, %v16613_v44  ;;  %v11764_v35 = vsel %vm3825_vm13, %v16618_v15, %v16608_v43 }
 0x898   : > { %v21273_v56 = vpop.permute.xlu1 %16621  ;;  %v21275_v52 = vpop.permute.xlu0 %16641  ;;  %14922 = vmatprep.subr.bf16.mxu1 %v16851_v51  ;;  %v14930_v28 = vpack.c.bf16 %v11767_v29, %v11764_v35 }
 0x899   : > { %v16624_v7 = vunpack.i.h.bf16 %v21273_v56  ;;  %v16623_v63 = vunpack.i.l.bf16 %v21273_v56  ;;  %v16644_v32 = vunpack.i.h.bf16 %v21275_v52  ;;  %v16643_v36 = vunpack.i.l.bf16 %v21275_v52 }
 0x89a   : > { %13540 = vmatmul.mubr.msk.f32.vlgmr.msra.gmra.mrb[22].mxu1 %vm3825_vm13, %v13539_v61 }
 0x89b   : > { %14924 = vmatpush3.bf16.msra.mxu1 %v14923_v50  ;;  %14526 = vmatprep.mubr.msk.f32.mxu1 %vm16852_vm6, %v20815_v30  ;;  %v11774_v4 = vsel %vm3825_vm13, %v16623_v63, %v16624_v7  ;;  %v11773_v0 = vsel %vm3825_vm13, %v16634_v16, %v16623_v63  ;;  %v11775_v21 = vsel %vm3825_vm13, %v16624_v7, %v16644_v32 }
 0x89c   : > { %v16637_v54 = vpop.permute.xlu1 %16636  ;;  %v21289_v31 = vpop.permute.xlu0 %16651  ;;  %14925 = vmatprep.subr.bf16.mxu1 %v16851_v51 }
 0x89d   : > { %v16639_v38 = vunpack.i.h.bf16 %v16637_v54  ;;  %v16638_v2 = vunpack.i.l.bf16 %v16637_v54  ;;  %v16654_v53 = vunpack.i.h.bf16 %v21289_v31  ;;  %v16653_v37 = vunpack.i.l.bf16 %v21289_v31 }
 0x89f   : > { %14927 = vmatpush3.bf16.msra.mxu1 %v14926_v11  ;;  %v11769_v60 = vsel %vm3825_vm13, %v16614_v47, %v16639_v38  ;;  %v11766_v62 = vsel %vm3825_vm13, %v16609_v49, %v16638_v2  ;;  %v11973_v52 = vsel %vm4115_vm14, %v16653_v37, %v16654_v53 }
 0x8a0   : > { %v21301_v3 = vpop.permute.xlu1 %16646  ;;  %v16667_v45 = vpop.permute.xlu0 %16666  ;;  %14929 = vmatprep.subr.bf16.mxu1 %v14928_v22  ;;  %v14937_v57 = vpack.c.bf16 %v11769_v60, %v11766_v62 }
 0x8a1   : > { %v16669_v5 = vunpack.i.h.bf16 %v16667_v45  ;;  %v16668_v25 = vunpack.i.l.bf16 %v16667_v45  ;;  %v16649_v12 = vunpack.i.h.bf16 %v21301_v3  ;;  %v16648_v39 = vunpack.i.l.bf16 %v21301_v3 }
 0x8a2   : > { %14527 = vmatmul.mubr.msk.f32.vlgmr.msra.gmra.mrb[30].mxu1 %vm3825_vm13, %v13539_v61 }
 0x8a3   : > { %v11770_v10 = vsel %vm3825_vm13, %v16633_v34, %v16668_v25  ;;  %v11771_v58 = vsel %vm3825_vm13, %v16668_v25, %v16669_v5  ;;  %14931 = vmatpush1.bf16.msra.mxu1 %v14930_v28  ;;  %11855 = vmatprep.mubr.f32.mxu1 %v20815_v30  ;;  %v11772_v42 = vsel %vm3825_vm13, %v16669_v5, %v16643_v36  ;;  %v13545_v28 = vld [vmem:[%s21454_s6 + $0x14] sm:$0xf] }
 0x8a4   : > { %v16657_v13 = vpop.permute.xlu1 %16656  ;;  %v16672_v40 = vpop.permute.xlu0 %16671  ;;  %v14932_v33 = vpack.c.bf16 %v11774_v4, %v11771_v58  ;;  %v14934_v41 = vpack.c.bf16 %v11773_v0, %v11770_v10  ;;  %v11970_v46 = vsel %vm4115_vm14, %v16648_v39, %v16649_v12  ;;  %v14940_v17 = vpack.c.bf16 %v11775_v21, %v11772_v42 }
 0x8a5   : > { %v16659_v20 = vunpack.i.h.bf16 %v16657_v13  ;;  %v16658_v26 = vunpack.i.l.bf16 %v16657_v13  ;;  %v14942_v8 = vpack.c.bf16 %v11973_v52, %v11970_v46  ;;  %v16673_v50 = vunpack.i.l.bf16 %v16672_v40 }
 0x8a6   : > { %14933 = vmatprep.subr.bf16.mxu1 %v14932_v33  ;;  %v16674_v23 = vunpack.i.h.bf16 %v16672_v40 }
 0x8a7   : > { %14935 = vmatpush1.bf16.msra.mxu1 %v14934_v41  ;;  %v11972_v49 = vsel %vm4115_vm14, %v16659_v20, %v16653_v37  ;;  %v11969_v43 = vsel %vm4115_vm14, %v16658_v26, %v16648_v39 }
 0x8a8   : > { %v21311_v27 = vpop.permute.xlu1 %16661  ;;  %v21313_v6 = vpop.permute.xlu0 %16681  ;;  %14936 = vmatprep.subr.bf16.mxu1 %v16851_v51  ;;  %v14944_v14 = vpack.c.bf16 %v11972_v49, %v11969_v43 }
 0x8a9   : > { %v16664_v24 = vunpack.i.h.bf16 %v21311_v27  ;;  %v16663_v56 = vunpack.i.l.bf16 %v21311_v27  ;;  %v16684_v34 = vunpack.i.h.bf16 %v21313_v6  ;;  %v16683_v5 = vunpack.i.l.bf16 %v21313_v6 }
 0x8aa   : > { %13543 = vmatmul.mubr.msk.f32.vlgmr.msra.gmra.mrb[22].mxu1 %vm3825_vm13, %v13542_v59 }
 0x8ab   : > { %14938 = vmatpush3.bf16.msra.mxu1 %v14937_v57  ;;  %14537 = vmatprep.mubr.msk.f32.mxu1 %vm16852_vm6, %v20815_v30  ;;  %v11979_v31 = vsel %vm4115_vm14, %v16663_v56, %v16664_v24  ;;  %v11978_v1 = vsel %vm4115_vm14, %v16674_v23, %v16663_v56  ;;  %v11980_v33 = vsel %vm4115_vm14, %v16664_v24, %v16684_v34 }
 0x8ac   : > { %v16677_v9 = vpop.permute.xlu1 %16676  ;;  %v21327_v55 = vpop.permute.xlu0 %16691  ;;  %14939 = vmatprep.subr.bf16.mxu1 %v16851_v51 }
 0x8ad   : > { %v16679_v48 = vunpack.i.h.bf16 %v16677_v9  ;;  %v16678_v11 = vunpack.i.l.bf16 %v16677_v9  ;;  %v16694_v10 = vunpack.i.h.bf16 %v21327_v55  ;;  %v16693_v58 = vunpack.i.l.bf16 %v21327_v55 }
 0x8af   : > { %14941 = vmatpush3.bf16.msra.mxu1 %v14940_v17  ;;  %v11974_v35 = vsel %vm4115_vm14, %v16654_v53, %v16679_v48  ;;  %v11971_v3 = vsel %vm4115_vm14, %v16649_v12, %v16678_v11  ;;  %v12178_v62 = vsel %vm4985_vm2, %v16693_v58, %v16694_v10  ;;  %v13548_v11 = vld [vmem:[%s21454_s6 + $0x18] sm:$0xf] }
 0x8b0   : > { %v21339_v61 = vpop.permute.xlu1 %16686  ;;  %v16707_v19 = vpop.permute.xlu0 %16706  ;;  %14943 = vmatprep.subr.bf16.mxu1 %v14942_v8  ;;  %v14951_v4 = vpack.c.bf16 %v11974_v35, %v11971_v3 }
 0x8b1   : > { %v16709_v47 = vunpack.i.h.bf16 %v16707_v19  ;;  %v16708_v44 = vunpack.i.l.bf16 %v16707_v19  ;;  %v16689_v25 = vunpack.i.h.bf16 %v21339_v61  ;;  %v16688_v16 = vunpack.i.l.bf16 %v21339_v61 }
 0x8b2   : > { %14538 = vmatmul.mubr.msk.f32.vlgmr.msra.gmra.mrb[32].mxu1 %vm3825_vm13, %v13542_v59 }
 0x8b3   : > { %v11975_v15 = vsel %vm4115_vm14, %v16673_v50, %v16708_v44  ;;  %v11976_v54 = vsel %vm4115_vm14, %v16708_v44, %v16709_v47  ;;  %14945 = vmatpush1.bf16.msra.mxu1 %v14944_v14  ;;  %12060 = vmatprep.mubr.f32.mxu1 %v20815_v30  ;;  %v11977_v0 = vsel %vm4115_vm14, %v16709_v47, %v16683_v5 }
 0x8b4   : > { %v16697_v7 = vpop.permute.xlu1 %16696  ;;  %v16712_v63 = vpop.permute.xlu0 %16711  ;;  %v14946_v18 = vpack.c.bf16 %v11979_v31, %v11976_v54  ;;  %v14948_v29 = vpack.c.bf16 %v11978_v1, %v11975_v15  ;;  %v12175_v41 = vsel %vm4985_vm2, %v16688_v16, %v16689_v25  ;;  %v14954_v60 = vpack.c.bf16 %v11980_v33, %v11977_v0 }
 0x8b5   : > { %v16699_v38 = vunpack.i.h.bf16 %v16697_v7  ;;  %v16698_v2 = vunpack.i.l.bf16 %v16697_v7  ;;  %v14956_v36 = vpack.c.bf16 %v12178_v62, %v12175_v41  ;;  %v16714_v57 = vunpack.i.h.bf16 %v16712_v63 }
 0x8b6   : > { %14947 = vmatprep.subr.bf16.mxu1 %v14946_v18  ;;  %v16713_v53 = vunpack.i.l.bf16 %v16712_v63 }
 0x8b7   : > { %14949 = vmatpush1.bf16.msra.mxu1 %v14948_v29  ;;  %v12177_v27 = vsel %vm4985_vm2, %v16699_v38, %v16693_v58  ;;  %v12174_v6 = vsel %vm4985_vm2, %v16698_v2, %v16688_v16 }
 0x8b8   : > { %v21349_v45 = vpop.permute.xlu1 %16701  ;;  %v21351_v22 = vpop.permute.xlu0 %16721  ;;  %14950 = vmatprep.subr.bf16.mxu1 %v16851_v51  ;;  %v14958_v20 = vpack.c.bf16 %v12177_v27, %v12174_v6 }
 0x8b9   : > { %v16704_v12 = vunpack.i.h.bf16 %v21349_v45  ;;  %v16703_v39 = vunpack.i.l.bf16 %v21349_v45  ;;  %v16724_v7 = vunpack.i.h.bf16 %v21351_v22  ;;  %v16723_v63 = vunpack.i.l.bf16 %v21351_v22 }
 0x8ba   : > { %13546 = vmatmul.mubr.msk.f32.vlgmr.msra.gmra.mrb[22].mxu1 %vm3825_vm13, %v13545_v28 }
 0x8bb   : > { %14952 = vmatpush3.bf16.msra.mxu1 %v14951_v4  ;;  %14548 = vmatprep.mubr.msk.f32.mxu1 %vm16852_vm6, %v20815_v30  ;;  %v12183_v26 = vsel %vm4985_vm2, %v16714_v57, %v16703_v39  ;;  %v12184_v46 = vsel %vm4985_vm2, %v16703_v39, %v16704_v12 }
 0x8bc   : > { %v16717_v13 = vpop.permute.xlu1 %16716  ;;  %v21365_v40 = vpop.permute.xlu0 %16731  ;;  %14953 = vmatprep.subr.bf16.mxu1 %v16851_v51 }
 0x8bd   : > { %v16719_v21 = vunpack.i.h.bf16 %v16717_v13  ;;  %v16718_v17 = vunpack.i.l.bf16 %v16717_v13  ;;  %v16734_v24 = vunpack.i.h.bf16 %v21365_v40  ;;  %v16733_v29 = vunpack.i.l.bf16 %v21365_v40 }
 0x8bf   : > { %14955 = vmatpush3.bf16.msra.mxu1 %v14954_v60  ;;  %v12179_v44 = vsel %vm4985_vm2, %v16694_v10, %v16719_v21  ;;  %v12176_v23 = vsel %vm4985_vm2, %v16689_v25, %v16718_v17  ;;  %v12383_v4 = vsel %vm408_vm1, %v16733_v29, %v16734_v24 }
 0x8c0   : > { %v16727_v59 = vpop.permute.xlu1 %16726  ;;  %v16742_v32 = vpop.permute.xlu0 %16741  ;;  %14957 = vmatprep.subr.bf16.mxu1 %v14956_v36  ;;  %v14965_v18 = vpack.c.bf16 %v12179_v44, %v12176_v23 }
 0x8c1   : > { %v16744_v37 = vunpack.i.h.bf16 %v16742_v32  ;;  %v16743_v42 = vunpack.i.l.bf16 %v16742_v32  ;;  %v16729_v43 = vunpack.i.h.bf16 %v16727_v59  ;;  %v16728_v14 = vunpack.i.l.bf16 %v16727_v59 }
 0x8c2   : > { %14549 = vmatmul.mubr.msk.f32.vlgmr.msra.gmra.mrb[34].mxu1 %vm3825_vm13, %v13545_v28  ;;  %v12185_v28 = vsel %vm4985_vm2, %v16704_v12, %v16724_v7 }
 0x8c3   : > { %v12180_v9 = vsel %vm4985_vm2, %v16713_v53, %v16743_v42  ;;  %v12181_v55 = vsel %vm4985_vm2, %v16743_v42, %v16744_v37  ;;  %14959 = vmatpush1.bf16.msra.mxu1 %v14958_v20  ;;  %12265 = vmatprep.mubr.f32.mxu1 %v20815_v30  ;;  %v12182_v35 = vsel %vm4985_vm2, %v16744_v37, %v16723_v63 }
 0x8c4   : > { %v16737_v56 = vpop.permute.xlu1 %16736  ;;  %v16747_v52 = vpop.permute.xlu0 %16746  ;;  %v14960_v49 = vpack.c.bf16 %v12184_v46, %v12181_v55  ;;  %v14962_v61 = vpack.c.bf16 %v12183_v26, %v12180_v9  ;;  %v12380_v34 = vsel %vm408_vm1, %v16728_v14, %v16729_v43  ;;  %v14968_v10 = vpack.c.bf16 %v12185_v28, %v12182_v35  ;;  %v13554_v28 = vld [vmem:[%s21454_s6 + $0x20] sm:$0xf] }
 0x8c5   : > { %v16749_v19 = vunpack.i.h.bf16 %v16747_v52  ;;  %v16748_v8 = vunpack.i.l.bf16 %v16747_v52  ;;  %v16739_v1 = vunpack.i.h.bf16 %v16737_v56  ;;  %v16738_v48 = vunpack.i.l.bf16 %v16737_v56  ;;  %v13551_v52 = vld [vmem:[%s21454_s6 + $0x1c] sm:$0xf] }
 0x8c6   : > { %14961 = vmatprep.subr.bf16.mxu1 %v14960_v49  ;;  %v14970_v40 = vpack.c.bf16 %v12383_v4, %v12380_v34 }
 0x8c7   : > { %v12381_v50 = vsel %vm408_vm1, %v16729_v43, %v16748_v8  ;;  %v12384_v47 = vsel %vm408_vm1, %v16734_v24, %v16749_v19  ;;  %14963 = vmatpush1.bf16.msra.mxu1 %v14962_v61  ;;  %v12382_v5 = vsel %vm408_vm1, %v16739_v1, %v16733_v29  ;;  %v12379_v22 = vsel %vm408_vm1, %v16738_v48, %v16728_v14 }
 0x8c8   : > { %v14979_v15 = vpack.c.bf16 %v12384_v47, %v12381_v50  ;;  %v16757_v54 = vpop.permute.xlu1 %16756  ;;  %v16752_v31 = vpop.permute.xlu0 %16751  ;;  %14964 = vmatprep.subr.bf16.mxu1 %v16851_v51  ;;  %v14972_v0 = vpack.c.bf16 %v12382_v5, %v12379_v22 }
 0x8c9   : > { %v16754_v25 = vunpack.i.h.bf16 %v16752_v31  ;;  %v16753_v16 = vunpack.i.l.bf16 %v16752_v31  ;;  %v16759_v38 = vunpack.i.h.bf16 %v16757_v54  ;;  %v16758_v2 = vunpack.i.l.bf16 %v16757_v54 }
 0x8ca   : > { %14980 = vmatpush3.bf16.msra.mxu0 %v14979_v15  ;;  %13549 = vmatmul.mubr.msk.f32.vlgmr.msra.gmra.mrb[22].mxu1 %vm3825_vm13, %v13548_v11 }
 0x8cb   : > { %14981 = vmatprep.subr.bf16.mxu0 %v16851_v51  ;;  %14966 = vmatpush3.bf16.msra.mxu1 %v14965_v18  ;;  %v12389_v27 = vsel %vm408_vm1, %v16753_v16, %v16754_v25  ;;  %v12388_v37 = vsel %vm408_vm1, %v16759_v38, %v16753_v16 }
 0x8cc   : > { %v16767_v3 = vpop.permute.xlu1 %16766  ;;  %v16762_v45 = vpop.permute.xlu0 %16761  ;;  %14559 = vmatprep.mubr.msk.f32.mxu1 %vm16852_vm6, %v20815_v30  ;;  %14967 = vmatprep.subr.bf16.mxu1 %v16851_v51 }
 0x8cd   : > { %v16764_v58 = vunpack.i.h.bf16 %v16762_v45  ;;  %v16763_v33 = vunpack.i.l.bf16 %v16762_v45  ;;  %v16769_v6 = vunpack.i.h.bf16 %v16767_v3  ;;  %v16768_v12 = vunpack.i.l.bf16 %v16767_v3 }
 0x8cf   : > { %14969 = vmatpush3.bf16.msra.mxu1 %v14968_v10  ;;  %v12390_v32 = vsel %vm408_vm1, %v16754_v25, %v16764_v58  ;;  %v12585_v61 = vsel %vm5564_vm3, %v16768_v12, %v16769_v6 }
 0x8d0   : > { %v16777_v13 = vpop.permute.xlu1 %16776  ;;  %14971 = vmatprep.subr.bf16.mxu1 %v14970_v40 }
 0x8d1   : > { %v16779_v41 = vunpack.i.h.bf16 %v16777_v13  ;;  %v16778_v60 = vunpack.i.l.bf16 %v16777_v13  ;;  %v16772_v62 = vpop.permute.xlu0 %16771 }
 0x8d2   : > { %v16774_v39 = vunpack.i.h.bf16 %v16772_v62  ;;  %v16773_v59 = vunpack.i.l.bf16 %v16772_v62  ;;  %14560 = vmatmul.mubr.msk.f32.vlgmr.msra.gmra.mrb[36].mxu1 %vm3825_vm13, %v13548_v11 }
 0x8d3   : > { %v12387_v36 = vsel %vm408_vm1, %v16779_v41, %v16763_v33  ;;  %v12385_v57 = vsel %vm408_vm1, %v16758_v2, %v16778_v60  ;;  %v12386_v53 = vsel %vm408_vm1, %v16778_v60, %v16779_v41  ;;  %14973 = vmatpush1.bf16.msra.mxu1 %v14972_v0  ;;  %12470 = vmatprep.mubr.f32.mxu1 %v20815_v30 }
 0x8d4   : > { %v14982_v42 = vpack.c.bf16 %v12390_v32, %v12387_v36  ;;  %v16782_v20 = vpop.permute.xlu1 %16781  ;;  %v14974_v26 = vpack.c.bf16 %v12389_v27, %v12386_v53  ;;  %v14976_v9 = vpack.c.bf16 %v12388_v37, %v12385_v57  ;;  %v12588_v17 = vsel %vm5564_vm3, %v16773_v59, %v16774_v39 }
 0x8d5   : > { %v16784_v55 = vunpack.i.h.bf16 %v16782_v20  ;;  %v16783_v46 = vunpack.i.l.bf16 %v16782_v20  ;;  %v16787_v21 = vpop.permute.xlu0 %16786  ;;  %v14984_v47 = vpack.c.bf16 %v12588_v17, %v12585_v61 }
 0x8d6   : > { %v16789_v24 = vunpack.i.h.bf16 %v16787_v21  ;;  %v16788_v56 = vunpack.i.l.bf16 %v16787_v21  ;;  %14975 = vmatprep.subr.bf16.mxu1 %v14974_v26  ;;  %14983 = vmatpush3.bf16.msra.mxu0 %v14982_v42 }
 0x8d7   : > { %v12587_v49 = vsel %vm5564_vm3, %v16784_v55, %v16773_v59  ;;  %v12584_v43 = vsel %vm5564_vm3, %v16783_v46, %v16768_v12  ;;  %14992 = vmatprep.subr.bf16.mxu0 %v16851_v51  ;;  %14977 = vmatpush1.bf16.msra.mxu1 %v14976_v9 }
 0x8d8   : > { %v12586_v19 = vsel %vm5564_vm3, %v16769_v6, %v16788_v56  ;;  %v12589_v8 = vsel %vm5564_vm3, %v16774_v39, %v16789_v24  ;;  %v16797_v50 = vpop.permute.xlu1 %16796  ;;  %v14986_v44 = vpack.c.bf16 %v12587_v49, %v12584_v43  ;;  %14985 = vmatprep.subr.bf16.mxu1 %v14984_v47 }
 0x8d9   : > { %v14993_v23 = vpack.c.bf16 %v12589_v8, %v12586_v19  ;;  %v16799_v14 = vunpack.i.h.bf16 %v16797_v50  ;;  %v16798_v15 = vunpack.i.l.bf16 %v16797_v50  ;;  %v16792_v54 = vpop.permute.xlu0 %16791  ;;  %14571 = vmatmul.mubr.msk.f32.vlgmr.msra.gmra.mrb[16].mxu0 %vm3825_vm13, %v13551_v52 }
 0x8da   : > { %v16794_v31 = vunpack.i.h.bf16 %v16792_v54  ;;  %v16793_v1 = vunpack.i.l.bf16 %v16792_v54  ;;  %14581 = vmatprep.mubr.msk.f32.mxu0 %vm16852_vm6, %v20815_v30  ;;  %13552 = vmatmul.mubr.msk.f32.vlgmr.msra.gmra.mrb[22].mxu1 %vm3825_vm13, %v13551_v52 }
 0x8db   : > { %14994 = vmatpush3.bf16.msra.mxu0 %v14993_v23  ;;  %v12591_v48 = vsel %vm5564_vm3, %v16798_v15, %v16799_v14  ;;  %14987 = vmatpush1.bf16.msra.mxu1 %v14986_v44 }
 0x8dc   : > { %v16802_v11 = vpop.permute.xlu1 %16801  ;;  %v12594_v7 = vsel %vm5564_vm3, %v16793_v1, %v16794_v31  ;;  %14995 = vmatprep.subr.bf16.mxu0 %v16851_v51  ;;  %12675 = vmatprep.mubr.f32.mxu1 %v20815_v30 }
 0x8dd   : > { %v16804_v63 = vunpack.i.h.bf16 %v16802_v11  ;;  %v16803_v18 = vunpack.i.l.bf16 %v16802_v11  ;;  %v16807_v29 = vpop.permute.xlu0 %16806  ;;  %v14988_v35 = vpack.c.bf16 %v12594_v7, %v12591_v48 }
 0x8de   : > { %v16809_v3 = vunpack.i.h.bf16 %v16807_v29  ;;  %v16808_v45 = vunpack.i.l.bf16 %v16807_v29 }
 0x8df   : > { %v12593_v34 = vsel %vm5564_vm3, %v16804_v63, %v16793_v1  ;;  %v12590_v5 = vsel %vm5564_vm3, %v16803_v18, %v16798_v15  ;;  %14989 = vmatprep.subr.bf16.mxu1 %v14988_v35 }
 0x8e0   : > { %v14990_v22 = vpack.c.bf16 %v12593_v34, %v12590_v5  ;;  %v12592_v25 = vsel %vm5564_vm3, %v16799_v14, %v16808_v45  ;;  %v12595_v16 = vsel %vm5564_vm3, %v16794_v31, %v16809_v3 }
 0x8e1   : > { %v14996_v51 = vpack.c.bf16 %v12595_v16, %v12592_v25 }
 0x8e2   : > { %14991 = vmatpush1.bf16.msra.mxu1 %v14990_v22 }
 0x8e3   : > { %14997 = vmatpush3.bf16.msra.mxu0 %v14996_v51 }
 0x8e5   : > { %13555 = vmatmul.mubr.msk.f32.vlgmr.msra.gmra.mrb[22].mxu1 %vm3825_vm13, %v13554_v28 }
 0x8e6   : > { %14582 = vmatmul.mubr.msk.f32.vlgmr.msra.gmra.mrb[18].mxu0 %vm3825_vm13, %v13554_v28 }
 0x8ed   : > { %v12759_v42 = vpop.permute.xlu1 %12758 }
 0x945   : > { %v11116_v30 = vpop.f32.mrb[24].mxu1 }
 0x946   : > { %v14495_v10 = vpop.f32.mrb[25].mxu1 }
 0x955   : > { %v11316_v58 = vpop.f32.mrb[26].mxu1 }
 0x956   : > { %v11317_v4 = vadd.f32 %v11316_v58, %v11116_v30  ;;  %v14506_v0 = vpop.f32.mrb[27].mxu1 }
 0x965   : > { %v11518_v38 = vpop.f32.mrb[28].mxu1 }
 0x966   : > { %v11524_v2 = vadd.f32 %v11518_v38, %v11317_v4  ;;  %v14517_v13 = vpop.f32.mrb[29].mxu1 }
 0x975   : > { %v11723_v40 = vpop.f32.mrb[30].mxu1 }
 0x976   : > { %v11729_v33 = vadd.f32 %v11723_v40, %v11524_v2  ;;  %v14528_v41 = vpop.f32.mrb[31].mxu1 }
 0x985   : > { %v11928_v60 = vpop.f32.mrb[32].mxu1 }
 0x986   : > { %v11934_v62 = vadd.f32 %v11928_v60, %v11729_v33  ;;  %v14539_v27 = vpop.f32.mrb[33].mxu1 }
 0x995   : > { %v12133_v6 = vpop.f32.mrb[34].mxu1 }
 0x996   : > { %v12139_v12 = vadd.f32 %v12133_v6, %v11934_v62  ;;  %v14550_v39 = vpop.f32.mrb[35].mxu1 }
 0x9a5   : > { %v12338_v59 = vpop.f32.mrb[36].mxu1 }
 0x9a6   : > { %v12344_v32 = vadd.f32 %v12338_v59, %v12139_v12  ;;  %v14561_v36 = vpop.f32.mrb[37].mxu1 }
 0x9ac   : > { %v12543_v57 = vpop.f32.mrb[16].mxu0 }
 0x9ad   : > { %v12549_v53 = vadd.f32 %v12543_v57, %v12344_v32  ;;  %v14572_v37 = vpop.f32.mrb[17].mxu0 }
 0x9b8   : > { %v12677_v20 = vpop.f32.mrb[22].mxu1 }
 0x9b9   : > { %v12761_v26 = vadd.f32 %v12759_v42, %v12677_v20  ;;  %v12679_v9 = vpop.f32.mrb[23].mxu1  ;;  %v12748_v55 = vpop.f32.mrb[18].mxu0 }
 0x9ba   : > { %v12762_v46 = vadd.f32 %v12759_v42, %v12679_v9  ;;  %v12754_v21 = vadd.f32 %v12748_v55, %v12549_v53  ;;  %v14583_v17 = vpop.f32.mrb[19].mxu0 }
 0x9bb   : > { %v12764_v24 = vmax.f32 %v12761_v26, 0.0 }
 0x9bc   : > { %v12765_v56 = vmax.f32 %v12762_v46, 0.0  ;;  %v12763_v52 = vadd.f32 %v12759_v42, %v12754_v21 }
 0x9be   : > { %v12769_v49 = vcombine.low %v12764_v24, %v12765_v56  ;;  %v12766_v43 = vmax.f32 %v12763_v52, 0.0 }
 0x9c0   : > { %12771 = vst [vmem:[%s305_s23] sm:$0xff] %v12769_v49  ;;  %12772 = vst [vmem:[%s305_s23 + $0x8] sm:$0xf] %v12766_v43 }
 0x9c1 PF: > { %s18_s27 = sadd.s32 1, %s16821_s27  }
 0x9c2   : > { %p15_p4 = scmp.ge.s32.totalorder %s18_s27, 4  }
 0x9c4   :  { %17 = sbr.rel (!%p15_p4) target bundleno = 1 (0x1), region = 122 }

</bundles_post_ra>
